<compile_context>
chip_gen: v7x
topology: tpu7x:2x2x1
jax: 0.10.0
libtpu: 0.0.40
codegen_flags: <defaults>
</compile_context>

<pallas_src>
import numpy as np
import jax
import jax.numpy as jnp
from jax import lax
from jax.experimental import pallas as pl
from jax.experimental.pallas import tpu as pltpu

# ---------------- synthetic Config() values ----------------
NEGATIVE_SLOPE = 0.2
NUM_HEADS = 4
OUTPUT_DIM = 32          # GAT out_features == state_dim fed into the FCN
DROPOUT = 0.1            # nn.Dropout -> identity at inference
HIDDEN_DIM = 32          # LSTM hidden size == GAT in_features
NUM_STOCKS = 16
WINDOW = 8
INPUT_DIM = 4
MID_DIM = 32
MID_LAYER_NUM = 1
STATE_DIM = OUTPUT_DIM
HEAD_F = OUTPUT_DIM // NUM_HEADS


def actor_ppo_kernel(x_ref, dg_ref, sg_ref,
                     wih_ref, whh_ref, blstm_ref,
                     ww_ref, bw_ref, wu_ref, wv_ref,
                     wcat_ref, bcat_ref, bgat_ref, wproj_ref, bproj_ref,
                     wf1_ref, bf1_ref, wf2_ref, bf2_ref, wf3_ref, bf3_ref,
                     out_ref):
    N = dg_ref.shape[0]
    NT, D = x_ref.shape                    # x is the flat (N*T, D) batch-first view
    T = NT // N
    LH = whh_ref.shape[0]
    G = 4 * LH
    H, HF = wu_ref.shape                   # wu_ref: (H, HF) block-row layout of weight_u
    F = HF // H
    bf16 = jnp.bfloat16

    # ---------------- LSTM (batch_first, 1 layer; keep only h_n) ----------------
    wih_b = wih_ref[...].astype(bf16)      # (D, 4*LH)
    whh_b = whh_ref[...].astype(bf16)      # (LH, 4*LH)

    # Hoisted input projection: one MXU pass over all timesteps, bias folded once.
    x_proj = (jnp.dot(x_ref[...].astype(bf16), wih_b,
                      preferred_element_type=jnp.float32)
              + blstm_ref[...])                         # (N*T, 4*LH)
    x_proj3 = x_proj.reshape(N, T, G)                   # row n*T + t -> [n, t, :]

    h = jnp.zeros((N, LH), jnp.float32)
    c = jnp.zeros((N, LH), jnp.float32)
    for t in range(T):                     # static unroll, WINDOW is small
        gates = x_proj3[:, t, :] + jnp.dot(h.astype(bf16), whh_b,
                                           preferred_element_type=jnp.float32)  # (N, 4*LH)
        # full-width nonlinearities, then slice torch gate order i, f, g, o
        sig = jax.nn.sigmoid(gates)
        th = jnp.tanh(gates)
        i_g = sig[:, 0 * LH:1 * LH]
        f_g = sig[:, 1 * LH:2 * LH]
        g_g = th[:, 2 * LH:3 * LH]
        o_g = sig[:, 3 * LH:4 * LH]
        c = f_g * c + i_g * g_g
        h = o_g * jnp.tanh(c)
    h_n = h                                # (N, LH) == torch h_n[0]

    # ---------------- DotProductAttention(h_n, h_n, h_n) (Dropout = identity) ----------
    h_n_b = h_n.astype(bf16)
    scores = lax.dot_general(h_n_b, h_n_b, (((1,), (1,)), ((), ())),
                             preferred_element_type=jnp.float32) * (1.0 / np.sqrt(LH))
    scores = scores - jnp.max(scores, axis=-1, keepdims=True)
    e = jnp.exp(scores)
    attn = e * pl.reciprocal(jnp.sum(e, axis=-1, keepdims=True), approx=True)
    h_att = jnp.dot(attn.astype(bf16), h_n_b,
                    preferred_element_type=jnp.float32)            # (N, LH)

    # ---------------- GAT multi-heads ----------------
    h_att_b = h_att.astype(bf16)
    score = (jnp.dot(h_att_b, ww_ref[...].astype(bf16),
                     preferred_element_type=jnp.float32) + bw_ref[...])   # (N, HF)
    score_b = score.astype(bf16)
    dg = dg_ref[...]
    sg = sg_ref[...]

    # f_1 / f_2 for all heads in two well-shaped matmuls:
    #   f1_t[h, j] = score_head_h[j] . u_h     (block-row weight_u layout, (H, HF))
    #   f2[i, h]   = score_head_h[i] . v_h     (block-col weight_v layout, (HF, H))
    f1_t = lax.dot_general(wu_ref[...].astype(bf16), score_b, (((1,), (1,)), ((), ())),
                           preferred_element_type=jnp.float32)            # (H, N)
    f2 = jnp.dot(score_b, wv_ref[...].astype(bf16),
                 preferred_element_type=jnp.float32)                      # (N, H)

    def masked_sparse_softmax(masked):
        # Emulates torch .to_sparse() + torch.sparse.softmax(dim=2) + .to_dense():
        # softmax over the nonzero entries of each row; zero entries stay zero;
        # fully-zero rows stay zero.  exp argument is clamped inside the mask to
        # avoid evaluating exp on huge values in masked lanes.
        mask = masked != 0.0
        rowmax = jnp.max(jnp.where(mask, masked, -1e30), axis=-1, keepdims=True)
        arg = jnp.where(mask, masked - rowmax, 0.0)
        ex = jnp.where(mask, jnp.exp(arg), 0.0)
        s = jnp.sum(ex, axis=-1, keepdims=True)
        return ex * pl.reciprocal(jnp.where(s > 0.0, s, 1.0), approx=True)

    s_sups = []
    d_sups = []
    for hd in range(H):
        sh_b = score_b[:, hd * F:(hd + 1) * F]               # (N, F) this head's features
        logits = f1_t[hd:hd + 1, :] + f2[:, hd:hd + 1]        # (N, N): f_1 + f_2 broadcast
        w = jnp.where(logits >= 0.0, logits, NEGATIVE_SLOPE * logits)     # LeakyReLU
        d_attn = masked_sparse_softmax(w * dg)
        s_attn = masked_sparse_softmax(w * sg)
        d_sups.append(jnp.dot(d_attn.astype(bf16), sh_b,
                              preferred_element_type=jnp.float32))        # (N, F)
        s_sups.append(jnp.dot(s_attn.astype(bf16), sh_b,
                              preferred_element_type=jnp.float32))        # (N, F)

    # cat([S_support, D_support], dim=1) -> single (N, 2HF) @ (2HF, HF) matmul
    full = jnp.concatenate(s_sups + d_sups, axis=1)           # (N, 2*HF)
    gat = (jnp.dot(full.astype(bf16), wcat_ref[...].astype(bf16),
                   preferred_element_type=jnp.float32)
           + bcat_ref[...] + bgat_ref[...]
           + jnp.dot(h_att_b, wproj_ref[...].astype(bf16),
                     preferred_element_type=jnp.float32)
           + bproj_ref[...])                                  # (N, HF)

    # ---------------- FCN head: Linear->ReLU->Linear->ReLU->Linear(->1) ----------------
    y = jnp.maximum(jnp.dot(gat.astype(bf16), wf1_ref[...].astype(bf16),
                            preferred_element_type=jnp.float32) + bf1_ref[...], 0.0)
    y = jnp.maximum(jnp.dot(y.astype(bf16), wf2_ref[...].astype(bf16),
                            preferred_element_type=jnp.float32) + bf2_ref[...], 0.0)
    # Final layer computed directly as a (1, N) row (wf3 kept in torch (1, MID) layout),
    # so the .transpose(1, 0) of the reference is free and the store is lane-dense.
    logit = lax.dot_general(wf3_ref[...].astype(bf16), y.astype(bf16),
                            (((1,), (1,)), ((), ())),
                            preferred_element_type=jnp.float32) + bf3_ref[...]   # (1, N)

    # softmax over the stock axis; exact divide keeps the output tightly normalized
    m = jnp.max(logit, axis=-1, keepdims=True)
    ez = jnp.exp(logit - m)
    out_ref[...] = ez / jnp.sum(ez, axis=-1, keepdims=True)


def actor_ppo_forward(params, state, drelation, sgraph):
    """Returns action of shape (1, num_stocks), matching ActorPPO.forward."""
    n, t, d = state.shape
    x_flat = state.reshape(n * t, d)       # free view of the batch-first layout (no transpose)
    args = [x_flat, drelation, sgraph,
            params["wih_t"], params["whh_t"], params["b_lstm"],
            params["ww_t"], params["bw"], params["wu_blk_t"], params["wv_blk"],
            params["wcat_t"], params["bcat"], params["bgat"],
            params["wproj_t"], params["bproj"],
            params["wf1_t"], params["bf1"], params["wf2_t"], params["bf2"],
            params["wf3"], params["bf3"]]
    vmem_spec = pl.BlockSpec(memory_space=pltpu.MemorySpace.VMEM)
    # NOTE: if this forward is ever run over a batch of states, add a leading grid axis with
    # dimension_semantics=("parallel",) so both v7x TensorCores are used.
    out = pl.pallas_call(
        actor_ppo_kernel,
        out_shape=jax.ShapeDtypeStruct((1, n), jnp.float32),
        in_specs=[vmem_spec] * len(args),
        out_specs=vmem_spec,
    )(*args)
    return out


def init_params(key):
    """Deterministic synthetic parameters (shapes follow the PyTorch module __init__)."""
    ks = jax.random.split(key, 20)

    def uni(k, shape, fan_in):
        b = 1.0 / np.sqrt(fan_in)
        return jax.random.uniform(k, shape, jnp.float32, -b, b)

    LH, D, H, F, HF = HIDDEN_DIM, INPUT_DIM, NUM_HEADS, HEAD_F, OUTPUT_DIM
    p = {}
    # LSTM(in=INPUT_DIM, hidden=HIDDEN_DIM) — torch weights (4H,in)/(4H,H), pre-transposed
    p["wih_t"] = uni(ks[0], (D, 4 * LH), LH)
    p["whh_t"] = uni(ks[1], (LH, 4 * LH), LH)
    p["b_lstm"] = uni(ks[2], (1, 4 * LH), LH) + uni(ks[3], (1, 4 * LH), LH)  # b_ih + b_hh
    # GAT_MultiHeads(in=HIDDEN_DIM, out=OUTPUT_DIM)
    p["ww_t"] = uni(ks[4], (LH, HF), LH)          # weight: Linear(LH, HF), pre-transposed
    p["bw"] = uni(ks[5], (1, HF), LH)
    wu = uni(ks[6], (H, F), F)                    # torch weight_u (H, F, 1) squeezed
    wv = uni(ks[7], (H, F), F)                    # torch weight_v (H, F, 1) squeezed
    # Block-diagonal expansions (built once here) so all heads' f_1/f_2 come from two
    # well-shaped matmuls instead of 8 degenerate ones inside the kernel.
    wu_blk_t = jnp.zeros((H, HF), jnp.float32)    # rows: head h occupies cols [h*F,(h+1)*F)
    wv_blk = jnp.zeros((HF, H), jnp.float32)      # cols: head h occupies rows [h*F,(h+1)*F)
    for h in range(H):
        wu_blk_t = wu_blk_t.at[h, h * F:(h + 1) * F].set(wu[h])
        wv_blk = wv_blk.at[h * F:(h + 1) * F, h].set(wv[h])
    p["wu_blk_t"] = wu_blk_t
    p["wv_blk"] = wv_blk
    p["wcat_t"] = uni(ks[8], (2 * HF, HF), 2 * HF)  # weight_cat: Linear(2HF, HF), pre-transposed
    p["bcat"] = uni(ks[9], (1, HF), 2 * HF)
    p["bgat"] = uni(ks[10], (1, HF), HF)            # GAT .bias parameter
    p["wproj_t"] = uni(ks[11], (LH, HF), LH)        # residual project: Linear(LH, HF)
    p["bproj"] = uni(ks[12], (1, HF), LH)
    # build_fcn(MID_DIM, MID_LAYER_NUM=1, inp=STATE_DIM, out=1)
    p["wf1_t"] = uni(ks[13], (STATE_DIM, MID_DIM), STATE_DIM)
    p["bf1"] = uni(ks[14], (1, MID_DIM), STATE_DIM)
    p["wf2_t"] = uni(ks[15], (MID_DIM, MID_DIM), MID_DIM)
    p["bf2"] = uni(ks[16], (1, MID_DIM), MID_DIM)
    p["wf3"] = uni(ks[17], (1, MID_DIM), MID_DIM)   # torch layout (out=1, in=MID) — used as-is
    p["bf3"] = uni(ks[18], (1, 1), MID_DIM)
    return p


if __name__ == "__main__":
    key = jax.random.PRNGKey(0)
    k_state, k_dg, k_sg, k_params = jax.random.split(key, 4)

    # state: (num_stocks, window, input_dim)
    state = jax.random.normal(k_state, (NUM_STOCKS, WINDOW, INPUT_DIM), jnp.float32)
    eye = jnp.eye(NUM_STOCKS, dtype=jnp.float32)
    # drelation (Dgraph) and the global SGRAPH: deterministic binary adjacency with self-loops
    drelation = jnp.maximum(
        jax.random.bernoulli(k_dg, 0.4, (NUM_STOCKS, NUM_STOCKS)).astype(jnp.float32), eye)
    SGRAPH = jnp.maximum(
        jax.random.bernoulli(k_sg, 0.6, (NUM_STOCKS, NUM_STOCKS)).astype(jnp.float32), eye)

    params = init_params(k_params)

    action = actor_ppo_forward(params, state, drelation, SGRAPH)
    action = jax.block_until_ready(action)

    assert action.shape == (1, NUM_STOCKS)
    a = np.asarray(action)
    assert np.isfinite(a).all()
    assert abs(float(a.sum()) - 1.0) < 1e-4   # softmax over stocks
    print("KERNEL_OK")
</pallas_src>

<mosaic_0001>
module attributes {stable_mosaic.version = 11 : i64} {
  func.func @actor_ppo_kernel(%arg0: memref<128x4xf32, #tpu.memory_space<vmem>>, %arg1: memref<16x16xf32, #tpu.memory_space<vmem>>, %arg2: memref<16x16xf32, #tpu.memory_space<vmem>>, %arg3: memref<4x128xf32, #tpu.memory_space<vmem>>, %arg4: memref<32x128xf32, #tpu.memory_space<vmem>>, %arg5: memref<1x128xf32, #tpu.memory_space<vmem>>, %arg6: memref<32x32xf32, #tpu.memory_space<vmem>>, %arg7: memref<1x32xf32, #tpu.memory_space<vmem>>, %arg8: memref<4x32xf32, #tpu.memory_space<vmem>>, %arg9: memref<32x4xf32, #tpu.memory_space<vmem>>, %arg10: memref<64x32xf32, #tpu.memory_space<vmem>>, %arg11: memref<1x32xf32, #tpu.memory_space<vmem>>, %arg12: memref<1x32xf32, #tpu.memory_space<vmem>>, %arg13: memref<32x32xf32, #tpu.memory_space<vmem>>, %arg14: memref<1x32xf32, #tpu.memory_space<vmem>>, %arg15: memref<32x32xf32, #tpu.memory_space<vmem>>, %arg16: memref<1x32xf32, #tpu.memory_space<vmem>>, %arg17: memref<32x32xf32, #tpu.memory_space<vmem>>, %arg18: memref<1x32xf32, #tpu.memory_space<vmem>>, %arg19: memref<1x32xf32, #tpu.memory_space<vmem>>, %arg20: memref<1x1xf32, #tpu.memory_space<vmem>>, %arg21: memref<1x16xf32, #tpu.memory_space<vmem>>) attributes {dimension_semantics = [], scalar_prefetch = 0 : i64, scratch_operands = 0 : i64, tpu.core_type = #tpu.core_type<tc>} {
    %c0 = arith.constant 0 : index
    %c0_0 = arith.constant 0 : index
    %0 = vector.load %arg3[%c0, %c0_0] : memref<4x128xf32, #tpu.memory_space<vmem>>, vector<4x128xf32>
    %1 = arith.truncf %0 : vector<4x128xf32> to vector<4x128xbf16>
    %c0_1 = arith.constant 0 : index
    %c0_2 = arith.constant 0 : index
    %2 = vector.load %arg4[%c0_1, %c0_2] : memref<32x128xf32, #tpu.memory_space<vmem>>, vector<32x128xf32>
    %3 = arith.truncf %2 : vector<32x128xf32> to vector<32x128xbf16>
    %c0_3 = arith.constant 0 : index
    %c0_4 = arith.constant 0 : index
    %4 = vector.load %arg0[%c0_3, %c0_4] : memref<128x4xf32, #tpu.memory_space<vmem>>, vector<128x4xf32>
    %5 = arith.truncf %4 : vector<128x4xf32> to vector<128x4xbf16>
    %cst = arith.constant dense<0.000000e+00> : vector<128x128xf32>
    %6 = tpu.matmul %5, %1, %cst {dimension_numbers = #tpu.dot_dimension_numbers<[1], [0], [0], [1], [0, 0, 1, 1], [], []>} : vector<128x4xbf16>, vector<4x128xbf16>, vector<128x128xf32> -> vector<128x128xf32>
    %c0_5 = arith.constant 0 : index
    %c0_6 = arith.constant 0 : index
    %7 = vector.load %arg5[%c0_5, %c0_6] : memref<1x128xf32, #tpu.memory_space<vmem>>, vector<1x128xf32>
    %8 = vector.broadcast %7 : vector<1x128xf32> to vector<128x128xf32>
    %9 = arith.addf %6, %8 : vector<128x128xf32>
    %10 = vector.shape_cast %9 : vector<128x128xf32> to vector<16x8x128xf32>
    %cst_7 = arith.constant 0.000000e+00 : f32
    %11 = vector.broadcast %cst_7 : f32 to vector<16x32xf32>
    %cst_8 = arith.constant 0.000000e+00 : f32
    %12 = vector.broadcast %cst_8 : f32 to vector<16x32xf32>
    %13 = vector.extract_strided_slice %10 {offsets = [0, 0, 0], sizes = [16, 1, 128], strides = [1, 1, 1]} : vector<16x8x128xf32> to vector<16x1x128xf32>
    %14 = vector.shape_cast %13 : vector<16x1x128xf32> to vector<16x128xf32>
    %15 = arith.truncf %11 : vector<16x32xf32> to vector<16x32xbf16>
    %cst_9 = arith.constant dense<0.000000e+00> : vector<16x128xf32>
    %16 = tpu.matmul %15, %3, %cst_9 {dimension_numbers = #tpu.dot_dimension_numbers<[1], [0], [0], [1], [0, 0, 1, 1], [], []>} : vector<16x32xbf16>, vector<32x128xbf16>, vector<16x128xf32> -> vector<16x128xf32>
    %17 = arith.addf %14, %16 : vector<16x128xf32>
    %18 = arith.negf %17 : vector<16x128xf32>
    %19 = math.exp %18 : vector<16x128xf32>
    %cst_10 = arith.constant 1.000000e+00 : f32
    %20 = vector.broadcast %cst_10 : f32 to vector<16x128xf32>
    %21 = arith.addf %20, %19 : vector<16x128xf32>
    %22 = arith.divf %20, %21 : vector<16x128xf32>
    %23 = math.tanh %17 : vector<16x128xf32>
    %24 = vector.extract_strided_slice %22 {offsets = [0, 0], sizes = [16, 32], strides = [1, 1]} : vector<16x128xf32> to vector<16x32xf32>
    %25 = vector.extract_strided_slice %22 {offsets = [0, 32], sizes = [16, 32], strides = [1, 1]} : vector<16x128xf32> to vector<16x32xf32>
    %26 = vector.extract_strided_slice %23 {offsets = [0, 64], sizes = [16, 32], strides = [1, 1]} : vector<16x128xf32> to vector<16x32xf32>
    %27 = vector.extract_strided_slice %22 {offsets = [0, 96], sizes = [16, 32], strides = [1, 1]} : vector<16x128xf32> to vector<16x32xf32>
    %28 = arith.mulf %25, %12 : vector<16x32xf32>
    %29 = arith.mulf %24, %26 : vector<16x32xf32>
    %30 = arith.addf %28, %29 : vector<16x32xf32>
    %31 = math.tanh %30 : vector<16x32xf32>
    %32 = arith.mulf %27, %31 : vector<16x32xf32>
    %33 = vector.extract_strided_slice %10 {offsets = [0, 1, 0], sizes = [16, 1, 128], strides = [1, 1, 1]} : vector<16x8x128xf32> to vector<16x1x128xf32>
    %34 = vector.shape_cast %33 : vector<16x1x128xf32> to vector<16x128xf32>
    %35 = arith.truncf %32 : vector<16x32xf32> to vector<16x32xbf16>
    %cst_11 = arith.constant dense<0.000000e+00> : vector<16x128xf32>
    %36 = tpu.matmul %35, %3, %cst_11 {dimension_numbers = #tpu.dot_dimension_numbers<[1], [0], [0], [1], [0, 0, 1, 1], [], []>} : vector<16x32xbf16>, vector<32x128xbf16>, vector<16x128xf32> -> vector<16x128xf32>
    %37 = arith.addf %34, %36 : vector<16x128xf32>
    %38 = arith.negf %37 : vector<16x128xf32>
    %39 = math.exp %38 : vector<16x128xf32>
    %cst_12 = arith.constant 1.000000e+00 : f32
    %40 = vector.broadcast %cst_12 : f32 to vector<16x128xf32>
    %41 = arith.addf %40, %39 : vector<16x128xf32>
    %42 = arith.divf %40, %41 : vector<16x128xf32>
    %43 = math.tanh %37 : vector<16x128xf32>
    %44 = vector.extract_strided_slice %42 {offsets = [0, 0], sizes = [16, 32], strides = [1, 1]} : vector<16x128xf32> to vector<16x32xf32>
    %45 = vector.extract_strided_slice %42 {offsets = [0, 32], sizes = [16, 32], strides = [1, 1]} : vector<16x128xf32> to vector<16x32xf32>
    %46 = vector.extract_strided_slice %43 {offsets = [0, 64], sizes = [16, 32], strides = [1, 1]} : vector<16x128xf32> to vector<16x32xf32>
    %47 = vector.extract_strided_slice %42 {offsets = [0, 96], sizes = [16, 32], strides = [1, 1]} : vector<16x128xf32> to vector<16x32xf32>
    %48 = arith.mulf %45, %30 : vector<16x32xf32>
    %49 = arith.mulf %44, %46 : vector<16x32xf32>
    %50 = arith.addf %48, %49 : vector<16x32xf32>
    %51 = math.tanh %50 : vector<16x32xf32>
    %52 = arith.mulf %47, %51 : vector<16x32xf32>
    %53 = vector.extract_strided_slice %10 {offsets = [0, 2, 0], sizes = [16, 1, 128], strides = [1, 1, 1]} : vector<16x8x128xf32> to vector<16x1x128xf32>
    %54 = vector.shape_cast %53 : vector<16x1x128xf32> to vector<16x128xf32>
    %55 = arith.truncf %52 : vector<16x32xf32> to vector<16x32xbf16>
    %cst_13 = arith.constant dense<0.000000e+00> : vector<16x128xf32>
    %56 = tpu.matmul %55, %3, %cst_13 {dimension_numbers = #tpu.dot_dimension_numbers<[1], [0], [0], [1], [0, 0, 1, 1], [], []>} : vector<16x32xbf16>, vector<32x128xbf16>, vector<16x128xf32> -> vector<16x128xf32>
    %57 = arith.addf %54, %56 : vector<16x128xf32>
    %58 = arith.negf %57 : vector<16x128xf32>
    %59 = math.exp %58 : vector<16x128xf32>
    %cst_14 = arith.constant 1.000000e+00 : f32
    %60 = vector.broadcast %cst_14 : f32 to vector<16x128xf32>
    %61 = arith.addf %60, %59 : vector<16x128xf32>
    %62 = arith.divf %60, %61 : vector<16x128xf32>
    %63 = math.tanh %57 : vector<16x128xf32>
    %64 = vector.extract_strided_slice %62 {offsets = [0, 0], sizes = [16, 32], strides = [1, 1]} : vector<16x128xf32> to vector<16x32xf32>
    %65 = vector.extract_strided_slice %62 {offsets = [0, 32], sizes = [16, 32], strides = [1, 1]} : vector<16x128xf32> to vector<16x32xf32>
    %66 = vector.extract_strided_slice %63 {offsets = [0, 64], sizes = [16, 32], strides = [1, 1]} : vector<16x128xf32> to vector<16x32xf32>
    %67 = vector.extract_strided_slice %62 {offsets = [0, 96], sizes = [16, 32], strides = [1, 1]} : vector<16x128xf32> to vector<16x32xf32>
    %68 = arith.mulf %65, %50 : vector<16x32xf32>
    %69 = arith.mulf %64, %66 : vector<16x32xf32>
    %70 = arith.addf %68, %69 : vector<16x32xf32>
    %71 = math.tanh %70 : vector<16x32xf32>
    %72 = arith.mulf %67, %71 : vector<16x32xf32>
    %73 = vector.extract_strided_slice %10 {offsets = [0, 3, 0], sizes = [16, 1, 128], strides = [1, 1, 1]} : vector<16x8x128xf32> to vector<16x1x128xf32>
    %74 = vector.shape_cast %73 : vector<16x1x128xf32> to vector<16x128xf32>
    %75 = arith.truncf %72 : vector<16x32xf32> to vector<16x32xbf16>
    %cst_15 = arith.constant dense<0.000000e+00> : vector<16x128xf32>
    %76 = tpu.matmul %75, %3, %cst_15 {dimension_numbers = #tpu.dot_dimension_numbers<[1], [0], [0], [1], [0, 0, 1, 1], [], []>} : vector<16x32xbf16>, vector<32x128xbf16>, vector<16x128xf32> -> vector<16x128xf32>
    %77 = arith.addf %74, %76 : vector<16x128xf32>
    %78 = arith.negf %77 : vector<16x128xf32>
    %79 = math.exp %78 : vector<16x128xf32>
    %cst_16 = arith.constant 1.000000e+00 : f32
    %80 = vector.broadcast %cst_16 : f32 to vector<16x128xf32>
    %81 = arith.addf %80, %79 : vector<16x128xf32>
    %82 = arith.divf %80, %81 : vector<16x128xf32>
    %83 = math.tanh %77 : vector<16x128xf32>
    %84 = vector.extract_strided_slice %82 {offsets = [0, 0], sizes = [16, 32], strides = [1, 1]} : vector<16x128xf32> to vector<16x32xf32>
    %85 = vector.extract_strided_slice %82 {offsets = [0, 32], sizes = [16, 32], strides = [1, 1]} : vector<16x128xf32> to vector<16x32xf32>
    %86 = vector.extract_strided_slice %83 {offsets = [0, 64], sizes = [16, 32], strides = [1, 1]} : vector<16x128xf32> to vector<16x32xf32>
    %87 = vector.extract_strided_slice %82 {offsets = [0, 96], sizes = [16, 32], strides = [1, 1]} : vector<16x128xf32> to vector<16x32xf32>
    %88 = arith.mulf %85, %70 : vector<16x32xf32>
    %89 = arith.mulf %84, %86 : vector<16x32xf32>
    %90 = arith.addf %88, %89 : vector<16x32xf32>
    %91 = math.tanh %90 : vector<16x32xf32>
    %92 = arith.mulf %87, %91 : vector<16x32xf32>
    %93 = vector.extract_strided_slice %10 {offsets = [0, 4, 0], sizes = [16, 1, 128], strides = [1, 1, 1]} : vector<16x8x128xf32> to vector<16x1x128xf32>
    %94 = vector.shape_cast %93 : vector<16x1x128xf32> to vector<16x128xf32>
    %95 = arith.truncf %92 : vector<16x32xf32> to vector<16x32xbf16>
    %cst_17 = arith.constant dense<0.000000e+00> : vector<16x128xf32>
    %96 = tpu.matmul %95, %3, %cst_17 {dimension_numbers = #tpu.dot_dimension_numbers<[1], [0], [0], [1], [0, 0, 1, 1], [], []>} : vector<16x32xbf16>, vector<32x128xbf16>, vector<16x128xf32> -> vector<16x128xf32>
    %97 = arith.addf %94, %96 : vector<16x128xf32>
    %98 = arith.negf %97 : vector<16x128xf32>
    %99 = math.exp %98 : vector<16x128xf32>
    %cst_18 = arith.constant 1.000000e+00 : f32
    %100 = vector.broadcast %cst_18 : f32 to vector<16x128xf32>
    %101 = arith.addf %100, %99 : vector<16x128xf32>
    %102 = arith.divf %100, %101 : vector<16x128xf32>
    %103 = math.tanh %97 : vector<16x128xf32>
    %104 = vector.extract_strided_slice %102 {offsets = [0, 0], sizes = [16, 32], strides = [1, 1]} : vector<16x128xf32> to vector<16x32xf32>
    %105 = vector.extract_strided_slice %102 {offsets = [0, 32], sizes = [16, 32], strides = [1, 1]} : vector<16x128xf32> to vector<16x32xf32>
    %106 = vector.extract_strided_slice %103 {offsets = [0, 64], sizes = [16, 32], strides = [1, 1]} : vector<16x128xf32> to vector<16x32xf32>
    %107 = vector.extract_strided_slice %102 {offsets = [0, 96], sizes = [16, 32], strides = [1, 1]} : vector<16x128xf32> to vector<16x32xf32>
    %108 = arith.mulf %105, %90 : vector<16x32xf32>
    %109 = arith.mulf %104, %106 : vector<16x32xf32>
    %110 = arith.addf %108, %109 : vector<16x32xf32>
    %111 = math.tanh %110 : vector<16x32xf32>
    %112 = arith.mulf %107, %111 : vector<16x32xf32>
    %113 = vector.extract_strided_slice %10 {offsets = [0, 5, 0], sizes = [16, 1, 128], strides = [1, 1, 1]} : vector<16x8x128xf32> to vector<16x1x128xf32>
    %114 = vector.shape_cast %113 : vector<16x1x128xf32> to vector<16x128xf32>
    %115 = arith.truncf %112 : vector<16x32xf32> to vector<16x32xbf16>
    %cst_19 = arith.constant dense<0.000000e+00> : vector<16x128xf32>
    %116 = tpu.matmul %115, %3, %cst_19 {dimension_numbers = #tpu.dot_dimension_numbers<[1], [0], [0], [1], [0, 0, 1, 1], [], []>} : vector<16x32xbf16>, vector<32x128xbf16>, vector<16x128xf32> -> vector<16x128xf32>
    %117 = arith.addf %114, %116 : vector<16x128xf32>
    %118 = arith.negf %117 : vector<16x128xf32>
    %119 = math.exp %118 : vector<16x128xf32>
    %cst_20 = arith.constant 1.000000e+00 : f32
    %120 = vector.broadcast %cst_20 : f32 to vector<16x128xf32>
    %121 = arith.addf %120, %119 : vector<16x128xf32>
    %122 = arith.divf %120, %121 : vector<16x128xf32>
    %123 = math.tanh %117 : vector<16x128xf32>
    %124 = vector.extract_strided_slice %122 {offsets = [0, 0], sizes = [16, 32], strides = [1, 1]} : vector<16x128xf32> to vector<16x32xf32>
    %125 = vector.extract_strided_slice %122 {offsets = [0, 32], sizes = [16, 32], strides = [1, 1]} : vector<16x128xf32> to vector<16x32xf32>
    %126 = vector.extract_strided_slice %123 {offsets = [0, 64], sizes = [16, 32], strides = [1, 1]} : vector<16x128xf32> to vector<16x32xf32>
    %127 = vector.extract_strided_slice %122 {offsets = [0, 96], sizes = [16, 32], strides = [1, 1]} : vector<16x128xf32> to vector<16x32xf32>
    %128 = arith.mulf %125, %110 : vector<16x32xf32>
    %129 = arith.mulf %124, %126 : vector<16x32xf32>
    %130 = arith.addf %128, %129 : vector<16x32xf32>
    %131 = math.tanh %130 : vector<16x32xf32>
    %132 = arith.mulf %127, %131 : vector<16x32xf32>
    %133 = vector.extract_strided_slice %10 {offsets = [0, 6, 0], sizes = [16, 1, 128], strides = [1, 1, 1]} : vector<16x8x128xf32> to vector<16x1x128xf32>
    %134 = vector.shape_cast %133 : vector<16x1x128xf32> to vector<16x128xf32>
    %135 = arith.truncf %132 : vector<16x32xf32> to vector<16x32xbf16>
    %cst_21 = arith.constant dense<0.000000e+00> : vector<16x128xf32>
    %136 = tpu.matmul %135, %3, %cst_21 {dimension_numbers = #tpu.dot_dimension_numbers<[1], [0], [0], [1], [0, 0, 1, 1], [], []>} : vector<16x32xbf16>, vector<32x128xbf16>, vector<16x128xf32> -> vector<16x128xf32>
    %137 = arith.addf %134, %136 : vector<16x128xf32>
    %138 = arith.negf %137 : vector<16x128xf32>
    %139 = math.exp %138 : vector<16x128xf32>
    %cst_22 = arith.constant 1.000000e+00 : f32
    %140 = vector.broadcast %cst_22 : f32 to vector<16x128xf32>
    %141 = arith.addf %140, %139 : vector<16x128xf32>
    %142 = arith.divf %140, %141 : vector<16x128xf32>
    %143 = math.tanh %137 : vector<16x128xf32>
    %144 = vector.extract_strided_slice %142 {offsets = [0, 0], sizes = [16, 32], strides = [1, 1]} : vector<16x128xf32> to vector<16x32xf32>
    %145 = vector.extract_strided_slice %142 {offsets = [0, 32], sizes = [16, 32], strides = [1, 1]} : vector<16x128xf32> to vector<16x32xf32>
    %146 = vector.extract_strided_slice %143 {offsets = [0, 64], sizes = [16, 32], strides = [1, 1]} : vector<16x128xf32> to vector<16x32xf32>
    %147 = vector.extract_strided_slice %142 {offsets = [0, 96], sizes = [16, 32], strides = [1, 1]} : vector<16x128xf32> to vector<16x32xf32>
    %148 = arith.mulf %145, %130 : vector<16x32xf32>
    %149 = arith.mulf %144, %146 : vector<16x32xf32>
    %150 = arith.addf %148, %149 : vector<16x32xf32>
    %151 = math.tanh %150 : vector<16x32xf32>
    %152 = arith.mulf %147, %151 : vector<16x32xf32>
    %153 = vector.extract_strided_slice %10 {offsets = [0, 7, 0], sizes = [16, 1, 128], strides = [1, 1, 1]} : vector<16x8x128xf32> to vector<16x1x128xf32>
    %154 = vector.shape_cast %153 : vector<16x1x128xf32> to vector<16x128xf32>
    %155 = arith.truncf %152 : vector<16x32xf32> to vector<16x32xbf16>
    %cst_23 = arith.constant dense<0.000000e+00> : vector<16x128xf32>
    %156 = tpu.matmul %155, %3, %cst_23 {dimension_numbers = #tpu.dot_dimension_numbers<[1], [0], [0], [1], [0, 0, 1, 1], [], []>} : vector<16x32xbf16>, vector<32x128xbf16>, vector<16x128xf32> -> vector<16x128xf32>
    %157 = arith.addf %154, %156 : vector<16x128xf32>
    %158 = arith.negf %157 : vector<16x128xf32>
    %159 = math.exp %158 : vector<16x128xf32>
    %cst_24 = arith.constant 1.000000e+00 : f32
    %160 = vector.broadcast %cst_24 : f32 to vector<16x128xf32>
    %161 = arith.addf %160, %159 : vector<16x128xf32>
    %162 = arith.divf %160, %161 : vector<16x128xf32>
    %163 = math.tanh %157 : vector<16x128xf32>
    %164 = vector.extract_strided_slice %162 {offsets = [0, 0], sizes = [16, 32], strides = [1, 1]} : vector<16x128xf32> to vector<16x32xf32>
    %165 = vector.extract_strided_slice %162 {offsets = [0, 32], sizes = [16, 32], strides = [1, 1]} : vector<16x128xf32> to vector<16x32xf32>
    %166 = vector.extract_strided_slice %163 {offsets = [0, 64], sizes = [16, 32], strides = [1, 1]} : vector<16x128xf32> to vector<16x32xf32>
    %167 = vector.extract_strided_slice %162 {offsets = [0, 96], sizes = [16, 32], strides = [1, 1]} : vector<16x128xf32> to vector<16x32xf32>
    %168 = arith.mulf %165, %150 : vector<16x32xf32>
    %169 = arith.mulf %164, %166 : vector<16x32xf32>
    %170 = arith.addf %168, %169 : vector<16x32xf32>
    %171 = math.tanh %170 : vector<16x32xf32>
    %172 = arith.mulf %167, %171 : vector<16x32xf32>
    %173 = arith.truncf %172 : vector<16x32xf32> to vector<16x32xbf16>
    %cst_25 = arith.constant dense<0.000000e+00> : vector<16x16xf32>
    %174 = tpu.matmul %173, %173, %cst_25 {dimension_numbers = #tpu.dot_dimension_numbers<[1], [1], [0], [0], [0, 0, 1, 0], [], []>} : vector<16x32xbf16>, vector<16x32xbf16>, vector<16x16xf32> -> vector<16x16xf32>
    %cst_26 = arith.constant 0.176776692 : f32
    %175 = vector.broadcast %cst_26 : f32 to vector<16x16xf32>
    %176 = arith.mulf %174, %175 : vector<16x16xf32>
    %cst_27 = arith.constant dense<0xFF800000> : vector<16xf32>
    %177 = vector.multi_reduction <maximumf>, %176, %cst_27 [1] : vector<16x16xf32> to vector<16xf32>
    %178 = vector.shape_cast %177 : vector<16xf32> to vector<16x1xf32>
    %179 = vector.broadcast %178 : vector<16x1xf32> to vector<16x16xf32>
    %180 = arith.subf %176, %179 : vector<16x16xf32>
    %181 = math.exp %180 : vector<16x16xf32>
    %cst_28 = arith.constant dense<0.000000e+00> : vector<16xf32>
    %182 = vector.multi_reduction <add>, %181, %cst_28 [1] : vector<16x16xf32> to vector<16xf32>
    %183 = vector.shape_cast %182 : vector<16xf32> to vector<16x1xf32>
    %184 = tpu.reciprocal %183 {approx = true} : vector<16x1xf32> -> vector<16x1xf32>
    %185 = vector.broadcast %184 : vector<16x1xf32> to vector<16x16xf32>
    %186 = arith.mulf %181, %185 : vector<16x16xf32>
    %187 = arith.truncf %186 : vector<16x16xf32> to vector<16x16xbf16>
    %cst_29 = arith.constant dense<0.000000e+00> : vector<16x32xf32>
    %188 = tpu.matmul %187, %173, %cst_29 {dimension_numbers = #tpu.dot_dimension_numbers<[1], [0], [0], [1], [0, 0, 1, 1], [], []>} : vector<16x16xbf16>, vector<16x32xbf16>, vector<16x32xf32> -> vector<16x32xf32>
    %189 = arith.truncf %188 : vector<16x32xf32> to vector<16x32xbf16>
    %c0_30 = arith.constant 0 : index
    %c0_31 = arith.constant 0 : index
    %190 = vector.load %arg6[%c0_30, %c0_31] : memref<32x32xf32, #tpu.memory_space<vmem>>, vector<32x32xf32>
    %191 = arith.truncf %190 : vector<32x32xf32> to vector<32x32xbf16>
    %cst_32 = arith.constant dense<0.000000e+00> : vector<16x32xf32>
    %192 = tpu.matmul %189, %191, %cst_32 {dimension_numbers = #tpu.dot_dimension_numbers<[1], [0], [0], [1], [0, 0, 1, 1], [], []>} : vector<16x32xbf16>, vector<32x32xbf16>, vector<16x32xf32> -> vector<16x32xf32>
    %c0_33 = arith.constant 0 : index
    %c0_34 = arith.constant 0 : index
    %193 = vector.load %arg7[%c0_33, %c0_34] : memref<1x32xf32, #tpu.memory_space<vmem>>, vector<1x32xf32>
    %194 = vector.broadcast %193 : vector<1x32xf32> to vector<16x32xf32>
    %195 = arith.addf %192, %194 : vector<16x32xf32>
    %196 = arith.truncf %195 : vector<16x32xf32> to vector<16x32xbf16>
    %c0_35 = arith.constant 0 : index
    %c0_36 = arith.constant 0 : index
    %197 = vector.load %arg1[%c0_35, %c0_36] : memref<16x16xf32, #tpu.memory_space<vmem>>, vector<16x16xf32>
    %c0_37 = arith.constant 0 : index
    %c0_38 = arith.constant 0 : index
    %198 = vector.load %arg2[%c0_37, %c0_38] : memref<16x16xf32, #tpu.memory_space<vmem>>, vector<16x16xf32>
    %c0_39 = arith.constant 0 : index
    %c0_40 = arith.constant 0 : index
    %199 = vector.load %arg8[%c0_39, %c0_40] : memref<4x32xf32, #tpu.memory_space<vmem>>, vector<4x32xf32>
    %200 = arith.truncf %199 : vector<4x32xf32> to vector<4x32xbf16>
    %cst_41 = arith.constant dense<0.000000e+00> : vector<4x16xf32>
    %201 = tpu.matmul %200, %196, %cst_41 {dimension_numbers = #tpu.dot_dimension_numbers<[1], [1], [0], [0], [0, 0, 1, 0], [], []>} : vector<4x32xbf16>, vector<16x32xbf16>, vector<4x16xf32> -> vector<4x16xf32>
    %c0_42 = arith.constant 0 : index
    %c0_43 = arith.constant 0 : index
    %202 = vector.load %arg9[%c0_42, %c0_43] : memref<32x4xf32, #tpu.memory_space<vmem>>, vector<32x4xf32>
    %203 = arith.truncf %202 : vector<32x4xf32> to vector<32x4xbf16>
    %cst_44 = arith.constant dense<0.000000e+00> : vector<16x4xf32>
    %204 = tpu.matmul %196, %203, %cst_44 {dimension_numbers = #tpu.dot_dimension_numbers<[1], [0], [0], [1], [0, 0, 1, 1], [], []>} : vector<16x32xbf16>, vector<32x4xbf16>, vector<16x4xf32> -> vector<16x4xf32>
    %205 = vector.extract_strided_slice %196 {offsets = [0, 0], sizes = [16, 8], strides = [1, 1]} : vector<16x32xbf16> to vector<16x8xbf16>
    %206 = vector.extract_strided_slice %201 {offsets = [0, 0], sizes = [1, 16], strides = [1, 1]} : vector<4x16xf32> to vector<1x16xf32>
    %207 = vector.extract_strided_slice %204 {offsets = [0, 0], sizes = [16, 1], strides = [1, 1]} : vector<16x4xf32> to vector<16x1xf32>
    %208 = vector.broadcast %206 : vector<1x16xf32> to vector<16x16xf32>
    %209 = vector.broadcast %207 : vector<16x1xf32> to vector<16x16xf32>
    %210 = arith.addf %208, %209 : vector<16x16xf32>
    %cst_45 = arith.constant 0.000000e+00 : f32
    %211 = vector.broadcast %cst_45 : f32 to vector<16x16xf32>
    %212 = arith.cmpf oge, %210, %211 : vector<16x16xf32>
    %cst_46 = arith.constant 2.000000e-01 : f32
    %213 = vector.broadcast %cst_46 : f32 to vector<16x16xf32>
    %214 = arith.mulf %213, %210 : vector<16x16xf32>
    %215 = arith.select %212, %210, %214 : vector<16x16xi1>, vector<16x16xf32>
    %216 = arith.mulf %215, %197 : vector<16x16xf32>
    %cst_47 = arith.constant 0.000000e+00 : f32
    %217 = vector.broadcast %cst_47 : f32 to vector<16x16xf32>
    %218 = arith.cmpf one, %216, %217 : vector<16x16xf32>
    %cst_48 = arith.constant -1.000000e+30 : f32
    %219 = vector.broadcast %cst_48 : f32 to vector<16x16xf32>
    %220 = arith.select %218, %216, %219 : vector<16x16xi1>, vector<16x16xf32>
    %cst_49 = arith.constant dense<0xFF800000> : vector<16xf32>
    %221 = vector.multi_reduction <maximumf>, %220, %cst_49 [1] : vector<16x16xf32> to vector<16xf32>
    %222 = vector.shape_cast %221 : vector<16xf32> to vector<16x1xf32>
    %223 = vector.broadcast %222 : vector<16x1xf32> to vector<16x16xf32>
    %224 = arith.subf %216, %223 : vector<16x16xf32>
    %cst_50 = arith.constant 0.000000e+00 : f32
    %225 = vector.broadcast %cst_50 : f32 to vector<16x16xf32>
    %226 = arith.select %218, %224, %225 : vector<16x16xi1>, vector<16x16xf32>
    %227 = math.exp %226 : vector<16x16xf32>
    %cst_51 = arith.constant 0.000000e+00 : f32
    %228 = vector.broadcast %cst_51 : f32 to vector<16x16xf32>
    %229 = arith.select %218, %227, %228 : vector<16x16xi1>, vector<16x16xf32>
    %cst_52 = arith.constant dense<0.000000e+00> : vector<16xf32>
    %230 = vector.multi_reduction <add>, %229, %cst_52 [1] : vector<16x16xf32> to vector<16xf32>
    %231 = vector.shape_cast %230 : vector<16xf32> to vector<16x1xf32>
    %cst_53 = arith.constant 0.000000e+00 : f32
    %232 = vector.broadcast %cst_53 : f32 to vector<16x1xf32>
    %233 = arith.cmpf ogt, %231, %232 : vector<16x1xf32>
    %cst_54 = arith.constant 1.000000e+00 : f32
    %234 = vector.broadcast %cst_54 : f32 to vector<16x1xf32>
    %235 = arith.select %233, %231, %234 : vector<16x1xi1>, vector<16x1xf32>
    %236 = tpu.reciprocal %235 {approx = true} : vector<16x1xf32> -> vector<16x1xf32>
    %237 = vector.broadcast %236 : vector<16x1xf32> to vector<16x16xf32>
    %238 = arith.mulf %229, %237 : vector<16x16xf32>
    %239 = arith.mulf %215, %198 : vector<16x16xf32>
    %cst_55 = arith.constant 0.000000e+00 : f32
    %240 = vector.broadcast %cst_55 : f32 to vector<16x16xf32>
    %241 = arith.cmpf one, %239, %240 : vector<16x16xf32>
    %cst_56 = arith.constant -1.000000e+30 : f32
    %242 = vector.broadcast %cst_56 : f32 to vector<16x16xf32>
    %243 = arith.select %241, %239, %242 : vector<16x16xi1>, vector<16x16xf32>
    %cst_57 = arith.constant dense<0xFF800000> : vector<16xf32>
    %244 = vector.multi_reduction <maximumf>, %243, %cst_57 [1] : vector<16x16xf32> to vector<16xf32>
    %245 = vector.shape_cast %244 : vector<16xf32> to vector<16x1xf32>
    %246 = vector.broadcast %245 : vector<16x1xf32> to vector<16x16xf32>
    %247 = arith.subf %239, %246 : vector<16x16xf32>
    %cst_58 = arith.constant 0.000000e+00 : f32
    %248 = vector.broadcast %cst_58 : f32 to vector<16x16xf32>
    %249 = arith.select %241, %247, %248 : vector<16x16xi1>, vector<16x16xf32>
    %250 = math.exp %249 : vector<16x16xf32>
    %cst_59 = arith.constant 0.000000e+00 : f32
    %251 = vector.broadcast %cst_59 : f32 to vector<16x16xf32>
    %252 = arith.select %241, %250, %251 : vector<16x16xi1>, vector<16x16xf32>
    %cst_60 = arith.constant dense<0.000000e+00> : vector<16xf32>
    %253 = vector.multi_reduction <add>, %252, %cst_60 [1] : vector<16x16xf32> to vector<16xf32>
    %254 = vector.shape_cast %253 : vector<16xf32> to vector<16x1xf32>
    %cst_61 = arith.constant 0.000000e+00 : f32
    %255 = vector.broadcast %cst_61 : f32 to vector<16x1xf32>
    %256 = arith.cmpf ogt, %254, %255 : vector<16x1xf32>
    %cst_62 = arith.constant 1.000000e+00 : f32
    %257 = vector.broadcast %cst_62 : f32 to vector<16x1xf32>
    %258 = arith.select %256, %254, %257 : vector<16x1xi1>, vector<16x1xf32>
    %259 = tpu.reciprocal %258 {approx = true} : vector<16x1xf32> -> vector<16x1xf32>
    %260 = vector.broadcast %259 : vector<16x1xf32> to vector<16x16xf32>
    %261 = arith.mulf %252, %260 : vector<16x16xf32>
    %262 = arith.truncf %238 : vector<16x16xf32> to vector<16x16xbf16>
    %cst_63 = arith.constant dense<0.000000e+00> : vector<16x8xf32>
    %263 = tpu.matmul %262, %205, %cst_63 {dimension_numbers = #tpu.dot_dimension_numbers<[1], [0], [0], [1], [0, 0, 1, 1], [], []>} : vector<16x16xbf16>, vector<16x8xbf16>, vector<16x8xf32> -> vector<16x8xf32>
    %264 = arith.truncf %261 : vector<16x16xf32> to vector<16x16xbf16>
    %cst_64 = arith.constant dense<0.000000e+00> : vector<16x8xf32>
    %265 = tpu.matmul %264, %205, %cst_64 {dimension_numbers = #tpu.dot_dimension_numbers<[1], [0], [0], [1], [0, 0, 1, 1], [], []>} : vector<16x16xbf16>, vector<16x8xbf16>, vector<16x8xf32> -> vector<16x8xf32>
    %266 = vector.extract_strided_slice %196 {offsets = [0, 8], sizes = [16, 8], strides = [1, 1]} : vector<16x32xbf16> to vector<16x8xbf16>
    %267 = vector.extract_strided_slice %201 {offsets = [1, 0], sizes = [1, 16], strides = [1, 1]} : vector<4x16xf32> to vector<1x16xf32>
    %268 = vector.extract_strided_slice %204 {offsets = [0, 1], sizes = [16, 1], strides = [1, 1]} : vector<16x4xf32> to vector<16x1xf32>
    %269 = vector.broadcast %267 : vector<1x16xf32> to vector<16x16xf32>
    %270 = vector.broadcast %268 : vector<16x1xf32> to vector<16x16xf32>
    %271 = arith.addf %269, %270 : vector<16x16xf32>
    %cst_65 = arith.constant 0.000000e+00 : f32
    %272 = vector.broadcast %cst_65 : f32 to vector<16x16xf32>
    %273 = arith.cmpf oge, %271, %272 : vector<16x16xf32>
    %cst_66 = arith.constant 2.000000e-01 : f32
    %274 = vector.broadcast %cst_66 : f32 to vector<16x16xf32>
    %275 = arith.mulf %274, %271 : vector<16x16xf32>
    %276 = arith.select %273, %271, %275 : vector<16x16xi1>, vector<16x16xf32>
    %277 = arith.mulf %276, %197 : vector<16x16xf32>
    %cst_67 = arith.constant 0.000000e+00 : f32
    %278 = vector.broadcast %cst_67 : f32 to vector<16x16xf32>
    %279 = arith.cmpf one, %277, %278 : vector<16x16xf32>
    %cst_68 = arith.constant -1.000000e+30 : f32
    %280 = vector.broadcast %cst_68 : f32 to vector<16x16xf32>
    %281 = arith.select %279, %277, %280 : vector<16x16xi1>, vector<16x16xf32>
    %cst_69 = arith.constant dense<0xFF800000> : vector<16xf32>
    %282 = vector.multi_reduction <maximumf>, %281, %cst_69 [1] : vector<16x16xf32> to vector<16xf32>
    %283 = vector.shape_cast %282 : vector<16xf32> to vector<16x1xf32>
    %284 = vector.broadcast %283 : vector<16x1xf32> to vector<16x16xf32>
    %285 = arith.subf %277, %284 : vector<16x16xf32>
    %cst_70 = arith.constant 0.000000e+00 : f32
    %286 = vector.broadcast %cst_70 : f32 to vector<16x16xf32>
    %287 = arith.select %279, %285, %286 : vector<16x16xi1>, vector<16x16xf32>
    %288 = math.exp %287 : vector<16x16xf32>
    %cst_71 = arith.constant 0.000000e+00 : f32
    %289 = vector.broadcast %cst_71 : f32 to vector<16x16xf32>
    %290 = arith.select %279, %288, %289 : vector<16x16xi1>, vector<16x16xf32>
    %cst_72 = arith.constant dense<0.000000e+00> : vector<16xf32>
    %291 = vector.multi_reduction <add>, %290, %cst_72 [1] : vector<16x16xf32> to vector<16xf32>
    %292 = vector.shape_cast %291 : vector<16xf32> to vector<16x1xf32>
    %cst_73 = arith.constant 0.000000e+00 : f32
    %293 = vector.broadcast %cst_73 : f32 to vector<16x1xf32>
    %294 = arith.cmpf ogt, %292, %293 : vector<16x1xf32>
    %cst_74 = arith.constant 1.000000e+00 : f32
    %295 = vector.broadcast %cst_74 : f32 to vector<16x1xf32>
    %296 = arith.select %294, %292, %295 : vector<16x1xi1>, vector<16x1xf32>
    %297 = tpu.reciprocal %296 {approx = true} : vector<16x1xf32> -> vector<16x1xf32>
    %298 = vector.broadcast %297 : vector<16x1xf32> to vector<16x16xf32>
    %299 = arith.mulf %290, %298 : vector<16x16xf32>
    %300 = arith.mulf %276, %198 : vector<16x16xf32>
    %cst_75 = arith.constant 0.000000e+00 : f32
    %301 = vector.broadcast %cst_75 : f32 to vector<16x16xf32>
    %302 = arith.cmpf one, %300, %301 : vector<16x16xf32>
    %cst_76 = arith.constant -1.000000e+30 : f32
    %303 = vector.broadcast %cst_76 : f32 to vector<16x16xf32>
    %304 = arith.select %302, %300, %303 : vector<16x16xi1>, vector<16x16xf32>
    %cst_77 = arith.constant dense<0xFF800000> : vector<16xf32>
    %305 = vector.multi_reduction <maximumf>, %304, %cst_77 [1] : vector<16x16xf32> to vector<16xf32>
    %306 = vector.shape_cast %305 : vector<16xf32> to vector<16x1xf32>
    %307 = vector.broadcast %306 : vector<16x1xf32> to vector<16x16xf32>
    %308 = arith.subf %300, %307 : vector<16x16xf32>
    %cst_78 = arith.constant 0.000000e+00 : f32
    %309 = vector.broadcast %cst_78 : f32 to vector<16x16xf32>
    %310 = arith.select %302, %308, %309 : vector<16x16xi1>, vector<16x16xf32>
    %311 = math.exp %310 : vector<16x16xf32>
    %cst_79 = arith.constant 0.000000e+00 : f32
    %312 = vector.broadcast %cst_79 : f32 to vector<16x16xf32>
    %313 = arith.select %302, %311, %312 : vector<16x16xi1>, vector<16x16xf32>
    %cst_80 = arith.constant dense<0.000000e+00> : vector<16xf32>
    %314 = vector.multi_reduction <add>, %313, %cst_80 [1] : vector<16x16xf32> to vector<16xf32>
    %315 = vector.shape_cast %314 : vector<16xf32> to vector<16x1xf32>
    %cst_81 = arith.constant 0.000000e+00 : f32
    %316 = vector.broadcast %cst_81 : f32 to vector<16x1xf32>
    %317 = arith.cmpf ogt, %315, %316 : vector<16x1xf32>
    %cst_82 = arith.constant 1.000000e+00 : f32
    %318 = vector.broadcast %cst_82 : f32 to vector<16x1xf32>
    %319 = arith.select %317, %315, %318 : vector<16x1xi1>, vector<16x1xf32>
    %320 = tpu.reciprocal %319 {approx = true} : vector<16x1xf32> -> vector<16x1xf32>
    %321 = vector.broadcast %320 : vector<16x1xf32> to vector<16x16xf32>
    %322 = arith.mulf %313, %321 : vector<16x16xf32>
    %323 = arith.truncf %299 : vector<16x16xf32> to vector<16x16xbf16>
    %cst_83 = arith.constant dense<0.000000e+00> : vector<16x8xf32>
    %324 = tpu.matmul %323, %266, %cst_83 {dimension_numbers = #tpu.dot_dimension_numbers<[1], [0], [0], [1], [0, 0, 1, 1], [], []>} : vector<16x16xbf16>, vector<16x8xbf16>, vector<16x8xf32> -> vector<16x8xf32>
    %325 = arith.truncf %322 : vector<16x16xf32> to vector<16x16xbf16>
    %cst_84 = arith.constant dense<0.000000e+00> : vector<16x8xf32>
    %326 = tpu.matmul %325, %266, %cst_84 {dimension_numbers = #tpu.dot_dimension_numbers<[1], [0], [0], [1], [0, 0, 1, 1], [], []>} : vector<16x16xbf16>, vector<16x8xbf16>, vector<16x8xf32> -> vector<16x8xf32>
    %327 = vector.extract_strided_slice %196 {offsets = [0, 16], sizes = [16, 8], strides = [1, 1]} : vector<16x32xbf16> to vector<16x8xbf16>
    %328 = vector.extract_strided_slice %201 {offsets = [2, 0], sizes = [1, 16], strides = [1, 1]} : vector<4x16xf32> to vector<1x16xf32>
    %329 = vector.extract_strided_slice %204 {offsets = [0, 2], sizes = [16, 1], strides = [1, 1]} : vector<16x4xf32> to vector<16x1xf32>
    %330 = vector.broadcast %328 : vector<1x16xf32> to vector<16x16xf32>
    %331 = vector.broadcast %329 : vector<16x1xf32> to vector<16x16xf32>
    %332 = arith.addf %330, %331 : vector<16x16xf32>
    %cst_85 = arith.constant 0.000000e+00 : f32
    %333 = vector.broadcast %cst_85 : f32 to vector<16x16xf32>
    %334 = arith.cmpf oge, %332, %333 : vector<16x16xf32>
    %cst_86 = arith.constant 2.000000e-01 : f32
    %335 = vector.broadcast %cst_86 : f32 to vector<16x16xf32>
    %336 = arith.mulf %335, %332 : vector<16x16xf32>
    %337 = arith.select %334, %332, %336 : vector<16x16xi1>, vector<16x16xf32>
    %338 = arith.mulf %337, %197 : vector<16x16xf32>
    %cst_87 = arith.constant 0.000000e+00 : f32
    %339 = vector.broadcast %cst_87 : f32 to vector<16x16xf32>
    %340 = arith.cmpf one, %338, %339 : vector<16x16xf32>
    %cst_88 = arith.constant -1.000000e+30 : f32
    %341 = vector.broadcast %cst_88 : f32 to vector<16x16xf32>
    %342 = arith.select %340, %338, %341 : vector<16x16xi1>, vector<16x16xf32>
    %cst_89 = arith.constant dense<0xFF800000> : vector<16xf32>
    %343 = vector.multi_reduction <maximumf>, %342, %cst_89 [1] : vector<16x16xf32> to vector<16xf32>
    %344 = vector.shape_cast %343 : vector<16xf32> to vector<16x1xf32>
    %345 = vector.broadcast %344 : vector<16x1xf32> to vector<16x16xf32>
    %346 = arith.subf %338, %345 : vector<16x16xf32>
    %cst_90 = arith.constant 0.000000e+00 : f32
    %347 = vector.broadcast %cst_90 : f32 to vector<16x16xf32>
    %348 = arith.select %340, %346, %347 : vector<16x16xi1>, vector<16x16xf32>
    %349 = math.exp %348 : vector<16x16xf32>
    %cst_91 = arith.constant 0.000000e+00 : f32
    %350 = vector.broadcast %cst_91 : f32 to vector<16x16xf32>
    %351 = arith.select %340, %349, %350 : vector<16x16xi1>, vector<16x16xf32>
    %cst_92 = arith.constant dense<0.000000e+00> : vector<16xf32>
    %352 = vector.multi_reduction <add>, %351, %cst_92 [1] : vector<16x16xf32> to vector<16xf32>
    %353 = vector.shape_cast %352 : vector<16xf32> to vector<16x1xf32>
    %cst_93 = arith.constant 0.000000e+00 : f32
    %354 = vector.broadcast %cst_93 : f32 to vector<16x1xf32>
    %355 = arith.cmpf ogt, %353, %354 : vector<16x1xf32>
    %cst_94 = arith.constant 1.000000e+00 : f32
    %356 = vector.broadcast %cst_94 : f32 to vector<16x1xf32>
    %357 = arith.select %355, %353, %356 : vector<16x1xi1>, vector<16x1xf32>
    %358 = tpu.reciprocal %357 {approx = true} : vector<16x1xf32> -> vector<16x1xf32>
    %359 = vector.broadcast %358 : vector<16x1xf32> to vector<16x16xf32>
    %360 = arith.mulf %351, %359 : vector<16x16xf32>
    %361 = arith.mulf %337, %198 : vector<16x16xf32>
    %cst_95 = arith.constant 0.000000e+00 : f32
    %362 = vector.broadcast %cst_95 : f32 to vector<16x16xf32>
    %363 = arith.cmpf one, %361, %362 : vector<16x16xf32>
    %cst_96 = arith.constant -1.000000e+30 : f32
    %364 = vector.broadcast %cst_96 : f32 to vector<16x16xf32>
    %365 = arith.select %363, %361, %364 : vector<16x16xi1>, vector<16x16xf32>
    %cst_97 = arith.constant dense<0xFF800000> : vector<16xf32>
    %366 = vector.multi_reduction <maximumf>, %365, %cst_97 [1] : vector<16x16xf32> to vector<16xf32>
    %367 = vector.shape_cast %366 : vector<16xf32> to vector<16x1xf32>
    %368 = vector.broadcast %367 : vector<16x1xf32> to vector<16x16xf32>
    %369 = arith.subf %361, %368 : vector<16x16xf32>
    %cst_98 = arith.constant 0.000000e+00 : f32
    %370 = vector.broadcast %cst_98 : f32 to vector<16x16xf32>
    %371 = arith.select %363, %369, %370 : vector<16x16xi1>, vector<16x16xf32>
    %372 = math.exp %371 : vector<16x16xf32>
    %cst_99 = arith.constant 0.000000e+00 : f32
    %373 = vector.broadcast %cst_99 : f32 to vector<16x16xf32>
    %374 = arith.select %363, %372, %373 : vector<16x16xi1>, vector<16x16xf32>
    %cst_100 = arith.constant dense<0.000000e+00> : vector<16xf32>
    %375 = vector.multi_reduction <add>, %374, %cst_100 [1] : vector<16x16xf32> to vector<16xf32>
    %376 = vector.shape_cast %375 : vector<16xf32> to vector<16x1xf32>
    %cst_101 = arith.constant 0.000000e+00 : f32
    %377 = vector.broadcast %cst_101 : f32 to vector<16x1xf32>
    %378 = arith.cmpf ogt, %376, %377 : vector<16x1xf32>
    %cst_102 = arith.constant 1.000000e+00 : f32
    %379 = vector.broadcast %cst_102 : f32 to vector<16x1xf32>
    %380 = arith.select %378, %376, %379 : vector<16x1xi1>, vector<16x1xf32>
    %381 = tpu.reciprocal %380 {approx = true} : vector<16x1xf32> -> vector<16x1xf32>
    %382 = vector.broadcast %381 : vector<16x1xf32> to vector<16x16xf32>
    %383 = arith.mulf %374, %382 : vector<16x16xf32>
    %384 = arith.truncf %360 : vector<16x16xf32> to vector<16x16xbf16>
    %cst_103 = arith.constant dense<0.000000e+00> : vector<16x8xf32>
    %385 = tpu.matmul %384, %327, %cst_103 {dimension_numbers = #tpu.dot_dimension_numbers<[1], [0], [0], [1], [0, 0, 1, 1], [], []>} : vector<16x16xbf16>, vector<16x8xbf16>, vector<16x8xf32> -> vector<16x8xf32>
    %386 = arith.truncf %383 : vector<16x16xf32> to vector<16x16xbf16>
    %cst_104 = arith.constant dense<0.000000e+00> : vector<16x8xf32>
    %387 = tpu.matmul %386, %327, %cst_104 {dimension_numbers = #tpu.dot_dimension_numbers<[1], [0], [0], [1], [0, 0, 1, 1], [], []>} : vector<16x16xbf16>, vector<16x8xbf16>, vector<16x8xf32> -> vector<16x8xf32>
    %388 = vector.extract_strided_slice %196 {offsets = [0, 24], sizes = [16, 8], strides = [1, 1]} : vector<16x32xbf16> to vector<16x8xbf16>
    %389 = vector.extract_strided_slice %201 {offsets = [3, 0], sizes = [1, 16], strides = [1, 1]} : vector<4x16xf32> to vector<1x16xf32>
    %390 = vector.extract_strided_slice %204 {offsets = [0, 3], sizes = [16, 1], strides = [1, 1]} : vector<16x4xf32> to vector<16x1xf32>
    %391 = vector.broadcast %389 : vector<1x16xf32> to vector<16x16xf32>
    %392 = vector.broadcast %390 : vector<16x1xf32> to vector<16x16xf32>
    %393 = arith.addf %391, %392 : vector<16x16xf32>
    %cst_105 = arith.constant 0.000000e+00 : f32
    %394 = vector.broadcast %cst_105 : f32 to vector<16x16xf32>
    %395 = arith.cmpf oge, %393, %394 : vector<16x16xf32>
    %cst_106 = arith.constant 2.000000e-01 : f32
    %396 = vector.broadcast %cst_106 : f32 to vector<16x16xf32>
    %397 = arith.mulf %396, %393 : vector<16x16xf32>
    %398 = arith.select %395, %393, %397 : vector<16x16xi1>, vector<16x16xf32>
    %399 = arith.mulf %398, %197 : vector<16x16xf32>
    %cst_107 = arith.constant 0.000000e+00 : f32
    %400 = vector.broadcast %cst_107 : f32 to vector<16x16xf32>
    %401 = arith.cmpf one, %399, %400 : vector<16x16xf32>
    %cst_108 = arith.constant -1.000000e+30 : f32
    %402 = vector.broadcast %cst_108 : f32 to vector<16x16xf32>
    %403 = arith.select %401, %399, %402 : vector<16x16xi1>, vector<16x16xf32>
    %cst_109 = arith.constant dense<0xFF800000> : vector<16xf32>
    %404 = vector.multi_reduction <maximumf>, %403, %cst_109 [1] : vector<16x16xf32> to vector<16xf32>
    %405 = vector.shape_cast %404 : vector<16xf32> to vector<16x1xf32>
    %406 = vector.broadcast %405 : vector<16x1xf32> to vector<16x16xf32>
    %407 = arith.subf %399, %406 : vector<16x16xf32>
    %cst_110 = arith.constant 0.000000e+00 : f32
    %408 = vector.broadcast %cst_110 : f32 to vector<16x16xf32>
    %409 = arith.select %401, %407, %408 : vector<16x16xi1>, vector<16x16xf32>
    %410 = math.exp %409 : vector<16x16xf32>
    %cst_111 = arith.constant 0.000000e+00 : f32
    %411 = vector.broadcast %cst_111 : f32 to vector<16x16xf32>
    %412 = arith.select %401, %410, %411 : vector<16x16xi1>, vector<16x16xf32>
    %cst_112 = arith.constant dense<0.000000e+00> : vector<16xf32>
    %413 = vector.multi_reduction <add>, %412, %cst_112 [1] : vector<16x16xf32> to vector<16xf32>
    %414 = vector.shape_cast %413 : vector<16xf32> to vector<16x1xf32>
    %cst_113 = arith.constant 0.000000e+00 : f32
    %415 = vector.broadcast %cst_113 : f32 to vector<16x1xf32>
    %416 = arith.cmpf ogt, %414, %415 : vector<16x1xf32>
    %cst_114 = arith.constant 1.000000e+00 : f32
    %417 = vector.broadcast %cst_114 : f32 to vector<16x1xf32>
    %418 = arith.select %416, %414, %417 : vector<16x1xi1>, vector<16x1xf32>
    %419 = tpu.reciprocal %418 {approx = true} : vector<16x1xf32> -> vector<16x1xf32>
    %420 = vector.broadcast %419 : vector<16x1xf32> to vector<16x16xf32>
    %421 = arith.mulf %412, %420 : vector<16x16xf32>
    %422 = arith.mulf %398, %198 : vector<16x16xf32>
    %cst_115 = arith.constant 0.000000e+00 : f32
    %423 = vector.broadcast %cst_115 : f32 to vector<16x16xf32>
    %424 = arith.cmpf one, %422, %423 : vector<16x16xf32>
    %cst_116 = arith.constant -1.000000e+30 : f32
    %425 = vector.broadcast %cst_116 : f32 to vector<16x16xf32>
    %426 = arith.select %424, %422, %425 : vector<16x16xi1>, vector<16x16xf32>
    %cst_117 = arith.constant dense<0xFF800000> : vector<16xf32>
    %427 = vector.multi_reduction <maximumf>, %426, %cst_117 [1] : vector<16x16xf32> to vector<16xf32>
    %428 = vector.shape_cast %427 : vector<16xf32> to vector<16x1xf32>
    %429 = vector.broadcast %428 : vector<16x1xf32> to vector<16x16xf32>
    %430 = arith.subf %422, %429 : vector<16x16xf32>
    %cst_118 = arith.constant 0.000000e+00 : f32
    %431 = vector.broadcast %cst_118 : f32 to vector<16x16xf32>
    %432 = arith.select %424, %430, %431 : vector<16x16xi1>, vector<16x16xf32>
    %433 = math.exp %432 : vector<16x16xf32>
    %cst_119 = arith.constant 0.000000e+00 : f32
    %434 = vector.broadcast %cst_119 : f32 to vector<16x16xf32>
    %435 = arith.select %424, %433, %434 : vector<16x16xi1>, vector<16x16xf32>
    %cst_120 = arith.constant dense<0.000000e+00> : vector<16xf32>
    %436 = vector.multi_reduction <add>, %435, %cst_120 [1] : vector<16x16xf32> to vector<16xf32>
    %437 = vector.shape_cast %436 : vector<16xf32> to vector<16x1xf32>
    %cst_121 = arith.constant 0.000000e+00 : f32
    %438 = vector.broadcast %cst_121 : f32 to vector<16x1xf32>
    %439 = arith.cmpf ogt, %437, %438 : vector<16x1xf32>
    %cst_122 = arith.constant 1.000000e+00 : f32
    %440 = vector.broadcast %cst_122 : f32 to vector<16x1xf32>
    %441 = arith.select %439, %437, %440 : vector<16x1xi1>, vector<16x1xf32>
    %442 = tpu.reciprocal %441 {approx = true} : vector<16x1xf32> -> vector<16x1xf32>
    %443 = vector.broadcast %442 : vector<16x1xf32> to vector<16x16xf32>
    %444 = arith.mulf %435, %443 : vector<16x16xf32>
    %445 = arith.truncf %421 : vector<16x16xf32> to vector<16x16xbf16>
    %cst_123 = arith.constant dense<0.000000e+00> : vector<16x8xf32>
    %446 = tpu.matmul %445, %388, %cst_123 {dimension_numbers = #tpu.dot_dimension_numbers<[1], [0], [0], [1], [0, 0, 1, 1], [], []>} : vector<16x16xbf16>, vector<16x8xbf16>, vector<16x8xf32> -> vector<16x8xf32>
    %447 = arith.truncf %444 : vector<16x16xf32> to vector<16x16xbf16>
    %cst_124 = arith.constant dense<0.000000e+00> : vector<16x8xf32>
    %448 = tpu.matmul %447, %388, %cst_124 {dimension_numbers = #tpu.dot_dimension_numbers<[1], [0], [0], [1], [0, 0, 1, 1], [], []>} : vector<16x16xbf16>, vector<16x8xbf16>, vector<16x8xf32> -> vector<16x8xf32>
    %449 = tpu.concatenate %265, %326, %387, %448, %263, %324, %385, %446 in 1 : vector<16x8xf32>, vector<16x8xf32>, vector<16x8xf32>, vector<16x8xf32>, vector<16x8xf32>, vector<16x8xf32>, vector<16x8xf32>, vector<16x8xf32> -> vector<16x64xf32>
    %450 = arith.truncf %449 : vector<16x64xf32> to vector<16x64xbf16>
    %c0_125 = arith.constant 0 : index
    %c0_126 = arith.constant 0 : index
    %451 = vector.load %arg10[%c0_125, %c0_126] : memref<64x32xf32, #tpu.memory_space<vmem>>, vector<64x32xf32>
    %452 = arith.truncf %451 : vector<64x32xf32> to vector<64x32xbf16>
    %cst_127 = arith.constant dense<0.000000e+00> : vector<16x32xf32>
    %453 = tpu.matmul %450, %452, %cst_127 {dimension_numbers = #tpu.dot_dimension_numbers<[1], [0], [0], [1], [0, 0, 1, 1], [], []>} : vector<16x64xbf16>, vector<64x32xbf16>, vector<16x32xf32> -> vector<16x32xf32>
    %c0_128 = arith.constant 0 : index
    %c0_129 = arith.constant 0 : index
    %454 = vector.load %arg11[%c0_128, %c0_129] : memref<1x32xf32, #tpu.memory_space<vmem>>, vector<1x32xf32>
    %455 = vector.broadcast %454 : vector<1x32xf32> to vector<16x32xf32>
    %456 = arith.addf %453, %455 : vector<16x32xf32>
    %c0_130 = arith.constant 0 : index
    %c0_131 = arith.constant 0 : index
    %457 = vector.load %arg12[%c0_130, %c0_131] : memref<1x32xf32, #tpu.memory_space<vmem>>, vector<1x32xf32>
    %458 = vector.broadcast %457 : vector<1x32xf32> to vector<16x32xf32>
    %459 = arith.addf %456, %458 : vector<16x32xf32>
    %c0_132 = arith.constant 0 : index
    %c0_133 = arith.constant 0 : index
    %460 = vector.load %arg13[%c0_132, %c0_133] : memref<32x32xf32, #tpu.memory_space<vmem>>, vector<32x32xf32>
    %461 = arith.truncf %460 : vector<32x32xf32> to vector<32x32xbf16>
    %cst_134 = arith.constant dense<0.000000e+00> : vector<16x32xf32>
    %462 = tpu.matmul %189, %461, %cst_134 {dimension_numbers = #tpu.dot_dimension_numbers<[1], [0], [0], [1], [0, 0, 1, 1], [], []>} : vector<16x32xbf16>, vector<32x32xbf16>, vector<16x32xf32> -> vector<16x32xf32>
    %463 = arith.addf %459, %462 : vector<16x32xf32>
    %c0_135 = arith.constant 0 : index
    %c0_136 = arith.constant 0 : index
    %464 = vector.load %arg14[%c0_135, %c0_136] : memref<1x32xf32, #tpu.memory_space<vmem>>, vector<1x32xf32>
    %465 = vector.broadcast %464 : vector<1x32xf32> to vector<16x32xf32>
    %466 = arith.addf %463, %465 : vector<16x32xf32>
    %467 = arith.truncf %466 : vector<16x32xf32> to vector<16x32xbf16>
    %c0_137 = arith.constant 0 : index
    %c0_138 = arith.constant 0 : index
    %468 = vector.load %arg15[%c0_137, %c0_138] : memref<32x32xf32, #tpu.memory_space<vmem>>, vector<32x32xf32>
    %469 = arith.truncf %468 : vector<32x32xf32> to vector<32x32xbf16>
    %cst_139 = arith.constant dense<0.000000e+00> : vector<16x32xf32>
    %470 = tpu.matmul %467, %469, %cst_139 {dimension_numbers = #tpu.dot_dimension_numbers<[1], [0], [0], [1], [0, 0, 1, 1], [], []>} : vector<16x32xbf16>, vector<32x32xbf16>, vector<16x32xf32> -> vector<16x32xf32>
    %c0_140 = arith.constant 0 : index
    %c0_141 = arith.constant 0 : index
    %471 = vector.load %arg16[%c0_140, %c0_141] : memref<1x32xf32, #tpu.memory_space<vmem>>, vector<1x32xf32>
    %472 = vector.broadcast %471 : vector<1x32xf32> to vector<16x32xf32>
    %473 = arith.addf %470, %472 : vector<16x32xf32>
    %cst_142 = arith.constant 0.000000e+00 : f32
    %474 = vector.broadcast %cst_142 : f32 to vector<16x32xf32>
    %475 = arith.maximumf %473, %474 : vector<16x32xf32>
    %476 = arith.truncf %475 : vector<16x32xf32> to vector<16x32xbf16>
    %c0_143 = arith.constant 0 : index
    %c0_144 = arith.constant 0 : index
    %477 = vector.load %arg17[%c0_143, %c0_144] : memref<32x32xf32, #tpu.memory_space<vmem>>, vector<32x32xf32>
    %478 = arith.truncf %477 : vector<32x32xf32> to vector<32x32xbf16>
    %cst_145 = arith.constant dense<0.000000e+00> : vector<16x32xf32>
    %479 = tpu.matmul %476, %478, %cst_145 {dimension_numbers = #tpu.dot_dimension_numbers<[1], [0], [0], [1], [0, 0, 1, 1], [], []>} : vector<16x32xbf16>, vector<32x32xbf16>, vector<16x32xf32> -> vector<16x32xf32>
    %c0_146 = arith.constant 0 : index
    %c0_147 = arith.constant 0 : index
    %480 = vector.load %arg18[%c0_146, %c0_147] : memref<1x32xf32, #tpu.memory_space<vmem>>, vector<1x32xf32>
    %481 = vector.broadcast %480 : vector<1x32xf32> to vector<16x32xf32>
    %482 = arith.addf %479, %481 : vector<16x32xf32>
    %cst_148 = arith.constant 0.000000e+00 : f32
    %483 = vector.broadcast %cst_148 : f32 to vector<16x32xf32>
    %484 = arith.maximumf %482, %483 : vector<16x32xf32>
    %c0_149 = arith.constant 0 : index
    %c0_150 = arith.constant 0 : index
    %485 = vector.load %arg19[%c0_149, %c0_150] : memref<1x32xf32, #tpu.memory_space<vmem>>, vector<1x32xf32>
    %486 = arith.truncf %485 : vector<1x32xf32> to vector<1x32xbf16>
    %487 = arith.truncf %484 : vector<16x32xf32> to vector<16x32xbf16>
    %cst_151 = arith.constant dense<0.000000e+00> : vector<1x16xf32>
    %488 = tpu.matmul %486, %487, %cst_151 {dimension_numbers = #tpu.dot_dimension_numbers<[1], [1], [0], [0], [0, 0, 1, 0], [], []>} : vector<1x32xbf16>, vector<16x32xbf16>, vector<1x16xf32> -> vector<1x16xf32>
    %c0_152 = arith.constant 0 : index
    %c0_153 = arith.constant 0 : index
    %489 = vector.load %arg20[%c0_152, %c0_153] : memref<1x1xf32, #tpu.memory_space<vmem>>, vector<1x1xf32>
    %490 = vector.broadcast %489 : vector<1x1xf32> to vector<1x16xf32>
    %491 = arith.addf %488, %490 : vector<1x16xf32>
    %cst_154 = arith.constant dense<0xFF800000> : vector<1xf32>
    %492 = vector.multi_reduction <maximumf>, %491, %cst_154 [1] : vector<1x16xf32> to vector<1xf32>
    %493 = vector.shape_cast %492 : vector<1xf32> to vector<1x1xf32>
    %494 = vector.broadcast %493 : vector<1x1xf32> to vector<1x16xf32>
    %495 = arith.subf %491, %494 : vector<1x16xf32>
    %496 = math.exp %495 : vector<1x16xf32>
    %cst_155 = arith.constant dense<0.000000e+00> : vector<1xf32>
    %497 = vector.multi_reduction <add>, %496, %cst_155 [1] : vector<1x16xf32> to vector<1xf32>
    %498 = vector.shape_cast %497 : vector<1xf32> to vector<1x1xf32>
    %499 = vector.broadcast %498 : vector<1x1xf32> to vector<1x16xf32>
    %500 = arith.divf %496, %499 : vector<1x16xf32>
    %c0_156 = arith.constant 0 : index
    %c0_157 = arith.constant 0 : index
    %501 = vector.load %arg21[%c0_156, %c0_157] : memref<1x16xf32, #tpu.memory_space<vmem>>, vector<1x16xf32>
    tpu.vector_store %arg21[%c0_156, %c0_157], %500 {strides = array<i32>} : memref<1x16xf32, #tpu.memory_space<vmem>>, vector<1x16xf32>,
    return
  }
}

</mosaic_0001>

<bundles_post_ra>
// kernel: tpu_custom_call.1
= control target key start
LH: loop header
LB: loop body
LE: loop exit
PB: predicated region body
PF: predicated region fallthrough
CT: control target
= control target key end

     0   :  { %s11276_s0 = inlined_call_operand.vmem [shape: f32[128,4], index: 0, kind: input, shape index: {}]   ;;  %s11277_s1 = inlined_call_operand.vmem [shape: f32[16,16], index: 1, kind: input, shape index: {}]   ;;  %s11278_s2 = inlined_call_operand.vmem [shape: f32[16,16], index: 2, kind: input, shape index: {}]   ;;  %s11279_s3 = inlined_call_operand.vmem [shape: f32[4,128], index: 3, kind: input, shape index: {}]   ;;  %s11280_s4 = inlined_call_operand.vmem [shape: f32[32,128], index: 4, kind: input, shape index: {}]   ;;  %s11281_s5 = inlined_call_operand.vmem [shape: f32[1,128], index: 5, kind: input, shape index: {}]   ;;  %s11282_s6 = inlined_call_operand.vmem [shape: f32[32,32], index: 6, kind: input, shape index: {}]   ;;  %s11283_s7 = inlined_call_operand.vmem [shape: f32[1,32], index: 7, kind: input, shape index: {}]   ;;  %s11284_s8 = inlined_call_operand.vmem [shape: f32[4,32], index: 8, kind: input, shape index: {}]   ;;  %s11285_s9 = inlined_call_operand.vmem [shape: f32[32,4], index: 9, kind: input, shape index: {}]   ;;  %s11286_s10 = inlined_call_operand.vmem [shape: f32[64,32], index: 10, kind: input, shape index: {}]   ;;  %s11287_s11 = inlined_call_operand.vmem [shape: f32[1,32], index: 11, kind: input, shape index: {}]   ;;  %s11288_s12 = inlined_call_operand.vmem [shape: f32[1,32], index: 12, kind: input, shape index: {}]   ;;  %s11289_s13 = inlined_call_operand.vmem [shape: f32[32,32], index: 13, kind: input, shape index: {}]   ;;  %s11290_s14 = inlined_call_operand.vmem [shape: f32[1,32], index: 14, kind: input, shape index: {}]   ;;  %s11291_s15 = inlined_call_operand.vmem [shape: f32[32,32], index: 15, kind: input, shape index: {}]   ;;  %s11292_s16 = inlined_call_operand.vmem [shape: f32[1,32], index: 16, kind: input, shape index: {}]   ;;  %s11293_s17 = inlined_call_operand.vmem [shape: f32[32,32], index: 17, kind: input, shape index: {}]   ;;  %s11294_s18 = inlined_call_operand.vmem [shape: f32[1,32], index: 18, kind: input, shape index: {}]   ;;  %s11295_s19 = inlined_call_operand.vmem [shape: f32[1,32], index: 19, kind: input, shape index: {}]   ;;  %s11296_s20 = inlined_call_operand.<no memory space> [shape: f32[1,1], index: 20, kind: input, shape index: {}]   ;;  %s11297_s21 = inlined_call_operand.hbm [shape: f32[1,16], index: 21, kind: output, shape index: {}]  }
   0x1   :  { %11362 = sst [smem:[#allocation15_spill]] %s11276_s0  ;;  %v26_v0 = vstv %s11296_s20 }
   0x2   :  { %11363 = sst [smem:[#allocation16_spill]] %s11277_s1  ;;  %27 = vst [vmem:[#allocation2] sm:$0x1] %v26_v0 }
   0x3   :  { %11364 = sst [smem:[#allocation17_spill]] %s11278_s2 }
   0x4   :  { %11365 = sst [smem:[#allocation18_spill]] %s11279_s3 }
   0x5   :  { %11366 = sst [smem:[#allocation19_spill]] %s11280_s4 }
   0x6   :  { %11367 = sst [smem:[#allocation20_spill]] %s11281_s5 }
   0x7   :  { %s11368_s3 = sld [smem:[#allocation18_spill]]  ;;  %vm136_vm0 = vcmask 1041408   ;;  %s11369_s0 = sld [smem:[#allocation19_spill]]  ;;  %v11302_v4 = vmov 0.0   ;;  %vm111_vm1 = vcmask 31744   ;;  %vm11359_vm2 = vmmov 0  }
   0x8   :  { %6710 = vmatprep.subr.bf16.mxu1 %v11302_v4  ;;  %s11370_s22 = sld [smem:[#allocation15_spill]]  ;;  %6714 = vmatprep.mubr.msk.bf16.mxu1 %vm11359_vm2, %v11302_v4  ;;  %v8083_v20 = vmov 0  }
   0x9   :  { %6917 = vset.pattern.permute.xlu1 %v8083_v20  ;;  %6918 = vset.pattern.permute.xlu0 %v8083_v20 }
   0xd   :  { %v72_v1 = vld [vmem:[%s11368_s3] sm:$0xf]  ;;  %v75_v3 = vld [vmem:[%s11369_s0 + $0x8] sm:$0xff]  ;;  %v76_v12 = vld [vmem:[%s11369_s0 + $0x10] sm:$0xff] }
   0xe   :  { %v74_v2 = vld [vmem:[%s11369_s0] sm:$0xff]  ;;  %v73_v5 = vpack.c.bf16 %v72_v1, %v72_v1  ;;  %v81_v8 = vld [vmem:[%s11370_s22 + $0x8] sm:$0xff]  ;;  %v82_v9 = vld [vmem:[%s11370_s22 + $0x10] sm:$0xff] }
   0xf   :  { %v8222_v6 = vpack.c.bf16 %v75_v3, %v74_v2  ;;  %v80_v7 = vld [vmem:[%s11370_s22] sm:$0xff]  ;;  %v83_v11 = vld [vmem:[%s11370_s22 + $0x18] sm:$0xff]  ;;  %v85_v18 = vld [vmem:[%s11370_s22 + $0x28] sm:$0xff] }
  0x10   :  { %v96_v10 = vpack.c.bf16 %v81_v8, %v80_v7  ;;  %v77_v13 = vld [vmem:[%s11369_s0 + $0x18] sm:$0xff]  ;;  %6898 = vmatprep.subr.msk.bf16.mxu0 %vm136_vm0, %v73_v5  ;;  %v138_v14 = vsel %vm136_vm0, %v73_v5, 0  ;;  %v97_v15 = vpack.c.bf16 %v83_v11, %v82_v9  ;;  %v84_v17 = vld [vmem:[%s11370_s22 + $0x20] sm:$0xff] }
  0x11   :  { %6711 = vmatpush3.bf16.msra.mxu1 %v8222_v6  ;;  %v8247_v16 = vpack.c.bf16 %v77_v13, %v76_v12  ;;  %6693 = vmatpush3.bf16.msra.mxu0 %v138_v14  ;;  %v98_v19 = vpack.c.bf16 %v85_v18, %v84_v17 }
  0x12   :  { %6694 = vmatprep.mubr.msk.bf16.mxu0 %vm111_vm1, %v96_v10  ;;  %6712 = vmatprep.subr.bf16.mxu1 %v11302_v4 }
  0x13   :  { %6742 = vmatprep.subr.bf16.mxu0 %v11302_v4 }
  0x14   :  { %6695 = vmatmul.mubr.msk.bf16.vlgmr.msra.gmra.mrb[0].mxu0 %vm111_vm1, %v97_v15 }
  0x15   :  { %6713 = vmatpush3.bf16.msra.mxu1 %v8247_v16 }
  0x16   :  { %28 = vsyncpa [#allocation4], 0  ;;  %6698 = vmatprep.mubr.msk.bf16.mxu0 %vm111_vm1, %v98_v19  ;;  %v86_v21 = vld [vmem:[%s11370_s22 + $0x30] sm:$0xff]  ;;  %v87_v22 = vld [vmem:[%s11370_s22 + $0x38] sm:$0xff]  ;;  %6718 = vmatprep.subr.bf16.mxu1 %v11302_v4  ;;  %s11371_s27 = sld [smem:[#allocation20_spill]]  ;;  %s8085_s3 = smov 32  }
  0x17   :  { %v88_v23 = vld [vmem:[%s11370_s22 + $0x40] sm:$0xff]  ;;  %v89_v24 = vld [vmem:[%s11370_s22 + $0x48] sm:$0xff]  ;;  %6743 = vmatpush3.bf16.msra.mxu0 %v8222_v6  ;;  %v99_v25 = vpack.c.bf16 %v87_v22, %v86_v21  ;;  %v90_v27 = vld [vmem:[%s11370_s22 + $0x50] sm:$0xff]  ;;  %vm763_vm3 = vcmask 1041409   ;;  %vm766_vm4 = vcmask 1042434   ;;  %vm769_vm5 = vcmask 1043459  }
  0x18   :  { %6715 = vmatmul.mubr.bf16.vlgmr.msra.gmra.mrb[0].mxu1 %v8083_v20  ;;  %6744 = vmatprep.subr.bf16.mxu0 %v11302_v4  ;;  %v100_v26 = vpack.c.bf16 %v89_v24, %v88_v23  ;;  %v91_v28 = vld [vmem:[%s11370_s22 + $0x58] sm:$0xff]  ;;  %v92_v29 = vld [vmem:[%s11370_s22 + $0x60] sm:$0xff]  ;;  %v93_v30 = vld [vmem:[%s11370_s22 + $0x68] sm:$0xff]  ;;  %vm772_vm6 = vcmask 1044484   ;;  %vm775_vm7 = vcmask 1045509   ;;  %vm778_vm8 = vcmask 1046534  }
  0x19   :  { %6719 = vmatpush3.bf16.msra.mxu1 %v8222_v6  ;;  %6722 = vmatprep.mubr.msk.bf16.mxu1 %vm11359_vm2, %v11302_v4  ;;  %v101_v31 = vpack.c.bf16 %v91_v28, %v90_v27  ;;  %v102_v32 = vpack.c.bf16 %v93_v30, %v92_v29  ;;  %v94_v33 = vld [vmem:[%s11370_s22 + $0x70] sm:$0xff]  ;;  %v95_v34 = vld [vmem:[%s11370_s22 + $0x78] sm:$0xff]  ;;  %s8084_s22 = smov 64   ;;  %vm781_vm9 = vcmask 1047559   ;;  %vm11358_vm10 = vcmask 261120   ;;  %s11481_s30 = sld [smem:[#allocation16_spill]] }
  0x1a   :  { %6720 = vmatprep.subr.bf16.mxu1 %v11302_v4  ;;  %v103_v35 = vpack.c.bf16 %v95_v34, %v94_v33  ;;  %vm5067_vm11 = vcmask 130048   ;;  %s11482_s0 = sld [smem:[#allocation17_spill]]  ;;  %s8089_s25 = smov 120  }
  0x1b   :  { %6745 = vmatpush3.bf16.msra.mxu0 %v8247_v16  ;;  %s8091_s26 = smov 112   ;;  %s8093_s2 = smov 40  }
  0x1c   :  { %6758 = vmatprep.subr.bf16.mxu0 %v11302_v4  ;;  %6699 = vmatmul.mubr.msk.bf16.gmra.mrb[4].mxu0 %vm111_vm1, %v99_v25  ;;  %v8312_v37 = vld [vmem:[%s11371_s27] ss:$0 sm:$0xff] }
  0x1d   :  { %6721 = vmatpush3.bf16.msra.mxu1 %v8247_v16  ;;  %6702 = vmatprep.mubr.msk.bf16.mxu0 %vm111_vm1, %v100_v26 }
  0x1e   :  { %6726 = vmatprep.subr.bf16.mxu1 %v11302_v4 }
  0x24   :  { %6703 = vmatmul.mubr.msk.bf16.gmra.mrb[8].mxu0 %vm111_vm1, %v101_v31 }
  0x25   :  { %6706 = vmatprep.mubr.msk.bf16.mxu0 %vm111_vm1, %v102_v32 }
  0x2c   :  { %6707 = vmatmul.mubr.msk.bf16.gmra.mrb[12].mxu0 %vm111_vm1, %v103_v35 }
  0x2d   :  { %6746 = vmatprep.mubr.msk.bf16.mxu0 %vm11359_vm2, %v11302_v4 }
  0xe7   :  { %v6696_v36 = vpop.f32.mrb[0].mxu0 }
  0xe8   :  { %v174_v38 = vpop.f32.mrb[1].mxu0  ;;  %v8330_v50 = vadd.f32 %v6696_v36, %v8312_v37 }
  0xe9   :  { %v6697_v39 = vpop.f32.mrb[2].mxu0  ;;  %v8317_v42 = vadd.f32 %v8312_v37, %v174_v38 }
  0xea   :  { %v177_v40 = vpop.f32.mrb[3].mxu0  ;;  %v8333_v51 = vadd.f32 %v6697_v39, %v8312_v37 }
  0xeb   :  { %v8314_v41 = vpop.f32.mrb[0].mxu1  ;;  %v8322_v46 = vadd.f32 %v8312_v37, %v177_v40 }
  0xec   :  { %v6716_v43 = vpop.f32.mrb[1].mxu1  ;;  %v284_v47 = vrot.slane %v8314_v41, 1  ;;  %v8327_v49 = vadd.f32 %v8314_v41, %v8317_v42  ;;  %v286_v52 = vrot.slane %v8314_v41, 3  ;;  %v285_v54 = vrot.slane %v8314_v41, 2 }
  0xed   :  { %v8319_v44 = vpop.f32.mrb[2].mxu1  ;;  %v287_v59 = vrot.slane %v8314_v41, 4  ;;  %v288_v5 = vrot.slane %v8314_v41, 5  ;;  %v289_v35 = vrot.slane %v8314_v41, 6 }
  0xee   :  { %v6717_v45 = vpop.f32.mrb[3].mxu1  ;;  %v8341_v58 = vadd.f32 %v285_v54, %v8330_v50  ;;  %v8345_v60 = vadd.f32 %v284_v47, %v8322_v46  ;;  %6957 = vtanh.f32 %v8327_v49  ;;  %v8349_v61 = vadd.f32 %v286_v52, %v8333_v51 }
  0xef   :  { %v6700_v48 = vpop.f32.mrb[4].mxu0  ;;  %v292_v1 = vrot.slane %v8319_v44, 2  ;;  %v293_v12 = vrot.slane %v8319_v44, 3  ;;  %v296_v21 = vrot.slane %v8319_v44, 6  ;;  %v291_v25 = vrot.slane %v8319_v44, 1 }
  0xf0   :  { %v190_v53 = vpop.f32.mrb[5].mxu0  ;;  %6959 = vtanh.f32 %v8341_v58  ;;  %v8408_v32 = vadd.f32 %v6700_v48, %v8312_v37  ;;  %v294_v34 = vrot.slane %v8319_v44, 4  ;;  %v295_v45 = vrot.slane %v8319_v44, 5 }
  0xf1   :  { %v8338_v55 = vadd.f32 %v8312_v37, %v190_v53  ;;  %v6701_v56 = vpop.f32.mrb[6].mxu0  ;;  %6961 = vtanh.f32 %v8345_v60  ;;  %v290_v48 = vrot.slane %v8314_v41, 7 }
  0xf2   :  { %v193_v57 = vpop.f32.mrb[7].mxu0  ;;  %6963 = vtanh.f32 %v8349_v61  ;;  %v8423_v40 = vadd.f32 %v6701_v56, %v8312_v37  ;;  %v320_v43 = vadd.f32 %v289_v35, %v8408_v32 }
  0xf3   :  { %v8353_v62 = vadd.f32 %v287_v59, %v8338_v55  ;;  %v8357_v63 = vadd.f32 %v8312_v37, %v193_v57  ;;  %v297_v59 = vrot.slane %v8319_v44, 7 }
  0xf4   :  { %v8438_v57 = vadd.f32 %v290_v48, %v8423_v40 }
  0xf5   :  { %6965 = vtanh.f32 %v8353_v62  ;;  %v8377_v13 = vadd.f32 %v288_v5, %v8357_v63 }
  0xf7   :  { %v6704_v0 = vpop.f32.mrb[8].mxu0 }
  0xf8   :  { %v8362_v2 = vadd.f32 %v6704_v0, %v8312_v37  ;;  %v206_v3 = vpop.f32.mrb[9].mxu0  ;;  %v6958_v15 = vpop.eup %6957 }
  0xf9   :  { %v8366_v7 = vadd.f32 %v8312_v37, %v206_v3  ;;  %v6705_v8 = vpop.f32.mrb[10].mxu0  ;;  %474 = vrot.lane.b32.xlu0 %v6958_v15, %s8084_s22  ;;  %v6459_v15 = vmul.f32 -1.442695, %v8349_v61 }
  0xfa   :  { %v8370_v9 = vadd.f32 %v6705_v8, %v8312_v37  ;;  %v209_v10 = vpop.f32.mrb[11].mxu0  ;;  %v8373_v11 = vadd.f32 %v292_v1, %v8362_v2  ;;  %v6960_v18 = vpop.eup %6959 }
  0xfb   :  { %v8382_v14 = vadd.f32 %v8319_v44, %v8366_v7  ;;  %v8389_v19 = vadd.f32 %v8312_v37, %v209_v10  ;;  %478 = vrot.lane.b32.xlu1 %v6960_v18, %s8084_s22  ;;  %v6962_v24 = vpop.eup %6961  ;;  %v6456_v10 = vmul.f32 -1.442695, %v8327_v49  ;;  %v6458_v18 = vmul.f32 -1.442695, %v8341_v58 }
  0xfc   :  { %6967 = vtanh.f32 %v8373_v11  ;;  %v8385_v17 = vadd.f32 %v293_v12, %v8370_v9  ;;  %v6964_v27 = vpop.eup %6963  ;;  %v6457_v12 = vmul.f32 -1.442695, %v8345_v60 }
  0xfd   :  { %6969 = vtanh.f32 %v8377_v13  ;;  %476 = vrot.lane.b32.xlu0 %v6962_v24, %s8084_s22  ;;  %v323_v33 = vadd.f32 %v291_v25, %v8389_v19 }
  0xfe   :  { %6971 = vtanh.f32 %v8382_v14 }
  0xff   :  { %v6708_v20 = vpop.f32.mrb[12].mxu0  ;;  %6973 = vtanh.f32 %v8385_v17  ;;  %v6966_v31 = vpop.eup %6965  ;;  %480 = vrot.lane.b32.xlu1 %v6964_v27, %s8084_s22 }
 0x100   :  { %v8395_v22 = vadd.f32 %v6708_v20, %v8312_v37  ;;  %v222_v23 = vpop.f32.mrb[13].mxu0  ;;  %v6466_v20 = vmul.f32 -1.442695, %v8373_v11 }
 0x101   :  { %v6709_v26 = vpop.f32.mrb[14].mxu0  ;;  %v8402_v28 = vadd.f32 %v8312_v37, %v222_v23  ;;  %482 = vrot.lane.b32.xlu0 %v6966_v31, %s8084_s22  ;;  %v6467_v23 = vmul.f32 -1.442695, %v8385_v17  ;;  %v6462_v31 = vmul.f32 -1.442695, %v320_v43 }
 0x102   :  { %v225_v29 = vpop.f32.mrb[15].mxu0  ;;  %v8405_v30 = vadd.f32 %v296_v21, %v8395_v22  ;;  %v8430_v53 = vadd.f32 %v6709_v26, %v8312_v37  ;;  %v6465_v26 = vmul.f32 -1.442695, %v323_v33 }
 0x103   :  { %v8416_v38 = vadd.f32 %v8312_v37, %v225_v29  ;;  %v8420_v39 = vadd.f32 %v294_v34, %v8402_v28  ;;  %v6460_v34 = vmul.f32 -1.442695, %v8353_v62 }
 0x104   :  { %6975 = vtanh.f32 %v8405_v30  ;;  %v8445_v37 = vadd.f32 %v297_v59, %v8430_v53  ;;  %v6470_v61 = vmul.f32 -1.442695, %v8405_v30 }
 0x105   :  { %6977 = vtanh.f32 %v323_v33  ;;  %v8435_v54 = vadd.f32 %v295_v45, %v8416_v38  ;;  %v6468_v33 = vmul.f32 -1.442695, %v8420_v39 }
 0x106   :  { %v6968_v36 = vpop.eup %6967  ;;  %6979 = vtanh.f32 %v8420_v39 }
 0x107   :  { %494 = vrot.lane.b32.xlu1 %v6968_v36, %s8084_s22  ;;  %v6970_v47 = vpop.eup %6969  ;;  %6981 = vtanh.f32 %v320_v43  ;;  %v6461_v36 = vmul.f32 -1.442695, %v8377_v13  ;;  %v6464_v13 = vmul.f32 -1.442695, %v8382_v14  ;;  %v6463_v14 = vmul.f32 -1.442695, %v8438_v57 }
 0x108   :  { %v6972_v52 = vpop.eup %6971  ;;  %484 = vrot.lane.b32.xlu0 %v6970_v47, %s8084_s22  ;;  %6983 = vtanh.f32 %v8435_v54  ;;  %v6469_v47 = vmul.f32 -1.442695, %v8435_v54 }
 0x109   :  { %v6974_v56 = vpop.eup %6973  ;;  %6985 = vtanh.f32 %v8438_v57 }
 0x10a   :  { %6987 = vtanh.f32 %v8445_v37 }
 0x10b   :  { %496 = vrot.lane.b32.xlu1 %v6974_v56, %s8084_s22  ;;  %6989 = vpow2.f32 %v6456_v10 }
 0x10c   :  { %490 = vrot.lane.b32.xlu0 %v6972_v52, %s8084_s22  ;;  %6991 = vpow2.f32 %v6457_v12 }
 0x10d   :  { %6993 = vpow2.f32 %v6459_v15 }
 0x10e   :  { %v6976_v41 = vpop.eup %6975  ;;  %6995 = vpow2.f32 %v6458_v18 }
 0x10f   :  { %v6978_v0 = vpop.eup %6977  ;;  %502 = vrot.lane.b32.xlu1 %v6976_v41, %s8084_s22  ;;  %6997 = vpow2.f32 %v6466_v20  ;;  %v6471_v41 = vmul.f32 -1.442695, %v8445_v37 }
 0x110   :  { %492 = vrot.lane.b32.xlu0 %v6978_v0, %s8084_s22  ;;  %v6980_v44 = vpop.eup %6979  ;;  %6999 = vpow2.f32 %v6467_v23 }
 0x111   :  { %v6982_v1 = vpop.eup %6981 }
 0x112   :  { %v6984_v3 = vpop.eup %6983 }
 0x113   :  { %498 = vrot.lane.b32.xlu1 %v6980_v44, %s8084_s22  ;;  %v6986_v5 = vpop.eup %6985 }
 0x114   :  { %486 = vrot.lane.b32.xlu0 %v6982_v1, %s8084_s22  ;;  %v6988_v8 = vpop.eup %6987 }
 0x115   :  { %v6990_v21 = vpop.eup %6989 }
 0x116   :  { %v378_v24 = vadd.f32 1.0, %v6990_v21  ;;  %v6992_v25 = vpop.eup %6991 }
 0x117   :  { %500 = vrot.lane.b32.xlu1 %v6984_v3, %s8084_s22  ;;  %v6994_v49 = vpop.eup %6993  ;;  %v379_v60 = vadd.f32 1.0, %v6992_v25 }
 0x118   :  { %488 = vrot.lane.b32.xlu0 %v6986_v5, %s8084_s22  ;;  %7001 = vrcp.f32 %v378_v24  ;;  %v6996_v27 = vpop.eup %6995  ;;  %v381_v29 = vadd.f32 1.0, %v6994_v49 }
 0x119   :  { %v6998_v58 = vpop.eup %6997  ;;  %7003 = vpow2.f32 %v6465_v26  ;;  %v380_v11 = vadd.f32 1.0, %v6996_v27 }
 0x11a   :  { %7005 = vrcp.f32 %v379_v60  ;;  %v388_v17 = vadd.f32 1.0, %v6998_v58  ;;  %v7000_v35 = vpop.eup %6999 }
 0x11b   :  { %504 = vrot.lane.b32.xlu1 %v6988_v8, %s8084_s22  ;;  %7007 = vpow2.f32 %v6470_v61  ;;  %v389_v43 = vadd.f32 1.0, %v7000_v35 }
 0x11c   :  { %7009 = vrcp.f32 %v381_v29 }
 0x11d   :  { %7011 = vpow2.f32 %v6462_v31 }
 0x11e   :  { %7013 = vrcp.f32 %v380_v11 }
 0x11f   :  { %7015 = vpow2.f32 %v6460_v34 }
 0x120   :  { %7017 = vrcp.f32 %v388_v17 }
 0x121   :  { %7019 = vpow2.f32 %v6468_v33 }
 0x122   :  { %v8466_v30 = vpop.eup %7001  ;;  %7021 = vpow2.f32 %v6461_v36 }
 0x123   :  { %v7004_v52 = vpop.eup %7003  ;;  %7023 = vrcp.f32 %v389_v43 }
 0x124   :  { %v8471_v39 = vpop.eup %7005  ;;  %7025 = vpow2.f32 %v6469_v47  ;;  %v387_v1 = vadd.f32 1.0, %v7004_v52 }
 0x125   :  { %v7008_v59 = vpop.eup %7007  ;;  %7027 = vpow2.f32 %v6464_v13 }
 0x126   :  { %v8476_v0 = vpop.eup %7009  ;;  %7029 = vpow2.f32 %v6471_v41  ;;  %v392_v15 = vadd.f32 1.0, %v7008_v59 }
 0x127   :  { %v7012_v3 = vpop.eup %7011  ;;  %7031 = vrcp.f32 %v387_v1 }
 0x128   :  { %v8480_v8 = vpop.eup %7013  ;;  %v384_v21 = vadd.f32 1.0, %v7012_v3  ;;  %7033 = vpow2.f32 %v6463_v14 }
 0x129   :  { %v7016_v12 = vpop.eup %7015  ;;  %7035 = vrcp.f32 %v392_v15 }
 0x12a   :  { %v8485_v18 = vpop.eup %7017  ;;  %v382_v49 = vadd.f32 1.0, %v7016_v12  ;;  %7037 = vrcp.f32 %v384_v21 }
 0x12b   :  { %v7020_v23 = vpop.eup %7019 }
 0x12c   :  { %v7022_v25 = vpop.eup %7021  ;;  %v390_v27 = vadd.f32 1.0, %v7020_v23  ;;  %7039 = vrcp.f32 %v382_v49 }
 0x12d   :  { %v8490_v26 = vpop.eup %7023  ;;  %v383_v31 = vadd.f32 1.0, %v7022_v25 }
 0x12e   :  { %v7026_v61 = vpop.eup %7025  ;;  %7041 = vrcp.f32 %v390_v27  ;;  %v442_v27 = vmul.f32 0.0, %v8466_v30 }
 0x12f   :  { %v7028_v11 = vpop.eup %7027  ;;  %v391_v34 = vadd.f32 1.0, %v7026_v61  ;;  %7043 = vrcp.f32 %v383_v31 }
 0x130   :  { %v7030_v17 = vpop.eup %7029 }
 0x131   :  { %v8494_v33 = vpop.eup %7031  ;;  %7045 = vrcp.f32 %v391_v34  ;;  %v445_v34 = vmul.f32 0.0, %v8476_v0 }
 0x132   :  { %v7034_v47 = vpop.eup %7033 }
 0x16b   :  { %v475_v45 = vpop.permute.xlu0 %474 }
 0x16c   :  { %v522_v62 = vmul.f32 %v8466_v30, %v475_v45  ;;  %v386_v45 = vadd.f32 1.0, %v7028_v11 }
 0x16d   :  { %v479_v48 = vpop.permute.xlu1 %478 }
 0x16e   :  { %554 = vrot.lane.b32.xlu0 %v522_v62, %s8085_s3  ;;  %v524_v37 = vmul.f32 %v8480_v8, %v479_v48  ;;  %v393_v62 = vadd.f32 1.0, %v7030_v17  ;;  %v8497_v48 = vpop.eup %7035  ;;  %7047 = vrcp.f32 %v386_v45 }
 0x16f   :  { %v477_v56 = vpop.permute.xlu0 %476  ;;  %v8500_v13 = vpop.eup %7037 }
 0x170   :  { %v523_v54 = vmul.f32 %v8471_v39, %v477_v56  ;;  %7049 = vrcp.f32 %v393_v62 }
 0x171   :  { %v481_v44 = vpop.permute.xlu1 %480 }
 0x172   :  { %v525_v5 = vmul.f32 %v8476_v0, %v481_v44  ;;  %556 = vrot.lane.b32.xlu0 %v523_v54, %s8085_s3  ;;  %v385_v54 = vadd.f32 1.0, %v7034_v47  ;;  %v8504_v44 = vpop.eup %7039  ;;  %v452_v47 = vmul.f32 0.0, %v8485_v18 }
 0x173   :  { %v483_v10 = vpop.permute.xlu0 %482  ;;  %v8508_v1 = vpop.eup %7041 }
 0x174   :  { %560 = vrot.lane.b32.xlu1 %v525_v5, %s8085_s3  ;;  %v526_v5 = vmul.f32 %v8504_v44, %v483_v10  ;;  %7051 = vrcp.f32 %v385_v54  ;;  %v8512_v12 = vpop.eup %7043 }
 0x176   :  { %558 = vrot.lane.b32.xlu0 %v524_v37, %s8085_s3  ;;  %v8516_v37 = vpop.eup %7045 }
 0x178   :  { %v8520_v23 = vpop.eup %7047 }
 0x179   :  { %v495_v20 = vpop.permute.xlu1 %494 }
 0x17a   :  { %v532_v24 = vmul.f32 %v8485_v18, %v495_v20  ;;  %v485_v57 = vpop.permute.xlu0 %484  ;;  %v8524_v10 = vpop.eup %7049 }
 0x17b   :  { %v527_v15 = vmul.f32 %v8512_v12, %v485_v57 }
 0x17c   :  { %574 = vrot.lane.b32.xlu1 %v532_v24, %s8085_s3 }
 0x17d   :  { %v497_v60 = vpop.permute.xlu1 %496 }
 0x17e   :  { %v533_v29 = vmul.f32 %v8490_v26, %v497_v60  ;;  %v491_v58 = vpop.permute.xlu0 %490  ;;  %v8530_v57 = vpop.eup %7051 }
 0x17f   :  { %v530_v24 = vmul.f32 %v8520_v23, %v491_v58  ;;  %v443_v58 = vmul.f32 0.0, %v8471_v39 }
 0x180   :  { %576 = vrot.lane.b32.xlu1 %v533_v29, %s8085_s3 }
 0x181   :  { %v503_v35 = vpop.permute.xlu1 %502 }
 0x182   :  { %v493_v36 = vpop.permute.xlu0 %492  ;;  %v536_v59 = vmul.f32 %v8497_v48, %v503_v35 }
 0x183   :  { %v531_v43 = vmul.f32 %v8494_v33, %v493_v36  ;;  %v444_v36 = vmul.f32 0.0, %v8480_v8 }
 0x185   :  { %572 = vrot.lane.b32.xlu1 %v531_v43, %s8085_s3  ;;  %v499_v52 = vpop.permute.xlu1 %498 }
 0x186   :  { %v487_v56 = vpop.permute.xlu0 %486  ;;  %v534_v14 = vmul.f32 %v8508_v1, %v499_v52 }
 0x187   :  { %v528_v41 = vmul.f32 %v8500_v13, %v487_v56 }
 0x189   :  { %566 = vrot.lane.b32.xlu0 %v528_v41, %s8085_s3  ;;  %582 = vrot.lane.b32.xlu1 %v536_v59, %s8085_s3  ;;  %v501_v3 = vpop.permute.xlu1 %500  ;;  %v453_v59 = vmul.f32 0.0, %v8490_v26 }
 0x18a   :  { %v535_v20 = vmul.f32 %v8516_v37, %v501_v3  ;;  %v489_v49 = vpop.permute.xlu0 %488 }
 0x18b   :  { %v529_v60 = vmul.f32 %v8530_v57, %v489_v49  ;;  %v456_v49 = vmul.f32 0.0, %v8497_v48 }
 0x18d   :  { %562 = vrot.lane.b32.xlu0 %v526_v5, %s8085_s3  ;;  %578 = vrot.lane.b32.xlu1 %v534_v14, %s8085_s3  ;;  %v505_v21 = vpop.permute.xlu1 %504  ;;  %v451_v14 = vmul.f32 0.0, %v8494_v33 }
 0x18e   :  { %v537_v25 = vmul.f32 %v8524_v10, %v505_v21 }
 0x191   :  { %564 = vrot.lane.b32.xlu0 %v527_v15, %s8085_s3  ;;  %580 = vrot.lane.b32.xlu1 %v535_v20, %s8085_s3 }
 0x195   :  { %570 = vrot.lane.b32.xlu0 %v530_v24, %s8085_s3  ;;  %584 = vrot.lane.b32.xlu1 %v537_v25, %s8085_s3  ;;  %v448_v25 = vmul.f32 0.0, %v8500_v13 }
 0x199   :  { %568 = vrot.lane.b32.xlu0 %v529_v60, %s8085_s3 }
 0x1e0   :  { %v555_v61 = vpop.permute.xlu0 %554 }
 0x1e1   :  { %v8535_v29 = vadd.f32 %v555_v61, %v442_v27 }
 0x1e3   :  { %7053 = vtanh.f32 %v8535_v29 }
 0x1e4   :  { %v557_v31 = vpop.permute.xlu0 %556 }
 0x1e5   :  { %v8539_v11 = vadd.f32 %v557_v31, %v443_v58 }
 0x1e6   :  { %v561_v17 = vpop.permute.xlu1 %560 }
 0x1e7   :  { %7055 = vtanh.f32 %v8539_v11  ;;  %v8543_v35 = vadd.f32 %v561_v17, %v445_v34  ;;  %v446_v34 = vmul.f32 0.0, %v8504_v44  ;;  %v454_v17 = vmul.f32 0.0, %v8508_v1 }
 0x1e8   :  { %v559_v45 = vpop.permute.xlu0 %558 }
 0x1e9   :  { %7057 = vtanh.f32 %v8543_v35  ;;  %v8547_v43 = vadd.f32 %v559_v45, %v444_v36 }
 0x1eb   :  { %7059 = vtanh.f32 %v8547_v43 }
 0x1ed   :  { %v7054_v56 = vpop.eup %7053 }
 0x1ee   :  { %v575_v62 = vpop.permute.xlu1 %574  ;;  %650 = vrot.lane.b32.xlu0 %v7054_v56, %s8084_s22  ;;  %v447_v56 = vmul.f32 0.0, %v8512_v12 }
 0x1ef   :  { %v8551_v52 = vadd.f32 %v575_v62, %v452_v47 }
 0x1f1   :  { %7061 = vtanh.f32 %v8551_v52  ;;  %v7056_v3 = vpop.eup %7055 }
 0x1f2   :  { %v577_v41 = vpop.permute.xlu1 %576  ;;  %652 = vrot.lane.b32.xlu0 %v7056_v3, %s8084_s22 }
 0x1f3   :  { %v8556_v54 = vadd.f32 %v577_v41, %v453_v59  ;;  %v7058_v5 = vpop.eup %7057  ;;  %v455_v59 = vmul.f32 0.0, %v8516_v37 }
 0x1f4   :  { %656 = vrot.lane.b32.xlu1 %v7058_v5, %s8084_s22 }
 0x1f5   :  { %7063 = vtanh.f32 %v8556_v54  ;;  %v7060_v20 = vpop.eup %7059 }
 0x1f6   :  { %654 = vrot.lane.b32.xlu0 %v7060_v20, %s8084_s22  ;;  %v450_v20 = vmul.f32 0.0, %v8520_v23 }
 0x1f7   :  { %v573_v15 = vpop.permute.xlu1 %572 }
 0x1f8   :  { %v8562_v21 = vadd.f32 %v573_v15, %v451_v14 }
 0x1fa   :  { %7065 = vtanh.f32 %v8562_v21 }
 0x1fb   :  { %v7062_v24 = vpop.eup %7061  ;;  %v567_v60 = vpop.permute.xlu0 %566 }
 0x1fc   :  { %v583_v27 = vpop.permute.xlu1 %582  ;;  %670 = vrot.lane.b32.xlu1 %v7062_v24, %s8084_s22  ;;  %v8569_v61 = vadd.f32 %v567_v60, %v448_v25  ;;  %v457_v24 = vmul.f32 0.0, %v8524_v10 }
 0x1fd   :  { %v8571_v58 = vadd.f32 %v583_v27, %v456_v49 }
 0x1fe   :  { %11372 = vst [vmem:[#allocation6_spill] sm:$0xff] %v8569_v61  ;;  %7067 = vtanh.f32 %v8569_v61 }
 0x1ff   :  { %11373 = vst [vmem:[#allocation7_spill] sm:$0xff] %v8571_v58  ;;  %v7064_v31 = vpop.eup %7063  ;;  %7069 = vtanh.f32 %v8571_v58  ;;  %v563_v36 = vpop.permute.xlu0 %562 }
 0x200   :  { %v579_v45 = vpop.permute.xlu1 %578  ;;  %672 = vrot.lane.b32.xlu1 %v7064_v31, %s8084_s22  ;;  %v8578_v47 = vadd.f32 %v563_v36, %v446_v34 }
 0x201   :  { %v8580_v62 = vadd.f32 %v579_v45, %v454_v17  ;;  %v449_v17 = vmul.f32 0.0, %v8530_v57 }
 0x202   :  { %7071 = vtanh.f32 %v8578_v47 }
 0x203   :  { %11374 = vst [vmem:[#allocation8_spill] sm:$0xff] %v8580_v62  ;;  %7073 = vtanh.f32 %v8580_v62  ;;  %v565_v41 = vpop.permute.xlu0 %564 }
 0x204   :  { %v581_v3 = vpop.permute.xlu1 %580  ;;  %v7066_v5 = vpop.eup %7065  ;;  %v8586_v14 = vadd.f32 %v565_v41, %v447_v56 }
 0x205   :  { %v8588_v15 = vadd.f32 %v581_v3, %v455_v59  ;;  %668 = vrot.lane.b32.xlu1 %v7066_v5, %s8084_s22 }
 0x206   :  { %11375 = vst [vmem:[#allocation9_spill] sm:$0xff] %v8586_v14  ;;  %7075 = vtanh.f32 %v8586_v14 }
 0x207   :  { %11376 = vst [vmem:[#allocation10_spill] sm:$0xff] %v8588_v15  ;;  %7077 = vtanh.f32 %v8588_v15  ;;  %v571_v25 = vpop.permute.xlu0 %570 }
 0x208   :  { %v585_v49 = vpop.permute.xlu1 %584  ;;  %v7068_v60 = vpop.eup %7067  ;;  %v8595_v27 = vadd.f32 %v571_v25, %v450_v20 }
 0x209   :  { %v8597_v31 = vadd.f32 %v585_v49, %v457_v24  ;;  %v7070_v34 = vpop.eup %7069  ;;  %662 = vrot.lane.b32.xlu0 %v7068_v60, %s8084_s22 }
 0x20a   :  { %7079 = vtanh.f32 %v8595_v27  ;;  %678 = vrot.lane.b32.xlu1 %v7070_v34, %s8084_s22 }
 0x20b   :  { %11377 = vst [vmem:[#allocation11_spill] sm:$0xff] %v8597_v31  ;;  %7081 = vtanh.f32 %v8597_v31  ;;  %v569_v36 = vpop.permute.xlu0 %568 }
 0x20c   :  { %v7072_v45 = vpop.eup %7071  ;;  %v8604_v56 = vadd.f32 %v569_v36, %v449_v17 }
 0x20d   :  { %v7074_v59 = vpop.eup %7073  ;;  %658 = vrot.lane.b32.xlu0 %v7072_v45, %s8084_s22 }
 0x20e   :  { %11378 = vst [vmem:[#allocation12_spill] sm:$0xff] %v8604_v56  ;;  %7083 = vtanh.f32 %v8604_v56  ;;  %674 = vrot.lane.b32.xlu1 %v7074_v59, %s8084_s22 }
 0x210   :  { %v7076_v41 = vpop.eup %7075 }
 0x211   :  { %v7078_v3 = vpop.eup %7077  ;;  %660 = vrot.lane.b32.xlu0 %v7076_v41, %s8084_s22 }
 0x212   :  { %676 = vrot.lane.b32.xlu1 %v7078_v3, %s8084_s22 }
 0x214   :  { %v7080_v5 = vpop.eup %7079 }
 0x215   :  { %v7082_v20 = vpop.eup %7081  ;;  %666 = vrot.lane.b32.xlu0 %v7080_v5, %s8084_s22 }
 0x216   :  { %680 = vrot.lane.b32.xlu1 %v7082_v20, %s8084_s22 }
 0x218   :  { %v7084_v24 = vpop.eup %7083 }
 0x219   :  { %664 = vrot.lane.b32.xlu0 %v7084_v24, %s8084_s22 }
 0x260   :  { %v651_v49 = vpop.permute.xlu0 %650 }
 0x261   :  { %v698_v4 = vmul.f32 %v8466_v30, %v651_v49 }
 0x263   :  { %v714_v56 = vpack.c.bf16 %v698_v4, %v698_v4 }
 0x264   :  { %v653_v34 = vpop.permute.xlu0 %652 }
 0x265   :  { %v699_v59 = vmul.f32 %v8471_v39, %v653_v34  ;;  %v746_v4 = vunpack.c.l.b16 %v714_v56 }
 0x266   :  { %v657_v25 = vpop.permute.xlu1 %656 }
 0x267   :  { %v715_v5 = vpack.c.bf16 %v699_v59, %v699_v59  ;;  %v701_v20 = vmul.f32 %v8476_v0, %v657_v25 }
 0x268   :  { %v655_v36 = vpop.permute.xlu0 %654 }
 0x269   :  { %v700_v41 = vmul.f32 %v8480_v8, %v655_v36  ;;  %v747_v15 = vunpack.c.l.b16 %v715_v5  ;;  %v717_v8 = vpack.c.bf16 %v701_v20, %v701_v20 }
 0x26b   :  { %v716_v58 = vpack.c.bf16 %v700_v41, %v700_v41  ;;  %v762_v36 = vrot.slane %v747_v15, 7 }
 0x26d   :  { %v748_v34 = vunpack.c.l.b16 %v716_v58  ;;  %v764_v56 = vsel %vm763_vm3, %v762_v36, %v746_v4 }
 0x26e   :  { %v671_v60 = vpop.permute.xlu1 %670 }
 0x26f   :  { %v708_v39 = vmul.f32 %v8485_v18, %v671_v60  ;;  %v749_v60 = vunpack.c.l.b16 %v717_v8 }
 0x272   :  { %v673_v17 = vpop.permute.xlu1 %672 }
 0x273   :  { %v709_v30 = vmul.f32 %v8490_v26, %v673_v17  ;;  %v765_v17 = vrot.slane %v748_v34, 6 }
 0x277   :  { %v669_v45 = vpop.permute.xlu1 %668 }
 0x278   :  { %v707_v61 = vmul.f32 %v8494_v33, %v669_v45  ;;  %v724_v45 = vpack.c.bf16 %v708_v39, %v708_v39  ;;  %v767_v39 = vsel %vm766_vm4, %v765_v17, %v764_v56 }
 0x27a   :  { %v723_v59 = vpack.c.bf16 %v707_v61, %v707_v61 }
 0x27b   :  { %v663_v3 = vpop.permute.xlu0 %662 }
 0x27c   :  { %v679_v31 = vpop.permute.xlu1 %678  ;;  %v704_v18 = vmul.f32 %v8500_v13, %v663_v3 }
 0x27d   :  { %v712_v58 = vmul.f32 %v8497_v48, %v679_v31  ;;  %v756_v48 = vunpack.c.l.b16 %v724_v45 }
 0x27e   :  { %v720_v31 = vpack.c.bf16 %v704_v18, %v704_v18 }
 0x27f   :  { %v659_v24 = vpop.permute.xlu0 %658 }
 0x280   :  { %v702_v62 = vmul.f32 %v8504_v44, %v659_v24  ;;  %v675_v14 = vpop.permute.xlu1 %674  ;;  %v768_v24 = vrot.slane %v749_v60, 5  ;;  %v752_v45 = vunpack.c.l.b16 %v720_v31 }
 0x281   :  { %v710_v0 = vmul.f32 %v8508_v1, %v675_v14 }
 0x282   :  { %v718_v49 = vpack.c.bf16 %v702_v62, %v702_v62  ;;  %v725_v62 = vpack.c.bf16 %v709_v30, %v709_v30 }
 0x283   :  { %v661_v25 = vpop.permute.xlu0 %660  ;;  %v726_v14 = vpack.c.bf16 %v710_v0, %v710_v0 }
 0x284   :  { %v703_v33 = vmul.f32 %v8512_v12, %v661_v25  ;;  %v677_v44 = vpop.permute.xlu1 %676  ;;  %v750_v1 = vunpack.c.l.b16 %v718_v49  ;;  %v755_v12 = vunpack.c.l.b16 %v723_v59  ;;  %v757_v8 = vunpack.c.l.b16 %v725_v62 }
 0x285   :  { %v711_v26 = vmul.f32 %v8516_v37, %v677_v44  ;;  %v728_v37 = vpack.c.bf16 %v712_v58, %v712_v58  ;;  %v758_v49 = vunpack.c.l.b16 %v726_v14  ;;  %v785_v44 = vrot.slane %v756_v48, 6 }
 0x286   :  { %v719_v41 = vpack.c.bf16 %v703_v33, %v703_v33  ;;  %v771_v30 = vrot.slane %v750_v1, 4  ;;  %v783_v36 = vrot.slane %v755_v12, 7  ;;  %v777_v12 = vrot.slane %v752_v45, 2 }
 0x287   :  { %v727_v15 = vpack.c.bf16 %v711_v26, %v711_v26  ;;  %v667_v61 = vpop.permute.xlu0 %666  ;;  %v760_v18 = vunpack.c.l.b16 %v728_v37  ;;  %v770_v26 = vsel %vm769_vm5, %v768_v24, %v767_v39 }
 0x288   :  { %v751_v5 = vunpack.c.l.b16 %v719_v41  ;;  %v706_v20 = vmul.f32 %v8520_v23, %v667_v61  ;;  %v681_v13 = vpop.permute.xlu1 %680  ;;  %v773_v62 = vsel %vm772_vm6, %v771_v30, %v770_v26  ;;  %v789_v41 = vrot.slane %v758_v49, 4 }
 0x289   :  { %v713_v3 = vmul.f32 %v8524_v10, %v681_v13  ;;  %v759_v0 = vunpack.c.l.b16 %v727_v15  ;;  %v787_v10 = vrot.slane %v757_v8, 5 }
 0x28a   :  { %v722_v34 = vpack.c.bf16 %v706_v20, %v706_v20  ;;  %v774_v59 = vrot.slane %v751_v5, 3  ;;  %v793_v5 = vrot.slane %v760_v18, 2 }
 0x28b   :  { %v729_v25 = vpack.c.bf16 %v713_v3, %v713_v3  ;;  %v665_v4 = vpop.permute.xlu0 %664  ;;  %v791_v1 = vrot.slane %v759_v0, 3 }
 0x28c   :  { %v754_v23 = vunpack.c.l.b16 %v722_v34  ;;  %v705_v33 = vmul.f32 %v8530_v57, %v665_v4  ;;  %v776_v15 = vsel %vm775_vm7, %v774_v59, %v773_v62  ;;  %v11379_v34 = vmov 0.0  }
 0x28d   :  { %v761_v58 = vunpack.c.l.b16 %v729_v25  ;;  %v779_v31 = vsel %vm778_vm8, %v777_v12, %v776_v15 }
 0x28e   :  { %v784_v60 = vsel %vm763_vm3, %v783_v36, %v754_v23  ;;  %v721_v17 = vpack.c.bf16 %v705_v33, %v705_v33 }
 0x28f   :  { %v786_v14 = vsel %vm766_vm4, %v785_v44, %v784_v60  ;;  %v795_v61 = vrot.slane %v761_v58, 1 }
 0x290   :  { %v788_v57 = vsel %vm769_vm5, %v787_v10, %v786_v14  ;;  %v753_v56 = vunpack.c.l.b16 %v721_v17 }
 0x291   :  { %v790_v20 = vsel %vm772_vm6, %v789_v41, %v788_v57 }
 0x292   :  { %v780_v13 = vrot.slane %v753_v56, 1  ;;  %v792_v48 = vsel %vm775_vm7, %v791_v1, %v790_v20 }
 0x293   :  { %v794_v37 = vsel %vm778_vm8, %v793_v5, %v792_v48 }
 0x294   :  { %v782_v3 = vsel %vm781_vm9, %v780_v13, %v779_v31  ;;  %v796_v24 = vsel %vm781_vm9, %v795_v61, %v794_v37 }
 0x295   :  { %v797_v39 = vpack.c.b16 %v796_v24, %v782_v3 }
 0x297   :  { %798 = vrot.lane.b32.xlu0 %v797_v39, %s8085_s3 }
 0x309   :  { %v799_v8 = vpop.permute.xlu0 %798 }
 0x30a   :  { %6723 = vmatmul.mubr.msk.bf16.vlgmr.msra.gmra.mrb[4].mxu1 %vm11358_vm10, %v799_v8 }
 0x30b   :  { %6727 = vmatpush3.bf16.msra.mxu1 %v8222_v6  ;;  %6730 = vmatprep.mubr.msk.bf16.mxu1 %vm11359_vm2, %v11379_v34 }
 0x30c   :  { %6728 = vmatprep.subr.bf16.mxu1 %v11379_v34 }
 0x30f   :  { %6729 = vmatpush3.bf16.msra.mxu1 %v8247_v16 }
 0x310   :  { %6734 = vmatprep.subr.bf16.mxu1 %v11379_v34 }
 0x3dd   :  { %v837_v30 = vpop.f32.mrb[4].mxu1 }
 0x3de   :  { %v6724_v49 = vpop.f32.mrb[5].mxu1  ;;  %v848_v4 = vrot.slane %v837_v30, 2  ;;  %v846_v36 = vrot.slane %v837_v30, 7  ;;  %v8655_v59 = vadd.f32 %v837_v30, %v8322_v46  ;;  %v847_v33 = vrot.slane %v837_v30, 1 }
 0x3df   :  { %v8652_v0 = vpop.f32.mrb[6].mxu1  ;;  %v849_v17 = vrot.slane %v837_v30, 3  ;;  %v850_v15 = vrot.slane %v837_v30, 4  ;;  %v851_v5 = vrot.slane %v837_v30, 5  ;;  %v852_v31 = vrot.slane %v837_v30, 6 }
 0x3e0   :  { %v6725_v25 = vpop.f32.mrb[7].mxu1  ;;  %v8658_v23 = vadd.f32 %v848_v4, %v8333_v51  ;;  %v8661_v44 = vadd.f32 %v846_v36, %v8317_v42  ;;  %7085 = vtanh.f32 %v8655_v59  ;;  %v8666_v45 = vadd.f32 %v847_v33, %v8330_v50 }
 0x3e1   :  { %v853_v18 = vrot.slane %v8652_v0, 7  ;;  %v854_v26 = vrot.slane %v8652_v0, 1  ;;  %v8678_v62 = vadd.f32 %v8652_v0, %v8389_v19  ;;  %v855_v1 = vrot.slane %v8652_v0, 2 }
 0x3e2   :  { %7087 = vtanh.f32 %v8658_v23  ;;  %v8688_v57 = vadd.f32 %v849_v17, %v8338_v55  ;;  %v856_v56 = vrot.slane %v8652_v0, 3  ;;  %v8698_v20 = vadd.f32 %v850_v15, %v8357_v63 }
 0x3e3   :  { %7089 = vtanh.f32 %v8661_v44  ;;  %v8674_v60 = vadd.f32 %v853_v18, %v8366_v7  ;;  %v8684_v14 = vadd.f32 %v854_v26, %v8362_v2  ;;  %v8694_v12 = vadd.f32 %v855_v1, %v8370_v9 }
 0x3e4   :  { %7091 = vtanh.f32 %v8666_v45  ;;  %v857_v13 = vrot.slane %v8652_v0, 4  ;;  %v8703_v48 = vadd.f32 %v856_v56, %v8402_v28  ;;  %v8707_v37 = vadd.f32 %v851_v5, %v8408_v32 }
 0x3e5   :  { %7093 = vtanh.f32 %v8674_v60  ;;  %v858_v39 = vrot.slane %v8652_v0, 5  ;;  %v8718_v30 = vadd.f32 %v852_v31, %v8423_v40  ;;  %v859_v4 = vrot.slane %v8652_v0, 6 }
 0x3e6   :  { %7095 = vtanh.f32 %v8678_v62  ;;  %v8713_v8 = vadd.f32 %v857_v13, %v8416_v38  ;;  %v6474_v15 = vmul.f32 -1.442695, %v8655_v59  ;;  %v6473_v56 = vmul.f32 -1.442695, %v8661_v44 }
 0x3e7   :  { %7097 = vtanh.f32 %v8684_v14  ;;  %v8724_v36 = vadd.f32 %v858_v39, %v8395_v22  ;;  %v6475_v5 = vmul.f32 -1.442695, %v8666_v45  ;;  %v6482_v39 = vmul.f32 -1.442695, %v8678_v62 }
 0x3e8   :  { %7099 = vtanh.f32 %v8688_v57  ;;  %v6477_v59 = vmul.f32 -1.442695, %v8688_v57  ;;  %v6478_v45 = vmul.f32 -1.442695, %v8698_v20  ;;  %v6485_v57 = vmul.f32 -1.442695, %v8703_v48 }
 0x3e9   :  { %7101 = vtanh.f32 %v8694_v12 }
 0x3ea   :  { %v7086_v58 = vpop.eup %7085  ;;  %7103 = vtanh.f32 %v8698_v20 }
 0x3eb   :  { %1086 = vrot.lane.b32.xlu1 %v7086_v58, %s8084_s22  ;;  %7105 = vtanh.f32 %v8703_v48  ;;  %v8731_v58 = vadd.f32 %v859_v4, %v8430_v53 }
 0x3ec   :  { %v7088_v10 = vpop.eup %7087  ;;  %7107 = vtanh.f32 %v8707_v37 }
 0x3ed   :  { %1090 = vrot.lane.b32.xlu0 %v7088_v10, %s8084_s22  ;;  %v7090_v41 = vpop.eup %7089  ;;  %7109 = vtanh.f32 %v8713_v8 }
 0x3ee   :  { %v7092_v61 = vpop.eup %7091  ;;  %7111 = vtanh.f32 %v8718_v30 }
 0x3ef   :  { %1084 = vrot.lane.b32.xlu1 %v7090_v41, %s8084_s22  ;;  %v7094_v3 = vpop.eup %7093  ;;  %7113 = vtanh.f32 %v8724_v36 }
 0x3f0   :  { %v7096_v24 = vpop.eup %7095  ;;  %7115 = vtanh.f32 %v8731_v58 }
 0x3f1   :  { %1100 = vrot.lane.b32.xlu0 %v7094_v3, %s8084_s22  ;;  %v7098_v49 = vpop.eup %7097  ;;  %7117 = vpow2.f32 %v6474_v15 }
 0x3f2   :  { %v7100_v25 = vpop.eup %7099 }
 0x3f3   :  { %1088 = vrot.lane.b32.xlu1 %v7092_v61, %s8084_s22  ;;  %v7102_v33 = vpop.eup %7101  ;;  %v6476_v61 = vmul.f32 -1.442695, %v8658_v23  ;;  %v6483_v23 = vmul.f32 -1.442695, %v8684_v14  ;;  %v6479_v14 = vmul.f32 -1.442695, %v8707_v37 }
 0x3f4   :  { %v7104_v18 = vpop.eup %7103 }
 0x3f5   :  { %1104 = vrot.lane.b32.xlu0 %v7098_v49, %s8084_s22  ;;  %v7106_v0 = vpop.eup %7105  ;;  %7119 = vpow2.f32 %v6476_v61 }
 0x3f6   :  { %v7108_v10 = vpop.eup %7107  ;;  %7121 = vpow2.f32 %v6473_v56 }
 0x3f7   :  { %1102 = vrot.lane.b32.xlu1 %v7096_v24, %s8084_s22  ;;  %v7110_v26 = vpop.eup %7109  ;;  %7123 = vpow2.f32 %v6475_v5  ;;  %v6481_v24 = vmul.f32 -1.442695, %v8674_v60  ;;  %v6484_v60 = vmul.f32 -1.442695, %v8694_v12  ;;  %v6486_v12 = vmul.f32 -1.442695, %v8713_v8 }
 0x3f8   :  { %v7112_v17 = vpop.eup %7111  ;;  %v6487_v8 = vmul.f32 -1.442695, %v8724_v36 }
 0x3f9   :  { %1106 = vrot.lane.b32.xlu0 %v7102_v33, %s8084_s22  ;;  %v7114_v41 = vpop.eup %7113 }
 0x3fa   :  { %v7116_v1 = vpop.eup %7115 }
 0x3fb   :  { %1092 = vrot.lane.b32.xlu1 %v7100_v25, %s8084_s22  ;;  %v7118_v13 = vpop.eup %7117 }
 0x3fc   :  { %v941_v31 = vadd.f32 1.0, %v7118_v13 }
 0x3fd   :  { %1108 = vrot.lane.b32.xlu0 %v7106_v0, %s8084_s22 }
 0x3fe   :  { %7125 = vrcp.f32 %v941_v31 }
 0x3ff   :  { %1094 = vrot.lane.b32.xlu1 %v7104_v18, %s8084_s22  ;;  %v7120_v3 = vpop.eup %7119  ;;  %7127 = vpow2.f32 %v6481_v24 }
 0x400   :  { %v7122_v49 = vpop.eup %7121  ;;  %v943_v25 = vadd.f32 1.0, %v7120_v3  ;;  %7129 = vpow2.f32 %v6482_v39 }
 0x401   :  { %1110 = vrot.lane.b32.xlu0 %v7110_v26, %s8084_s22  ;;  %v940_v44 = vadd.f32 1.0, %v7122_v49  ;;  %v7124_v4 = vpop.eup %7123  ;;  %7131 = vpow2.f32 %v6477_v59  ;;  %v6488_v59 = vmul.f32 -1.442695, %v8731_v58 }
 0x402   :  { %7133 = vrcp.f32 %v943_v25  ;;  %v942_v62 = vadd.f32 1.0, %v7124_v4 }
 0x403   :  { %1096 = vrot.lane.b32.xlu1 %v7108_v10, %s8084_s22  ;;  %7135 = vpow2.f32 %v6483_v23  ;;  %v6480_v10 = vmul.f32 -1.442695, %v8718_v30 }
 0x404   :  { %7137 = vrcp.f32 %v940_v44 }
 0x405   :  { %1112 = vrot.lane.b32.xlu0 %v7114_v41, %s8084_s22  ;;  %7139 = vpow2.f32 %v6478_v45 }
 0x406   :  { %7141 = vpow2.f32 %v6484_v60 }
 0x407   :  { %1098 = vrot.lane.b32.xlu1 %v7112_v17, %s8084_s22  ;;  %7143 = vrcp.f32 %v942_v62 }
 0x408   :  { %v8753_v33 = vpop.eup %7125  ;;  %7145 = vpow2.f32 %v6485_v57 }
 0x409   :  { %1114 = vrot.lane.b32.xlu0 %v7116_v1, %s8084_s22  ;;  %v7128_v18 = vpop.eup %7127  ;;  %7147 = vpow2.f32 %v6479_v14 }
 0x40a   :  { %v7130_v0 = vpop.eup %7129  ;;  %v948_v1 = vadd.f32 1.0, %v7128_v18  ;;  %7149 = vpow2.f32 %v6480_v10 }
 0x40b   :  { %v7132_v26 = vpop.eup %7131  ;;  %v949_v61 = vadd.f32 1.0, %v7130_v0  ;;  %7151 = vpow2.f32 %v6486_v12 }
 0x40c   :  { %v8759_v41 = vpop.eup %7133  ;;  %7153 = vrcp.f32 %v948_v1  ;;  %v944_v24 = vadd.f32 1.0, %v7132_v26 }
 0x40d   :  { %v7136_v15 = vpop.eup %7135  ;;  %7155 = vrcp.f32 %v949_v61 }
 0x40e   :  { %v8763_v56 = vpop.eup %7137  ;;  %v950_v31 = vadd.f32 1.0, %v7136_v15  ;;  %7157 = vpow2.f32 %v6487_v8 }
 0x40f   :  { %v7140_v13 = vpop.eup %7139 }
 0x410   :  { %v7142_v3 = vpop.eup %7141  ;;  %7159 = vrcp.f32 %v950_v31  ;;  %v945_v44 = vadd.f32 1.0, %v7140_v13 }
 0x411   :  { %v8769_v39 = vpop.eup %7143  ;;  %v951_v25 = vadd.f32 1.0, %v7142_v3  ;;  %7161 = vrcp.f32 %v944_v24 }
 0x412   :  { %v7146_v23 = vpop.eup %7145  ;;  %7163 = vpow2.f32 %v6488_v59 }
 0x413   :  { %v7148_v4 = vpop.eup %7147  ;;  %7165 = vrcp.f32 %v951_v25  ;;  %v952_v60 = vadd.f32 1.0, %v7146_v23 }
 0x414   :  { %v7150_v45 = vpop.eup %7149  ;;  %7167 = vrcp.f32 %v945_v44  ;;  %v946_v57 = vadd.f32 1.0, %v7148_v4 }
 0x415   :  { %v7152_v62 = vpop.eup %7151  ;;  %7169 = vrcp.f32 %v952_v60 }
 0x416   :  { %v8774_v14 = vpop.eup %7153  ;;  %v953_v26 = vadd.f32 1.0, %v7152_v62  ;;  %7171 = vrcp.f32 %v946_v57 }
 0x417   :  { %v8776_v18 = vpop.eup %7155 }
 0x418   :  { %v7158_v12 = vpop.eup %7157  ;;  %7173 = vrcp.f32 %v953_v26 }
 0x419   :  { %v954_v8 = vadd.f32 1.0, %v7158_v12 }
 0x45d   :  { %v1087_v20 = vpop.permute.xlu1 %1086 }
 0x45e   :  { %v1133_v17 = vmul.f32 %v8753_v33, %v1087_v20 }
 0x45f   :  { %v1091_v48 = vpop.permute.xlu0 %1090 }
 0x460   :  { %v1135_v37 = vmul.f32 %v8759_v41, %v1091_v48  ;;  %1166 = vrot.lane.b32.xlu1 %v1133_v17, %s8085_s3  ;;  %v947_v17 = vadd.f32 1.0, %v7150_v45  ;;  %v8781_v48 = vpop.eup %7159 }
 0x461   :  { %v1085_v30 = vpop.permute.xlu1 %1084  ;;  %v8784_v15 = vpop.eup %7161 }
 0x462   :  { %v1132_v5 = vmul.f32 %v8763_v56, %v1085_v30  ;;  %1170 = vrot.lane.b32.xlu0 %v1135_v37, %s8085_s3  ;;  %7175 = vrcp.f32 %v947_v17 }
 0x463   :  { %v1101_v58 = vpop.permute.xlu0 %1100  ;;  %7177 = vrcp.f32 %v954_v8  ;;  %v1023_v8 = vrot.slane %v8543_v35, 7 }
 0x464   :  { %1164 = vrot.lane.b32.xlu1 %v1132_v5, %s8085_s3  ;;  %v1140_v0 = vmul.f32 %v8774_v14, %v1101_v58  ;;  %v7164_v5 = vpop.eup %7163 }
 0x465   :  { %v1089_v49 = vpop.permute.xlu1 %1088  ;;  %v8789_v13 = vpop.eup %7165 }
 0x466   :  { %v1134_v36 = vmul.f32 %v8769_v39, %v1089_v49  ;;  %1180 = vrot.lane.b32.xlu0 %v1140_v0, %s8085_s3  ;;  %v8792_v3 = vpop.eup %7167 }
 0x467   :  { %v1105_v1 = vpop.permute.xlu0 %1104  ;;  %v8797_v25 = vpop.eup %7169 }
 0x468   :  { %1168 = vrot.lane.b32.xlu1 %v1134_v36, %s8085_s3  ;;  %v1142_v61 = vmul.f32 %v8781_v48, %v1105_v1  ;;  %v955_v36 = vadd.f32 1.0, %v7164_v5  ;;  %v8800_v44 = vpop.eup %7171 }
 0x469   :  { %v1103_v10 = vpop.permute.xlu1 %1102  ;;  %v8805_v62 = vpop.eup %7173 }
 0x46a   :  { %v1141_v20 = vmul.f32 %v8776_v18, %v1103_v10  ;;  %1184 = vrot.lane.b32.xlu0 %v1142_v61, %s8085_s3  ;;  %7179 = vrcp.f32 %v955_v36 }
 0x46b   :  { %v1107_v31 = vpop.permute.xlu0 %1106 }
 0x46c   :  { %1182 = vrot.lane.b32.xlu1 %v1141_v20, %s8085_s3  ;;  %v1143_v24 = vmul.f32 %v8789_v13, %v1107_v31  ;;  %v8808_v58 = vpop.eup %7175 }
 0x46d   :  { %v1093_v37 = vpop.permute.xlu1 %1092  ;;  %v8813_v26 = vpop.eup %7177 }
 0x46e   :  { %v1136_v30 = vmul.f32 %v8784_v15, %v1093_v37  ;;  %1186 = vrot.lane.b32.xlu0 %v1143_v24, %s8085_s3  ;;  %v1020_v24 = vrot.slane %v8535_v29, 7 }
 0x46f   :  { %v1109_v23 = vpop.permute.xlu0 %1108 }
 0x470   :  { %1172 = vrot.lane.b32.xlu1 %v1136_v30, %s8085_s3  ;;  %v1144_v4 = vmul.f32 %v8797_v25, %v1109_v23  ;;  %v1021_v30 = vrot.slane %v8539_v11, 7  ;;  %v1022_v11 = vrot.slane %v8547_v43, 7 }
 0x471   :  { %v1095_v49 = vpop.permute.xlu1 %1094 }
 0x472   :  { %v1137_v59 = vmul.f32 %v8792_v3, %v1095_v49  ;;  %1188 = vrot.lane.b32.xlu0 %v1144_v4, %s8085_s3  ;;  %v1053_v5 = vmul.f32 %v8753_v33, %v1021_v30  ;;  %v1052_v4 = vmul.f32 %v8763_v56, %v1020_v24  ;;  %v1054_v29 = vmul.f32 %v8769_v39, %v1022_v11 }
 0x473   :  { %v1111_v57 = vpop.permute.xlu0 %1110  ;;  %v1030_v30 = vrot.slane %v8551_v52, 7  ;;  %v1031_v52 = vrot.slane %v8556_v54, 7 }
 0x474   :  { %1174 = vrot.lane.b32.xlu1 %v1137_v59, %s8085_s3  ;;  %v1145_v0 = vmul.f32 %v8805_v62, %v1111_v57  ;;  %v8818_v1 = vpop.eup %7179  ;;  %v1055_v59 = vmul.f32 %v8759_v41, %v1023_v8 }
 0x475   :  { %v1097_v45 = vpop.permute.xlu1 %1096 }
 0x476   :  { %v1138_v60 = vmul.f32 %v8800_v44, %v1097_v45  ;;  %1190 = vrot.lane.b32.xlu0 %v1145_v0, %s8085_s3 }
 0x477   :  { %v1113_v12 = vpop.permute.xlu0 %1112 }
 0x478   :  { %1176 = vrot.lane.b32.xlu1 %v1138_v60, %s8085_s3  ;;  %v1146_v17 = vmul.f32 %v8813_v26, %v1113_v12 }
 0x479   :  { %v1099_v10 = vpop.permute.xlu1 %1098 }
 0x47a   :  { %v1139_v20 = vmul.f32 %v8808_v58, %v1099_v10  ;;  %1192 = vrot.lane.b32.xlu0 %v1146_v17, %s8085_s3  ;;  %v1028_v10 = vrot.slane %v8595_v27, 7  ;;  %v1024_v27 = vrot.slane %v8578_v47, 7  ;;  %v11381_v47 = vld [vmem:[#allocation9_spill] sm:$0xff] }
 0x47b   :  { %v1115_v61 = vpop.permute.xlu0 %1114  ;;  %v1025_v11 = vrot.slane %v11381_v47, 7  ;;  %v11388_v47 = vld [vmem:[#allocation12_spill] sm:$0xff] }
 0x47c   :  { %1178 = vrot.lane.b32.xlu1 %v1139_v20, %s8085_s3  ;;  %v1147_v37 = vmul.f32 %v8818_v1, %v1115_v61  ;;  %v1029_v20 = vrot.slane %v8562_v21, 7  ;;  %v1060_v12 = vmul.f32 %v8774_v14, %v1028_v10  ;;  %v1062_v21 = vmul.f32 %v8781_v48, %v1030_v30 }
 0x47d   :  { %v1057_v10 = vmul.f32 %v8792_v3, %v1025_v11  ;;  %v1027_v11 = vrot.slane %v11388_v47, 7 }
 0x47e   :  { %1194 = vrot.lane.b32.xlu0 %v1147_v37, %s8085_s3  ;;  %v1061_v61 = vmul.f32 %v8776_v18, %v1029_v20  ;;  %v11382_v20 = vld [vmem:[#allocation8_spill] sm:$0xff] }
 0x47f   :  { %v1032_v54 = vrot.slane %v11382_v20, 7  ;;  %v1059_v20 = vmul.f32 %v8808_v58, %v1027_v11 }
 0x481   :  { %v1064_v30 = vmul.f32 %v8797_v25, %v1032_v54 }
 0x4d2   :  { %v1167_v31 = vpop.permute.xlu1 %1166 }
 0x4d3   :  { %v8826_v49 = vadd.f32 %v1167_v31, %v1053_v5 }
 0x4d4   :  { %v1171_v36 = vpop.permute.xlu0 %1170 }
 0x4d5   :  { %7181 = vtanh.f32 %v8826_v49  ;;  %v8830_v23 = vadd.f32 %v1171_v36, %v1055_v59  ;;  %v1056_v59 = vmul.f32 %v8784_v15, %v1024_v27 }
 0x4d6   :  { %v1165_v45 = vpop.permute.xlu1 %1164 }
 0x4d7   :  { %7183 = vtanh.f32 %v8830_v23  ;;  %v8835_v35 = vadd.f32 %v1165_v45, %v1052_v4 }
 0x4d8   :  { %v1181_v17 = vpop.permute.xlu0 %1180 }
 0x4d9   :  { %7185 = vtanh.f32 %v8835_v35  ;;  %v8849_v8 = vadd.f32 %v1181_v17, %v1060_v12  ;;  %v11384_v17 = vld [vmem:[#allocation6_spill] sm:$0xff] }
 0x4da   :  { %v1169_v60 = vpop.permute.xlu1 %1168 }
 0x4db   :  { %v8839_v57 = vadd.f32 %v1169_v60, %v1054_v29  ;;  %11380 = vst [vmem:[#allocation13_spill] sm:$0xff] %v8849_v8  ;;  %v1063_v60 = vmul.f32 %v8789_v13, %v1031_v52 }
 0x4dc   :  { %v1185_v24 = vpop.permute.xlu0 %1184 }
 0x4dd   :  { %7187 = vtanh.f32 %v8839_v57  ;;  %v8860_v4 = vadd.f32 %v1185_v24, %v1062_v21  ;;  %v11386_v24 = vld [vmem:[#allocation10_spill] sm:$0xff] }
 0x4de   :  { %v1183_v5 = vpop.permute.xlu1 %1182  ;;  %7189 = vtanh.f32 %v8849_v8 }
 0x4df   :  { %v7182_v0 = vpop.eup %7181  ;;  %v8852_v31 = vadd.f32 %v1183_v5, %v1061_v61  ;;  %v1026_v61 = vrot.slane %v11384_v17, 7 }
 0x4e0   :  { %1262 = vrot.lane.b32.xlu1 %v7182_v0, %s8084_s22  ;;  %v1187_v0 = vpop.permute.xlu0 %1186 }
 0x4e1   :  { %v7184_v43 = vpop.eup %7183  ;;  %7191 = vtanh.f32 %v8852_v31  ;;  %v1058_v27 = vmul.f32 %v8800_v44, %v1026_v61 }
 0x4e2   :  { %1266 = vrot.lane.b32.xlu0 %v7184_v43, %s8084_s22  ;;  %v1173_v45 = vpop.permute.xlu1 %1172  ;;  %7193 = vtanh.f32 %v8860_v4  ;;  %v8871_v43 = vadd.f32 %v1187_v0, %v1063_v60 }
 0x4e3   :  { %v7186_v37 = vpop.eup %7185  ;;  %v8863_v29 = vadd.f32 %v1173_v45, %v1056_v59  ;;  %v1033_v59 = vrot.slane %v11386_v24, 7 }
 0x4e4   :  { %1260 = vrot.lane.b32.xlu1 %v7186_v37, %s8084_s22  ;;  %11383 = vst [vmem:[#allocation9_spill] sm:$0xff] %v8871_v43  ;;  %v1189_v5 = vpop.permute.xlu0 %1188 }
 0x4e5   :  { %7195 = vtanh.f32 %v8863_v29  ;;  %v1065_v0 = vmul.f32 %v8805_v62, %v1033_v59 }
 0x4e6   :  { %v1175_v12 = vpop.permute.xlu1 %1174  ;;  %7197 = vtanh.f32 %v8871_v43 }
 0x4e7   :  { %v7188_v36 = vpop.eup %7187  ;;  %v8874_v37 = vadd.f32 %v1175_v12, %v1057_v10  ;;  %v11390_v12 = vld [vmem:[#allocation7_spill] sm:$0xff] }
 0x4e8   :  { %1264 = vrot.lane.b32.xlu1 %v7188_v36, %s8084_s22  ;;  %v7190_v21 = vpop.eup %7189  ;;  %v8881_v36 = vadd.f32 %v1189_v5, %v1064_v30  ;;  %v1191_v10 = vpop.permute.xlu0 %1190  ;;  %v1034_v17 = vrot.slane %v11390_v12, 7 }
 0x4e9   :  { %11385 = vst [vmem:[#allocation8_spill] sm:$0xff] %v8874_v37  ;;  %7199 = vtanh.f32 %v8874_v37  ;;  %1276 = vrot.lane.b32.xlu0 %v7190_v21, %s8084_s22  ;;  %v8893_v61 = vadd.f32 %v1191_v10, %v1065_v0 }
 0x4ea   :  { %11387 = vst [vmem:[#allocation6_spill] sm:$0xff] %v8881_v36  ;;  %v1177_v52 = vpop.permute.xlu1 %1176  ;;  %7201 = vtanh.f32 %v8881_v36  ;;  %v1066_v21 = vmul.f32 %v8813_v26, %v1034_v17 }
 0x4eb   :  { %v7192_v45 = vpop.eup %7191  ;;  %v8885_v60 = vadd.f32 %v1177_v52, %v1058_v27  ;;  %11391 = vst [vmem:[#allocation12_spill] sm:$0xff] %v8893_v61  ;;  %v11393_v52 = vld [vmem:[#allocation11_spill] sm:$0xff] }
 0x4ec   :  { %1278 = vrot.lane.b32.xlu1 %v7192_v45, %s8084_s22  ;;  %v7194_v54 = vpop.eup %7193  ;;  %v1193_v24 = vpop.permute.xlu0 %1192  ;;  %v1035_v45 = vrot.slane %v11393_v52, 7 }
 0x4ed   :  { %11389 = vst [vmem:[#allocation10_spill] sm:$0xff] %v8885_v60  ;;  %7203 = vtanh.f32 %v8885_v60  ;;  %1280 = vrot.lane.b32.xlu0 %v7194_v54, %s8084_s22  ;;  %v8903_v47 = vadd.f32 %v1193_v24, %v1066_v21 }
 0x4ee   :  { %v1179_v30 = vpop.permute.xlu1 %1178  ;;  %7205 = vtanh.f32 %v8893_v61  ;;  %v1067_v0 = vmul.f32 %v8818_v1, %v1035_v45 }
 0x4ef   :  { %v7196_v5 = vpop.eup %7195  ;;  %v8896_v27 = vadd.f32 %v1179_v30, %v1059_v20  ;;  %11394 = vst [vmem:[#allocation11_spill] sm:$0xff] %v8903_v47 }
 0x4f0   :  { %1268 = vrot.lane.b32.xlu1 %v7196_v5, %s8084_s22  ;;  %v7198_v59 = vpop.eup %7197  ;;  %v1195_v10 = vpop.permute.xlu0 %1194 }
 0x4f1   :  { %11392 = vst [vmem:[#allocation7_spill] sm:$0xff] %v8896_v27  ;;  %7207 = vtanh.f32 %v8896_v27  ;;  %1282 = vrot.lane.b32.xlu0 %v7198_v59, %s8084_s22  ;;  %v8909_v54 = vadd.f32 %v1195_v10, %v1067_v0 }
 0x4f2   :  { %7209 = vtanh.f32 %v8903_v47 }
 0x4f3   :  { %v7200_v11 = vpop.eup %7199  ;;  %11395 = vst [vmem:[#allocation14_spill] sm:$0xff] %v8909_v54  ;;  %7211 = vtanh.f32 %v8909_v54 }
 0x4f4   :  { %1270 = vrot.lane.b32.xlu1 %v7200_v11, %s8084_s22  ;;  %v7202_v20 = vpop.eup %7201 }
 0x4f5   :  { %1284 = vrot.lane.b32.xlu0 %v7202_v20, %s8084_s22 }
 0x4f7   :  { %v7204_v12 = vpop.eup %7203 }
 0x4f8   :  { %1272 = vrot.lane.b32.xlu1 %v7204_v12, %s8084_s22  ;;  %v7206_v17 = vpop.eup %7205 }
 0x4f9   :  { %1286 = vrot.lane.b32.xlu0 %v7206_v17, %s8084_s22 }
 0x4fb   :  { %v7208_v30 = vpop.eup %7207 }
 0x4fc   :  { %1274 = vrot.lane.b32.xlu1 %v7208_v30, %s8084_s22  ;;  %v7210_v5 = vpop.eup %7209 }
 0x4fd   :  { %1288 = vrot.lane.b32.xlu0 %v7210_v5, %s8084_s22  ;;  %v7212_v21 = vpop.eup %7211 }
 0x501   :  { %1290 = vrot.lane.b32.xlu0 %v7212_v21, %s8084_s22 }
 0x552   :  { %v1263_v24 = vpop.permute.xlu1 %1262 }
 0x553   :  { %v1309_v61 = vmul.f32 %v8753_v33, %v1263_v24 }
 0x554   :  { %v1267_v52 = vpop.permute.xlu0 %1266 }
 0x555   :  { %v1325_v33 = vpack.c.bf16 %v1309_v61, %v1309_v61 }
 0x556   :  { %v1261_v59 = vpop.permute.xlu1 %1260 }
 0x557   :  { %v1308_v12 = vmul.f32 %v8763_v56, %v1261_v59  ;;  %v1311_v59 = vmul.f32 %v8759_v41, %v1267_v52 }
 0x559   :  { %v1324_v5 = vpack.c.bf16 %v1308_v12, %v1308_v12  ;;  %v1327_v41 = vpack.c.bf16 %v1311_v59, %v1311_v59 }
 0x55a   :  { %v1265_v45 = vpop.permute.xlu1 %1264 }
 0x55b   :  { %v1277_v11 = vpop.permute.xlu0 %1276  ;;  %v1310_v17 = vmul.f32 %v8769_v39, %v1265_v45  ;;  %v1356_v45 = vunpack.c.l.b16 %v1324_v5 }
 0x55c   :  { %v1316_v27 = vmul.f32 %v8774_v14, %v1277_v11 }
 0x55d   :  { %v1326_v8 = vpack.c.bf16 %v1310_v17, %v1310_v17  ;;  %v1372_v52 = vrot.slane %v1356_v45, 1 }
 0x55e   :  { %v1279_v0 = vpop.permute.xlu1 %1278  ;;  %v1332_v43 = vpack.c.bf16 %v1316_v27, %v1316_v27 }
 0x55f   :  { %v1281_v10 = vpop.permute.xlu0 %1280  ;;  %v1317_v21 = vmul.f32 %v8776_v18, %v1279_v0  ;;  %v1358_v24 = vunpack.c.l.b16 %v1326_v8 }
 0x560   :  { %v1318_v47 = vmul.f32 %v8781_v48, %v1281_v10 }
 0x561   :  { %v1333_v11 = vpack.c.bf16 %v1317_v21, %v1317_v21  ;;  %v1374_v61 = vrot.slane %v1358_v24, 7  ;;  %v1359_v21 = vunpack.c.l.b16 %v1327_v41 }
 0x562   :  { %v1269_v20 = vpop.permute.xlu1 %1268  ;;  %v1334_v48 = vpack.c.bf16 %v1318_v47, %v1318_v47 }
 0x563   :  { %v1283_v54 = vpop.permute.xlu0 %1282  ;;  %v1312_v56 = vmul.f32 %v8784_v15, %v1269_v20  ;;  %v1365_v12 = vunpack.c.l.b16 %v1333_v11 }
 0x564   :  { %v1319_v36 = vmul.f32 %v8789_v13, %v1283_v54  ;;  %v1364_v54 = vunpack.c.l.b16 %v1332_v43  ;;  %v1366_v47 = vunpack.c.l.b16 %v1334_v48 }
 0x565   :  { %v1328_v15 = vpack.c.bf16 %v1312_v56, %v1312_v56 }
 0x566   :  { %v1271_v30 = vpop.permute.xlu1 %1270  ;;  %v1335_v10 = vpack.c.bf16 %v1319_v36, %v1319_v36 }
 0x567   :  { %v1285_v60 = vpop.permute.xlu0 %1284  ;;  %v1313_v14 = vmul.f32 %v8792_v3, %v1271_v30  ;;  %v1360_v43 = vunpack.c.l.b16 %v1328_v15 }
 0x568   :  { %v1320_v39 = vmul.f32 %v8797_v25, %v1285_v60 }
 0x569   :  { %v1329_v60 = vpack.c.bf16 %v1313_v14, %v1313_v14  ;;  %v1388_v14 = vrot.slane %v1366_v47, 7 }
 0x56a   :  { %v1273_v37 = vpop.permute.xlu1 %1272  ;;  %v1336_v20 = vpack.c.bf16 %v1320_v39, %v1320_v39 }
 0x56b   :  { %v1287_v18 = vpop.permute.xlu0 %1286  ;;  %v1314_v0 = vmul.f32 %v8800_v44, %v1273_v37  ;;  %v1357_v44 = vunpack.c.l.b16 %v1325_v33  ;;  %v1367_v37 = vunpack.c.l.b16 %v1335_v10  ;;  %v1361_v56 = vunpack.c.l.b16 %v1329_v60 }
 0x56c   :  { %v1321_v13 = vmul.f32 %v8805_v62, %v1287_v18  ;;  %v1386_v62 = vrot.slane %v1364_v54, 1  ;;  %v1368_v5 = vunpack.c.l.b16 %v1336_v20  ;;  %v1378_v10 = vrot.slane %v1360_v43, 5 }
 0x56d   :  { %v1330_v17 = vpack.c.bf16 %v1314_v0, %v1314_v0  ;;  %v1373_v59 = vsel %vm763_vm3, %v1357_v44, %v1372_v52  ;;  %v1390_v18 = vrot.slane %v1367_v37, 6  ;;  %v1380_v54 = vrot.slane %v1361_v56, 4 }
 0x56e   :  { %v1275_v27 = vpop.permute.xlu1 %1274  ;;  %v1337_v3 = vpack.c.bf16 %v1321_v13, %v1321_v13  ;;  %v1387_v45 = vsel %vm763_vm3, %v1365_v12, %v1386_v62  ;;  %v1375_v24 = vsel %vm766_vm4, %v1374_v61, %v1373_v59  ;;  %v1392_v13 = vrot.slane %v1368_v5, 5 }
 0x56f   :  { %v1315_v25 = vmul.f32 %v8808_v58, %v1275_v27  ;;  %v1289_v30 = vpop.permute.xlu0 %1288  ;;  %v1362_v48 = vunpack.c.l.b16 %v1330_v17  ;;  %v1376_v27 = vrot.slane %v1359_v21, 6 }
 0x570   :  { %v1322_v8 = vmul.f32 %v8813_v26, %v1289_v30  ;;  %v1369_v58 = vunpack.c.l.b16 %v1337_v3 }
 0x571   :  { %v1331_v36 = vpack.c.bf16 %v1315_v25, %v1315_v25  ;;  %v1389_v25 = vsel %vm766_vm4, %v1388_v14, %v1387_v45  ;;  %v1382_v41 = vrot.slane %v1362_v48, 3  ;;  %v1377_v52 = vsel %vm769_vm5, %v1376_v27, %v1375_v24 }
 0x572   :  { %v1338_v39 = vpack.c.bf16 %v1322_v8, %v1322_v8  ;;  %v1394_v15 = vrot.slane %v1369_v58, 4  ;;  %v1391_v3 = vsel %vm769_vm5, %v1390_v18, %v1389_v25 }
 0x573   :  { %v1291_v11 = vpop.permute.xlu0 %1290  ;;  %v1363_v33 = vunpack.c.l.b16 %v1331_v36  ;;  %v1393_v17 = vsel %vm772_vm6, %v1392_v13, %v1391_v3 }
 0x574   :  { %v1370_v0 = vunpack.c.l.b16 %v1338_v39  ;;  %v1323_v26 = vmul.f32 %v8818_v1, %v1291_v11  ;;  %v1379_v1 = vsel %vm772_vm6, %v1378_v10, %v1377_v52  ;;  %v1395_v44 = vsel %vm775_vm7, %v1394_v15, %v1393_v17 }
 0x575   :  { %v1384_v47 = vrot.slane %v1363_v33, 2  ;;  %v1381_v30 = vsel %vm775_vm7, %v1380_v54, %v1379_v1 }
 0x576   :  { %v1339_v20 = vpack.c.bf16 %v1323_v26, %v1323_v26  ;;  %v1396_v60 = vrot.slane %v1370_v0, 3  ;;  %v1383_v8 = vsel %vm778_vm8, %v1382_v41, %v1381_v30 }
 0x577   :  { %v1385_v62 = vsel %vm781_vm9, %v1384_v47, %v1383_v8 }
 0x578   :  { %v1371_v12 = vunpack.c.l.b16 %v1339_v20  ;;  %v1397_v36 = vsel %vm778_vm8, %v1396_v60, %v1395_v44 }
 0x57a   :  { %v1398_v37 = vrot.slane %v1371_v12, 2 }
 0x57c   :  { %v1399_v61 = vsel %vm781_vm9, %v1398_v37, %v1397_v36 }
 0x57d   :  { %v1400_v43 = vpack.c.b16 %v1399_v61, %v1385_v62 }
 0x57f   :  { %1401 = vrot.lane.b32.xlu1 %v1400_v43, %s8085_s3 }
 0x5f1   :  { %v1402_v5 = vpop.permute.xlu1 %1401 }
 0x5f2   :  { %6731 = vmatmul.mubr.msk.bf16.vlgmr.msra.gmra.mrb[8].mxu1 %vm11358_vm10, %v1402_v5 }
 0x5f3   :  { %6735 = vmatpush3.bf16.msra.mxu1 %v8222_v6  ;;  %6738 = vmatprep.mubr.msk.bf16.mxu1 %vm11359_vm2, %v11379_v34 }
 0x5f4   :  { %6736 = vmatprep.subr.bf16.mxu1 %v11379_v34 }
 0x5f7   :  { %6737 = vmatpush3.bf16.msra.mxu1 %v8247_v16 }
 0x5f8   :  { %6750 = vmatprep.subr.bf16.mxu1 %v11379_v34 }
 0x6c5   :  { %v1440_v21 = vpop.f32.mrb[8].mxu1 }
 0x6c6   :  { %v6732_v56 = vpop.f32.mrb[9].mxu1  ;;  %v1450_v59 = vrot.slane %v1440_v21, 7  ;;  %v1452_v14 = vrot.slane %v1440_v21, 2  ;;  %v1449_v48 = vrot.slane %v1440_v21, 6  ;;  %v8960_v11 = vadd.f32 %v1440_v21, %v8330_v50 }
 0x6c7   :  { %v1443_v58 = vpop.f32.mrb[10].mxu1  ;;  %v1451_v0 = vrot.slane %v1440_v21, 1  ;;  %v1453_v20 = vrot.slane %v1440_v21, 3  ;;  %v1454_v30 = vrot.slane %v1440_v21, 4  ;;  %v1455_v36 = vrot.slane %v1440_v21, 5 }
 0x6c8   :  { %v6733_v39 = vpop.f32.mrb[11].mxu1  ;;  %v8957_v45 = vadd.f32 %v1450_v59, %v8322_v46  ;;  %v8963_v18 = vadd.f32 %v1452_v14, %v8338_v55  ;;  %v8967_v33 = vadd.f32 %v1449_v48, %v8317_v42  ;;  %v1457_v24 = vrot.slane %v1443_v58, 7 }
 0x6c9   :  { %v8972_v26 = vadd.f32 %v1451_v0, %v8333_v51  ;;  %v1458_v27 = vrot.slane %v1443_v58, 1  ;;  %v8982_v25 = vadd.f32 %v1443_v58, %v8362_v2  ;;  %v1459_v60 = vrot.slane %v1443_v58, 2 }
 0x6ca   :  { %7213 = vtanh.f32 %v8957_v45  ;;  %v8979_v54 = vadd.f32 %v1457_v24, %v8389_v19  ;;  %v8991_v52 = vadd.f32 %v1453_v20, %v8357_v63  ;;  %v1456_v47 = vrot.slane %v1443_v58, 6 }
 0x6cb   :  { %7215 = vtanh.f32 %v8960_v11  ;;  %v8987_v3 = vadd.f32 %v1458_v27, %v8370_v9  ;;  %v1460_v1 = vrot.slane %v1443_v58, 3  ;;  %v8996_v17 = vadd.f32 %v1459_v60, %v8402_v28 }
 0x6cc   :  { %7217 = vtanh.f32 %v8963_v18  ;;  %v9001_v44 = vadd.f32 %v1456_v47, %v8366_v7  ;;  %v1461_v37 = vrot.slane %v1443_v58, 4  ;;  %v9008_v62 = vadd.f32 %v1454_v30, %v8408_v32 }
 0x6cd   :  { %7219 = vtanh.f32 %v8967_v33  ;;  %v9004_v8 = vadd.f32 %v1460_v1, %v8416_v38  ;;  %v1462_v5 = vrot.slane %v1443_v58, 5  ;;  %v9018_v39 = vadd.f32 %v1455_v36, %v8423_v40 }
 0x6ce   :  { %7221 = vtanh.f32 %v8972_v26  ;;  %v9013_v56 = vadd.f32 %v1461_v37, %v8395_v22  ;;  %v6491_v20 = vmul.f32 -1.442695, %v8957_v45  ;;  %v6490_v60 = vmul.f32 -1.442695, %v8967_v33 }
 0x6cf   :  { %7223 = vtanh.f32 %v8979_v54  ;;  %v9023_v14 = vadd.f32 %v1462_v5, %v8430_v53  ;;  %v6493_v47 = vmul.f32 -1.442695, %v8972_v26  ;;  %v6499_v37 = vmul.f32 -1.442695, %v8979_v54 }
 0x6d0   :  { %7225 = vtanh.f32 %v8982_v25  ;;  %v6500_v45 = vmul.f32 -1.442695, %v8982_v25  ;;  %v6502_v54 = vmul.f32 -1.442695, %v8996_v17 }
 0x6d1   :  { %7227 = vtanh.f32 %v8987_v3 }
 0x6d2   :  { %7229 = vtanh.f32 %v8991_v52 }
 0x6d3   :  { %7231 = vtanh.f32 %v8996_v17 }
 0x6d4   :  { %v7214_v10 = vpop.eup %7213  ;;  %7233 = vtanh.f32 %v9001_v44 }
 0x6d5   :  { %v7216_v13 = vpop.eup %7215  ;;  %1689 = vrot.lane.b32.xlu1 %v7214_v10, %s8084_s22  ;;  %7235 = vtanh.f32 %v9004_v8 }
 0x6d6   :  { %1691 = vrot.lane.b32.xlu0 %v7216_v13, %s8084_s22  ;;  %v7218_v15 = vpop.eup %7217  ;;  %7237 = vtanh.f32 %v9008_v62 }
 0x6d7   :  { %v7220_v41 = vpop.eup %7219  ;;  %7239 = vtanh.f32 %v9013_v56 }
 0x6d8   :  { %v7222_v12 = vpop.eup %7221  ;;  %7241 = vtanh.f32 %v9018_v39 }
 0x6d9   :  { %1695 = vrot.lane.b32.xlu1 %v7218_v15, %s8084_s22  ;;  %v7224_v61 = vpop.eup %7223  ;;  %7243 = vtanh.f32 %v9023_v14  ;;  %v6492_v15 = vmul.f32 -1.442695, %v8960_v11 }
 0x6da   :  { %1687 = vrot.lane.b32.xlu0 %v7220_v41, %s8084_s22  ;;  %v7226_v43 = vpop.eup %7225  ;;  %v6494_v41 = vmul.f32 -1.442695, %v8963_v18  ;;  %v6501_v18 = vmul.f32 -1.442695, %v8987_v3  ;;  %v6503_v3 = vmul.f32 -1.442695, %v9004_v8 }
 0x6db   :  { %v7228_v21 = vpop.eup %7227  ;;  %7245 = vpow2.f32 %v6492_v15 }
 0x6dc   :  { %v7230_v59 = vpop.eup %7229  ;;  %7247 = vpow2.f32 %v6491_v20 }
 0x6dd   :  { %1705 = vrot.lane.b32.xlu1 %v7224_v61, %s8084_s22  ;;  %v7232_v58 = vpop.eup %7231  ;;  %7249 = vpow2.f32 %v6494_v41 }
 0x6de   :  { %1693 = vrot.lane.b32.xlu0 %v7222_v12, %s8084_s22  ;;  %v7234_v48 = vpop.eup %7233  ;;  %7251 = vpow2.f32 %v6490_v60 }
 0x6df   :  { %v7236_v0 = vpop.eup %7235  ;;  %7253 = vpow2.f32 %v6493_v47 }
 0x6e0   :  { %v7238_v24 = vpop.eup %7237 }
 0x6e1   :  { %1709 = vrot.lane.b32.xlu1 %v7228_v21, %s8084_s22  ;;  %v7240_v10 = vpop.eup %7239  ;;  %v6498_v21 = vmul.f32 -1.442695, %v9001_v44 }
 0x6e2   :  { %1707 = vrot.lane.b32.xlu0 %v7226_v43, %s8084_s22  ;;  %v7242_v13 = vpop.eup %7241  ;;  %v6495_v43 = vmul.f32 -1.442695, %v8991_v52 }
 0x6e3   :  { %v7244_v27 = vpop.eup %7243 }
 0x6e5   :  { %1711 = vrot.lane.b32.xlu1 %v7232_v58, %s8084_s22  ;;  %v7246_v12 = vpop.eup %7245  ;;  %v6496_v58 = vmul.f32 -1.442695, %v9008_v62 }
 0x6e6   :  { %1697 = vrot.lane.b32.xlu0 %v7230_v59, %s8084_s22  ;;  %v7248_v1 = vpop.eup %7247  ;;  %v1545_v30 = vadd.f32 1.0, %v7246_v12 }
 0x6e7   :  { %v1544_v36 = vadd.f32 1.0, %v7248_v1  ;;  %v7250_v11 = vpop.eup %7249 }
 0x6e8   :  { %v7252_v61 = vpop.eup %7251  ;;  %7255 = vrcp.f32 %v1545_v30  ;;  %v1547_v33 = vadd.f32 1.0, %v7250_v11 }
 0x6e9   :  { %1713 = vrot.lane.b32.xlu1 %v7236_v0, %s8084_s22  ;;  %7257 = vpow2.f32 %v6499_v37  ;;  %v1543_v26 = vadd.f32 1.0, %v7252_v61  ;;  %v7254_v5 = vpop.eup %7253 }
 0x6ea   :  { %1703 = vrot.lane.b32.xlu0 %v7234_v48, %s8084_s22  ;;  %7259 = vrcp.f32 %v1544_v36  ;;  %v1546_v25 = vadd.f32 1.0, %v7254_v5 }
 0x6eb   :  { %7261 = vpow2.f32 %v6500_v45 }
 0x6ec   :  { %7263 = vpow2.f32 %v6495_v43 }
 0x6ed   :  { %1715 = vrot.lane.b32.xlu1 %v7240_v10, %s8084_s22  ;;  %7265 = vpow2.f32 %v6501_v18 }
 0x6ee   :  { %1699 = vrot.lane.b32.xlu0 %v7238_v24, %s8084_s22  ;;  %7267 = vrcp.f32 %v1547_v33  ;;  %v6497_v24 = vmul.f32 -1.442695, %v9018_v39 }
 0x6ef   :  { %7269 = vrcp.f32 %v1543_v26 }
 0x6f0   :  { %7271 = vpow2.f32 %v6498_v21 }
 0x6f1   :  { %1717 = vrot.lane.b32.xlu1 %v7244_v27, %s8084_s22  ;;  %7273 = vpow2.f32 %v6502_v54  ;;  %v6504_v27 = vmul.f32 -1.442695, %v9013_v56  ;;  %v6505_v56 = vmul.f32 -1.442695, %v9023_v14 }
 0x6f2   :  { %1701 = vrot.lane.b32.xlu0 %v7242_v13, %s8084_s22  ;;  %v9047_v52 = vpop.eup %7255  ;;  %7275 = vrcp.f32 %v1546_v25 }
 0x6f3   :  { %v7258_v59 = vpop.eup %7257  ;;  %7277 = vpow2.f32 %v6503_v3 }
 0x6f4   :  { %v9051_v48 = vpop.eup %7259  ;;  %7279 = vpow2.f32 %v6496_v58  ;;  %v1552_v62 = vadd.f32 1.0, %v7258_v59 }
 0x6f5   :  { %v7262_v44 = vpop.eup %7261  ;;  %7281 = vpow2.f32 %v6497_v24 }
 0x6f6   :  { %v7264_v13 = vpop.eup %7263  ;;  %v1553_v41 = vadd.f32 1.0, %v7262_v44  ;;  %7283 = vpow2.f32 %v6504_v27 }
 0x6f7   :  { %v7266_v8 = vpop.eup %7265  ;;  %7285 = vrcp.f32 %v1552_v62  ;;  %v1548_v11 = vadd.f32 1.0, %v7264_v13 }
 0x6f8   :  { %v9058_v20 = vpop.eup %7267  ;;  %v1554_v37 = vadd.f32 1.0, %v7266_v8  ;;  %7287 = vrcp.f32 %v1553_v41 }
 0x6f9   :  { %v9061_v60 = vpop.eup %7269  ;;  %7289 = vpow2.f32 %v6505_v56 }
 0x6fa   :  { %v7272_v30 = vpop.eup %7271  ;;  %7291 = vrcp.f32 %v1554_v37 }
 0x6fb   :  { %v7274_v36 = vpop.eup %7273  ;;  %7293 = vrcp.f32 %v1548_v11  ;;  %v1551_v33 = vadd.f32 1.0, %v7272_v30 }
 0x6fc   :  { %v9068_v45 = vpop.eup %7275  ;;  %v1555_v14 = vadd.f32 1.0, %v7274_v36 }
 0x6fd   :  { %v7278_v18 = vpop.eup %7277 }
 0x6fe   :  { %v7280_v26 = vpop.eup %7279  ;;  %7295 = vrcp.f32 %v1555_v14  ;;  %v1556_v21 = vadd.f32 1.0, %v7278_v18 }
 0x6ff   :  { %v7282_v5 = vpop.eup %7281  ;;  %7297 = vrcp.f32 %v1551_v33  ;;  %v1549_v25 = vadd.f32 1.0, %v7280_v26 }
 0x700   :  { %v7284_v54 = vpop.eup %7283  ;;  %7299 = vrcp.f32 %v1556_v21  ;;  %v1550_v13 = vadd.f32 1.0, %v7282_v5 }
 0x701   :  { %v9072_v3 = vpop.eup %7285  ;;  %7301 = vrcp.f32 %v1549_v25 }
 0x702   :  { %v9074_v58 = vpop.eup %7287 }
 0x747   :  { %v1690_v0 = vpop.permute.xlu1 %1689 }
 0x748   :  { %v1692_v17 = vpop.permute.xlu0 %1691  ;;  %v1736_v10 = vmul.f32 %v9051_v48, %v1690_v0 }
 0x749   :  { %v1737_v15 = vmul.f32 %v9047_v52, %v1692_v17  ;;  %v1557_v17 = vadd.f32 1.0, %v7284_v54 }
 0x74a   :  { %1769 = vrot.lane.b32.xlu1 %v1736_v10, %s8085_s3  ;;  %v7290_v10 = vpop.eup %7289 }
 0x74b   :  { %1771 = vrot.lane.b32.xlu0 %v1737_v15, %s8085_s3  ;;  %v1696_v39 = vpop.permute.xlu1 %1695  ;;  %v9079_v27 = vpop.eup %7291  ;;  %7303 = vrcp.f32 %v1557_v17  ;;  %v1624_v17 = vrot.slane %v8826_v49, 7 }
 0x74c   :  { %v1688_v47 = vpop.permute.xlu0 %1687  ;;  %v1739_v12 = vmul.f32 %v9058_v20, %v1696_v39  ;;  %v9082_v8 = vpop.eup %7293  ;;  %7305 = vrcp.f32 %v1550_v13 }
 0x74d   :  { %v1735_v1 = vmul.f32 %v9061_v60, %v1688_v47  ;;  %v1558_v47 = vadd.f32 1.0, %v7290_v10  ;;  %v1625_v10 = vrot.slane %v8839_v57, 7  ;;  %v1656_v13 = vmul.f32 %v9051_v48, %v1624_v17 }
 0x74e   :  { %1775 = vrot.lane.b32.xlu1 %v1739_v12, %s8085_s3  ;;  %v9087_v12 = vpop.eup %7295 }
 0x74f   :  { %1767 = vrot.lane.b32.xlu0 %v1735_v1, %s8085_s3  ;;  %v1706_v59 = vpop.permute.xlu1 %1705  ;;  %v9090_v1 = vpop.eup %7297  ;;  %7307 = vrcp.f32 %v1558_v47 }
 0x750   :  { %v1694_v61 = vpop.permute.xlu0 %1693  ;;  %v1744_v0 = vmul.f32 %v9072_v3, %v1706_v59  ;;  %v9095_v11 = vpop.eup %7299 }
 0x751   :  { %v1738_v43 = vmul.f32 %v9068_v45, %v1694_v61 }
 0x752   :  { %1785 = vrot.lane.b32.xlu1 %v1744_v0, %s8085_s3 }
 0x753   :  { %1773 = vrot.lane.b32.xlu0 %v1738_v43, %s8085_s3  ;;  %v1710_v15 = vpop.permute.xlu1 %1709  ;;  %v9098_v43 = vpop.eup %7301 }
 0x754   :  { %v1708_v44 = vpop.permute.xlu0 %1707  ;;  %v1746_v62 = vmul.f32 %v9079_v27, %v1710_v15  ;;  %v1657_v15 = vmul.f32 %v9047_v52, %v1625_v10 }
 0x755   :  { %v1745_v24 = vmul.f32 %v9074_v58, %v1708_v44  ;;  %v9103_v26 = vpop.eup %7303 }
 0x756   :  { %1789 = vrot.lane.b32.xlu1 %v1746_v62, %s8085_s3  ;;  %v9106_v21 = vpop.eup %7305 }
 0x757   :  { %1787 = vrot.lane.b32.xlu0 %v1745_v24, %s8085_s3  ;;  %v1712_v56 = vpop.permute.xlu1 %1711 }
 0x758   :  { %v1698_v41 = vpop.permute.xlu0 %1697  ;;  %v1747_v30 = vmul.f32 %v9087_v12, %v1712_v56  ;;  %v1623_v56 = vrot.slane %v8835_v35, 7 }
 0x759   :  { %v1740_v39 = vmul.f32 %v9082_v8, %v1698_v41  ;;  %v9111_v0 = vpop.eup %7307  ;;  %v1627_v41 = vrot.slane %v8863_v29, 7  ;;  %v1626_v29 = vrot.slane %v8830_v23, 7  ;;  %v1633_v23 = vrot.slane %v8860_v4, 7 }
 0x75a   :  { %1791 = vrot.lane.b32.xlu1 %v1747_v30, %s8085_s3  ;;  %v1655_v57 = vmul.f32 %v9061_v60, %v1623_v56 }
 0x75b   :  { %1777 = vrot.lane.b32.xlu0 %v1740_v39, %s8085_s3  ;;  %v1714_v61 = vpop.permute.xlu1 %1713  ;;  %v1659_v49 = vmul.f32 %v9058_v20, %v1627_v41  ;;  %v1658_v35 = vmul.f32 %v9068_v45, %v1626_v29  ;;  %v1665_v17 = vmul.f32 %v9074_v58, %v1633_v23 }
 0x75c   :  { %v1704_v37 = vpop.permute.xlu0 %1703  ;;  %v1748_v14 = vmul.f32 %v9095_v11, %v1714_v61 }
 0x75d   :  { %v1743_v36 = vmul.f32 %v9090_v1, %v1704_v37 }
 0x75e   :  { %1793 = vrot.lane.b32.xlu1 %v1748_v14, %s8085_s3 }
 0x75f   :  { %1783 = vrot.lane.b32.xlu0 %v1743_v36, %s8085_s3  ;;  %v1716_v5 = vpop.permute.xlu1 %1715 }
 0x760   :  { %v1700_v18 = vpop.permute.xlu0 %1699  ;;  %v1749_v54 = vmul.f32 %v9103_v26, %v1716_v5 }
 0x761   :  { %v1741_v33 = vmul.f32 %v9098_v43, %v1700_v18 }
 0x762   :  { %1795 = vrot.lane.b32.xlu1 %v1749_v54, %s8085_s3 }
 0x763   :  { %1779 = vrot.lane.b32.xlu0 %v1741_v33, %s8085_s3  ;;  %v1718_v44 = vpop.permute.xlu1 %1717 }
 0x764   :  { %v1702_v25 = vpop.permute.xlu0 %1701  ;;  %v1750_v24 = vmul.f32 %v9111_v0, %v1718_v44 }
 0x765   :  { %v1742_v59 = vmul.f32 %v9106_v21, %v1702_v25  ;;  %v1632_v25 = vrot.slane %v8852_v31, 7  ;;  %v11397_v31 = vld [vmem:[#allocation8_spill] sm:$0xff] }
 0x766   :  { %1797 = vrot.lane.b32.xlu1 %v1750_v24, %s8085_s3 }
 0x767   :  { %1781 = vrot.lane.b32.xlu0 %v1742_v59, %s8085_s3  ;;  %v1664_v59 = vmul.f32 %v9072_v3, %v1632_v25 }
 0x7bc   :  { %v1770_v62 = vpop.permute.xlu1 %1769 }
 0x7bd   :  { %v1772_v39 = vpop.permute.xlu0 %1771  ;;  %v9121_v47 = vadd.f32 %v1770_v62, %v1656_v13  ;;  %v11396_v13 = vld [vmem:[#allocation9_spill] sm:$0xff] }
 0x7be   :  { %v9124_v30 = vadd.f32 %v1772_v39, %v1657_v15  ;;  %v1634_v15 = vrot.slane %v11396_v13, 7  ;;  %v1628_v39 = vrot.slane %v11397_v31, 7 }
 0x7bf   :  { %7309 = vtanh.f32 %v9121_v47 }
 0x7c0   :  { %7311 = vtanh.f32 %v9124_v30  ;;  %v1776_v37 = vpop.permute.xlu1 %1775  ;;  %v1666_v4 = vmul.f32 %v9079_v27, %v1634_v15  ;;  %v11402_v15 = vld [vmem:[#allocation10_spill] sm:$0xff] }
 0x7c1   :  { %v1768_v36 = vpop.permute.xlu0 %1767  ;;  %v9130_v61 = vadd.f32 %v1776_v37, %v1659_v49 }
 0x7c2   :  { %v9133_v14 = vadd.f32 %v1768_v36, %v1655_v57  ;;  %v1660_v57 = vmul.f32 %v9082_v8, %v1628_v39  ;;  %v11398_v36 = vld [vmem:[#allocation6_spill] sm:$0xff] }
 0x7c3   :  { %7313 = vtanh.f32 %v9130_v61  ;;  %v1635_v29 = vrot.slane %v11398_v36, 7 }
 0x7c4   :  { %7315 = vtanh.f32 %v9133_v14  ;;  %v1786_v24 = vpop.permute.xlu1 %1785 }
 0x7c5   :  { %v1774_v18 = vpop.permute.xlu0 %1773  ;;  %v9148_v62 = vadd.f32 %v1786_v24, %v1664_v59  ;;  %v1667_v23 = vmul.f32 %v9087_v12, %v1635_v29  ;;  %v11400_v24 = vld [vmem:[#allocation12_spill] sm:$0xff] }
 0x7c6   :  { %v9138_v33 = vadd.f32 %v1774_v18, %v1658_v35 }
 0x7c8   :  { %7317 = vtanh.f32 %v9138_v33  ;;  %v1790_v49 = vpop.permute.xlu1 %1789 }
 0x7c9   :  { %v7310_v5 = vpop.eup %7309  ;;  %v1788_v41 = vpop.permute.xlu0 %1787  ;;  %7319 = vtanh.f32 %v9148_v62  ;;  %v9160_v35 = vadd.f32 %v1790_v49, %v1666_v4 }
 0x7ca   :  { %v7312_v54 = vpop.eup %7311  ;;  %1865 = vrot.lane.b32.xlu1 %v7310_v5, %s8084_s22  ;;  %v9152_v56 = vadd.f32 %v1788_v41, %v1665_v17  ;;  %v11399_v5 = vld [vmem:[#allocation13_spill] sm:$0xff]  ;;  %v1636_v17 = vrot.slane %v11400_v24, 7  ;;  %v1629_v41 = vrot.slane %v11402_v15, 7  ;;  %v11408_v15 = vld [vmem:[#allocation14_spill] sm:$0xff] }
 0x7cb   :  { %1867 = vrot.lane.b32.xlu0 %v7312_v54, %s8084_s22  ;;  %v1631_v54 = vrot.slane %v11399_v5, 7 }
 0x7cc   :  { %7321 = vtanh.f32 %v9152_v56  ;;  %v1792_v59 = vpop.permute.xlu1 %1791  ;;  %v1668_v39 = vmul.f32 %v9095_v11, %v1636_v17  ;;  %v1661_v49 = vmul.f32 %v9098_v43, %v1629_v41  ;;  %v1638_v41 = vrot.slane %v11408_v15, 7 }
 0x7cd   :  { %v7314_v44 = vpop.eup %7313  ;;  %v1778_v18 = vpop.permute.xlu0 %1777  ;;  %7323 = vtanh.f32 %v9160_v35 }
 0x7ce   :  { %v7316_v10 = vpop.eup %7315  ;;  %1871 = vrot.lane.b32.xlu1 %v7314_v44, %s8084_s22  ;;  %v9163_v25 = vadd.f32 %v1778_v18, %v1660_v57  ;;  %v1663_v44 = vmul.f32 %v9090_v1, %v1631_v54  ;;  %v11406_v54 = vld [vmem:[#allocation7_spill] sm:$0xff] }
 0x7cf   :  { %1863 = vrot.lane.b32.xlu0 %v7316_v10, %s8084_s22  ;;  %v9171_v10 = vadd.f32 %v1792_v59, %v1667_v23  ;;  %v1630_v23 = vrot.slane %v11406_v54, 7 }
 0x7d0   :  { %7325 = vtanh.f32 %v9163_v25  ;;  %v1794_v4 = vpop.permute.xlu1 %1793 }
 0x7d1   :  { %11401 = vst [vmem:[#allocation9_spill] sm:$0xff] %v9171_v10  ;;  %v1784_v13 = vpop.permute.xlu0 %1783  ;;  %7327 = vtanh.f32 %v9171_v10  ;;  %v9181_v29 = vadd.f32 %v1794_v4, %v1668_v39  ;;  %v1662_v17 = vmul.f32 %v9106_v21, %v1630_v23 }
 0x7d2   :  { %v7318_v37 = vpop.eup %7317  ;;  %v9174_v31 = vadd.f32 %v1784_v13, %v1663_v44 }
 0x7d3   :  { %1869 = vrot.lane.b32.xlu0 %v7318_v37, %s8084_s22  ;;  %v7320_v57 = vpop.eup %7319  ;;  %v11404_v37 = vld [vmem:[#allocation11_spill] sm:$0xff]  ;;  %11405 = vst [vmem:[#allocation6_spill] sm:$0xff] %v9181_v29 }
 0x7d4   :  { %11403 = vst [vmem:[#allocation8_spill] sm:$0xff] %v9174_v31  ;;  %7329 = vtanh.f32 %v9174_v31  ;;  %v1637_v36 = vrot.slane %v11404_v37, 7  ;;  %1881 = vrot.lane.b32.xlu1 %v7320_v57, %s8084_s22  ;;  %v1796_v24 = vpop.permute.xlu1 %1795  ;;  %v1670_v37 = vmul.f32 %v9111_v0, %v1638_v41 }
 0x7d5   :  { %v1780_v18 = vpop.permute.xlu0 %1779  ;;  %7331 = vtanh.f32 %v9181_v29 }
 0x7d6   :  { %v7322_v5 = vpop.eup %7321  ;;  %v9185_v59 = vadd.f32 %v1780_v18, %v1661_v49  ;;  %v1669_v44 = vmul.f32 %v9103_v26, %v1637_v36 }
 0x7d7   :  { %1883 = vrot.lane.b32.xlu0 %v7322_v5, %s8084_s22  ;;  %v7324_v13 = vpop.eup %7323 }
 0x7d8   :  { %11407 = vst [vmem:[#allocation13_spill] sm:$0xff] %v9185_v59  ;;  %7333 = vtanh.f32 %v9185_v59  ;;  %v9193_v39 = vadd.f32 %v1796_v24, %v1669_v44  ;;  %1885 = vrot.lane.b32.xlu1 %v7324_v13, %s8084_s22  ;;  %v1798_v36 = vpop.permute.xlu1 %1797 }
 0x7d9   :  { %v1782_v4 = vpop.permute.xlu0 %1781  ;;  %v9202_v5 = vadd.f32 %v1798_v36, %v1670_v37 }
 0x7da   :  { %11409 = vst [vmem:[#allocation12_spill] sm:$0xff] %v9193_v39  ;;  %v7326_v57 = vpop.eup %7325  ;;  %v9196_v49 = vadd.f32 %v1782_v4, %v1662_v17  ;;  %7335 = vtanh.f32 %v9193_v39 }
 0x7db   :  { %1873 = vrot.lane.b32.xlu0 %v7326_v57, %s8084_s22  ;;  %v7328_v18 = vpop.eup %7327  ;;  %11411 = vst [vmem:[#allocation11_spill] sm:$0xff] %v9202_v5 }
 0x7dc   :  { %11410 = vst [vmem:[#allocation10_spill] sm:$0xff] %v9196_v49  ;;  %7337 = vtanh.f32 %v9196_v49  ;;  %1887 = vrot.lane.b32.xlu1 %v7328_v18, %s8084_s22 }
 0x7dd   :  { %7339 = vtanh.f32 %v9202_v5 }
 0x7de   :  { %v7330_v54 = vpop.eup %7329 }
 0x7df   :  { %1879 = vrot.lane.b32.xlu0 %v7330_v54, %s8084_s22  ;;  %v7332_v23 = vpop.eup %7331 }
 0x7e0   :  { %1889 = vrot.lane.b32.xlu1 %v7332_v23, %s8084_s22 }
 0x7e2   :  { %v7334_v44 = vpop.eup %7333 }
 0x7e3   :  { %1875 = vrot.lane.b32.xlu0 %v7334_v44, %s8084_s22 }
 0x7e4   :  { %v7336_v24 = vpop.eup %7335 }
 0x7e5   :  { %1891 = vrot.lane.b32.xlu1 %v7336_v24, %s8084_s22 }
 0x7e6   :  { %v7338_v17 = vpop.eup %7337 }
 0x7e7   :  { %1877 = vrot.lane.b32.xlu0 %v7338_v17, %s8084_s22  ;;  %v7340_v13 = vpop.eup %7339 }
 0x7e9   :  { %1893 = vrot.lane.b32.xlu1 %v7340_v13, %s8084_s22 }
 0x83c   :  { %v1866_v41 = vpop.permute.xlu1 %1865 }
 0x83d   :  { %v1868_v15 = vpop.permute.xlu0 %1867  ;;  %v1912_v23 = vmul.f32 %v9051_v48, %v1866_v41 }
 0x83e   :  { %v1913_v49 = vmul.f32 %v9047_v52, %v1868_v15 }
 0x83f   :  { %v1928_v29 = vpack.c.bf16 %v1912_v23, %v1912_v23 }
 0x840   :  { %v1872_v57 = vpop.permute.xlu1 %1871 }
 0x841   :  { %v1864_v4 = vpop.permute.xlu0 %1863 }
 0x842   :  { %v1911_v18 = vmul.f32 %v9061_v60, %v1864_v4  ;;  %v1915_v60 = vmul.f32 %v9058_v20, %v1872_v57 }
 0x844   :  { %v1927_v24 = vpack.c.bf16 %v1911_v18, %v1911_v18 }
 0x845   :  { %v1870_v37 = vpop.permute.xlu0 %1869 }
 0x846   :  { %v1882_v36 = vpop.permute.xlu1 %1881  ;;  %v1914_v17 = vmul.f32 %v9068_v45, %v1870_v37  ;;  %v1959_v31 = vunpack.c.l.b16 %v1927_v24  ;;  %v1929_v45 = vpack.c.bf16 %v1913_v49, %v1913_v49  ;;  %v1960_v37 = vunpack.c.l.b16 %v1928_v29 }
 0x847   :  { %v1920_v44 = vmul.f32 %v9072_v3, %v1882_v36  ;;  %v1931_v24 = vpack.c.bf16 %v1915_v60, %v1915_v60 }
 0x848   :  { %v1930_v41 = vpack.c.bf16 %v1914_v17, %v1914_v17  ;;  %v1976_v49 = vrot.slane %v1960_v37, 1 }
 0x849   :  { %v1884_v54 = vpop.permute.xlu0 %1883  ;;  %v1936_v59 = vpack.c.bf16 %v1920_v44, %v1920_v44  ;;  %v1975_v44 = vrot.slane %v1959_v31, 2  ;;  %v1963_v60 = vunpack.c.l.b16 %v1931_v24 }
 0x84a   :  { %v1886_v5 = vpop.permute.xlu1 %1885  ;;  %v1921_v4 = vmul.f32 %v9074_v58, %v1884_v54 }
 0x84b   :  { %v1922_v13 = vmul.f32 %v9079_v27, %v1886_v5  ;;  %v1968_v52 = vunpack.c.l.b16 %v1936_v59  ;;  %v1977_v31 = vsel %vm763_vm3, %v1976_v49, %v1975_v44 }
 0x84c   :  { %v1937_v20 = vpack.c.bf16 %v1921_v4, %v1921_v4 }
 0x84d   :  { %v1874_v39 = vpop.permute.xlu0 %1873  ;;  %v1938_v36 = vpack.c.bf16 %v1922_v13, %v1922_v13 }
 0x84e   :  { %v1888_v10 = vpop.permute.xlu1 %1887  ;;  %v1916_v27 = vmul.f32 %v9082_v8, %v1874_v39  ;;  %v1990_v8 = vrot.slane %v1968_v52, 1  ;;  %v1969_v4 = vunpack.c.l.b16 %v1937_v20 }
 0x84f   :  { %v1923_v48 = vmul.f32 %v9087_v12, %v1888_v10  ;;  %v1962_v12 = vunpack.c.l.b16 %v1930_v41  ;;  %v1970_v10 = vunpack.c.l.b16 %v1938_v36 }
 0x850   :  { %v1932_v29 = vpack.c.bf16 %v1916_v27, %v1916_v27 }
 0x851   :  { %v1880_v3 = vpop.permute.xlu0 %1879  ;;  %v1939_v5 = vpack.c.bf16 %v1923_v48, %v1923_v48  ;;  %v1979_v36 = vrot.slane %v1962_v12, 7 }
 0x852   :  { %v1919_v18 = vmul.f32 %v9090_v1, %v1880_v3  ;;  %v1890_v23 = vpop.permute.xlu1 %1889  ;;  %v1961_v1 = vunpack.c.l.b16 %v1929_v45  ;;  %v1964_v37 = vunpack.c.l.b16 %v1932_v29  ;;  %v1981_v29 = vrot.slane %v1963_v60, 6 }
 0x853   :  { %v1924_v58 = vmul.f32 %v9095_v11, %v1890_v23  ;;  %v1971_v59 = vunpack.c.l.b16 %v1939_v5 }
 0x854   :  { %v1935_v15 = vpack.c.bf16 %v1919_v18, %v1919_v18  ;;  %v1993_v18 = vrot.slane %v1970_v10, 7 }
 0x855   :  { %v1876_v57 = vpop.permute.xlu0 %1875  ;;  %v1940_v13 = vpack.c.bf16 %v1924_v58, %v1924_v58 }
 0x856   :  { %v1967_v54 = vunpack.c.l.b16 %v1935_v15  ;;  %v1917_v17 = vmul.f32 %v9098_v43, %v1876_v57  ;;  %v1995_v15 = vrot.slane %v1971_v59, 6  ;;  %v1978_v57 = vsel %vm766_vm4, %v1961_v1, %v1977_v31 }
 0x857   :  { %v1892_v3 = vpop.permute.xlu1 %1891  ;;  %v1972_v52 = vunpack.c.l.b16 %v1940_v13 }
 0x858   :  { %v1989_v39 = vrot.slane %v1967_v54, 2  ;;  %v1933_v48 = vpack.c.bf16 %v1917_v17, %v1917_v17  ;;  %v1925_v11 = vmul.f32 %v9103_v26, %v1892_v3  ;;  %v1983_v54 = vrot.slane %v1964_v37, 5 }
 0x859   :  { %v1878_v41 = vpop.permute.xlu0 %1877  ;;  %v1997_v17 = vrot.slane %v1972_v52, 5 }
 0x85a   :  { %v1991_v43 = vsel %vm763_vm3, %v1990_v8, %v1989_v39  ;;  %v1918_v45 = vmul.f32 %v9106_v21, %v1878_v41  ;;  %v1941_v5 = vpack.c.bf16 %v1925_v11, %v1925_v11  ;;  %v1965_v44 = vunpack.c.l.b16 %v1933_v48 }
 0x85b   :  { %v1992_v27 = vsel %vm766_vm4, %v1969_v4, %v1991_v43  ;;  %v1894_v20 = vpop.permute.xlu1 %1893  ;;  %v1980_v21 = vsel %vm769_vm5, %v1979_v36, %v1978_v57 }
 0x85c   :  { %v1994_v23 = vsel %vm769_vm5, %v1993_v18, %v1992_v27  ;;  %v1934_v24 = vpack.c.bf16 %v1918_v45, %v1918_v45  ;;  %v1973_v58 = vunpack.c.l.b16 %v1941_v5  ;;  %v1926_v26 = vmul.f32 %v9111_v0, %v1894_v20 }
 0x85d   :  { %v1996_v12 = vsel %vm772_vm6, %v1995_v15, %v1994_v23  ;;  %v1985_v13 = vrot.slane %v1965_v44, 4  ;;  %v1982_v3 = vsel %vm772_vm6, %v1981_v29, %v1980_v21 }
 0x85e   :  { %v1966_v10 = vunpack.c.l.b16 %v1934_v24  ;;  %v1942_v49 = vpack.c.bf16 %v1926_v26, %v1926_v26  ;;  %v1999_v8 = vrot.slane %v1973_v58, 4  ;;  %v1998_v59 = vsel %vm775_vm7, %v1997_v17, %v1996_v12 }
 0x85f   :  { %v1984_v0 = vsel %vm775_vm7, %v1983_v54, %v1982_v3 }
 0x860   :  { %v1987_v39 = vrot.slane %v1966_v10, 3  ;;  %v1974_v48 = vunpack.c.l.b16 %v1942_v49  ;;  %v1986_v31 = vsel %vm778_vm8, %v1985_v13, %v1984_v0  ;;  %v2000_v4 = vsel %vm778_vm8, %v1999_v8, %v1998_v59 }
 0x862   :  { %v2001_v1 = vrot.slane %v1974_v48, 3  ;;  %v1988_v11 = vsel %vm781_vm9, %v1987_v39, %v1986_v31 }
 0x864   :  { %v2002_v41 = vsel %vm781_vm9, %v2001_v1, %v2000_v4 }
 0x865   :  { %v2003_v60 = vpack.c.b16 %v2002_v41, %v1988_v11 }
 0x867   :  { %2004 = vrot.lane.b32.xlu0 %v2003_v60, %s8085_s3 }
 0x8d9   :  { %v2005_v36 = vpop.permute.xlu0 %2004 }
 0x8da   :  { %6739 = vmatmul.mubr.msk.bf16.vlgmr.msra.gmra.mrb[12].mxu1 %vm11358_vm10, %v2005_v36 }
 0x8db   :  { %6751 = vmatpush3.bf16.msra.mxu1 %v8222_v6  ;;  %6754 = vmatprep.mubr.msk.bf16.mxu1 %vm11359_vm2, %v11379_v34 }
 0x8dc   :  { %6752 = vmatprep.subr.bf16.mxu1 %v11379_v34 }
 0x8df   :  { %6753 = vmatpush3.bf16.msra.mxu1 %v8247_v16 }
 0x8e0   :  { %6766 = vmatprep.subr.bf16.mxu1 %v11379_v34 }
 0x9ad   :  { %v2043_v18 = vpop.f32.mrb[12].mxu1 }
 0x9ae   :  { %v6740_v43 = vpop.f32.mrb[13].mxu1  ;;  %v2053_v27 = vrot.slane %v2043_v18, 6  ;;  %v2056_v52 = vrot.slane %v2043_v18, 2  ;;  %v2052_v15 = vrot.slane %v2043_v18, 5  ;;  %v9256_v23 = vadd.f32 %v2043_v18, %v8333_v51 }
 0x9af   :  { %v9250_v45 = vpop.f32.mrb[14].mxu1  ;;  %v2054_v24 = vrot.slane %v2043_v18, 7  ;;  %v2055_v58 = vrot.slane %v2043_v18, 1  ;;  %v2057_v48 = vrot.slane %v2043_v18, 3  ;;  %v2058_v4 = vrot.slane %v2043_v18, 4 }
 0x9b0   :  { %v6741_v37 = vpop.f32.mrb[15].mxu1  ;;  %v9253_v5 = vadd.f32 %v2053_v27, %v8322_v46  ;;  %v9259_v44 = vadd.f32 %v2056_v52, %v8357_v63  ;;  %v9263_v20 = vadd.f32 %v2052_v15, %v8317_v42  ;;  %v2060_v57 = vrot.slane %v9250_v45, 6 }
 0x9b1   :  { %v9268_v26 = vadd.f32 %v2054_v24, %v8330_v50  ;;  %v9273_v10 = vadd.f32 %v2055_v58, %v8338_v55  ;;  %v2061_v54 = vrot.slane %v9250_v45, 7  ;;  %v2059_v29 = vrot.slane %v9250_v45, 5 }
 0x9b2   :  { %7341 = vtanh.f32 %v9253_v5  ;;  %v9279_v17 = vadd.f32 %v2060_v57, %v8389_v19  ;;  %v9286_v13 = vadd.f32 %v9250_v45, %v8370_v9  ;;  %v2062_v59 = vrot.slane %v9250_v45, 1 }
 0x9b3   :  { %7343 = vtanh.f32 %v9256_v23  ;;  %v9291_v39 = vadd.f32 %v2061_v54, %v8362_v2  ;;  %v9296_v3 = vadd.f32 %v2059_v29, %v8366_v7  ;;  %v2063_v1 = vrot.slane %v9250_v45, 2 }
 0x9b4   :  { %7345 = vtanh.f32 %v9259_v44  ;;  %v9301_v31 = vadd.f32 %v2062_v59, %v8402_v28  ;;  %v9306_v11 = vadd.f32 %v2057_v48, %v8408_v32  ;;  %v2064_v60 = vrot.slane %v9250_v45, 3 }
 0x9b5   :  { %7347 = vtanh.f32 %v9263_v20  ;;  %v9311_v36 = vadd.f32 %v2063_v1, %v8416_v38  ;;  %v9316_v37 = vadd.f32 %v2058_v4, %v8423_v40  ;;  %v2065_v27 = vrot.slane %v9250_v45, 4 }
 0x9b6   :  { %7349 = vtanh.f32 %v9268_v26  ;;  %v9322_v52 = vadd.f32 %v2064_v60, %v8395_v22  ;;  %v6508_v29 = vmul.f32 -1.442695, %v9253_v5  ;;  %v6512_v59 = vmul.f32 -1.442695, %v9259_v44 }
 0x9b7   :  { %7351 = vtanh.f32 %v9273_v10  ;;  %v9329_v58 = vadd.f32 %v2065_v27, %v8430_v53  ;;  %v6507_v48 = vmul.f32 -1.442695, %v9263_v20  ;;  %v6511_v4 = vmul.f32 -1.442695, %v9273_v10 }
 0x9b8   :  { %7353 = vtanh.f32 %v9279_v17  ;;  %v6516_v60 = vmul.f32 -1.442695, %v9279_v17  ;;  %v6518_v44 = vmul.f32 -1.442695, %v9286_v13  ;;  %v6517_v20 = vmul.f32 -1.442695, %v9291_v39 }
 0x9b9   :  { %7355 = vtanh.f32 %v9286_v13  ;;  %v6519_v17 = vmul.f32 -1.442695, %v9301_v31 }
 0x9ba   :  { %7357 = vtanh.f32 %v9291_v39  ;;  %v6520_v39 = vmul.f32 -1.442695, %v9311_v36 }
 0x9bb   :  { %7359 = vtanh.f32 %v9296_v3 }
 0x9bc   :  { %v7342_v12 = vpop.eup %7341  ;;  %7361 = vtanh.f32 %v9301_v31 }
 0x9bd   :  { %2292 = vrot.lane.b32.xlu0 %v7342_v12, %s8084_s22  ;;  %v7344_v21 = vpop.eup %7343  ;;  %7363 = vtanh.f32 %v9306_v11 }
 0x9be   :  { %2296 = vrot.lane.b32.xlu1 %v7344_v21, %s8084_s22  ;;  %v7346_v49 = vpop.eup %7345  ;;  %7365 = vtanh.f32 %v9311_v36 }
 0x9bf   :  { %v7348_v8 = vpop.eup %7347  ;;  %7367 = vtanh.f32 %v9316_v37 }
 0x9c0   :  { %v7350_v0 = vpop.eup %7349  ;;  %7369 = vtanh.f32 %v9322_v52 }
 0x9c1   :  { %2300 = vrot.lane.b32.xlu0 %v7346_v49, %s8084_s22  ;;  %v7352_v41 = vpop.eup %7351  ;;  %7371 = vtanh.f32 %v9329_v58 }
 0x9c2   :  { %2290 = vrot.lane.b32.xlu1 %v7348_v8, %s8084_s22  ;;  %v7354_v43 = vpop.eup %7353  ;;  %v6510_v8 = vmul.f32 -1.442695, %v9256_v23  ;;  %7373 = vpow2.f32 %v6508_v29  ;;  %v6521_v29 = vmul.f32 -1.442695, %v9322_v52  ;;  %v6522_v52 = vmul.f32 -1.442695, %v9329_v58 }
 0x9c3   :  { %v7356_v18 = vpop.eup %7355 }
 0x9c4   :  { %v7358_v15 = vpop.eup %7357  ;;  %7375 = vpow2.f32 %v6510_v8 }
 0x9c5   :  { %2308 = vrot.lane.b32.xlu0 %v7354_v43, %s8084_s22  ;;  %v7360_v24 = vpop.eup %7359  ;;  %7377 = vpow2.f32 %v6512_v59 }
 0x9c6   :  { %2294 = vrot.lane.b32.xlu1 %v7350_v0, %s8084_s22  ;;  %v7362_v45 = vpop.eup %7361  ;;  %7379 = vpow2.f32 %v6507_v48  ;;  %v6509_v0 = vmul.f32 -1.442695, %v9268_v26  ;;  %v6515_v26 = vmul.f32 -1.442695, %v9296_v3  ;;  %v6514_v3 = vmul.f32 -1.442695, %v9316_v37 }
 0x9c7   :  { %v7364_v57 = vpop.eup %7363 }
 0x9c8   :  { %v7366_v12 = vpop.eup %7365  ;;  %7381 = vpow2.f32 %v6509_v0 }
 0x9c9   :  { %2310 = vrot.lane.b32.xlu0 %v7358_v15, %s8084_s22  ;;  %v7368_v21 = vpop.eup %7367  ;;  %7383 = vpow2.f32 %v6511_v4 }
 0x9ca   :  { %2298 = vrot.lane.b32.xlu1 %v7352_v41, %s8084_s22  ;;  %v7370_v54 = vpop.eup %7369  ;;  %7385 = vpow2.f32 %v6516_v60 }
 0x9cb   :  { %v7372_v49 = vpop.eup %7371 }
 0x9cc   :  { %v7374_v1 = vpop.eup %7373 }
 0x9cd   :  { %2314 = vrot.lane.b32.xlu0 %v7362_v45, %s8084_s22  ;;  %v2147_v5 = vadd.f32 1.0, %v7374_v1 }
 0x9ce   :  { %2312 = vrot.lane.b32.xlu1 %v7356_v18, %s8084_s22  ;;  %v7376_v41 = vpop.eup %7375 }
 0x9cf   :  { %v7378_v43 = vpop.eup %7377  ;;  %v2149_v23 = vadd.f32 1.0, %v7376_v41  ;;  %7387 = vrcp.f32 %v2147_v5 }
 0x9d0   :  { %v7380_v18 = vpop.eup %7379  ;;  %v2151_v27 = vadd.f32 1.0, %v7378_v43 }
 0x9d1   :  { %2316 = vrot.lane.b32.xlu0 %v7366_v12, %s8084_s22  ;;  %7389 = vrcp.f32 %v2149_v23  ;;  %v2146_v10 = vadd.f32 1.0, %v7380_v18 }
 0x9d2   :  { %2306 = vrot.lane.b32.xlu1 %v7360_v24, %s8084_s22  ;;  %7391 = vpow2.f32 %v6518_v44  ;;  %v7382_v15 = vpop.eup %7381  ;;  %v6513_v24 = vmul.f32 -1.442695, %v9306_v11 }
 0x9d3   :  { %7393 = vpow2.f32 %v6517_v20  ;;  %v2148_v13 = vadd.f32 1.0, %v7382_v15  ;;  %v7384_v45 = vpop.eup %7383 }
 0x9d4   :  { %7395 = vrcp.f32 %v2151_v27 }
 0x9d5   :  { %2318 = vrot.lane.b32.xlu0 %v7370_v54, %s8084_s22  ;;  %7397 = vpow2.f32 %v6515_v26  ;;  %v2150_v54 = vadd.f32 1.0, %v7384_v45 }
 0x9d6   :  { %2302 = vrot.lane.b32.xlu1 %v7364_v57, %s8084_s22  ;;  %7399 = vrcp.f32 %v2146_v10  ;;  %v7386_v57 = vpop.eup %7385 }
 0x9d7   :  { %7401 = vpow2.f32 %v6519_v17  ;;  %v2155_v37 = vadd.f32 1.0, %v7386_v57 }
 0x9d8   :  { %7403 = vpow2.f32 %v6513_v24 }
 0x9d9   :  { %2320 = vrot.lane.b32.xlu0 %v7372_v49, %s8084_s22  ;;  %v9354_v12 = vpop.eup %7387  ;;  %7405 = vrcp.f32 %v2148_v13 }
 0x9da   :  { %2304 = vrot.lane.b32.xlu1 %v7368_v21, %s8084_s22  ;;  %7407 = vpow2.f32 %v6520_v39 }
 0x9db   :  { %v9356_v31 = vpop.eup %7389  ;;  %7409 = vpow2.f32 %v6514_v3 }
 0x9dc   :  { %v7392_v49 = vpop.eup %7391  ;;  %7411 = vrcp.f32 %v2150_v54 }
 0x9dd   :  { %v7394_v59 = vpop.eup %7393  ;;  %v2157_v4 = vadd.f32 1.0, %v7392_v49  ;;  %7413 = vpow2.f32 %v6521_v29 }
 0x9de   :  { %v9362_v48 = vpop.eup %7395  ;;  %7415 = vrcp.f32 %v2155_v37  ;;  %v2156_v23 = vadd.f32 1.0, %v7394_v59 }
 0x9df   :  { %v7398_v1 = vpop.eup %7397  ;;  %7417 = vrcp.f32 %v2157_v4 }
 0x9e0   :  { %v9366_v60 = vpop.eup %7399  ;;  %v2154_v20 = vadd.f32 1.0, %v7398_v1  ;;  %7419 = vpow2.f32 %v6522_v52 }
 0x9e1   :  { %v7402_v44 = vpop.eup %7401  ;;  %7421 = vrcp.f32 %v2156_v23 }
 0x9e2   :  { %v7404_v18 = vpop.eup %7403  ;;  %v2158_v58 = vadd.f32 1.0, %v7402_v44  ;;  %7423 = vrcp.f32 %v2154_v20 }
 0x9e3   :  { %v9372_v27 = vpop.eup %7405  ;;  %v2152_v24 = vadd.f32 1.0, %v7404_v18 }
 0x9e4   :  { %v7408_v15 = vpop.eup %7407  ;;  %7425 = vrcp.f32 %v2158_v58 }
 0x9e5   :  { %v7410_v17 = vpop.eup %7409  ;;  %v2159_v57 = vadd.f32 1.0, %v7408_v15  ;;  %7427 = vrcp.f32 %v2152_v24 }
 0x9e6   :  { %v9376_v13 = vpop.eup %7411 }
 0x9e7   :  { %v7414_v3 = vpop.eup %7413  ;;  %7429 = vrcp.f32 %v2159_v57 }
 0x9e8   :  { %v2160_v59 = vadd.f32 1.0, %v7414_v3 }
 0xa2f   :  { %v2293_v21 = vpop.permute.xlu0 %2292 }
 0xa30   :  { %v2339_v11 = vmul.f32 %v9354_v12, %v2293_v21  ;;  %v2297_v8 = vpop.permute.xlu1 %2296  ;;  %v9379_v21 = vpop.eup %7415 }
 0xa31   :  { %v2341_v36 = vmul.f32 %v9356_v31, %v2297_v8  ;;  %v9383_v29 = vpop.eup %7417 }
 0xa32   :  { %2372 = vrot.lane.b32.xlu0 %v2339_v11, %s8085_s3  ;;  %v2153_v11 = vadd.f32 1.0, %v7410_v17 }
 0xa33   :  { %v2301_v0 = vpop.permute.xlu0 %2300  ;;  %2376 = vrot.lane.b32.xlu1 %v2341_v36, %s8085_s3  ;;  %v7420_v36 = vpop.eup %7419 }
 0xa34   :  { %v2343_v41 = vmul.f32 %v9362_v48, %v2301_v0  ;;  %v2291_v5 = vpop.permute.xlu1 %2290  ;;  %v9387_v0 = vpop.eup %7421  ;;  %7431 = vrcp.f32 %v2153_v11 }
 0xa35   :  { %v2338_v43 = vmul.f32 %v9366_v60, %v2291_v5  ;;  %7433 = vrcp.f32 %v2160_v59  ;;  %v2161_v5 = vadd.f32 1.0, %v7420_v36  ;;  %v2227_v59 = vrot.slane %v9121_v47, 7 }
 0xa36   :  { %2380 = vrot.lane.b32.xlu0 %v2343_v41, %s8085_s3  ;;  %v9391_v41 = vpop.eup %7423  ;;  %v2229_v36 = vrot.slane %v9138_v33, 7 }
 0xa37   :  { %2370 = vrot.lane.b32.xlu1 %v2338_v43, %s8085_s3  ;;  %v2309_v54 = vpop.permute.xlu0 %2308  ;;  %v9395_v23 = vpop.eup %7425  ;;  %7435 = vrcp.f32 %v2161_v5 }
 0xa38   :  { %v2295_v26 = vpop.permute.xlu1 %2294  ;;  %v2347_v49 = vmul.f32 %v9379_v21, %v2309_v54  ;;  %v9399_v20 = vpop.eup %7427 }
 0xa39   :  { %v2340_v10 = vmul.f32 %v9372_v27, %v2295_v26  ;;  %v9403_v58 = vpop.eup %7429 }
 0xa3a   :  { %2388 = vrot.lane.b32.xlu0 %v2347_v49, %s8085_s3 }
 0xa3b   :  { %2374 = vrot.lane.b32.xlu1 %v2340_v10, %s8085_s3  ;;  %v2311_v1 = vpop.permute.xlu0 %2310 }
 0xa3c   :  { %v2299_v45 = vpop.permute.xlu1 %2298  ;;  %v2348_v4 = vmul.f32 %v9387_v0, %v2311_v1 }
 0xa3d   :  { %v2342_v39 = vmul.f32 %v9376_v13, %v2299_v45 }
 0xa3e   :  { %2390 = vrot.lane.b32.xlu0 %v2348_v4, %s8085_s3  ;;  %v9407_v24 = vpop.eup %7431  ;;  %v2231_v4 = vrot.slane %v9163_v25, 7 }
 0xa3f   :  { %2378 = vrot.lane.b32.xlu1 %v2342_v39, %s8085_s3  ;;  %v2315_v44 = vpop.permute.xlu0 %2314  ;;  %v9411_v57 = vpop.eup %7433 }
 0xa40   :  { %v2313_v8 = vpop.permute.xlu1 %2312  ;;  %v2350_v18 = vmul.f32 %v9395_v23, %v2315_v44  ;;  %v2226_v44 = vrot.slane %v9133_v14, 7  ;;  %v2263_v47 = vmul.f32 %v9362_v48, %v2231_v4 }
 0xa41   :  { %v2349_v37 = vmul.f32 %v9383_v29, %v2313_v8  ;;  %v9416_v11 = vpop.eup %7435 }
 0xa42   :  { %2394 = vrot.lane.b32.xlu0 %v2350_v18, %s8085_s3  ;;  %v2258_v33 = vmul.f32 %v9366_v60, %v2226_v44 }
 0xa43   :  { %2392 = vrot.lane.b32.xlu1 %v2349_v37, %s8085_s3  ;;  %v2317_v15 = vpop.permute.xlu0 %2316  ;;  %v2259_v37 = vmul.f32 %v9354_v12, %v2227_v59 }
 0xa44   :  { %v2307_v52 = vpop.permute.xlu1 %2306  ;;  %v2351_v17 = vmul.f32 %v9403_v58, %v2317_v15  ;;  %v2228_v15 = vrot.slane %v9124_v30, 7  ;;  %v2235_v30 = vrot.slane %v9148_v62, 7 }
 0xa45   :  { %v2346_v43 = vmul.f32 %v9391_v41, %v2307_v52  ;;  %v2261_v52 = vmul.f32 %v9356_v31, %v2229_v36 }
 0xa46   :  { %2396 = vrot.lane.b32.xlu0 %v2351_v17, %s8085_s3  ;;  %v2260_v14 = vmul.f32 %v9372_v27, %v2228_v15 }
 0xa47   :  { %2386 = vrot.lane.b32.xlu1 %v2346_v43, %s8085_s3  ;;  %v2319_v3 = vpop.permute.xlu0 %2318 }
 0xa48   :  { %v2303_v26 = vpop.permute.xlu1 %2302  ;;  %v2352_v54 = vmul.f32 %v9411_v57, %v2319_v3 }
 0xa49   :  { %v2344_v10 = vmul.f32 %v9399_v20, %v2303_v26 }
 0xa4a   :  { %2398 = vrot.lane.b32.xlu0 %v2352_v54, %s8085_s3 }
 0xa4b   :  { %2382 = vrot.lane.b32.xlu1 %v2344_v10, %s8085_s3  ;;  %v2321_v49 = vpop.permute.xlu0 %2320 }
 0xa4c   :  { %v2305_v45 = vpop.permute.xlu1 %2304  ;;  %v2353_v8 = vmul.f32 %v9416_v11, %v2321_v49 }
 0xa4d   :  { %v2345_v39 = vmul.f32 %v9407_v24, %v2305_v45 }
 0xa4e   :  { %2400 = vrot.lane.b32.xlu0 %v2353_v8, %s8085_s3 }
 0xa4f   :  { %2384 = vrot.lane.b32.xlu1 %v2345_v39, %s8085_s3  ;;  %v2230_v39 = vrot.slane %v9130_v61, 7 }
 0xa51   :  { %v2262_v49 = vmul.f32 %v9376_v13, %v2230_v39 }
 0xaa4   :  { %v2373_v1 = vpop.permute.xlu0 %2372 }
 0xaa5   :  { %v9425_v5 = vadd.f32 %v2373_v1, %v2259_v37  ;;  %v2377_v43 = vpop.permute.xlu1 %2376  ;;  %v2237_v37 = vrot.slane %v9160_v35, 7  ;;  %v2267_v1 = vmul.f32 %v9379_v21, %v2235_v30  ;;  %v11416_v30 = vld [vmem:[#allocation13_spill] sm:$0xff] }
 0xaa6   :  { %v9428_v18 = vadd.f32 %v2377_v43, %v2261_v52  ;;  %v2236_v52 = vrot.slane %v9152_v56, 7  ;;  %v11414_v56 = vld [vmem:[#allocation9_spill] sm:$0xff] }
 0xaa7   :  { %7437 = vtanh.f32 %v9425_v5  ;;  %v2269_v62 = vmul.f32 %v9383_v29, %v2237_v37 }
 0xaa8   :  { %v2381_v26 = vpop.permute.xlu0 %2380  ;;  %7439 = vtanh.f32 %v9428_v18 }
 0xaa9   :  { %v9434_v10 = vadd.f32 %v2381_v26, %v2263_v47  ;;  %v2371_v25 = vpop.permute.xlu1 %2370  ;;  %v11412_v26 = vld [vmem:[#allocation8_spill] sm:$0xff] }
 0xaaa   :  { %v9437_v17 = vadd.f32 %v2371_v25, %v2258_v33  ;;  %v2234_v35 = vrot.slane %v11412_v26, 7  ;;  %v2268_v33 = vmul.f32 %v9387_v0, %v2236_v52  ;;  %v11420_v26 = vld [vmem:[#allocation10_spill] sm:$0xff] }
 0xaab   :  { %7441 = vtanh.f32 %v9434_v10 }
 0xaac   :  { %7443 = vtanh.f32 %v9437_v17  ;;  %v2389_v4 = vpop.permute.xlu0 %2388  ;;  %v2266_v39 = vmul.f32 %v9391_v41, %v2234_v35  ;;  %v2233_v35 = vrot.slane %v11420_v26, 7 }
 0xaad   :  { %v2375_v45 = vpop.permute.xlu1 %2374  ;;  %v9456_v43 = vadd.f32 %v2389_v4, %v2267_v1 }
 0xaae   :  { %v9443_v3 = vadd.f32 %v2375_v45, %v2260_v14  ;;  %v2238_v14 = vrot.slane %v11414_v56, 7 }
 0xab0   :  { %7445 = vtanh.f32 %v9443_v3  ;;  %v2391_v15 = vpop.permute.xlu0 %2390 }
 0xab1   :  { %v7438_v54 = vpop.eup %7437  ;;  %v2379_v8 = vpop.permute.xlu1 %2378  ;;  %v9467_v45 = vadd.f32 %v2391_v15, %v2268_v33 }
 0xab2   :  { %2468 = vrot.lane.b32.xlu0 %v7438_v54, %s8084_s22  ;;  %v7440_v59 = vpop.eup %7439  ;;  %v9449_v36 = vadd.f32 %v2379_v8, %v2262_v49  ;;  %v2232_v8 = vrot.slane %v11416_v30, 7  ;;  %v2265_v30 = vmul.f32 %v9407_v24, %v2233_v35 }
 0xab3   :  { %2472 = vrot.lane.b32.xlu1 %v7440_v59, %s8084_s22  ;;  %11415 = vst [vmem:[#allocation14_spill] sm:$0xff] %v9467_v45  ;;  %v2270_v59 = vmul.f32 %v9395_v23, %v2238_v14 }
 0xab4   :  { %7447 = vtanh.f32 %v9449_v36  ;;  %v2395_v1 = vpop.permute.xlu0 %2394 }
 0xab5   :  { %v7442_v61 = vpop.eup %7441  ;;  %v2393_v47 = vpop.permute.xlu1 %2392  ;;  %7449 = vtanh.f32 %v9456_v43  ;;  %v9478_v52 = vadd.f32 %v2395_v1, %v2270_v59 }
 0xab6   :  { %2476 = vrot.lane.b32.xlu0 %v7442_v61, %s8084_s22  ;;  %v7444_v44 = vpop.eup %7443  ;;  %v9463_v25 = vadd.f32 %v2393_v47, %v2269_v62  ;;  %v11418_v61 = vld [vmem:[#allocation6_spill] sm:$0xff]  ;;  %v2264_v62 = vmul.f32 %v9399_v20, %v2232_v8 }
 0xab7   :  { %2466 = vrot.lane.b32.xlu1 %v7444_v44, %s8084_s22  ;;  %v2239_v4 = vrot.slane %v11418_v61, 7  ;;  %11419 = vst [vmem:[#allocation9_spill] sm:$0xff] %v9478_v52 }
 0xab8   :  { %11413 = vst [vmem:[#allocation7_spill] sm:$0xff] %v9463_v25  ;;  %7451 = vtanh.f32 %v9463_v25  ;;  %v2397_v56 = vpop.permute.xlu0 %2396 }
 0xab9   :  { %v2387_v49 = vpop.permute.xlu1 %2386  ;;  %7453 = vtanh.f32 %v9467_v45  ;;  %v2271_v33 = vmul.f32 %v9403_v58, %v2239_v4 }
 0xaba   :  { %v7446_v54 = vpop.eup %7445  ;;  %v9474_v37 = vadd.f32 %v2387_v49, %v2266_v39  ;;  %v11421_v39 = vld [vmem:[#allocation12_spill] sm:$0xff] }
 0xabb   :  { %2470 = vrot.lane.b32.xlu1 %v7446_v54, %s8084_s22  ;;  %v2240_v54 = vrot.slane %v11421_v39, 7  ;;  %v9489_v49 = vadd.f32 %v2397_v56, %v2271_v33 }
 0xabc   :  { %11417 = vst [vmem:[#allocation8_spill] sm:$0xff] %v9474_v37  ;;  %7455 = vtanh.f32 %v9474_v37  ;;  %v2399_v4 = vpop.permute.xlu0 %2398 }
 0xabd   :  { %v2383_v47 = vpop.permute.xlu1 %2382  ;;  %7457 = vtanh.f32 %v9478_v52  ;;  %11422 = vst [vmem:[#allocation13_spill] sm:$0xff] %v9489_v49  ;;  %v2272_v1 = vmul.f32 %v9411_v57, %v2240_v54 }
 0xabe   :  { %v7448_v44 = vpop.eup %7447  ;;  %v9485_v15 = vadd.f32 %v2383_v47, %v2264_v62 }
 0xabf   :  { %2474 = vrot.lane.b32.xlu1 %v7448_v44, %s8084_s22  ;;  %v7450_v14 = vpop.eup %7449  ;;  %v11424_v44 = vld [vmem:[#allocation11_spill] sm:$0xff]  ;;  %v9500_v26 = vadd.f32 %v2399_v4, %v2272_v1 }
 0xac0   :  { %7459 = vtanh.f32 %v9485_v15  ;;  %2484 = vrot.lane.b32.xlu0 %v7450_v14, %s8084_s22  ;;  %v2241_v47 = vrot.slane %v11424_v44, 7  ;;  %v2401_v56 = vpop.permute.xlu0 %2400 }
 0xac1   :  { %v2385_v8 = vpop.permute.xlu1 %2384  ;;  %7461 = vtanh.f32 %v9489_v49  ;;  %11425 = vst [vmem:[#allocation10_spill] sm:$0xff] %v9500_v26 }
 0xac2   :  { %v7452_v59 = vpop.eup %7451  ;;  %v9496_v61 = vadd.f32 %v2385_v8, %v2265_v30  ;;  %v2273_v33 = vmul.f32 %v9416_v11, %v2241_v47 }
 0xac3   :  { %2488 = vrot.lane.b32.xlu1 %v7452_v59, %s8084_s22  ;;  %v7454_v62 = vpop.eup %7453 }
 0xac4   :  { %11423 = vst [vmem:[#allocation6_spill] sm:$0xff] %v9496_v61  ;;  %7463 = vtanh.f32 %v9496_v61  ;;  %2486 = vrot.lane.b32.xlu0 %v7454_v62, %s8084_s22  ;;  %v9507_v39 = vadd.f32 %v2401_v56, %v2273_v33 }
 0xac5   :  { %7465 = vtanh.f32 %v9500_v26 }
 0xac6   :  { %v7456_v35 = vpop.eup %7455  ;;  %11426 = vst [vmem:[#allocation12_spill] sm:$0xff] %v9507_v39  ;;  %7467 = vtanh.f32 %v9507_v39 }
 0xac7   :  { %2482 = vrot.lane.b32.xlu1 %v7456_v35, %s8084_s22  ;;  %v7458_v14 = vpop.eup %7457 }
 0xac8   :  { %2490 = vrot.lane.b32.xlu0 %v7458_v14, %s8084_s22 }
 0xaca   :  { %v7460_v54 = vpop.eup %7459 }
 0xacb   :  { %2478 = vrot.lane.b32.xlu1 %v7460_v54, %s8084_s22  ;;  %v7462_v30 = vpop.eup %7461 }
 0xacc   :  { %2492 = vrot.lane.b32.xlu0 %v7462_v30, %s8084_s22 }
 0xace   :  { %v7464_v8 = vpop.eup %7463 }
 0xacf   :  { %2480 = vrot.lane.b32.xlu1 %v7464_v8, %s8084_s22  ;;  %v7466_v59 = vpop.eup %7465 }
 0xad0   :  { %2494 = vrot.lane.b32.xlu0 %v7466_v59, %s8084_s22  ;;  %v7468_v1 = vpop.eup %7467 }
 0xad4   :  { %2496 = vrot.lane.b32.xlu0 %v7468_v1, %s8084_s22 }
 0xb24   :  { %v2469_v62 = vpop.permute.xlu0 %2468 }
 0xb25   :  { %v2473_v4 = vpop.permute.xlu1 %2472  ;;  %v2515_v39 = vmul.f32 %v9354_v12, %v2469_v62 }
 0xb26   :  { %v2517_v62 = vmul.f32 %v9356_v31, %v2473_v4 }
 0xb28   :  { %v2477_v35 = vpop.permute.xlu0 %2476 }
 0xb29   :  { %v2467_v44 = vpop.permute.xlu1 %2466 }
 0xb2a   :  { %v2514_v54 = vmul.f32 %v9366_v60, %v2467_v44 }
 0xb2c   :  { %v2530_v61 = vpack.c.bf16 %v2514_v54, %v2514_v54 }
 0xb2d   :  { %v2471_v47 = vpop.permute.xlu1 %2470 }
 0xb2e   :  { %v2516_v8 = vmul.f32 %v9372_v27, %v2471_v47  ;;  %v2562_v47 = vunpack.c.l.b16 %v2530_v61 }
 0xb30   :  { %v2532_v52 = vpack.c.bf16 %v2516_v8, %v2516_v8  ;;  %v2578_v31 = vrot.slane %v2562_v47, 3 }
 0xb31   :  { %v2475_v33 = vpop.permute.xlu1 %2474 }
 0xb32   :  { %v2485_v56 = vpop.permute.xlu0 %2484  ;;  %v2518_v25 = vmul.f32 %v9376_v13, %v2475_v33  ;;  %v2564_v54 = vunpack.c.l.b16 %v2532_v52  ;;  %v2519_v33 = vmul.f32 %v9362_v48, %v2477_v35 }
 0xb33   :  { %v2523_v14 = vmul.f32 %v9379_v21, %v2485_v56  ;;  %v2531_v21 = vpack.c.bf16 %v2515_v39, %v2515_v39 }
 0xb34   :  { %v2534_v8 = vpack.c.bf16 %v2518_v25, %v2518_v25  ;;  %v2581_v4 = vrot.slane %v2564_v54, 1 }
 0xb35   :  { %v2489_v30 = vpop.permute.xlu1 %2488  ;;  %v2539_v26 = vpack.c.bf16 %v2523_v14, %v2523_v14  ;;  %v2563_v13 = vunpack.c.l.b16 %v2531_v21 }
 0xb36   :  { %v2487_v59 = vpop.permute.xlu0 %2486  ;;  %v2525_v44 = vmul.f32 %v9383_v29, %v2489_v30  ;;  %v2566_v52 = vunpack.c.l.b16 %v2534_v8 }
 0xb37   :  { %v2524_v1 = vmul.f32 %v9387_v0, %v2487_v59  ;;  %v2571_v60 = vunpack.c.l.b16 %v2539_v26 }
 0xb38   :  { %v2541_v29 = vpack.c.bf16 %v2525_v44, %v2525_v44  ;;  %v2535_v44 = vpack.c.bf16 %v2519_v33, %v2519_v33 }
 0xb39   :  { %v2483_v49 = vpop.permute.xlu1 %2482  ;;  %v2540_v37 = vpack.c.bf16 %v2524_v1, %v2524_v1  ;;  %v2593_v39 = vrot.slane %v2571_v60, 2  ;;  %v2579_v60 = vrot.slane %v2563_v13, 2 }
 0xb3a   :  { %v2522_v45 = vmul.f32 %v9391_v41, %v2483_v49  ;;  %v2491_v56 = vpop.permute.xlu0 %2490 }
 0xb3b   :  { %v2526_v27 = vmul.f32 %v9395_v23, %v2491_v56  ;;  %v2572_v0 = vunpack.c.l.b16 %v2540_v37  ;;  %v2580_v47 = vsel %vm763_vm3, %v2579_v60, %v2578_v31 }
 0xb3c   :  { %v2538_v12 = vpack.c.bf16 %v2522_v45, %v2522_v45  ;;  %v2533_v45 = vpack.c.bf16 %v2517_v62, %v2517_v62  ;;  %v2582_v8 = vsel %vm766_vm4, %v2581_v4, %v2580_v47 }
 0xb3d   :  { %v2479_v14 = vpop.permute.xlu1 %2478  ;;  %v2542_v41 = vpack.c.bf16 %v2526_v27, %v2526_v27  ;;  %v2595_v61 = vrot.slane %v2572_v0, 1  ;;  %v2573_v27 = vunpack.c.l.b16 %v2541_v29 }
 0xb3e   :  { %v2570_v59 = vunpack.c.l.b16 %v2538_v12  ;;  %v2493_v49 = vpop.permute.xlu0 %2492  ;;  %v2520_v26 = vmul.f32 %v9399_v20, %v2479_v14  ;;  %v2565_v12 = vunpack.c.l.b16 %v2533_v45 }
 0xb3f   :  { %v2527_v23 = vmul.f32 %v9403_v58, %v2493_v49  ;;  %v2574_v21 = vunpack.c.l.b16 %v2542_v41 }
 0xb40   :  { %v2592_v30 = vrot.slane %v2570_v59, 3  ;;  %v2536_v35 = vpack.c.bf16 %v2520_v26, %v2520_v26  ;;  %v2584_v59 = vrot.slane %v2566_v52, 7  ;;  %v2583_v29 = vsel %vm769_vm5, %v2565_v12, %v2582_v8 }
 0xb41   :  { %v2481_v37 = vpop.permute.xlu1 %2480  ;;  %v2543_v1 = vpack.c.bf16 %v2527_v23, %v2527_v23  ;;  %v2598_v41 = vrot.slane %v2574_v21, 7 }
 0xb42   :  { %v2594_v25 = vsel %vm763_vm3, %v2593_v39, %v2592_v30  ;;  %v2495_v56 = vpop.permute.xlu0 %2494  ;;  %v2521_v20 = vmul.f32 %v9407_v24, %v2481_v37  ;;  %v2568_v49 = vunpack.c.l.b16 %v2536_v35  ;;  %v2567_v24 = vunpack.c.l.b16 %v2535_v44 }
 0xb43   :  { %v2596_v48 = vsel %vm766_vm4, %v2595_v61, %v2594_v25  ;;  %v2528_v58 = vmul.f32 %v9411_v57, %v2495_v56  ;;  %v2575_v0 = vunpack.c.l.b16 %v2543_v1  ;;  %v2585_v45 = vsel %vm772_vm6, %v2584_v59, %v2583_v29 }
 0xb44   :  { %v2537_v62 = vpack.c.bf16 %v2521_v20, %v2521_v20  ;;  %v2597_v14 = vsel %vm769_vm5, %v2573_v27, %v2596_v48  ;;  %v2588_v31 = vrot.slane %v2568_v49, 5  ;;  %v2586_v37 = vrot.slane %v2567_v24, 6 }
 0xb45   :  { %v2544_v54 = vpack.c.bf16 %v2528_v58, %v2528_v58  ;;  %v2599_v57 = vsel %vm772_vm6, %v2598_v41, %v2597_v14  ;;  %v2600_v30 = vrot.slane %v2575_v0, 6 }
 0xb46   :  { %v2497_v26 = vpop.permute.xlu0 %2496  ;;  %v2569_v33 = vunpack.c.l.b16 %v2537_v62  ;;  %v2587_v1 = vsel %vm775_vm7, %v2586_v37, %v2585_v45 }
 0xb47   :  { %v2576_v13 = vunpack.c.l.b16 %v2544_v54  ;;  %v2529_v39 = vmul.f32 %v9416_v11, %v2497_v26  ;;  %v2601_v4 = vsel %vm775_vm7, %v2600_v30, %v2599_v57  ;;  %v2589_v11 = vsel %vm778_vm8, %v2588_v31, %v2587_v1 }
 0xb48   :  { %v2590_v52 = vrot.slane %v2569_v33, 4 }
 0xb49   :  { %v2545_v23 = vpack.c.bf16 %v2529_v39, %v2529_v39  ;;  %v2602_v61 = vrot.slane %v2576_v13, 5 }
 0xb4a   :  { %v2591_v35 = vsel %vm781_vm9, %v2590_v52, %v2589_v11 }
 0xb4b   :  { %v2577_v25 = vunpack.c.l.b16 %v2545_v23  ;;  %v2603_v48 = vsel %vm778_vm8, %v2602_v61, %v2601_v4 }
 0xb4d   :  { %v2604_v21 = vrot.slane %v2577_v25, 4 }
 0xb4f   :  { %v2605_v56 = vsel %vm781_vm9, %v2604_v21, %v2603_v48 }
 0xb50   :  { %v2606_v20 = vpack.c.b16 %v2605_v56, %v2591_v35 }
 0xb52   :  { %2607 = vrot.lane.b32.xlu1 %v2606_v20, %s8085_s3 }
 0xbc4   :  { %v2608_v60 = vpop.permute.xlu1 %2607 }
 0xbc5   :  { %6747 = vmatmul.mubr.msk.bf16.vlgmr.msra.gmra.mrb[16].mxu0 %vm11358_vm10, %v2608_v60 }
 0xbc6   :  { %6759 = vmatpush3.bf16.msra.mxu0 %v8222_v6  ;;  %6762 = vmatprep.mubr.msk.bf16.mxu0 %vm11359_vm2, %v11379_v34 }
 0xbc7   :  { %6760 = vmatprep.subr.bf16.mxu0 %v11379_v34 }
 0xbca   :  { %6761 = vmatpush3.bf16.msra.mxu0 %v8247_v16 }
 0xbcb   :  { %6774 = vmatprep.subr.bf16.mxu0 %v11379_v34 }
 0xc98   :  { %v2646_v44 = vpop.f32.mrb[16].mxu0 }
 0xc99   :  { %v6748_v27 = vpop.f32.mrb[17].mxu0  ;;  %v2656_v62 = vrot.slane %v2646_v44, 5  ;;  %v2660_v0 = vrot.slane %v2646_v44, 2  ;;  %v2655_v14 = vrot.slane %v2646_v44, 4  ;;  %v9560_v54 = vadd.f32 %v2646_v44, %v8338_v55 }
 0xc9a   :  { %v9554_v58 = vpop.f32.mrb[18].mxu0  ;;  %v2657_v59 = vrot.slane %v2646_v44, 6  ;;  %v2658_v49 = vrot.slane %v2646_v44, 7  ;;  %v2659_v33 = vrot.slane %v2646_v44, 1  ;;  %v2661_v11 = vrot.slane %v2646_v44, 3 }
 0xc9b   :  { %v6749_v12 = vpop.f32.mrb[19].mxu0  ;;  %v9557_v47 = vadd.f32 %v2656_v62, %v8322_v46  ;;  %v9564_v8 = vadd.f32 %v2660_v0, %v8408_v32  ;;  %v9567_v41 = vadd.f32 %v2655_v14, %v8317_v42  ;;  %v2663_v24 = vrot.slane %v9554_v58, 5 }
 0xc9c   :  { %v9572_v26 = vadd.f32 %v2657_v59, %v8330_v50  ;;  %v9577_v39 = vadd.f32 %v2658_v49, %v8333_v51  ;;  %v2664_v29 = vrot.slane %v9554_v58, 6  ;;  %v9587_v23 = vadd.f32 %v2659_v33, %v8357_v63 }
 0xc9d   :  { %7469 = vtanh.f32 %v9557_v47  ;;  %v9583_v30 = vadd.f32 %v2663_v24, %v8389_v19  ;;  %v2662_v45 = vrot.slane %v9554_v58, 4  ;;  %v2665_v37 = vrot.slane %v9554_v58, 7 }
 0xc9e   :  { %7471 = vtanh.f32 %v9560_v54  ;;  %v9593_v4 = vadd.f32 %v2664_v29, %v8362_v2  ;;  %v2666_v1 = vrot.slane %v9554_v58, 1  ;;  %v9610_v48 = vadd.f32 %v9554_v58, %v8402_v28 }
 0xc9f   :  { %7473 = vtanh.f32 %v9564_v8  ;;  %v9600_v52 = vadd.f32 %v2662_v45, %v8366_v7  ;;  %v9604_v21 = vadd.f32 %v2665_v37, %v8370_v9  ;;  %v2667_v56 = vrot.slane %v9554_v58, 2 }
 0xca0   :  { %7475 = vtanh.f32 %v9567_v41  ;;  %v9615_v20 = vadd.f32 %v2666_v1, %v8416_v38  ;;  %v9620_v27 = vadd.f32 %v2661_v11, %v8423_v40  ;;  %v2668_v12 = vrot.slane %v9554_v58, 3 }
 0xca1   :  { %7477 = vtanh.f32 %v9572_v26  ;;  %v9626_v62 = vadd.f32 %v2667_v56, %v8395_v22  ;;  %v6525_v29 = vmul.f32 -1.442695, %v9557_v47  ;;  %v6528_v45 = vmul.f32 -1.442695, %v9560_v54 }
 0xca2   :  { %7479 = vtanh.f32 %v9577_v39  ;;  %v9633_v59 = vadd.f32 %v2668_v12, %v8430_v53  ;;  %v6526_v37 = vmul.f32 -1.442695, %v9572_v26  ;;  %v6527_v1 = vmul.f32 -1.442695, %v9577_v39 }
 0xca3   :  { %7481 = vtanh.f32 %v9583_v30  ;;  %v6533_v11 = vmul.f32 -1.442695, %v9583_v30  ;;  %v6529_v54 = vmul.f32 -1.442695, %v9587_v23  ;;  %v6532_v26 = vmul.f32 -1.442695, %v9600_v52 }
 0xca4   :  { %7483 = vtanh.f32 %v9587_v23  ;;  %v6535_v30 = vmul.f32 -1.442695, %v9604_v21  ;;  %v6536_v23 = vmul.f32 -1.442695, %v9610_v48 }
 0xca5   :  { %7485 = vtanh.f32 %v9593_v4 }
 0xca6   :  { %7487 = vtanh.f32 %v9600_v52 }
 0xca7   :  { %v7470_v13 = vpop.eup %7469  ;;  %7489 = vtanh.f32 %v9604_v21 }
 0xca8   :  { %2895 = vrot.lane.b32.xlu1 %v7470_v13, %s8084_s22  ;;  %v7472_v57 = vpop.eup %7471  ;;  %7491 = vtanh.f32 %v9610_v48  ;;  %v6538_v48 = vmul.f32 -1.442695, %v9626_v62 }
 0xca9   :  { %2901 = vrot.lane.b32.xlu0 %v7472_v57, %s8084_s22  ;;  %v7474_v31 = vpop.eup %7473  ;;  %7493 = vtanh.f32 %v9615_v20 }
 0xcaa   :  { %v7476_v61 = vpop.eup %7475  ;;  %7495 = vtanh.f32 %v9620_v27 }
 0xcab   :  { %v7478_v25 = vpop.eup %7477  ;;  %7497 = vtanh.f32 %v9626_v62 }
 0xcac   :  { %2905 = vrot.lane.b32.xlu1 %v7474_v31, %s8084_s22  ;;  %v7480_v35 = vpop.eup %7479  ;;  %7499 = vtanh.f32 %v9633_v59  ;;  %v6530_v31 = vmul.f32 -1.442695, %v9564_v8 }
 0xcad   :  { %2893 = vrot.lane.b32.xlu0 %v7476_v61, %s8084_s22  ;;  %v7482_v60 = vpop.eup %7481  ;;  %7501 = vpow2.f32 %v6525_v29  ;;  %v6524_v61 = vmul.f32 -1.442695, %v9567_v41 }
 0xcae   :  { %v7484_v44 = vpop.eup %7483  ;;  %7503 = vpow2.f32 %v6528_v45 }
 0xcaf   :  { %v7486_v0 = vpop.eup %7485  ;;  %7505 = vpow2.f32 %v6530_v31 }
 0xcb0   :  { %2911 = vrot.lane.b32.xlu1 %v7482_v60, %s8084_s22  ;;  %v7488_v14 = vpop.eup %7487  ;;  %7507 = vpow2.f32 %v6524_v61  ;;  %v6534_v60 = vmul.f32 -1.442695, %v9593_v4  ;;  %v6537_v4 = vmul.f32 -1.442695, %v9615_v20 }
 0xcb1   :  { %2897 = vrot.lane.b32.xlu0 %v7478_v25, %s8084_s22  ;;  %v7490_v58 = vpop.eup %7489  ;;  %7509 = vpow2.f32 %v6526_v37 }
 0xcb2   :  { %v7492_v49 = vpop.eup %7491  ;;  %7511 = vpow2.f32 %v6527_v1 }
 0xcb3   :  { %v7494_v24 = vpop.eup %7493  ;;  %7513 = vpow2.f32 %v6533_v11 }
 0xcb4   :  { %2913 = vrot.lane.b32.xlu1 %v7486_v0, %s8084_s22  ;;  %v7496_v13 = vpop.eup %7495 }
 0xcb5   :  { %2899 = vrot.lane.b32.xlu0 %v7480_v35, %s8084_s22  ;;  %v7498_v33 = vpop.eup %7497 }
 0xcb6   :  { %v7500_v57 = vpop.eup %7499 }
 0xcb7   :  { %v7502_v25 = vpop.eup %7501 }
 0xcb8   :  { %2915 = vrot.lane.b32.xlu1 %v7490_v58, %s8084_s22  ;;  %v7504_v35 = vpop.eup %7503  ;;  %v2750_v47 = vadd.f32 1.0, %v7502_v25  ;;  %v6539_v25 = vmul.f32 -1.442695, %v9633_v59 }
 0xcb9   :  { %2903 = vrot.lane.b32.xlu0 %v7484_v44, %s8084_s22  ;;  %v7506_v56 = vpop.eup %7505  ;;  %v2753_v8 = vadd.f32 1.0, %v7504_v35 }
 0xcba   :  { %v7508_v41 = vpop.eup %7507  ;;  %7515 = vrcp.f32 %v2750_v47  ;;  %v2755_v44 = vadd.f32 1.0, %v7506_v56 }
 0xcbb   :  { %7517 = vpow2.f32 %v6529_v54  ;;  %v2749_v39 = vadd.f32 1.0, %v7508_v41  ;;  %v7510_v12 = vpop.eup %7509 }
 0xcbc   :  { %2919 = vrot.lane.b32.xlu1 %v7494_v24, %s8084_s22  ;;  %7519 = vrcp.f32 %v2753_v8  ;;  %v2751_v0 = vadd.f32 1.0, %v7510_v12 }
 0xcbd   :  { %2909 = vrot.lane.b32.xlu0 %v7488_v14, %s8084_s22  ;;  %7521 = vpow2.f32 %v6534_v60  ;;  %v7512_v14 = vpop.eup %7511 }
 0xcbe   :  { %7523 = vpow2.f32 %v6532_v26  ;;  %v7514_v58 = vpop.eup %7513  ;;  %v2752_v21 = vadd.f32 1.0, %v7512_v14 }
 0xcbf   :  { %7525 = vrcp.f32 %v2755_v44  ;;  %v2758_v20 = vadd.f32 1.0, %v7514_v58 }
 0xcc0   :  { %2921 = vrot.lane.b32.xlu1 %v7498_v33, %s8084_s22  ;;  %7527 = vrcp.f32 %v2749_v39 }
 0xcc1   :  { %2917 = vrot.lane.b32.xlu0 %v7492_v49, %s8084_s22  ;;  %7529 = vpow2.f32 %v6535_v30  ;;  %v6531_v49 = vmul.f32 -1.442695, %v9620_v27 }
 0xcc2   :  { %7531 = vpow2.f32 %v6536_v23 }
 0xcc3   :  { %7533 = vrcp.f32 %v2751_v0 }
 0xcc4   :  { %2923 = vrot.lane.b32.xlu1 %v7500_v57, %s8084_s22  ;;  %v9657_v52 = vpop.eup %7515  ;;  %7535 = vpow2.f32 %v6537_v4 }
 0xcc5   :  { %2907 = vrot.lane.b32.xlu0 %v7496_v13, %s8084_s22  ;;  %v7518_v33 = vpop.eup %7517  ;;  %7537 = vpow2.f32 %v6531_v49 }
 0xcc6   :  { %v9662_v57 = vpop.eup %7519  ;;  %7539 = vrcp.f32 %v2752_v21  ;;  %v2754_v61 = vadd.f32 1.0, %v7518_v33 }
 0xcc7   :  { %v7522_v45 = vpop.eup %7521  ;;  %7541 = vpow2.f32 %v6538_v48 }
 0xcc8   :  { %v7524_v31 = vpop.eup %7523  ;;  %7543 = vrcp.f32 %v2758_v20  ;;  %v2759_v47 = vadd.f32 1.0, %v7522_v45 }
 0xcc9   :  { %v9666_v37 = vpop.eup %7525  ;;  %7545 = vrcp.f32 %v2754_v61  ;;  %v2757_v8 = vadd.f32 1.0, %v7524_v31 }
 0xcca   :  { %v9670_v1 = vpop.eup %7527  ;;  %7547 = vpow2.f32 %v6539_v25 }
 0xccb   :  { %v7530_v54 = vpop.eup %7529  ;;  %7549 = vrcp.f32 %v2759_v47 }
 0xccc   :  { %v7532_v41 = vpop.eup %7531  ;;  %v2760_v26 = vadd.f32 1.0, %v7530_v54  ;;  %7551 = vrcp.f32 %v2757_v8 }
 0xccd   :  { %v9676_v59 = vpop.eup %7533  ;;  %v2761_v12 = vadd.f32 1.0, %v7532_v41 }
 0xcce   :  { %v7536_v44 = vpop.eup %7535  ;;  %7553 = vrcp.f32 %v2760_v26 }
 0xccf   :  { %v7538_v30 = vpop.eup %7537  ;;  %v2762_v14 = vadd.f32 1.0, %v7536_v44  ;;  %7555 = vrcp.f32 %v2761_v12 }
 0xcd0   :  { %v9680_v23 = vpop.eup %7539 }
 0xcd1   :  { %v7542_v4 = vpop.eup %7541  ;;  %7557 = vrcp.f32 %v2762_v14 }
 0xcd2   :  { %v9683_v49 = vpop.eup %7543 }
 0xcd3   :  { %v9687_v33 = vpop.eup %7545 }
 0xcd4   :  { %v7548_v20 = vpop.eup %7547 }
 0xd1a   :  { %v2896_v24 = vpop.permute.xlu1 %2895 }
 0xd1b   :  { %v2942_v13 = vmul.f32 %v9657_v52, %v2896_v24  ;;  %v2902_v29 = vpop.permute.xlu0 %2901 }
 0xd1c   :  { %v2945_v27 = vmul.f32 %v9662_v57, %v2902_v29  ;;  %v2763_v29 = vadd.f32 1.0, %v7542_v4 }
 0xd1d   :  { %2975 = vrot.lane.b32.xlu1 %v2942_v13, %s8085_s3  ;;  %v2756_v13 = vadd.f32 1.0, %v7538_v30 }
 0xd1e   :  { %2981 = vrot.lane.b32.xlu0 %v2945_v27, %s8085_s3  ;;  %v2906_v62 = vpop.permute.xlu1 %2905  ;;  %v9691_v27 = vpop.eup %7549 }
 0xd1f   :  { %v2894_v11 = vpop.permute.xlu0 %2893  ;;  %v2947_v35 = vmul.f32 %v9666_v37, %v2906_v62  ;;  %7559 = vrcp.f32 %v2756_v13  ;;  %v9695_v25 = vpop.eup %7551 }
 0xd20   :  { %v2941_v56 = vmul.f32 %v9670_v1, %v2894_v11  ;;  %7561 = vrcp.f32 %v2763_v29  ;;  %v2764_v11 = vadd.f32 1.0, %v7548_v20  ;;  %v9699_v47 = vpop.eup %7553  ;;  %v2833_v20 = vrot.slane %v9449_v36, 7 }
 0xd21   :  { %2985 = vrot.lane.b32.xlu1 %v2947_v35, %s8085_s3  ;;  %v9703_v8 = vpop.eup %7555 }
 0xd22   :  { %2973 = vrot.lane.b32.xlu0 %v2941_v56, %s8085_s3  ;;  %v2912_v24 = vpop.permute.xlu1 %2911  ;;  %7563 = vrcp.f32 %v2764_v11  ;;  %v9707_v26 = vpop.eup %7557 }
 0xd23   :  { %v2898_v60 = vpop.permute.xlu0 %2897  ;;  %v2950_v21 = vmul.f32 %v9683_v49, %v2912_v24 }
 0xd24   :  { %v2943_v39 = vmul.f32 %v9676_v59, %v2898_v60 }
 0xd25   :  { %2991 = vrot.lane.b32.xlu1 %v2950_v21, %s8085_s3 }
 0xd26   :  { %2977 = vrot.lane.b32.xlu0 %v2943_v39, %s8085_s3  ;;  %v2914_v31 = vpop.permute.xlu1 %2913 }
 0xd27   :  { %v2900_v0 = vpop.permute.xlu0 %2899  ;;  %v2951_v61 = vmul.f32 %v9691_v27, %v2914_v31 }
 0xd28   :  { %v2944_v58 = vmul.f32 %v9680_v23, %v2900_v0 }
 0xd29   :  { %2993 = vrot.lane.b32.xlu1 %v2951_v61, %s8085_s3  ;;  %v9711_v12 = vpop.eup %7559  ;;  %v2865_v61 = vmul.f32 %v9662_v57, %v2833_v20 }
 0xd2a   :  { %2979 = vrot.lane.b32.xlu0 %v2944_v58, %s8085_s3  ;;  %v2916_v54 = vpop.permute.xlu1 %2915  ;;  %v9715_v14 = vpop.eup %7561 }
 0xd2b   :  { %v2904_v48 = vpop.permute.xlu0 %2903  ;;  %v2952_v56 = vmul.f32 %v9699_v47, %v2916_v54 }
 0xd2c   :  { %v2946_v45 = vmul.f32 %v9687_v33, %v2904_v48  ;;  %v9720_v24 = vpop.eup %7563  ;;  %v2830_v48 = vrot.slane %v9425_v5, 7 }
 0xd2d   :  { %2995 = vrot.lane.b32.xlu1 %v2952_v56, %s8085_s3 }
 0xd2e   :  { %2983 = vrot.lane.b32.xlu0 %v2946_v45, %s8085_s3  ;;  %v2920_v44 = vpop.permute.xlu1 %2919  ;;  %v2862_v29 = vmul.f32 %v9657_v52, %v2830_v48  ;;  %v2834_v48 = vrot.slane %v9434_v10, 7 }
 0xd2f   :  { %v2910_v62 = vpop.permute.xlu0 %2909  ;;  %v2954_v39 = vmul.f32 %v9707_v26, %v2920_v44  ;;  %v2831_v44 = vrot.slane %v9443_v3, 7 }
 0xd30   :  { %v2949_v35 = vmul.f32 %v9695_v25, %v2910_v62  ;;  %v2835_v62 = vrot.slane %v9485_v15, 7 }
 0xd31   :  { %2999 = vrot.lane.b32.xlu1 %v2954_v39, %s8085_s3 }
 0xd32   :  { %2989 = vrot.lane.b32.xlu0 %v2949_v35, %s8085_s3  ;;  %v2922_v4 = vpop.permute.xlu1 %2921  ;;  %v2829_v35 = vrot.slane %v9437_v17, 7  ;;  %v2867_v5 = vmul.f32 %v9666_v37, %v2835_v62  ;;  %v2863_v17 = vmul.f32 %v9676_v59, %v2831_v44  ;;  %v2866_v62 = vmul.f32 %v9687_v33, %v2834_v48 }
 0xd33   :  { %v2918_v41 = vpop.permute.xlu0 %2917  ;;  %v2955_v58 = vmul.f32 %v9715_v14, %v2922_v4 }
 0xd34   :  { %v2953_v60 = vmul.f32 %v9703_v8, %v2918_v41  ;;  %v2861_v36 = vmul.f32 %v9670_v1, %v2829_v35 }
 0xd35   :  { %3001 = vrot.lane.b32.xlu1 %v2955_v58, %s8085_s3  ;;  %v2838_v58 = vrot.slane %v9456_v43, 7 }
 0xd36   :  { %2997 = vrot.lane.b32.xlu0 %v2953_v60, %s8085_s3  ;;  %v2924_v13 = vpop.permute.xlu1 %2923 }
 0xd37   :  { %v2908_v30 = vpop.permute.xlu0 %2907  ;;  %v2956_v21 = vmul.f32 %v9720_v24, %v2924_v13 }
 0xd38   :  { %v2948_v0 = vmul.f32 %v9711_v12, %v2908_v30  ;;  %v2832_v30 = vrot.slane %v9428_v18, 7 }
 0xd39   :  { %3003 = vrot.lane.b32.xlu1 %v2956_v21, %s8085_s3 }
 0xd3a   :  { %2987 = vrot.lane.b32.xlu0 %v2948_v0, %s8085_s3  ;;  %v2864_v3 = vmul.f32 %v9680_v23, %v2832_v30 }
 0xd8f   :  { %v2976_v45 = vpop.permute.xlu1 %2975 }
 0xd90   :  { %v9727_v31 = vadd.f32 %v2976_v45, %v2862_v29  ;;  %v2982_v11 = vpop.permute.xlu0 %2981  ;;  %v2870_v29 = vmul.f32 %v9683_v49, %v2838_v58  ;;  %v11427_v45 = vld [vmem:[#allocation14_spill] sm:$0xff] }
 0xd91   :  { %v9733_v54 = vadd.f32 %v2982_v11, %v2865_v61  ;;  %v2839_v61 = vrot.slane %v11427_v45, 7  ;;  %v11435_v45 = vld [vmem:[#allocation13_spill] sm:$0xff] }
 0xd92   :  { %7565 = vtanh.f32 %v9727_v31 }
 0xd93   :  { %7567 = vtanh.f32 %v9733_v54  ;;  %v2986_v56 = vpop.permute.xlu1 %2985 }
 0xd94   :  { %v2974_v41 = vpop.permute.xlu0 %2973  ;;  %v9738_v60 = vadd.f32 %v2986_v56, %v2867_v5  ;;  %v2871_v56 = vmul.f32 %v9691_v27, %v2839_v61  ;;  %v2842_v61 = vrot.slane %v11435_v45, 7 }
 0xd95   :  { %v9741_v15 = vadd.f32 %v2974_v41, %v2861_v36  ;;  %v11429_v36 = vld [vmem:[#allocation8_spill] sm:$0xff] }
 0xd96   :  { %7569 = vtanh.f32 %v9738_v60  ;;  %v2837_v10 = vrot.slane %v11429_v36, 7  ;;  %v11437_v36 = vld [vmem:[#allocation6_spill] sm:$0xff] }
 0xd97   :  { %7571 = vtanh.f32 %v9741_v15  ;;  %v2992_v18 = vpop.permute.xlu1 %2991 }
 0xd98   :  { %v2978_v39 = vpop.permute.xlu0 %2977  ;;  %v9759_v43 = vadd.f32 %v2992_v18, %v2870_v29 }
 0xd99   :  { %v9747_v0 = vadd.f32 %v2978_v39, %v2863_v17  ;;  %v11431_v17 = vld [vmem:[#allocation7_spill] sm:$0xff] }
 0xd9a   :  { %11428 = vst [vmem:[#allocation11_spill] sm:$0xff] %v9759_v43  ;;  %v2840_v39 = vrot.slane %v11431_v17, 7 }
 0xd9b   :  { %7573 = vtanh.f32 %v9747_v0  ;;  %v2994_v44 = vpop.permute.xlu1 %2993 }
 0xd9c   :  { %v7566_v4 = vpop.eup %7565  ;;  %v2980_v13 = vpop.permute.xlu0 %2979  ;;  %v9771_v30 = vadd.f32 %v2994_v44, %v2871_v56  ;;  %v2872_v48 = vmul.f32 %v9699_v47, %v2840_v39  ;;  %v2874_v56 = vmul.f32 %v9707_v26, %v2842_v61 }
 0xd9d   :  { %3071 = vrot.lane.b32.xlu1 %v7566_v4, %s8084_s22  ;;  %v7568_v21 = vpop.eup %7567  ;;  %v9755_v20 = vadd.f32 %v2980_v13, %v2864_v3  ;;  %v2869_v4 = vmul.f32 %v9695_v25, %v2837_v10  ;;  %v11433_v13 = vld [vmem:[#allocation9_spill] sm:$0xff]  ;;  %v2836_v10 = vrot.slane %v11437_v36, 7 }
 0xd9e   :  { %3077 = vrot.lane.b32.xlu0 %v7568_v21, %s8084_s22  ;;  %11432 = vst [vmem:[#allocation8_spill] sm:$0xff] %v9771_v30  ;;  %v2841_v21 = vrot.slane %v11433_v13, 7 }
 0xd9f   :  { %7575 = vtanh.f32 %v9755_v20  ;;  %v2996_v18 = vpop.permute.xlu1 %2995  ;;  %v2868_v13 = vmul.f32 %v9711_v12, %v2836_v10 }
 0xda0   :  { %v7570_v11 = vpop.eup %7569  ;;  %v2984_v35 = vpop.permute.xlu0 %2983  ;;  %7577 = vtanh.f32 %v9759_v43 }
 0xda1   :  { %v7572_v5 = vpop.eup %7571  ;;  %v9766_v41 = vadd.f32 %v2984_v35, %v2866_v62  ;;  %3081 = vrot.lane.b32.xlu1 %v7570_v11, %s8084_s22  ;;  %v9782_v62 = vadd.f32 %v2996_v18, %v2872_v48  ;;  %v2873_v11 = vmul.f32 %v9703_v8, %v2841_v21 }
 0xda2   :  { %3069 = vrot.lane.b32.xlu0 %v7572_v5, %s8084_s22 }
 0xda3   :  { %11430 = vst [vmem:[#allocation14_spill] sm:$0xff] %v9766_v41  ;;  %7579 = vtanh.f32 %v9766_v41  ;;  %11436 = vst [vmem:[#allocation9_spill] sm:$0xff] %v9782_v62  ;;  %v3000_v17 = vpop.permute.xlu1 %2999 }
 0xda4   :  { %v2990_v58 = vpop.permute.xlu0 %2989  ;;  %7581 = vtanh.f32 %v9771_v30 }
 0xda5   :  { %v7574_v3 = vpop.eup %7573  ;;  %v9778_v29 = vadd.f32 %v2990_v58, %v2869_v4  ;;  %v11439_v4 = vld [vmem:[#allocation10_spill] sm:$0xff] }
 0xda6   :  { %3073 = vrot.lane.b32.xlu0 %v7574_v3, %s8084_s22  ;;  %v2843_v58 = vrot.slane %v11439_v4, 7  ;;  %v9793_v3 = vadd.f32 %v3000_v17, %v2874_v56 }
 0xda7   :  { %11434 = vst [vmem:[#allocation7_spill] sm:$0xff] %v9778_v29  ;;  %7583 = vtanh.f32 %v9778_v29  ;;  %v3002_v61 = vpop.permute.xlu1 %3001 }
 0xda8   :  { %v2998_v35 = vpop.permute.xlu0 %2997  ;;  %7585 = vtanh.f32 %v9782_v62  ;;  %11440 = vst [vmem:[#allocation6_spill] sm:$0xff] %v9793_v3  ;;  %v2875_v18 = vmul.f32 %v9715_v14, %v2843_v58 }
 0xda9   :  { %v7576_v5 = vpop.eup %7575  ;;  %v9789_v44 = vadd.f32 %v2998_v35, %v2873_v11  ;;  %v11441_v35 = vld [vmem:[#allocation12_spill] sm:$0xff] }
 0xdaa   :  { %3075 = vrot.lane.b32.xlu0 %v7576_v5, %s8084_s22  ;;  %v7578_v39 = vpop.eup %7577  ;;  %v2844_v5 = vrot.slane %v11441_v35, 7  ;;  %v9804_v36 = vadd.f32 %v3002_v61, %v2875_v18 }
 0xdab   :  { %11438 = vst [vmem:[#allocation13_spill] sm:$0xff] %v9789_v44  ;;  %7587 = vtanh.f32 %v9789_v44  ;;  %3087 = vrot.lane.b32.xlu1 %v7578_v39, %s8084_s22  ;;  %v3004_v17 = vpop.permute.xlu1 %3003 }
 0xdac   :  { %v2988_v21 = vpop.permute.xlu0 %2987  ;;  %7589 = vtanh.f32 %v9793_v3  ;;  %11442 = vst [vmem:[#allocation10_spill] sm:$0xff] %v9804_v36  ;;  %v2876_v56 = vmul.f32 %v9720_v24, %v2844_v5 }
 0xdad   :  { %v7580_v48 = vpop.eup %7579  ;;  %v9800_v45 = vadd.f32 %v2988_v21, %v2868_v13 }
 0xdae   :  { %3079 = vrot.lane.b32.xlu0 %v7580_v48, %s8084_s22  ;;  %v7582_v11 = vpop.eup %7581  ;;  %v9811_v4 = vadd.f32 %v3004_v17, %v2876_v56 }
 0xdaf   :  { %7591 = vtanh.f32 %v9800_v45  ;;  %3089 = vrot.lane.b32.xlu1 %v7582_v11, %s8084_s22 }
 0xdb0   :  { %7593 = vtanh.f32 %v9804_v36  ;;  %11443 = vst [vmem:[#allocation12_spill] sm:$0xff] %v9811_v4 }
 0xdb1   :  { %v7584_v10 = vpop.eup %7583  ;;  %7595 = vtanh.f32 %v9811_v4 }
 0xdb2   :  { %3085 = vrot.lane.b32.xlu0 %v7584_v10, %s8084_s22  ;;  %v7586_v39 = vpop.eup %7585 }
 0xdb3   :  { %3091 = vrot.lane.b32.xlu1 %v7586_v39, %s8084_s22 }
 0xdb5   :  { %v7588_v58 = vpop.eup %7587 }
 0xdb6   :  { %3093 = vrot.lane.b32.xlu0 %v7588_v58, %s8084_s22  ;;  %v7590_v13 = vpop.eup %7589 }
 0xdb7   :  { %3095 = vrot.lane.b32.xlu1 %v7590_v13, %s8084_s22 }
 0xdb9   :  { %v7592_v21 = vpop.eup %7591 }
 0xdba   :  { %3083 = vrot.lane.b32.xlu0 %v7592_v21, %s8084_s22  ;;  %v7594_v48 = vpop.eup %7593 }
 0xdbb   :  { %3097 = vrot.lane.b32.xlu1 %v7594_v48, %s8084_s22  ;;  %v7596_v18 = vpop.eup %7595 }
 0xdbf   :  { %3099 = vrot.lane.b32.xlu1 %v7596_v18, %s8084_s22 }
 0xe0f   :  { %v3072_v11 = vpop.permute.xlu1 %3071 }
 0xe10   :  { %v3078_v61 = vpop.permute.xlu0 %3077  ;;  %v3118_v4 = vmul.f32 %v9657_v52, %v3072_v11 }
 0xe12   :  { %v3134_v29 = vpack.c.bf16 %v3118_v4, %v3118_v4 }
 0xe13   :  { %v3082_v5 = vpop.permute.xlu1 %3081 }
 0xe14   :  { %v3070_v35 = vpop.permute.xlu0 %3069 }
 0xe15   :  { %v3117_v39 = vmul.f32 %v9670_v1, %v3070_v35 }
 0xe17   :  { %v3133_v44 = vpack.c.bf16 %v3117_v39, %v3117_v39  ;;  %v3166_v39 = vunpack.c.l.b16 %v3134_v29 }
 0xe18   :  { %v3074_v10 = vpop.permute.xlu0 %3073 }
 0xe19   :  { %v3119_v21 = vmul.f32 %v9676_v59, %v3074_v10  ;;  %v3165_v52 = vunpack.c.l.b16 %v3133_v44  ;;  %v3182_v29 = vrot.slane %v3166_v39, 3 }
 0xe1b   :  { %v3135_v41 = vpack.c.bf16 %v3119_v21, %v3119_v21  ;;  %v3181_v44 = vrot.slane %v3165_v52, 4 }
 0xe1c   :  { %v3076_v56 = vpop.permute.xlu0 %3075 }
 0xe1d   :  { %v3088_v17 = vpop.permute.xlu1 %3087  ;;  %v3120_v48 = vmul.f32 %v9680_v23, %v3076_v56  ;;  %v3167_v56 = vunpack.c.l.b16 %v3135_v41 }
 0xe1e   :  { %v3126_v58 = vmul.f32 %v9683_v49, %v3088_v17 }
 0xe1f   :  { %v3136_v43 = vpack.c.bf16 %v3120_v48, %v3120_v48 }
 0xe20   :  { %v3080_v13 = vpop.permute.xlu0 %3079  ;;  %v3142_v3 = vpack.c.bf16 %v3126_v58, %v3126_v58 }
 0xe21   :  { %v3090_v36 = vpop.permute.xlu1 %3089  ;;  %v3122_v1 = vmul.f32 %v9687_v33, %v3080_v13  ;;  %v3168_v58 = vunpack.c.l.b16 %v3136_v43  ;;  %v3121_v33 = vmul.f32 %v9662_v57, %v3078_v61 }
 0xe22   :  { %v3127_v18 = vmul.f32 %v9691_v27, %v3090_v36  ;;  %v3174_v11 = vunpack.c.l.b16 %v3142_v3 }
 0xe23   :  { %v3138_v4 = vpack.c.bf16 %v3122_v1, %v3122_v1  ;;  %v3186_v1 = vrot.slane %v3168_v58, 1  ;;  %v3137_v52 = vpack.c.bf16 %v3121_v33, %v3121_v33 }
 0xe24   :  { %v3086_v62 = vpop.permute.xlu0 %3085  ;;  %v3143_v30 = vpack.c.bf16 %v3127_v18, %v3127_v18  ;;  %v3196_v3 = vrot.slane %v3174_v11, 3  ;;  %v3184_v18 = vrot.slane %v3167_v56, 2  ;;  %v3183_v11 = vsel %vm763_vm3, %v3182_v29, %v3181_v44 }
 0xe25   :  { %v3092_v49 = vpop.permute.xlu1 %3091  ;;  %v3125_v35 = vmul.f32 %v9695_v25, %v3086_v62  ;;  %v3123_v25 = vmul.f32 %v9666_v37, %v3082_v5 }
 0xe26   :  { %v3128_v59 = vmul.f32 %v9699_v47, %v3092_v49  ;;  %v3175_v27 = vunpack.c.l.b16 %v3143_v30  ;;  %v3185_v56 = vsel %vm766_vm4, %v3184_v18, %v3183_v11 }
 0xe27   :  { %v3141_v23 = vpack.c.bf16 %v3125_v35, %v3125_v35  ;;  %v3170_v35 = vunpack.c.l.b16 %v3138_v4 }
 0xe28   :  { %v3094_v10 = vpop.permute.xlu0 %3093  ;;  %v3144_v36 = vpack.c.bf16 %v3128_v59, %v3128_v59  ;;  %v3198_v49 = vrot.slane %v3175_v27, 2 }
 0xe29   :  { %v3129_v17 = vmul.f32 %v9703_v8, %v3094_v10  ;;  %v3173_v21 = vunpack.c.l.b16 %v3141_v23  ;;  %v3096_v48 = vpop.permute.xlu1 %3095  ;;  %v3139_v23 = vpack.c.bf16 %v3123_v25, %v3123_v25  ;;  %v3189_v58 = vrot.slane %v3170_v35, 7 }
 0xe2a   :  { %v3176_v62 = vunpack.c.l.b16 %v3144_v36  ;;  %v3130_v47 = vmul.f32 %v9707_v26, %v3096_v48  ;;  %v3169_v48 = vunpack.c.l.b16 %v3137_v52 }
 0xe2b   :  { %v3195_v13 = vrot.slane %v3173_v21, 4  ;;  %v3145_v41 = vpack.c.bf16 %v3129_v17, %v3129_v17  ;;  %v3187_v17 = vsel %vm769_vm5, %v3186_v1, %v3185_v56  ;;  %v3171_v33 = vunpack.c.l.b16 %v3139_v23 }
 0xe2c   :  { %v3084_v30 = vpop.permute.xlu0 %3083  ;;  %v3146_v8 = vpack.c.bf16 %v3130_v47, %v3130_v47  ;;  %v3200_v37 = vrot.slane %v3176_v62, 1  ;;  %v3188_v44 = vsel %vm772_vm6, %v3169_v48, %v3187_v17 }
 0xe2d   :  { %v3124_v43 = vmul.f32 %v9711_v12, %v3084_v30  ;;  %v3197_v57 = vsel %vm763_vm3, %v3196_v3, %v3195_v13  ;;  %v3098_v61 = vpop.permute.xlu1 %3097  ;;  %v3177_v10 = vunpack.c.l.b16 %v3145_v41  ;;  %v3190_v13 = vsel %vm775_vm7, %v3189_v58, %v3188_v44 }
 0xe2e   :  { %v3199_v5 = vsel %vm766_vm4, %v3198_v49, %v3197_v57  ;;  %v3131_v26 = vmul.f32 %v9715_v14, %v3098_v61  ;;  %v3178_v12 = vunpack.c.l.b16 %v3146_v8  ;;  %v3191_v49 = vrot.slane %v3171_v33, 6 }
 0xe2f   :  { %v3140_v59 = vpack.c.bf16 %v3124_v43, %v3124_v43  ;;  %v3201_v27 = vsel %vm769_vm5, %v3200_v37, %v3199_v5 }
 0xe30   :  { %v3147_v36 = vpack.c.bf16 %v3131_v26, %v3131_v26  ;;  %v3202_v62 = vsel %vm772_vm6, %v3177_v10, %v3201_v27  ;;  %v3203_v25 = vrot.slane %v3178_v12, 7 }
 0xe31   :  { %v3100_v39 = vpop.permute.xlu1 %3099  ;;  %v3172_v21 = vunpack.c.l.b16 %v3140_v59 }
 0xe32   :  { %v3179_v4 = vunpack.c.l.b16 %v3147_v36  ;;  %v3132_v14 = vmul.f32 %v9720_v24, %v3100_v39  ;;  %v3204_v41 = vsel %vm775_vm7, %v3203_v25, %v3202_v62  ;;  %v3192_v24 = vsel %vm778_vm8, %v3191_v49, %v3190_v13 }
 0xe33   :  { %v3193_v30 = vrot.slane %v3172_v21, 5 }
 0xe34   :  { %v3148_v47 = vpack.c.bf16 %v3132_v14, %v3132_v14  ;;  %v3205_v3 = vrot.slane %v3179_v4, 6 }
 0xe35   :  { %v3194_v29 = vsel %vm781_vm9, %v3193_v30, %v3192_v24 }
 0xe36   :  { %v3180_v18 = vunpack.c.l.b16 %v3148_v47  ;;  %v3206_v43 = vsel %vm778_vm8, %v3205_v3, %v3204_v41 }
 0xe38   :  { %v3207_v8 = vrot.slane %v3180_v18, 5 }
 0xe3a   :  { %v3208_v1 = vsel %vm781_vm9, %v3207_v8, %v3206_v43 }
 0xe3b   :  { %v3209_v35 = vpack.c.b16 %v3208_v1, %v3194_v29 }
 0xe3d   :  { %3210 = vrot.lane.b32.xlu0 %v3209_v35, %s8085_s3 }
 0xeaf   :  { %v3211_v57 = vpop.permute.xlu0 %3210 }
 0xeb0   :  { %6755 = vmatmul.mubr.msk.bf16.vlgmr.msra.gmra.mrb[16].mxu1 %vm11358_vm10, %v3211_v57 }
 0xeb1   :  { %6767 = vmatpush3.bf16.msra.mxu1 %v8222_v6  ;;  %6770 = vmatprep.mubr.msk.bf16.mxu1 %vm11359_vm2, %v11379_v34 }
 0xeb2   :  { %6768 = vmatprep.subr.bf16.mxu1 %v11379_v34 }
 0xeb5   :  { %6769 = vmatpush3.bf16.msra.mxu1 %v8247_v16 }
 0xeb6   :  { %6780 = vmatprep.subr.bf16.mxu1 %v11379_v34 }
 0xf83   :  { %v3249_v61 = vpop.f32.mrb[16].mxu1 }
 0xf84   :  { %v3258_v37 = vrot.slane %v3249_v61, 3  ;;  %v6756_v5 = vpop.f32.mrb[17].mxu1  ;;  %v3259_v6 = vrot.slane %v3249_v61, 4  ;;  %v3260_v11 = vrot.slane %v3249_v61, 5  ;;  %v3261_v10 = vrot.slane %v3249_v61, 6 }
 0xf85   :  { %v9858_v26 = vpop.f32.mrb[18].mxu1  ;;  %v3264_v56 = vrot.slane %v3249_v61, 2  ;;  %v3262_v27 = vrot.slane %v3249_v61, 7  ;;  %v3263_v39 = vrot.slane %v3249_v61, 1  ;;  %v9901_v3 = vadd.f32 %v3249_v61, %v8357_v63 }
 0xf86   :  { %v9861_v59 = vadd.f32 %v3258_v37, %v8317_v42  ;;  %v6757_v52 = vpop.f32.mrb[19].mxu1  ;;  %v9865_v23 = vadd.f32 %v3259_v6, %v8322_v46  ;;  %v9868_v16 = vadd.f32 %v3260_v11, %v8330_v50  ;;  %v9872_v36 = vadd.f32 %v3261_v10, %v8333_v51 }
 0xf87   :  { %v9877_v17 = vadd.f32 %v3264_v56, %v8423_v40  ;;  %v9880_v58 = vadd.f32 %v3262_v27, %v8338_v55  ;;  %v3265_v4 = vrot.slane %v9858_v26, 3  ;;  %v9886_v21 = vadd.f32 %v3263_v39, %v8408_v32 }
 0xf88   :  { %7597 = vtanh.f32 %v9861_v59  ;;  %v3266_v14 = vrot.slane %v9858_v26, 4  ;;  %v3267_v25 = vrot.slane %v9858_v26, 5  ;;  %v3268_v13 = vrot.slane %v9858_v26, 6 }
 0xf89   :  { %7599 = vtanh.f32 %v9865_v23  ;;  %v9892_v62 = vadd.f32 %v3265_v4, %v8366_v7  ;;  %v3269_v8 = vrot.slane %v9858_v26, 7  ;;  %v9919_v43 = vadd.f32 %v9858_v26, %v8416_v38 }
 0xf8a   :  { %7601 = vtanh.f32 %v9868_v16  ;;  %v9898_v47 = vadd.f32 %v3266_v14, %v8389_v19  ;;  %v9907_v30 = vadd.f32 %v3267_v25, %v8362_v2  ;;  %v9913_v49 = vadd.f32 %v3268_v13, %v8370_v9 }
 0xf8b   :  { %7603 = vtanh.f32 %v9872_v36  ;;  %v3270_v29 = vrot.slane %v9858_v26, 1  ;;  %v9926_v1 = vadd.f32 %v3269_v8, %v8402_v28  ;;  %v3271_v61 = vrot.slane %v9858_v26, 2 }
 0xf8c   :  { %7605 = vtanh.f32 %v9877_v17  ;;  %v6541_v27 = vmul.f32 -1.442695, %v9861_v59  ;;  %v6542_v39 = vmul.f32 -1.442695, %v9865_v23  ;;  %v6543_v4 = vmul.f32 -1.442695, %v9868_v16 }
 0xf8d   :  { %7607 = vtanh.f32 %v9880_v58  ;;  %v9933_v37 = vadd.f32 %v3270_v29, %v8395_v22  ;;  %v9939_v6 = vadd.f32 %v3271_v61, %v8430_v53  ;;  %v6547_v59 = vmul.f32 -1.442695, %v9886_v21 }
 0xf8e   :  { %7609 = vtanh.f32 %v9886_v21  ;;  %v6549_v16 = vmul.f32 -1.442695, %v9892_v62 }
 0xf8f   :  { %7611 = vtanh.f32 %v9892_v62 }
 0xf90   :  { %7613 = vtanh.f32 %v9898_v47 }
 0xf91   :  { %7615 = vtanh.f32 %v9901_v3 }
 0xf92   :  { %v7598_v12 = vpop.eup %7597  ;;  %7617 = vtanh.f32 %v9907_v30 }
 0xf93   :  { %3496 = vrot.lane.b32.xlu1 %v7598_v12, %s8084_s22  ;;  %v7600_v48 = vpop.eup %7599  ;;  %7619 = vtanh.f32 %v9913_v49 }
 0xf94   :  { %v7602_v33 = vpop.eup %7601  ;;  %3498 = vrot.lane.b32.xlu0 %v7600_v48, %s8084_s22  ;;  %7621 = vtanh.f32 %v9919_v43  ;;  %v6544_v48 = vmul.f32 -1.442695, %v9872_v36 }
 0xf95   :  { %v7604_v44 = vpop.eup %7603  ;;  %7623 = vtanh.f32 %v9926_v1 }
 0xf96   :  { %v7606_v41 = vpop.eup %7605  ;;  %7625 = vtanh.f32 %v9933_v37 }
 0xf97   :  { %3500 = vrot.lane.b32.xlu1 %v7602_v33, %s8084_s22  ;;  %v7608_v18 = vpop.eup %7607  ;;  %7627 = vtanh.f32 %v9939_v6  ;;  %v6548_v33 = vmul.f32 -1.442695, %v9877_v17  ;;  %v6546_v17 = vmul.f32 -1.442695, %v9901_v3  ;;  %v6552_v3 = vmul.f32 -1.442695, %v9913_v49 }
 0xf98   :  { %3510 = vrot.lane.b32.xlu0 %v7606_v41, %s8084_s22  ;;  %v7610_v24 = vpop.eup %7609  ;;  %7629 = vpow2.f32 %v6541_v27  ;;  %v6550_v41 = vmul.f32 -1.442695, %v9898_v47  ;;  %v6554_v47 = vmul.f32 -1.442695, %v9919_v43  ;;  %v6555_v49 = vmul.f32 -1.442695, %v9933_v37 }
 0xf99   :  { %v7612_v35 = vpop.eup %7611  ;;  %7631 = vpow2.f32 %v6542_v39 }
 0xf9a   :  { %v7614_v57 = vpop.eup %7613  ;;  %7633 = vpow2.f32 %v6543_v4 }
 0xf9b   :  { %3502 = vrot.lane.b32.xlu1 %v7604_v44, %s8084_s22  ;;  %v7616_v5 = vpop.eup %7615  ;;  %7635 = vpow2.f32 %v6544_v48  ;;  %v6545_v44 = vmul.f32 -1.442695, %v9880_v58 }
 0xf9c   :  { %3514 = vrot.lane.b32.xlu0 %v7614_v57, %s8084_s22  ;;  %v7618_v52 = vpop.eup %7617  ;;  %7637 = vpow2.f32 %v6548_v33 }
 0xf9d   :  { %v7620_v11 = vpop.eup %7619 }
 0xf9e   :  { %v7622_v10 = vpop.eup %7621 }
 0xf9f   :  { %3504 = vrot.lane.b32.xlu1 %v7608_v18, %s8084_s22  ;;  %v7624_v26 = vpop.eup %7623 }
 0xfa0   :  { %3516 = vrot.lane.b32.xlu0 %v7618_v52, %s8084_s22  ;;  %v7626_v56 = vpop.eup %7625 }
 0xfa1   :  { %v7628_v12 = vpop.eup %7627 }
 0xfa2   :  { %v7630_v14 = vpop.eup %7629 }
 0xfa3   :  { %3508 = vrot.lane.b32.xlu1 %v7610_v24, %s8084_s22  ;;  %v3352_v25 = vadd.f32 1.0, %v7630_v14  ;;  %v7632_v13 = vpop.eup %7631  ;;  %v6551_v24 = vmul.f32 -1.442695, %v9907_v30 }
 0xfa4   :  { %3518 = vrot.lane.b32.xlu0 %v7620_v11, %s8084_s22  ;;  %v7634_v23 = vpop.eup %7633  ;;  %v3353_v18 = vadd.f32 1.0, %v7632_v13  ;;  %v6553_v11 = vmul.f32 -1.442695, %v9926_v1  ;;  %v6556_v13 = vmul.f32 -1.442695, %v9939_v6 }
 0xfa5   :  { %7639 = vrcp.f32 %v3352_v25  ;;  %v3354_v36 = vadd.f32 1.0, %v7634_v23  ;;  %v7636_v8 = vpop.eup %7635 }
 0xfa6   :  { %7641 = vpow2.f32 %v6545_v44  ;;  %v7638_v58 = vpop.eup %7637 }
 0xfa7   :  { %3512 = vrot.lane.b32.xlu1 %v7612_v35, %s8084_s22  ;;  %7643 = vpow2.f32 %v6547_v59  ;;  %v3355_v35 = vadd.f32 1.0, %v7636_v8  ;;  %v3359_v61 = vadd.f32 1.0, %v7638_v58 }
 0xfa8   :  { %3520 = vrot.lane.b32.xlu0 %v7624_v26, %s8084_s22  ;;  %7645 = vpow2.f32 %v6549_v16 }
 0xfa9   :  { %7647 = vpow2.f32 %v6550_v41 }
 0xfaa   :  { %7649 = vrcp.f32 %v3353_v18 }
 0xfab   :  { %3506 = vrot.lane.b32.xlu1 %v7616_v5, %s8084_s22  ;;  %7651 = vrcp.f32 %v3354_v36 }
 0xfac   :  { %3524 = vrot.lane.b32.xlu0 %v7626_v56, %s8084_s22  ;;  %7653 = vpow2.f32 %v6546_v17 }
 0xfad   :  { %7655 = vpow2.f32 %v6551_v24 }
 0xfae   :  { %7657 = vrcp.f32 %v3355_v35 }
 0xfaf   :  { %3522 = vrot.lane.b32.xlu1 %v7622_v10, %s8084_s22  ;;  %v9959_v29 = vpop.eup %7639  ;;  %7659 = vpow2.f32 %v6554_v47 }
 0xfb0   :  { %3526 = vrot.lane.b32.xlu0 %v7628_v12, %s8084_s22  ;;  %v7642_v62 = vpop.eup %7641  ;;  %7661 = vrcp.f32 %v3359_v61 }
 0xfb1   :  { %v3356_v30 = vadd.f32 1.0, %v7642_v62  ;;  %v7644_v5 = vpop.eup %7643  ;;  %7663 = vpow2.f32 %v6552_v3 }
 0xfb2   :  { %v7646_v52 = vpop.eup %7645  ;;  %v3358_v43 = vadd.f32 1.0, %v7644_v5 }
 0xfb3   :  { %v7648_v10 = vpop.eup %7647  ;;  %7665 = vrcp.f32 %v3356_v30  ;;  %v3360_v1 = vadd.f32 1.0, %v7646_v52 }
 0xfb4   :  { %v9966_v26 = vpop.eup %7649  ;;  %7667 = vpow2.f32 %v6553_v11  ;;  %v3361_v48 = vadd.f32 1.0, %v7648_v10 }
 0xfb5   :  { %v9968_v12 = vpop.eup %7651  ;;  %7669 = vrcp.f32 %v3358_v43 }
 0xfb6   :  { %v7654_v4 = vpop.eup %7653  ;;  %7671 = vpow2.f32 %v6555_v49 }
 0xfb7   :  { %v7656_v33 = vpop.eup %7655  ;;  %v3357_v44 = vadd.f32 1.0, %v7654_v4  ;;  %7673 = vrcp.f32 %v3361_v48 }
 0xfb8   :  { %v9975_v25 = vpop.eup %7657  ;;  %v3362_v18 = vadd.f32 1.0, %v7656_v33  ;;  %7675 = vrcp.f32 %v3360_v1 }
 0xfb9   :  { %v7660_v59 = vpop.eup %7659  ;;  %7677 = vrcp.f32 %v3357_v44 }
 0xfba   :  { %v9979_v16 = vpop.eup %7661  ;;  %7679 = vpow2.f32 %v6556_v13  ;;  %v3365_v24 = vadd.f32 1.0, %v7660_v59 }
 0xfbb   :  { %v7664_v36 = vpop.eup %7663  ;;  %7681 = vrcp.f32 %v3362_v18 }
 0xfbc   :  { %7683 = vrcp.f32 %v3365_v24 }
 0xfbd   :  { %v9983_v17 = vpop.eup %7665 }
 0xfbe   :  { %v7668_v35 = vpop.eup %7667 }
 0xfbf   :  { %v9988_v62 = vpop.eup %7669  ;;  %v3364_v3 = vadd.f32 1.0, %v7668_v35 }
 0xfc0   :  { %v7672_v61 = vpop.eup %7671 }
 0xfc1   :  { %v9991_v30 = vpop.eup %7673  ;;  %v3366_v49 = vadd.f32 1.0, %v7672_v61 }
 0xfc2   :  { %v9994_v5 = vpop.eup %7675 }
0x1005   :  { %v3497_v21 = vpop.permute.xlu1 %3496 }
0x1006   :  { %v3544_v57 = vmul.f32 %v9959_v29, %v3497_v21  ;;  %v3499_v56 = vpop.permute.xlu0 %3498  ;;  %v3363_v21 = vadd.f32 1.0, %v7664_v36 }
0x1007   :  { %v3545_v27 = vmul.f32 %v9966_v26, %v3499_v56  ;;  %v9998_v56 = vpop.eup %7677 }
0x1008   :  { %3576 = vrot.lane.b32.xlu1 %v3544_v57, %s8085_s3  ;;  %7685 = vrcp.f32 %v3363_v21 }
0x1009   :  { %v3501_v39 = vpop.permute.xlu1 %3500  ;;  %3578 = vrot.lane.b32.xlu0 %v3545_v27, %s8085_s3  ;;  %7687 = vrcp.f32 %v3364_v3  ;;  %v7680_v27 = vpop.eup %7679 }
0x100a   :  { %v3546_v14 = vmul.f32 %v9968_v12, %v3501_v39  ;;  %v3511_v41 = vpop.permute.xlu0 %3510  ;;  %v10002_v39 = vpop.eup %7681  ;;  %7689 = vrcp.f32 %v3366_v49  ;;  %v3367_v33 = vadd.f32 1.0, %v7680_v27 }
0x100b   :  { %v3551_v8 = vmul.f32 %v9979_v16, %v3511_v41  ;;  %v10006_v44 = vpop.eup %7683 }
0x100c   :  { %3580 = vrot.lane.b32.xlu1 %v3546_v14, %s8085_s3  ;;  %7691 = vrcp.f32 %v3367_v33  ;;  %v3439_v33 = vrot.slane %v9800_v45, 7 }
0x100d   :  { %v3503_v37 = vpop.permute.xlu1 %3502  ;;  %3590 = vrot.lane.b32.xlu0 %v3551_v8, %s8085_s3 }
0x100e   :  { %v3547_v23 = vmul.f32 %v9975_v25, %v3503_v37  ;;  %v3515_v52 = vpop.permute.xlu0 %3514 }
0x100f   :  { %v3553_v10 = vmul.f32 %v9991_v30, %v3515_v52 }
0x1010   :  { %3582 = vrot.lane.b32.xlu1 %v3547_v23, %s8085_s3 }
0x1011   :  { %v3505_v58 = vpop.permute.xlu1 %3504  ;;  %3594 = vrot.lane.b32.xlu0 %v3553_v10, %s8085_s3  ;;  %v3434_v10 = vrot.slane %v9747_v0, 7 }
0x1012   :  { %v3548_v6 = vmul.f32 %v9983_v17, %v3505_v58  ;;  %v3517_v4 = vpop.permute.xlu0 %3516  ;;  %v10010_v37 = vpop.eup %7685 }
0x1013   :  { %v3554_v48 = vmul.f32 %v10002_v39, %v3517_v4  ;;  %v10016_v18 = vpop.eup %7687  ;;  %v3466_v27 = vmul.f32 %v9968_v12, %v3434_v10 }
0x1014   :  { %3584 = vrot.lane.b32.xlu1 %v3548_v6, %s8085_s3  ;;  %v10020_v58 = vpop.eup %7689 }
0x1015   :  { %v3509_v47 = vpop.permute.xlu1 %3508  ;;  %3596 = vrot.lane.b32.xlu0 %v3554_v48, %s8085_s3 }
0x1016   :  { %v3550_v57 = vmul.f32 %v9988_v62, %v3509_v47  ;;  %v3519_v59 = vpop.permute.xlu0 %3518  ;;  %v10024_v21 = vpop.eup %7691 }
0x1017   :  { %v3555_v23 = vmul.f32 %v10010_v37, %v3519_v59  ;;  %v3436_v59 = vrot.slane %v9733_v54, 7 }
0x1018   :  { %3588 = vrot.lane.b32.xlu1 %v3550_v57, %s8085_s3  ;;  %v3432_v57 = vrot.slane %v9741_v15, 7  ;;  %v3435_v15 = vrot.slane %v9755_v20, 7 }
0x1019   :  { %v3513_v11 = vpop.permute.xlu1 %3512  ;;  %3598 = vrot.lane.b32.xlu0 %v3555_v23, %s8085_s3  ;;  %v3468_v45 = vmul.f32 %v9983_v17, %v3436_v59 }
0x101a   :  { %v3552_v43 = vmul.f32 %v9994_v5, %v3513_v11  ;;  %v3521_v36 = vpop.permute.xlu0 %3520  ;;  %v3464_v61 = vmul.f32 %v9959_v29, %v3432_v57  ;;  %v3433_v11 = vrot.slane %v9727_v31, 7  ;;  %v3467_v31 = vmul.f32 %v9975_v25, %v3435_v15  ;;  %v11444_v57 = vld [vmem:[#allocation11_spill] sm:$0xff]  ;;  %v11447_v15 = vld [vmem:[#allocation8_spill] sm:$0xff] }
0x101b   :  { %v3556_v8 = vmul.f32 %v10016_v18, %v3521_v36 }
0x101c   :  { %3592 = vrot.lane.b32.xlu1 %v3552_v43, %s8085_s3  ;;  %v3465_v43 = vmul.f32 %v9966_v26, %v3433_v11 }
0x101d   :  { %v3507_v14 = vpop.permute.xlu1 %3506  ;;  %3600 = vrot.lane.b32.xlu0 %v3556_v8, %s8085_s3  ;;  %v3438_v8 = vrot.slane %v9738_v60, 7 }
0x101e   :  { %v3549_v1 = vmul.f32 %v9998_v56, %v3507_v14  ;;  %v3525_v24 = vpop.permute.xlu0 %3524 }
0x101f   :  { %v3558_v6 = vmul.f32 %v10020_v58, %v3525_v24  ;;  %v3470_v54 = vmul.f32 %v9988_v62, %v3438_v8 }
0x1020   :  { %3586 = vrot.lane.b32.xlu1 %v3549_v1, %s8085_s3 }
0x1021   :  { %v3523_v13 = vpop.permute.xlu1 %3522  ;;  %3604 = vrot.lane.b32.xlu0 %v3558_v6, %s8085_s3 }
0x1022   :  { %v3557_v41 = vmul.f32 %v10006_v44, %v3523_v13  ;;  %v3527_v35 = vpop.permute.xlu0 %3526  ;;  %v3471_v13 = vmul.f32 %v9979_v16, %v3439_v33  ;;  %v11448_v33 = vld [vmem:[#allocation14_spill] sm:$0xff] }
0x1023   :  { %v3559_v47 = vmul.f32 %v10024_v21, %v3527_v35 }
0x1024   :  { %3602 = vrot.lane.b32.xlu1 %v3557_v41, %s8085_s3 }
0x1025   :  { %3606 = vrot.lane.b32.xlu0 %v3559_v47, %s8085_s3 }
0x107a   :  { %v3577_v3 = vpop.permute.xlu1 %3576 }
0x107b   :  { %v10030_v52 = vadd.f32 %v3577_v3, %v3464_v61  ;;  %v3579_v49 = vpop.permute.xlu0 %3578  ;;  %v3441_v61 = vrot.slane %v11444_v57, 7  ;;  %v11445_v3 = vld [vmem:[#allocation7_spill] sm:$0xff] }
0x107c   :  { %v10037_v4 = vadd.f32 %v3579_v49, %v3465_v43  ;;  %v3440_v11 = vrot.slane %v11445_v3, 7 }
0x107d   :  { %7693 = vtanh.f32 %v10030_v52  ;;  %v3473_v60 = vmul.f32 %v9991_v30, %v3441_v61 }
0x107e   :  { %v3581_v14 = vpop.permute.xlu1 %3580  ;;  %7695 = vtanh.f32 %v10037_v4  ;;  %v3472_v43 = vmul.f32 %v9994_v5, %v3440_v11 }
0x107f   :  { %v10040_v48 = vadd.f32 %v3581_v14, %v3466_v27  ;;  %v3591_v20 = vpop.permute.xlu0 %3590 }
0x1080   :  { %v10051_v41 = vadd.f32 %v3591_v20, %v3471_v13 }
0x1081   :  { %7697 = vtanh.f32 %v10040_v48 }
0x1082   :  { %v3583_v0 = vpop.permute.xlu1 %3582 }
0x1083   :  { %v10049_v23 = vadd.f32 %v3583_v0, %v3467_v31  ;;  %v3595_v49 = vpop.permute.xlu0 %3594  ;;  %v3437_v31 = vrot.slane %v11448_v33, 7 }
0x1084   :  { %v10072_v0 = vadd.f32 %v3595_v49, %v3473_v60 }
0x1085   :  { %7699 = vtanh.f32 %v10049_v23 }
0x1086   :  { %v3585_v36 = vpop.permute.xlu1 %3584  ;;  %7701 = vtanh.f32 %v10051_v41 }
0x1087   :  { %v7694_v1 = vpop.eup %7693  ;;  %v10057_v24 = vadd.f32 %v3585_v36, %v3468_v45  ;;  %v3469_v45 = vmul.f32 %v9998_v56, %v3437_v31  ;;  %v3597_v36 = vpop.permute.xlu0 %3596 }
0x1088   :  { %3672 = vrot.lane.b32.xlu1 %v7694_v1, %s8084_s22  ;;  %v7696_v6 = vpop.eup %7695  ;;  %v3442_v1 = vrot.slane %v11447_v15, 7 }
0x1089   :  { %7703 = vtanh.f32 %v10057_v24  ;;  %3674 = vrot.lane.b32.xlu0 %v7696_v6, %s8084_s22  ;;  %v11449_v6 = vld [vmem:[#allocation9_spill] sm:$0xff] }
0x108a   :  { %v3589_v35 = vpop.permute.xlu1 %3588  ;;  %v3474_v20 = vmul.f32 %v10002_v39, %v3442_v1 }
0x108b   :  { %v7698_v47 = vpop.eup %7697  ;;  %v10064_v10 = vadd.f32 %v3589_v35, %v3470_v54  ;;  %v3443_v35 = vrot.slane %v11449_v6, 7 }
0x108c   :  { %3676 = vrot.lane.b32.xlu1 %v7698_v47, %s8084_s22  ;;  %v11450_v47 = vld [vmem:[#allocation6_spill] sm:$0xff]  ;;  %v10084_v61 = vadd.f32 %v3597_v36, %v3474_v20 }
0x108d   :  { %11446 = vst [vmem:[#allocation11_spill] sm:$0xff] %v10064_v10  ;;  %7705 = vtanh.f32 %v10064_v10  ;;  %v3445_v57 = vrot.slane %v11450_v47, 7  ;;  %v3475_v11 = vmul.f32 %v10010_v37, %v3443_v35 }
0x108e   :  { %v3593_v27 = vpop.permute.xlu1 %3592  ;;  %7707 = vtanh.f32 %v10072_v0  ;;  %11451 = vst [vmem:[#allocation7_spill] sm:$0xff] %v10084_v61 }
0x108f   :  { %v7700_v14 = vpop.eup %7699  ;;  %v10074_v59 = vadd.f32 %v3593_v27, %v3472_v43  ;;  %v3477_v60 = vmul.f32 %v10006_v44, %v3445_v57  ;;  %v3599_v43 = vpop.permute.xlu0 %3598  ;;  %v11457_v57 = vld [vmem:[#allocation12_spill] sm:$0xff] }
0x1090   :  { %3678 = vrot.lane.b32.xlu1 %v7700_v14, %s8084_s22  ;;  %v7702_v13 = vpop.eup %7701  ;;  %v11452_v14 = vld [vmem:[#allocation13_spill] sm:$0xff]  ;;  %v10094_v1 = vadd.f32 %v3599_v43, %v3475_v11  ;;  %v3447_v11 = vrot.slane %v11457_v57, 7 }
0x1091   :  { %3686 = vrot.lane.b32.xlu0 %v7702_v13, %s8084_s22  ;;  %7709 = vtanh.f32 %v10074_v59  ;;  %v3444_v15 = vrot.slane %v11452_v14, 7 }
0x1092   :  { %v3587_v8 = vpop.permute.xlu1 %3586  ;;  %7711 = vtanh.f32 %v10084_v61  ;;  %11453 = vst [vmem:[#allocation8_spill] sm:$0xff] %v10094_v1 }
0x1093   :  { %v7704_v54 = vpop.eup %7703  ;;  %v10086_v3 = vadd.f32 %v3587_v8, %v3469_v45  ;;  %v3476_v31 = vmul.f32 %v10016_v18, %v3444_v15  ;;  %v3601_v13 = vpop.permute.xlu0 %3600  ;;  %v11455_v45 = vld [vmem:[#allocation10_spill] sm:$0xff] }
0x1094   :  { %3680 = vrot.lane.b32.xlu1 %v7704_v54, %s8084_s22  ;;  %v3446_v36 = vrot.slane %v11455_v45, 7 }
0x1095   :  { %7713 = vtanh.f32 %v10086_v3  ;;  %v10103_v8 = vadd.f32 %v3601_v13, %v3476_v31 }
0x1096   :  { %v3603_v49 = vpop.permute.xlu1 %3602  ;;  %7715 = vtanh.f32 %v10094_v1  ;;  %v3478_v6 = vmul.f32 %v10020_v58, %v3446_v36 }
0x1097   :  { %v7706_v27 = vpop.eup %7705  ;;  %v10096_v33 = vadd.f32 %v3603_v49, %v3477_v60  ;;  %11456 = vst [vmem:[#allocation9_spill] sm:$0xff] %v10103_v8  ;;  %v3605_v35 = vpop.permute.xlu0 %3604  ;;  %v3479_v49 = vmul.f32 %v10024_v21, %v3447_v11 }
0x1098   :  { %3684 = vrot.lane.b32.xlu1 %v7706_v27, %s8084_s22  ;;  %v7708_v20 = vpop.eup %7707  ;;  %v10110_v60 = vadd.f32 %v3605_v35, %v3478_v6 }
0x1099   :  { %11454 = vst [vmem:[#allocation14_spill] sm:$0xff] %v10096_v33  ;;  %7717 = vtanh.f32 %v10096_v33  ;;  %3690 = vrot.lane.b32.xlu0 %v7708_v20, %s8084_s22 }
0x109a   :  { %7719 = vtanh.f32 %v10103_v8  ;;  %11458 = vst [vmem:[#allocation6_spill] sm:$0xff] %v10110_v60 }
0x109b   :  { %v7710_v54 = vpop.eup %7709  ;;  %7721 = vtanh.f32 %v10110_v60  ;;  %v3607_v27 = vpop.permute.xlu0 %3606 }
0x109c   :  { %3688 = vrot.lane.b32.xlu1 %v7710_v54, %s8084_s22  ;;  %v7712_v47 = vpop.eup %7711  ;;  %v10116_v15 = vadd.f32 %v3607_v27, %v3479_v49 }
0x109d   :  { %3692 = vrot.lane.b32.xlu0 %v7712_v47, %s8084_s22 }
0x109e   :  { %11459 = vst [vmem:[#allocation13_spill] sm:$0xff] %v10116_v15  ;;  %7723 = vtanh.f32 %v10116_v15 }
0x109f   :  { %v7714_v43 = vpop.eup %7713 }
0x10a0   :  { %3682 = vrot.lane.b32.xlu1 %v7714_v43, %s8084_s22  ;;  %v7716_v14 = vpop.eup %7715 }
0x10a1   :  { %3694 = vrot.lane.b32.xlu0 %v7716_v14, %s8084_s22 }
0x10a3   :  { %v7718_v31 = vpop.eup %7717 }
0x10a4   :  { %3698 = vrot.lane.b32.xlu1 %v7718_v31, %s8084_s22  ;;  %v7720_v13 = vpop.eup %7719 }
0x10a5   :  { %3696 = vrot.lane.b32.xlu0 %v7720_v13, %s8084_s22  ;;  %v7722_v20 = vpop.eup %7721 }
0x10a8   :  { %v7724_v45 = vpop.eup %7723 }
0x10a9   :  { %3700 = vrot.lane.b32.xlu0 %v7722_v20, %s8084_s22 }
0x10ad   :  { %3702 = vrot.lane.b32.xlu0 %v7724_v45, %s8084_s22 }
0x10fa   :  { %v3673_v36 = vpop.permute.xlu1 %3672 }
0x10fb   :  { %v3675_v6 = vpop.permute.xlu0 %3674  ;;  %v3720_v43 = vmul.f32 %v9959_v29, %v3673_v36 }
0x10fc   :  { %v3721_v31 = vmul.f32 %v9966_v26, %v3675_v6 }
0x10fd   :  { %v3736_v60 = vpack.c.bf16 %v3720_v43, %v3720_v43 }
0x10fe   :  { %v3677_v54 = vpop.permute.xlu1 %3676  ;;  %v3737_v29 = vpack.c.bf16 %v3721_v31, %v3721_v31 }
0x10ff   :  { %v3722_v45 = vmul.f32 %v9968_v12, %v3677_v54  ;;  %v3768_v26 = vunpack.c.l.b16 %v3736_v60 }
0x1101   :  { %v3738_v6 = vpack.c.bf16 %v3722_v45, %v3722_v45 }
0x1102   :  { %v3679_v35 = vpop.permute.xlu1 %3678 }
0x1103   :  { %v3687_v57 = vpop.permute.xlu0 %3686  ;;  %v3723_v8 = vmul.f32 %v9975_v25, %v3679_v35 }
0x1106   :  { %v3681_v47 = vpop.permute.xlu1 %3680 }
0x1107   :  { %v3724_v36 = vmul.f32 %v9983_v17, %v3681_v47  ;;  %v3770_v47 = vunpack.c.l.b16 %v3738_v6 }
0x1109   :  { %v3740_v25 = vpack.c.bf16 %v3724_v36, %v3724_v36 }
0x110a   :  { %v3685_v11 = vpop.permute.xlu1 %3684 }
0x110b   :  { %v3691_v49 = vpop.permute.xlu0 %3690  ;;  %v3772_v36 = vunpack.c.l.b16 %v3740_v25 }
0x110c   :  { %v3729_v27 = vmul.f32 %v9991_v30, %v3691_v49 }
0x110e   :  { %v3689_v14 = vpop.permute.xlu1 %3688  ;;  %v3745_v20 = vpack.c.bf16 %v3729_v27, %v3729_v27  ;;  %v3739_v27 = vpack.c.bf16 %v3723_v8, %v3723_v8 }
0x110f   :  { %v3728_v13 = vmul.f32 %v9994_v5, %v3689_v14  ;;  %v3693_v15 = vpop.permute.xlu0 %3692  ;;  %v3769_v14 = vunpack.c.l.b16 %v3737_v29 }
0x1110   :  { %v3730_v10 = vmul.f32 %v10002_v39, %v3693_v15  ;;  %v3777_v49 = vunpack.c.l.b16 %v3745_v20  ;;  %v3771_v31 = vunpack.c.l.b16 %v3739_v27 }
0x1111   :  { %v3744_v33 = vpack.c.bf16 %v3728_v13, %v3728_v13  ;;  %v3785_v45 = vrot.slane %v3769_v14, 4 }
0x1112   :  { %v3683_v1 = vpop.permute.xlu1 %3682  ;;  %v3746_v61 = vpack.c.bf16 %v3730_v10, %v3730_v10  ;;  %v3799_v35 = vrot.slane %v3777_v49, 4  ;;  %v3726_v10 = vmul.f32 %v9988_v62, %v3685_v11  ;;  %v3789_v11 = vrot.slane %v3771_v31, 2 }
0x1113   :  { %v3776_v30 = vunpack.c.l.b16 %v3744_v33  ;;  %v3695_v5 = vpop.permute.xlu0 %3694  ;;  %v3725_v15 = vmul.f32 %v9998_v56, %v3683_v1  ;;  %v3784_v33 = vrot.slane %v3768_v26, 5 }
0x1114   :  { %v3731_v43 = vmul.f32 %v10010_v37, %v3695_v5  ;;  %v3778_v13 = vunpack.c.l.b16 %v3746_v61  ;;  %v3727_v61 = vmul.f32 %v9979_v16, %v3687_v57  ;;  %v3742_v49 = vpack.c.bf16 %v3726_v10, %v3726_v10 }
0x1115   :  { %v3798_v12 = vrot.slane %v3776_v30, 5  ;;  %v3741_v56 = vpack.c.bf16 %v3725_v15, %v3725_v15  ;;  %v3786_v27 = vsel %vm763_vm3, %v3785_v45, %v3784_v33 }
0x1116   :  { %v3699_v54 = vpop.permute.xlu1 %3698  ;;  %v3747_v39 = vpack.c.bf16 %v3731_v43, %v3731_v43  ;;  %v3801_v29 = vrot.slane %v3778_v13, 3  ;;  %v3743_v43 = vpack.c.bf16 %v3727_v61, %v3727_v61  ;;  %v3774_v25 = vunpack.c.l.b16 %v3742_v49 }
0x1117   :  { %v3733_v17 = vmul.f32 %v10006_v44, %v3699_v54  ;;  %v3697_v60 = vpop.permute.xlu0 %3696  ;;  %v3800_v20 = vsel %vm763_vm3, %v3799_v35, %v3798_v12  ;;  %v3787_v44 = vrot.slane %v3770_v47, 3  ;;  %v3791_v12 = vrot.slane %v3772_v36, 1 }
0x1118   :  { %v3779_v8 = vunpack.c.l.b16 %v3747_v39  ;;  %v3732_v37 = vmul.f32 %v10016_v18, %v3697_v60  ;;  %v3802_v26 = vsel %vm766_vm4, %v3801_v29, %v3800_v20  ;;  %v3773_v57 = vunpack.c.l.b16 %v3741_v56 }
0x1119   :  { %v3749_v1 = vpack.c.bf16 %v3733_v17, %v3733_v17  ;;  %v3788_v13 = vsel %vm766_vm4, %v3787_v44, %v3786_v27  ;;  %v3775_v10 = vunpack.c.l.b16 %v3743_v43 }
0x111a   :  { %v3748_v30 = vpack.c.bf16 %v3732_v37, %v3732_v37  ;;  %v3803_v6 = vrot.slane %v3779_v8, 2  ;;  %v3790_v15 = vsel %vm769_vm5, %v3789_v11, %v3788_v13  ;;  %v3794_v37 = vrot.slane %v3774_v25, 7 }
0x111b   :  { %v3701_v62 = vpop.permute.xlu0 %3700  ;;  %v3781_v14 = vunpack.c.l.b16 %v3749_v1  ;;  %v3796_v36 = vrot.slane %v3775_v10, 6 }
0x111c   :  { %v3780_v5 = vunpack.c.l.b16 %v3748_v30  ;;  %v3734_v18 = vmul.f32 %v10020_v58, %v3701_v62  ;;  %v3804_v54 = vsel %vm769_vm5, %v3803_v6, %v3802_v26  ;;  %v3792_v58 = vsel %vm772_vm6, %v3791_v12, %v3790_v15 }
0x111d   :  { %v3793_v60 = vsel %vm775_vm7, %v3773_v57, %v3792_v58 }
0x111e   :  { %v3750_v16 = vpack.c.bf16 %v3734_v18, %v3734_v18  ;;  %v3805_v35 = vrot.slane %v3780_v5, 1  ;;  %v3795_v61 = vsel %vm778_vm8, %v3794_v37, %v3793_v60 }
0x111f   :  { %v3703_v39 = vpop.permute.xlu0 %3702 }
0x1120   :  { %v3782_v17 = vunpack.c.l.b16 %v3750_v16  ;;  %v3735_v47 = vmul.f32 %v10024_v21, %v3703_v39  ;;  %v3806_v33 = vsel %vm772_vm6, %v3805_v35, %v3804_v54  ;;  %v3797_v21 = vsel %vm781_vm9, %v3796_v36, %v3795_v61 }
0x1121   :  { %v3807_v8 = vsel %vm775_vm7, %v3781_v14, %v3806_v33 }
0x1122   :  { %v3751_v31 = vpack.c.bf16 %v3735_v47, %v3735_v47  ;;  %v3808_v20 = vrot.slane %v3782_v17, 7 }
0x1124   :  { %v3783_v45 = vunpack.c.l.b16 %v3751_v31  ;;  %v3809_v29 = vsel %vm778_vm8, %v3808_v20, %v3807_v8 }
0x1126   :  { %v3810_v30 = vrot.slane %v3783_v45, 6 }
0x1128   :  { %v3811_v56 = vsel %vm781_vm9, %v3810_v30, %v3809_v29 }
0x1129   :  { %v3812_v1 = vpack.c.b16 %v3811_v56, %v3797_v21 }
0x112b   :  { %3813 = vrot.lane.b32.xlu1 %v3812_v1, %s8085_s3 }
0x119d   :  { %v3814_v44 = vpop.permute.xlu1 %3813 }
0x119e   :  { %6763 = vmatmul.mubr.msk.bf16.vlgmr.msra.gmra.mrb[20].mxu0 %vm11358_vm10, %v3814_v44 }
0x119f   :  { %6776 = vmatprep.mubr.msk.bf16.mxu0 %vm11359_vm2, %v11379_v34 }
0x1271   :  { %v3852_v49 = vpop.f32.mrb[20].mxu0 }
0x1272   :  { %v3861_v26 = vrot.slane %v3852_v49, 2  ;;  %v6764_v62 = vpop.f32.mrb[21].mxu0  ;;  %v3862_v18 = vrot.slane %v3852_v49, 3  ;;  %v3863_v27 = vrot.slane %v3852_v49, 4  ;;  %v3864_v12 = vrot.slane %v3852_v49, 5 }
0x1273   :  { %v10158_v11 = vpop.f32.mrb[22].mxu0  ;;  %v3865_v54 = vrot.slane %v3852_v49, 6  ;;  %v3866_v13 = vrot.slane %v3852_v49, 7  ;;  %v3867_v58 = vrot.slane %v3852_v49, 1  ;;  %v10207_v61 = vadd.f32 %v3852_v49, %v8408_v32 }
0x1274   :  { %v10161_v6 = vadd.f32 %v3861_v26, %v8317_v42  ;;  %v6765_v5 = vpop.f32.mrb[23].mxu0  ;;  %v10165_v43 = vadd.f32 %v3862_v18, %v8322_v46  ;;  %v10168_v16 = vadd.f32 %v3863_v27, %v8330_v50  ;;  %v10172_v14 = vadd.f32 %v3864_v12, %v8333_v51 }
0x1275   :  { %v10177_v25 = vadd.f32 %v3865_v54, %v8338_v55  ;;  %v3868_v35 = vrot.slane %v10158_v11, 2  ;;  %v10182_v39 = vadd.f32 %v3866_v13, %v8357_v63  ;;  %v3869_v15 = vrot.slane %v10158_v11, 3 }
0x1276   :  { %7725 = vtanh.f32 %v10161_v6  ;;  %v3870_v10 = vrot.slane %v10158_v11, 4  ;;  %v10197_v8 = vadd.f32 %v3867_v58, %v8423_v40  ;;  %v3871_v37 = vrot.slane %v10158_v11, 5 }
0x1277   :  { %7727 = vtanh.f32 %v10165_v43  ;;  %v10188_v33 = vadd.f32 %v3868_v35, %v8366_v7  ;;  %v10194_v60 = vadd.f32 %v3869_v15, %v8389_v19  ;;  %v3872_v29 = vrot.slane %v10158_v11, 6 }
0x1278   :  { %7729 = vtanh.f32 %v10168_v16  ;;  %v10203_v20 = vadd.f32 %v3870_v10, %v8362_v2  ;;  %v10213_v36 = vadd.f32 %v3871_v37, %v8370_v9  ;;  %v3873_v21 = vrot.slane %v10158_v11, 7 }
0x1279   :  { %7731 = vtanh.f32 %v10172_v14  ;;  %v10220_v56 = vadd.f32 %v3872_v29, %v8402_v28  ;;  %v3874_v49 = vrot.slane %v10158_v11, 1  ;;  %v6561_v10 = vmul.f32 -1.442695, %v10172_v14 }
0x127a   :  { %7733 = vtanh.f32 %v10177_v25  ;;  %v10227_v26 = vadd.f32 %v3873_v21, %v8416_v38  ;;  %v6562_v37 = vmul.f32 -1.442695, %v10177_v25  ;;  %v6568_v14 = vmul.f32 -1.442695, %v10203_v20 }
0x127b   :  { %7735 = vtanh.f32 %v10182_v39  ;;  %v10233_v18 = vadd.f32 %v3874_v49, %v8430_v53  ;;  %v6565_v25 = vmul.f32 -1.442695, %v10197_v8 }
0x127c   :  { %7737 = vtanh.f32 %v10188_v33 }
0x127d   :  { %7739 = vtanh.f32 %v10194_v60 }
0x127e   :  { %7741 = vtanh.f32 %v10197_v8 }
0x127f   :  { %7743 = vtanh.f32 %v10203_v20 }
0x1280   :  { %v7726_v57 = vpop.eup %7725  ;;  %7745 = vtanh.f32 %v10207_v61 }
0x1281   :  { %4099 = vrot.lane.b32.xlu0 %v7726_v57, %s8084_s22  ;;  %v7728_v17 = vpop.eup %7727  ;;  %7747 = vtanh.f32 %v10213_v36  ;;  %v10240_v57 = vadd.f32 %v10158_v11, %v8395_v22  ;;  %v6559_v11 = vmul.f32 -1.442695, %v10165_v43  ;;  %v6567_v43 = vmul.f32 -1.442695, %v10194_v60 }
0x1282   :  { %v7730_v47 = vpop.eup %7729  ;;  %4101 = vrot.lane.b32.xlu1 %v7728_v17, %s8084_s22  ;;  %7749 = vtanh.f32 %v10220_v56  ;;  %v6558_v17 = vmul.f32 -1.442695, %v10161_v6 }
0x1283   :  { %v7732_v31 = vpop.eup %7731  ;;  %7751 = vtanh.f32 %v10227_v26 }
0x1284   :  { %v7734_v45 = vpop.eup %7733  ;;  %7753 = vtanh.f32 %v10233_v18 }
0x1285   :  { %4103 = vrot.lane.b32.xlu0 %v7730_v47, %s8084_s22  ;;  %v7736_v30 = vpop.eup %7735  ;;  %7755 = vtanh.f32 %v10240_v57  ;;  %v6560_v47 = vmul.f32 -1.442695, %v10168_v16 }
0x1286   :  { %v7738_v1 = vpop.eup %7737  ;;  %7757 = vpow2.f32 %v6558_v17 }
0x1287   :  { %v7740_v44 = vpop.eup %7739  ;;  %7759 = vpow2.f32 %v6559_v11 }
0x1288   :  { %4117 = vrot.lane.b32.xlu1 %v7740_v44, %s8084_s22  ;;  %v7742_v62 = vpop.eup %7741  ;;  %7761 = vpow2.f32 %v6560_v47 }
0x1289   :  { %4105 = vrot.lane.b32.xlu0 %v7732_v31, %s8084_s22  ;;  %v7744_v5 = vpop.eup %7743  ;;  %7763 = vpow2.f32 %v6561_v10 }
0x128a   :  { %v7746_v27 = vpop.eup %7745 }
0x128b   :  { %v7748_v12 = vpop.eup %7747 }
0x128c   :  { %4119 = vrot.lane.b32.xlu1 %v7744_v5, %s8084_s22  ;;  %v7750_v54 = vpop.eup %7749  ;;  %v6569_v5 = vmul.f32 -1.442695, %v10213_v36  ;;  %v6571_v36 = vmul.f32 -1.442695, %v10227_v26  ;;  %v6573_v26 = vmul.f32 -1.442695, %v10233_v18 }
0x128d   :  { %4107 = vrot.lane.b32.xlu0 %v7734_v45, %s8084_s22  ;;  %v7752_v13 = vpop.eup %7751  ;;  %v6563_v45 = vmul.f32 -1.442695, %v10182_v39 }
0x128e   :  { %v7754_v35 = vpop.eup %7753 }
0x128f   :  { %v7756_v15 = vpop.eup %7755 }
0x1290   :  { %4121 = vrot.lane.b32.xlu1 %v7748_v12, %s8084_s22  ;;  %v7758_v58 = vpop.eup %7757  ;;  %v6570_v12 = vmul.f32 -1.442695, %v10220_v56 }
0x1291   :  { %4109 = vrot.lane.b32.xlu0 %v7736_v30, %s8084_s22  ;;  %v3955_v31 = vadd.f32 1.0, %v7758_v58  ;;  %v7760_v29 = vpop.eup %7759  ;;  %v6566_v30 = vmul.f32 -1.442695, %v10188_v33  ;;  %v6564_v33 = vmul.f32 -1.442695, %v10207_v61 }
0x1292   :  { %v7762_v6 = vpop.eup %7761  ;;  %v3956_v16 = vadd.f32 1.0, %v7760_v29 }
0x1293   :  { %7765 = vrcp.f32 %v3955_v31  ;;  %v3957_v21 = vadd.f32 1.0, %v7762_v6 }
0x1294   :  { %4123 = vrot.lane.b32.xlu1 %v7750_v54, %s8084_s22  ;;  %7767 = vpow2.f32 %v6562_v37 }
0x1295   :  { %4115 = vrot.lane.b32.xlu0 %v7738_v1, %s8084_s22  ;;  %7769 = vpow2.f32 %v6563_v45  ;;  %v7764_v1 = vpop.eup %7763 }
0x1296   :  { %7771 = vpow2.f32 %v6566_v30  ;;  %v3958_v49 = vadd.f32 1.0, %v7764_v1 }
0x1297   :  { %7773 = vpow2.f32 %v6567_v43 }
0x1298   :  { %4125 = vrot.lane.b32.xlu1 %v7752_v13, %s8084_s22  ;;  %7775 = vrcp.f32 %v3956_v16 }
0x1299   :  { %4113 = vrot.lane.b32.xlu0 %v7742_v62, %s8084_s22  ;;  %7777 = vrcp.f32 %v3957_v21 }
0x129a   :  { %7779 = vpow2.f32 %v6568_v14 }
0x129b   :  { %7781 = vpow2.f32 %v6565_v25  ;;  %v6572_v25 = vmul.f32 -1.442695, %v10240_v57 }
0x129c   :  { %4129 = vrot.lane.b32.xlu1 %v7754_v35, %s8084_s22  ;;  %7783 = vrcp.f32 %v3958_v49 }
0x129d   :  { %4111 = vrot.lane.b32.xlu0 %v7746_v27, %s8084_s22  ;;  %v10258_v44 = vpop.eup %7765  ;;  %7785 = vpow2.f32 %v6564_v33 }
0x129e   :  { %v7768_v62 = vpop.eup %7767  ;;  %7787 = vpow2.f32 %v6569_v5 }
0x129f   :  { %v3959_v20 = vadd.f32 1.0, %v7768_v62  ;;  %v7770_v8 = vpop.eup %7769 }
0x12a0   :  { %4127 = vrot.lane.b32.xlu1 %v7756_v15, %s8084_s22  ;;  %v7772_v27 = vpop.eup %7771  ;;  %v3960_v13 = vadd.f32 1.0, %v7770_v8 }
0x12a1   :  { %v7774_v54 = vpop.eup %7773  ;;  %7789 = vrcp.f32 %v3959_v20  ;;  %v3963_v56 = vadd.f32 1.0, %v7772_v27 }
0x12a2   :  { %v10265_v61 = vpop.eup %7775  ;;  %7791 = vpow2.f32 %v6570_v12  ;;  %v3964_v58 = vadd.f32 1.0, %v7774_v54 }
0x12a3   :  { %v10267_v15 = vpop.eup %7777  ;;  %7793 = vrcp.f32 %v3960_v13 }
0x12a4   :  { %v7780_v10 = vpop.eup %7779  ;;  %7795 = vpow2.f32 %v6571_v36 }
0x12a5   :  { %v7782_v31 = vpop.eup %7781  ;;  %7797 = vrcp.f32 %v3964_v58  ;;  %v3965_v30 = vadd.f32 1.0, %v7780_v10 }
0x12a6   :  { %v10274_v37 = vpop.eup %7783  ;;  %7799 = vrcp.f32 %v3963_v56  ;;  %v3962_v43 = vadd.f32 1.0, %v7782_v31 }
0x12a7   :  { %v7786_v29 = vpop.eup %7785  ;;  %7801 = vpow2.f32 %v6573_v26 }
0x12a8   :  { %v7788_v16 = vpop.eup %7787  ;;  %v3961_v1 = vadd.f32 1.0, %v7786_v29  ;;  %7803 = vrcp.f32 %v3965_v30 }
0x12a9   :  { %7805 = vrcp.f32 %v3962_v43 }
0x12aa   :  { %7807 = vrcp.f32 %v3961_v1 }
0x12ab   :  { %v10279_v21 = vpop.eup %7789  ;;  %7809 = vpow2.f32 %v6572_v25 }
0x12ac   :  { %v7792_v49 = vpop.eup %7791 }
0x12ad   :  { %v10284_v62 = vpop.eup %7793  ;;  %v3967_v20 = vadd.f32 1.0, %v7792_v49 }
0x12ae   :  { %v7796_v5 = vpop.eup %7795 }
0x12af   :  { %v10287_v8 = vpop.eup %7797  ;;  %v3968_v36 = vadd.f32 1.0, %v7796_v5 }
0x12b0   :  { %v10290_v57 = vpop.eup %7799 }
0x12f3   :  { %v4100_v39 = vpop.permute.xlu0 %4099 }
0x12f4   :  { %v4147_v60 = vmul.f32 %v10258_v44, %v4100_v39  ;;  %v4102_v35 = vpop.permute.xlu1 %4101  ;;  %v3966_v39 = vadd.f32 1.0, %v7788_v16 }
0x12f5   :  { %v4148_v17 = vmul.f32 %v10265_v61, %v4102_v35  ;;  %v7802_v35 = vpop.eup %7801 }
0x12f6   :  { %4179 = vrot.lane.b32.xlu0 %v4147_v60, %s8085_s3  ;;  %7811 = vrcp.f32 %v3966_v39  ;;  %v3970_v26 = vadd.f32 1.0, %v7802_v35 }
0x12f7   :  { %v4104_v11 = vpop.permute.xlu0 %4103  ;;  %4181 = vrot.lane.b32.xlu1 %v4148_v17, %s8085_s3  ;;  %7813 = vrcp.f32 %v3967_v20  ;;  %v10294_v17 = vpop.eup %7803 }
0x12f8   :  { %v4149_v47 = vmul.f32 %v10267_v15, %v4104_v11  ;;  %v10298_v11 = vpop.eup %7805  ;;  %7815 = vrcp.f32 %v3968_v36 }
0x12f9   :  { %v10302_v31 = vpop.eup %7807  ;;  %7817 = vrcp.f32 %v3970_v26 }
0x12fa   :  { %4183 = vrot.lane.b32.xlu0 %v4149_v47, %s8085_s3  ;;  %v4118_v27 = vpop.permute.xlu1 %4117 }
0x12fb   :  { %v4106_v45 = vpop.permute.xlu0 %4105  ;;  %v4156_v54 = vmul.f32 %v10287_v8, %v4118_v27 }
0x12fc   :  { %v4150_v6 = vmul.f32 %v10274_v37, %v4106_v45  ;;  %v7810_v45 = vpop.eup %7809 }
0x12fd   :  { %4197 = vrot.lane.b32.xlu1 %v4156_v54, %s8085_s3  ;;  %v3969_v1 = vadd.f32 1.0, %v7810_v45 }
0x12fe   :  { %4185 = vrot.lane.b32.xlu0 %v4150_v6, %s8085_s3  ;;  %v4120_v47 = vpop.permute.xlu1 %4119 }
0x12ff   :  { %v4108_v14 = vpop.permute.xlu0 %4107  ;;  %v4157_v10 = vmul.f32 %v10294_v17, %v4120_v47  ;;  %7819 = vrcp.f32 %v3969_v1  ;;  %v4039_v1 = vrot.slane %v10057_v24, 7  ;;  %v4044_v24 = vrot.slane %v10072_v0, 7  ;;  %v11460_v0 = vld [vmem:[#allocation7_spill] sm:$0xff] }
0x1300   :  { %v4151_v18 = vmul.f32 %v10279_v21, %v4108_v14  ;;  %v10306_v29 = vpop.eup %7811 }
0x1301   :  { %4199 = vrot.lane.b32.xlu1 %v4157_v10, %s8085_s3  ;;  %v10312_v14 = vpop.eup %7813  ;;  %v4037_v10 = vrot.slane %v10040_v48, 7 }
0x1302   :  { %4187 = vrot.lane.b32.xlu0 %v4151_v18, %s8085_s3  ;;  %v4122_v6 = vpop.permute.xlu1 %4121  ;;  %v10316_v39 = vpop.eup %7815 }
0x1303   :  { %v4110_v33 = vpop.permute.xlu0 %4109  ;;  %v4158_v43 = vmul.f32 %v10306_v29, %v4122_v6  ;;  %v4069_v45 = vmul.f32 %v10267_v15, %v4037_v10 }
0x1304   :  { %v4152_v60 = vmul.f32 %v10284_v62, %v4110_v33 }
0x1305   :  { %4201 = vrot.lane.b32.xlu1 %v4158_v43, %s8085_s3 }
0x1306   :  { %4189 = vrot.lane.b32.xlu0 %v4152_v60, %s8085_s3  ;;  %v4124_v25 = vpop.permute.xlu1 %4123  ;;  %v10320_v60 = vpop.eup %7817 }
0x1307   :  { %v4116_v12 = vpop.permute.xlu0 %4115  ;;  %v4159_v18 = vmul.f32 %v10312_v14, %v4124_v25 }
0x1308   :  { %v4155_v13 = vmul.f32 %v10290_v57, %v4116_v12 }
0x1309   :  { %4203 = vrot.lane.b32.xlu1 %v4159_v18, %s8085_s3  ;;  %v10324_v27 = vpop.eup %7819 }
0x130a   :  { %4195 = vrot.lane.b32.xlu0 %v4155_v13, %s8085_s3  ;;  %v4126_v49 = vpop.permute.xlu1 %4125  ;;  %v4035_v13 = vrot.slane %v10030_v52, 7  ;;  %v4038_v52 = vrot.slane %v10049_v23, 7  ;;  %v4071_v23 = vmul.f32 %v10279_v21, %v4039_v1 }
0x130b   :  { %v4114_v58 = vpop.permute.xlu0 %4113  ;;  %v4160_v33 = vmul.f32 %v10316_v39, %v4126_v49  ;;  %v4040_v49 = vrot.slane %v10086_v3, 7  ;;  %v4076_v3 = vmul.f32 %v10287_v8, %v4044_v24 }
0x130c   :  { %v4154_v56 = vmul.f32 %v10298_v11, %v4114_v58  ;;  %v4067_v35 = vmul.f32 %v10258_v44, %v4035_v13  ;;  %v4036_v58 = vrot.slane %v10037_v4, 7  ;;  %v4070_v4 = vmul.f32 %v10274_v37, %v4038_v52 }
0x130d   :  { %4205 = vrot.lane.b32.xlu1 %v4160_v33, %s8085_s3  ;;  %v4043_v13 = vrot.slane %v10074_v59, 7 }
0x130e   :  { %4193 = vrot.lane.b32.xlu0 %v4154_v56, %s8085_s3  ;;  %v4130_v5 = vpop.permute.xlu1 %4129  ;;  %v4068_v56 = vmul.f32 %v10265_v61, %v4036_v58 }
0x130f   :  { %v4112_v30 = vpop.permute.xlu0 %4111  ;;  %v4162_v20 = vmul.f32 %v10320_v60, %v4130_v5  ;;  %v4072_v5 = vmul.f32 %v10284_v62, %v4040_v49 }
0x1310   :  { %v4153_v16 = vmul.f32 %v10302_v31, %v4112_v30 }
0x1311   :  { %4209 = vrot.lane.b32.xlu1 %v4162_v20, %s8085_s3 }
0x1312   :  { %4191 = vrot.lane.b32.xlu0 %v4153_v16, %s8085_s3  ;;  %v4128_v12 = vpop.permute.xlu1 %4127 }
0x1313   :  { %v4161_v54 = vmul.f32 %v10324_v27, %v4128_v12 }
0x1315   :  { %4207 = vrot.lane.b32.xlu1 %v4161_v54, %s8085_s3 }
0x1368   :  { %v4180_v36 = vpop.permute.xlu0 %4179 }
0x1369   :  { %v10330_v47 = vadd.f32 %v4180_v36, %v4067_v35  ;;  %v4182_v26 = vpop.permute.xlu1 %4181  ;;  %v4075_v36 = vmul.f32 %v10290_v57, %v4043_v13 }
0x136a   :  { %v10337_v6 = vadd.f32 %v4182_v26, %v4068_v56  ;;  %v4042_v26 = vrot.slane %v10051_v41, 7  ;;  %v11461_v41 = vld [vmem:[#allocation8_spill] sm:$0xff] }
0x136b   :  { %7821 = vtanh.f32 %v10330_v47 }
0x136c   :  { %v4184_v30 = vpop.permute.xlu0 %4183  ;;  %7823 = vtanh.f32 %v10337_v6 }
0x136d   :  { %v10340_v43 = vadd.f32 %v4184_v30, %v4069_v45  ;;  %v4045_v45 = vrot.slane %v11460_v0, 7 }
0x136f   :  { %7825 = vtanh.f32 %v10340_v43  ;;  %v4198_v58 = vpop.permute.xlu1 %4197  ;;  %v4077_v52 = vmul.f32 %v10294_v17, %v4045_v45 }
0x1370   :  { %v4186_v48 = vpop.permute.xlu0 %4185  ;;  %v10367_v59 = vadd.f32 %v4198_v58, %v4076_v3 }
0x1371   :  { %v10347_v25 = vadd.f32 %v4186_v48, %v4070_v4 }
0x1373   :  { %7827 = vtanh.f32 %v10347_v25  ;;  %v4200_v4 = vpop.permute.xlu1 %4199 }
0x1374   :  { %v4188_v18 = vpop.permute.xlu0 %4187 }
0x1375   :  { %v7822_v16 = vpop.eup %7821  ;;  %v10352_v33 = vadd.f32 %v4188_v18, %v4071_v23  ;;  %v4046_v23 = vrot.slane %v11461_v41, 7  ;;  %v11462_v18 = vld [vmem:[#allocation11_spill] sm:$0xff] }
0x1376   :  { %4275 = vrot.lane.b32.xlu0 %v7822_v16, %s8084_s22  ;;  %v7824_v20 = vpop.eup %7823  ;;  %v4074_v16 = vmul.f32 %v10298_v11, %v4042_v26  ;;  %v4041_v49 = vrot.slane %v11462_v18, 7  ;;  %v11469_v18 = vld [vmem:[#allocation13_spill] sm:$0xff] }
0x1377   :  { %7829 = vtanh.f32 %v10352_v33  ;;  %4277 = vrot.lane.b32.xlu1 %v7824_v20, %s8084_s22  ;;  %v4202_v24 = vpop.permute.xlu1 %4201 }
0x1378   :  { %v4190_v12 = vpop.permute.xlu0 %4189 }
0x1379   :  { %v7826_v54 = vpop.eup %7825  ;;  %v10359_v35 = vadd.f32 %v4190_v12, %v4072_v5  ;;  %v10378_v5 = vadd.f32 %v4200_v4, %v4077_v52  ;;  %v4078_v12 = vmul.f32 %v10306_v29, %v4046_v23  ;;  %v11467_v52 = vld [vmem:[#allocation14_spill] sm:$0xff] }
0x137a   :  { %4279 = vrot.lane.b32.xlu0 %v7826_v54, %s8084_s22  ;;  %v4073_v54 = vmul.f32 %v10302_v31, %v4041_v49  ;;  %v4050_v49 = vrot.slane %v11469_v18, 7 }
0x137b   :  { %7831 = vtanh.f32 %v10359_v35  ;;  %v4204_v0 = vpop.permute.xlu1 %4203 }
0x137c   :  { %v4196_v10 = vpop.permute.xlu0 %4195  ;;  %7833 = vtanh.f32 %v10367_v59 }
0x137d   :  { %v7828_v56 = vpop.eup %7827  ;;  %v10369_v30 = vadd.f32 %v4196_v10, %v4075_v36  ;;  %v11464_v36 = vld [vmem:[#allocation9_spill] sm:$0xff]  ;;  %v10388_v10 = vadd.f32 %v4202_v24, %v4078_v12  ;;  %v4082_v24 = vmul.f32 %v10320_v60, %v4050_v49 }
0x137e   :  { %4281 = vrot.lane.b32.xlu0 %v7828_v56, %s8084_s22  ;;  %v4047_v58 = vrot.slane %v11464_v36, 7  ;;  %v11471_v36 = vld [vmem:[#allocation6_spill] sm:$0xff] }
0x137f   :  { %7835 = vtanh.f32 %v10369_v30  ;;  %11465 = vst [vmem:[#allocation12_spill] sm:$0xff] %v10388_v10  ;;  %v4206_v41 = vpop.permute.xlu1 %4205 }
0x1380   :  { %v4194_v48 = vpop.permute.xlu0 %4193  ;;  %7837 = vtanh.f32 %v10378_v5  ;;  %v4079_v26 = vmul.f32 %v10312_v14, %v4047_v58  ;;  %v4049_v58 = vrot.slane %v11471_v36, 7 }
0x1381   :  { %v7830_v1 = vpop.eup %7829  ;;  %v10380_v20 = vadd.f32 %v4194_v48, %v4074_v16  ;;  %v4048_v16 = vrot.slane %v11467_v52, 7 }
0x1382   :  { %4283 = vrot.lane.b32.xlu0 %v7830_v1, %s8084_s22  ;;  %v10397_v4 = vadd.f32 %v4204_v0, %v4079_v26 }
0x1383   :  { %11463 = vst [vmem:[#allocation10_spill] sm:$0xff] %v10380_v20  ;;  %7839 = vtanh.f32 %v10380_v20  ;;  %v4080_v1 = vmul.f32 %v10316_v39, %v4048_v16 }
0x1384   :  { %v4192_v13 = vpop.permute.xlu0 %4191  ;;  %7841 = vtanh.f32 %v10388_v10  ;;  %11468 = vst [vmem:[#allocation8_spill] sm:$0xff] %v10397_v4 }
0x1385   :  { %v7832_v3 = vpop.eup %7831  ;;  %v10390_v56 = vadd.f32 %v4192_v13, %v4073_v54  ;;  %v10404_v12 = vadd.f32 %v4206_v41, %v4080_v1  ;;  %v4210_v13 = vpop.permute.xlu1 %4209 }
0x1386   :  { %4285 = vrot.lane.b32.xlu0 %v7832_v3, %s8084_s22  ;;  %v7834_v45 = vpop.eup %7833  ;;  %v10411_v26 = vadd.f32 %v4210_v13, %v4082_v24 }
0x1387   :  { %11466 = vst [vmem:[#allocation7_spill] sm:$0xff] %v10390_v56  ;;  %7843 = vtanh.f32 %v10390_v56  ;;  %4293 = vrot.lane.b32.xlu1 %v7834_v45, %s8084_s22  ;;  %11470 = vst [vmem:[#allocation11_spill] sm:$0xff] %v10404_v12  ;;  %v4081_v45 = vmul.f32 %v10324_v27, %v4049_v58 }
0x1388   :  { %7845 = vtanh.f32 %v10397_v4  ;;  %11472 = vst [vmem:[#allocation9_spill] sm:$0xff] %v10411_v26 }
0x1389   :  { %v7836_v48 = vpop.eup %7835  ;;  %7847 = vtanh.f32 %v10404_v12  ;;  %v4208_v52 = vpop.permute.xlu1 %4207 }
0x138a   :  { %4291 = vrot.lane.b32.xlu0 %v7836_v48, %s8084_s22  ;;  %v7838_v23 = vpop.eup %7837  ;;  %7849 = vtanh.f32 %v10411_v26  ;;  %v10417_v48 = vadd.f32 %v4208_v52, %v4081_v45 }
0x138b   :  { %4295 = vrot.lane.b32.xlu1 %v7838_v23, %s8084_s22 }
0x138c   :  { %11473 = vst [vmem:[#allocation14_spill] sm:$0xff] %v10417_v48  ;;  %7851 = vtanh.f32 %v10417_v48 }
0x138d   :  { %v7840_v54 = vpop.eup %7839 }
0x138e   :  { %4289 = vrot.lane.b32.xlu0 %v7840_v54, %s8084_s22  ;;  %v7842_v3 = vpop.eup %7841 }
0x138f   :  { %4297 = vrot.lane.b32.xlu1 %v7842_v3, %s8084_s22 }
0x1391   :  { %v7844_v0 = vpop.eup %7843 }
0x1392   :  { %4287 = vrot.lane.b32.xlu0 %v7844_v0, %s8084_s22  ;;  %v7846_v16 = vpop.eup %7845 }
0x1393   :  { %4299 = vrot.lane.b32.xlu1 %v7846_v16, %s8084_s22  ;;  %v7848_v1 = vpop.eup %7847 }
0x1394   :  { %v7850_v41 = vpop.eup %7849 }
0x1396   :  { %v7852_v23 = vpop.eup %7851 }
0x1397   :  { %4301 = vrot.lane.b32.xlu1 %v7848_v1, %s8084_s22 }
0x139b   :  { %4305 = vrot.lane.b32.xlu1 %v7850_v41, %s8084_s22 }
0x139f   :  { %4303 = vrot.lane.b32.xlu1 %v7852_v23, %s8084_s22 }
0x13e8   :  { %v4276_v18 = vpop.permute.xlu0 %4275 }
0x13e9   :  { %v4278_v13 = vpop.permute.xlu1 %4277  ;;  %v4323_v1 = vmul.f32 %v10258_v44, %v4276_v18 }
0x13ea   :  { %v4324_v23 = vmul.f32 %v10265_v61, %v4278_v13 }
0x13eb   :  { %v4339_v56 = vpack.c.bf16 %v4323_v1, %v4323_v1 }
0x13ec   :  { %v4280_v49 = vpop.permute.xlu0 %4279 }
0x13ed   :  { %v4325_v48 = vmul.f32 %v10267_v15, %v4280_v49 }
0x13ef   :  { %v4341_v18 = vpack.c.bf16 %v4325_v48, %v4325_v48 }
0x13f0   :  { %v4282_v54 = vpop.permute.xlu0 %4281 }
0x13f1   :  { %v4326_v4 = vmul.f32 %v10274_v37, %v4282_v54 }
0x13f3   :  { %v4342_v61 = vpack.c.bf16 %v4326_v4, %v4326_v4 }
0x13f4   :  { %v4284_v24 = vpop.permute.xlu0 %4283 }
0x13f5   :  { %v4374_v48 = vunpack.c.l.b16 %v4342_v61 }
0x13f8   :  { %v4286_v3 = vpop.permute.xlu0 %4285 }
0x13f9   :  { %v4294_v36 = vpop.permute.xlu1 %4293 }
0x13fa   :  { %v4332_v0 = vmul.f32 %v10287_v8, %v4294_v36  ;;  %v4327_v36 = vmul.f32 %v10279_v21, %v4284_v24 }
0x13fc   :  { %v4292_v58 = vpop.permute.xlu0 %4291  ;;  %v4348_v26 = vpack.c.bf16 %v4332_v0, %v4332_v0  ;;  %v4343_v54 = vpack.c.bf16 %v4327_v36, %v4327_v36 }
0x13fd   :  { %v4331_v45 = vmul.f32 %v10290_v57, %v4292_v58  ;;  %v4296_v52 = vpop.permute.xlu1 %4295  ;;  %v4340_v58 = vpack.c.bf16 %v4324_v23, %v4324_v23 }
0x13fe   :  { %v4333_v41 = vmul.f32 %v10294_v17, %v4296_v52  ;;  %v4380_v44 = vunpack.c.l.b16 %v4348_v26  ;;  %v4328_v17 = vmul.f32 %v10284_v62, %v4286_v3 }
0x13ff   :  { %v4347_v16 = vpack.c.bf16 %v4331_v45, %v4331_v45  ;;  %v4371_v45 = vunpack.c.l.b16 %v4339_v56  ;;  %v4375_v56 = vunpack.c.l.b16 %v4343_v54 }
0x1400   :  { %v4290_v12 = vpop.permute.xlu0 %4289  ;;  %v4349_v8 = vpack.c.bf16 %v4333_v41, %v4333_v41  ;;  %v4402_v1 = vrot.slane %v4380_v44, 5 }
0x1401   :  { %v4298_v20 = vpop.permute.xlu1 %4297  ;;  %v4379_v10 = vunpack.c.l.b16 %v4347_v16  ;;  %v4372_v16 = vunpack.c.l.b16 %v4340_v58 }
0x1402   :  { %v4334_v57 = vmul.f32 %v10306_v29, %v4298_v20  ;;  %v4381_v37 = vunpack.c.l.b16 %v4349_v8  ;;  %v4373_v29 = vunpack.c.l.b16 %v4341_v18  ;;  %v4344_v20 = vpack.c.bf16 %v4328_v17, %v4328_v17 }
0x1403   :  { %v4401_v15 = vrot.slane %v4379_v10, 6  ;;  %v4330_v10 = vmul.f32 %v10298_v11, %v4290_v12  ;;  %v4388_v23 = vrot.slane %v4372_v16, 5  ;;  %v4392_v18 = vrot.slane %v4374_v48, 3 }
0x1404   :  { %v4350_v13 = vpack.c.bf16 %v4334_v57, %v4334_v57  ;;  %v4288_v49 = vpop.permute.xlu0 %4287  ;;  %v4404_v3 = vrot.slane %v4381_v37, 4  ;;  %v4390_v8 = vrot.slane %v4373_v29, 4  ;;  %v4376_v57 = vunpack.c.l.b16 %v4344_v20 }
0x1405   :  { %v4300_v0 = vpop.permute.xlu1 %4299  ;;  %v4329_v26 = vmul.f32 %v10302_v31, %v4288_v49  ;;  %v4403_v4 = vsel %vm763_vm3, %v4402_v1, %v4401_v15 }
0x1406   :  { %v4335_v52 = vmul.f32 %v10312_v14, %v4300_v0  ;;  %v4382_v24 = vunpack.c.l.b16 %v4350_v13  ;;  %v4387_v14 = vrot.slane %v4371_v45, 6  ;;  %v4405_v44 = vsel %vm766_vm4, %v4404_v3, %v4403_v4 }
0x1407   :  { %v4345_v31 = vpack.c.bf16 %v4329_v26, %v4329_v26  ;;  %v4346_v13 = vpack.c.bf16 %v4330_v10, %v4330_v10  ;;  %v4394_v0 = vrot.slane %v4375_v56, 2  ;;  %v4396_v15 = vrot.slane %v4376_v57, 1 }
0x1408   :  { %v4351_v21 = vpack.c.bf16 %v4335_v52, %v4335_v52  ;;  %v4406_v17 = vrot.slane %v4382_v24, 3  ;;  %v4389_v12 = vsel %vm763_vm3, %v4388_v23, %v4387_v14 }
0x1409   :  { %v4302_v62 = vpop.permute.xlu1 %4301  ;;  %v4391_v45 = vsel %vm766_vm4, %v4390_v8, %v4389_v12  ;;  %v4377_v52 = vunpack.c.l.b16 %v4345_v31  ;;  %v4378_v1 = vunpack.c.l.b16 %v4346_v13 }
0x140a   :  { %v4336_v41 = vmul.f32 %v10316_v39, %v4302_v62  ;;  %v4383_v36 = vunpack.c.l.b16 %v4351_v21  ;;  %v4407_v49 = vsel %vm769_vm5, %v4406_v17, %v4405_v44  ;;  %v4393_v16 = vsel %vm769_vm5, %v4392_v18, %v4391_v45 }
0x140b   :  { %v4395_v20 = vsel %vm772_vm6, %v4394_v0, %v4393_v16  ;;  %v4399_v10 = vrot.slane %v4378_v1, 7 }
0x140c   :  { %v4352_v58 = vpack.c.bf16 %v4336_v41, %v4336_v41  ;;  %v4408_v37 = vrot.slane %v4383_v36, 2  ;;  %v4397_v26 = vsel %vm775_vm7, %v4396_v15, %v4395_v20 }
0x140d   :  { %v4306_v61 = vpop.permute.xlu1 %4305  ;;  %v4398_v4 = vsel %vm778_vm8, %v4377_v52, %v4397_v26 }
0x140e   :  { %v4338_v11 = vmul.f32 %v10320_v60, %v4306_v61  ;;  %v4384_v39 = vunpack.c.l.b16 %v4352_v58  ;;  %v4409_v60 = vsel %vm772_vm6, %v4408_v37, %v4407_v49  ;;  %v4400_v23 = vsel %vm781_vm9, %v4399_v10, %v4398_v4 }
0x1410   :  { %v4354_v54 = vpack.c.bf16 %v4338_v11, %v4338_v11  ;;  %v4410_v48 = vrot.slane %v4384_v39, 1 }
0x1411   :  { %v4304_v29 = vpop.permute.xlu1 %4303 }
0x1412   :  { %v4337_v21 = vmul.f32 %v10324_v27, %v4304_v29  ;;  %v4386_v24 = vunpack.c.l.b16 %v4354_v54  ;;  %v4411_v3 = vsel %vm775_vm7, %v4410_v48, %v4409_v60 }
0x1414   :  { %v4353_v62 = vpack.c.bf16 %v4337_v21, %v4337_v21  ;;  %v4413_v41 = vrot.slane %v4386_v24, 7 }
0x1416   :  { %v4385_v56 = vunpack.c.l.b16 %v4353_v62 }
0x1418   :  { %v4412_v14 = vsel %vm778_vm8, %v4385_v56, %v4411_v3 }
0x1419   :  { %v4414_v27 = vsel %vm781_vm9, %v4413_v41, %v4412_v14 }
0x141a   :  { %v4415_v8 = vpack.c.b16 %v4414_v27, %v4400_v23 }
0x141c   :  { %4416 = vrot.lane.b32.xlu0 %v4415_v8, %s8085_s3 }
0x148e   :  { %v4417_v57 = vpop.permute.xlu0 %4416 }
0x148f   :  { %6771 = vmatmul.mubr.msk.bf16.vlgmr.msra.gmra.mrb[20].mxu1 %vm11358_vm10, %v4417_v57 }
0x1490   :  { %6782 = vmatprep.mubr.msk.bf16.mxu1 %vm11359_vm2, %v11379_v34 }
0x1562   :  { %v4455_v36 = vpop.f32.mrb[20].mxu1 }
0x1563   :  { %v4464_v58 = vrot.slane %v4455_v36, 1  ;;  %v6772_v44 = vpop.f32.mrb[21].mxu1  ;;  %v4465_v61 = vrot.slane %v4455_v36, 2  ;;  %v4466_v13 = vrot.slane %v4455_v36, 3  ;;  %v4467_v11 = vrot.slane %v4455_v36, 4 }
0x1564   :  { %v10458_v31 = vpop.f32.mrb[22].mxu1  ;;  %v4468_v39 = vrot.slane %v4455_v36, 5  ;;  %v4470_v16 = vrot.slane %v4455_v36, 7 }
0x1565   :  { %v10461_v18 = vadd.f32 %v4464_v58, %v8317_v42  ;;  %v6773_v17 = vpop.f32.mrb[23].mxu1  ;;  %v10465_v0 = vadd.f32 %v4465_v61, %v8322_v46  ;;  %v10468_v12 = vadd.f32 %v4466_v13, %v8330_v50  ;;  %v10472_v49 = vadd.f32 %v4467_v11, %v8333_v51 }
0x1566   :  { %v4469_v42 = vrot.slane %v4455_v36, 6  ;;  %v10477_v45 = vadd.f32 %v4468_v39, %v8338_v55  ;;  %v4472_v46 = vrot.slane %v10458_v31, 2  ;;  %v4471_v51 = vrot.slane %v10458_v31, 1 }
0x1567   :  { %7853 = vtanh.f32 %v10461_v18  ;;  %v4473_v52 = vrot.slane %v10458_v31, 3  ;;  %v4474_v29 = vrot.slane %v10458_v31, 4  ;;  %v4475_v60 = vrot.slane %v10458_v31, 5 }
0x1568   :  { %7855 = vtanh.f32 %v10465_v0  ;;  %v10482_v50 = vadd.f32 %v4469_v42, %v8357_v63  ;;  %v10489_v55 = vadd.f32 %v4472_v46, %v8389_v19  ;;  %v10494_v63 = vadd.f32 %v4471_v51, %v8366_v7 }
0x1569   :  { %7857 = vtanh.f32 %v10468_v12  ;;  %v10498_v20 = vadd.f32 %v4473_v52, %v8362_v2  ;;  %v10503_v19 = vadd.f32 %v4470_v16, %v8408_v32  ;;  %v10508_v7 = vadd.f32 %v4474_v29, %v8370_v9 }
0x156a   :  { %7859 = vtanh.f32 %v10472_v49  ;;  %v10513_v2 = vadd.f32 %v4455_v36, %v8423_v40  ;;  %v4476_v32 = vrot.slane %v10458_v31, 6  ;;  %v10518_v48 = vadd.f32 %v4475_v60, %v8402_v28 }
0x156b   :  { %7861 = vtanh.f32 %v10477_v45  ;;  %v4477_v40 = vrot.slane %v10458_v31, 7  ;;  %v6576_v27 = vmul.f32 -1.442695, %v10465_v0  ;;  %v6577_v8 = vmul.f32 -1.442695, %v10468_v12 }
0x156c   :  { %7863 = vtanh.f32 %v10482_v50  ;;  %v10526_v62 = vadd.f32 %v4476_v32, %v8416_v38  ;;  %v10539_v38 = vadd.f32 %v10458_v31, %v8430_v53  ;;  %v6575_v53 = vmul.f32 -1.442695, %v10461_v18 }
0x156d   :  { %7865 = vtanh.f32 %v10489_v55  ;;  %v10532_v10 = vadd.f32 %v4477_v40, %v8395_v22  ;;  %v6578_v36 = vmul.f32 -1.442695, %v10472_v49  ;;  %v6579_v44 = vmul.f32 -1.442695, %v10477_v45 }
0x156e   :  { %7867 = vtanh.f32 %v10494_v63  ;;  %v6580_v31 = vmul.f32 -1.442695, %v10482_v50  ;;  %v6583_v61 = vmul.f32 -1.442695, %v10494_v63  ;;  %v6584_v13 = vmul.f32 -1.442695, %v10489_v55 }
0x156f   :  { %7869 = vtanh.f32 %v10498_v20  ;;  %v6581_v39 = vmul.f32 -1.442695, %v10503_v19  ;;  %v6586_v51 = vmul.f32 -1.442695, %v10508_v7  ;;  %v6587_v55 = vmul.f32 -1.442695, %v10518_v48 }
0x1570   :  { %7871 = vtanh.f32 %v10503_v19  ;;  %v6589_v40 = vmul.f32 -1.442695, %v10532_v10 }
0x1571   :  { %v7854_v15 = vpop.eup %7853  ;;  %7873 = vtanh.f32 %v10508_v7 }
0x1572   :  { %4702 = vrot.lane.b32.xlu1 %v7854_v15, %s8084_s22  ;;  %v7856_v37 = vpop.eup %7855  ;;  %7875 = vtanh.f32 %v10513_v2  ;;  %v6585_v15 = vmul.f32 -1.442695, %v10498_v20 }
0x1573   :  { %v7858_v54 = vpop.eup %7857  ;;  %4704 = vrot.lane.b32.xlu0 %v7856_v37, %s8084_s22  ;;  %7877 = vtanh.f32 %v10518_v48  ;;  %v6582_v37 = vmul.f32 -1.442695, %v10513_v2 }
0x1574   :  { %v7860_v1 = vpop.eup %7859  ;;  %7879 = vtanh.f32 %v10526_v62 }
0x1575   :  { %v7862_v21 = vpop.eup %7861  ;;  %7881 = vtanh.f32 %v10532_v10 }
0x1576   :  { %4706 = vrot.lane.b32.xlu1 %v7858_v54, %s8084_s22  ;;  %v7864_v26 = vpop.eup %7863  ;;  %7883 = vtanh.f32 %v10539_v38 }
0x1577   :  { %v7866_v9 = vpop.eup %7865  ;;  %7885 = vpow2.f32 %v6575_v53 }
0x1578   :  { %v7868_v24 = vpop.eup %7867  ;;  %4720 = vrot.lane.b32.xlu0 %v7866_v9, %s8084_s22  ;;  %7887 = vpow2.f32 %v6576_v27 }
0x1579   :  { %v7870_v28 = vpop.eup %7869  ;;  %7889 = vpow2.f32 %v6577_v8 }
0x157a   :  { %4708 = vrot.lane.b32.xlu1 %v7860_v1, %s8084_s22  ;;  %v7872_v4 = vpop.eup %7871  ;;  %7891 = vpow2.f32 %v6578_v36 }
0x157b   :  { %v7874_v3 = vpop.eup %7873 }
0x157c   :  { %4722 = vrot.lane.b32.xlu0 %v7870_v28, %s8084_s22  ;;  %v7876_v56 = vpop.eup %7875 }
0x157d   :  { %v7878_v41 = vpop.eup %7877 }
0x157e   :  { %4710 = vrot.lane.b32.xlu1 %v7862_v21, %s8084_s22  ;;  %v7880_v22 = vpop.eup %7879  ;;  %v6588_v21 = vmul.f32 -1.442695, %v10526_v62 }
0x157f   :  { %v7882_v23 = vpop.eup %7881 }
0x1580   :  { %4724 = vrot.lane.b32.xlu0 %v7874_v3, %s8084_s22  ;;  %v7884_v14 = vpop.eup %7883 }
0x1581   :  { %v7886_v57 = vpop.eup %7885 }
0x1582   :  { %4712 = vrot.lane.b32.xlu1 %v7864_v26, %s8084_s22  ;;  %v4558_v58 = vadd.f32 1.0, %v7886_v57  ;;  %v7888_v17 = vpop.eup %7887 }
0x1583   :  { %v7890_v18 = vpop.eup %7889  ;;  %v4559_v0 = vadd.f32 1.0, %v7888_v17 }
0x1584   :  { %4726 = vrot.lane.b32.xlu0 %v7878_v41, %s8084_s22  ;;  %7893 = vrcp.f32 %v4558_v58  ;;  %v4560_v11 = vadd.f32 1.0, %v7890_v18  ;;  %v7892_v12 = vpop.eup %7891 }
0x1585   :  { %7895 = vpow2.f32 %v6579_v44  ;;  %v4561_v45 = vadd.f32 1.0, %v7892_v12 }
0x1586   :  { %4718 = vrot.lane.b32.xlu1 %v7868_v24, %s8084_s22  ;;  %7897 = vpow2.f32 %v6580_v31 }
0x1587   :  { %7899 = vpow2.f32 %v6583_v61 }
0x1588   :  { %4728 = vrot.lane.b32.xlu0 %v7880_v22, %s8084_s22  ;;  %7901 = vpow2.f32 %v6584_v13 }
0x1589   :  { %7903 = vrcp.f32 %v4559_v0 }
0x158a   :  { %4714 = vrot.lane.b32.xlu1 %v7872_v4, %s8084_s22  ;;  %7905 = vrcp.f32 %v4560_v11 }
0x158b   :  { %7907 = vpow2.f32 %v6585_v15 }
0x158c   :  { %4730 = vrot.lane.b32.xlu0 %v7882_v23, %s8084_s22  ;;  %7909 = vpow2.f32 %v6581_v39  ;;  %v6590_v23 = vmul.f32 -1.442695, %v10539_v38 }
0x158d   :  { %7911 = vrcp.f32 %v4561_v45 }
0x158e   :  { %4716 = vrot.lane.b32.xlu1 %v7876_v56, %s8084_s22  ;;  %v10558_v49 = vpop.eup %7893  ;;  %7913 = vpow2.f32 %v6586_v51 }
0x158f   :  { %v7896_v46 = vpop.eup %7895  ;;  %7915 = vpow2.f32 %v6582_v37 }
0x1590   :  { %4732 = vrot.lane.b32.xlu0 %v7884_v14, %s8084_s22  ;;  %v4562_v54 = vadd.f32 1.0, %v7896_v46  ;;  %v7898_v52 = vpop.eup %7897 }
0x1591   :  { %v7900_v16 = vpop.eup %7899  ;;  %v4563_v1 = vadd.f32 1.0, %v7898_v52 }
0x1592   :  { %v7902_v63 = vpop.eup %7901  ;;  %7917 = vrcp.f32 %v4562_v54  ;;  %v4566_v48 = vadd.f32 1.0, %v7900_v16 }
0x1593   :  { %v10565_v29 = vpop.eup %7903  ;;  %7919 = vpow2.f32 %v6587_v55  ;;  %v4567_v26 = vadd.f32 1.0, %v7902_v63 }
0x1594   :  { %v10567_v19 = vpop.eup %7905  ;;  %7921 = vrcp.f32 %v4563_v1 }
0x1595   :  { %v7908_v32 = vpop.eup %7907  ;;  %7923 = vpow2.f32 %v6588_v21 }
0x1596   :  { %v7910_v9 = vpop.eup %7909  ;;  %7925 = vrcp.f32 %v4567_v26  ;;  %v4568_v4 = vadd.f32 1.0, %v7908_v32 }
0x1597   :  { %v10574_v24 = vpop.eup %7911  ;;  %7927 = vrcp.f32 %v4566_v48  ;;  %v4564_v56 = vadd.f32 1.0, %v7910_v9 }
0x1598   :  { %v7914_v3 = vpop.eup %7913  ;;  %7929 = vpow2.f32 %v6589_v40 }
0x1599   :  { %v7916_v41 = vpop.eup %7915  ;;  %7931 = vrcp.f32 %v4568_v4  ;;  %v4569_v53 = vadd.f32 1.0, %v7914_v3  ;;  %v4638_v3 = vrot.slane %v10330_v47, 7 }
0x159a   :  { %v4565_v8 = vadd.f32 1.0, %v7916_v41  ;;  %7933 = vrcp.f32 %v4564_v56 }
0x159b   :  { %7935 = vpow2.f32 %v6590_v23  ;;  %v4670_v56 = vmul.f32 %v10558_v49, %v4638_v3  ;;  %v11476_v3 = vld [vmem:[#allocation10_spill] sm:$0xff] }
0x159c   :  { %v10579_v22 = vpop.eup %7917  ;;  %7937 = vrcp.f32 %v4569_v53 }
0x159d   :  { %v7920_v27 = vpop.eup %7919  ;;  %7939 = vrcp.f32 %v4565_v8 }
0x159e   :  { %v10584_v57 = vpop.eup %7921  ;;  %v4570_v44 = vadd.f32 1.0, %v7920_v27 }
0x159f   :  { %v7924_v31 = vpop.eup %7923 }
0x15a0   :  { %v10587_v38 = vpop.eup %7925  ;;  %7941 = vrcp.f32 %v4570_v44  ;;  %v4571_v0 = vadd.f32 1.0, %v7924_v31  ;;  %v4641_v44 = vrot.slane %v10347_v25, 7 }
0x15a1   :  { %v10590_v18 = vpop.eup %7927 }
0x15a2   :  { %v7930_v12 = vpop.eup %7929  ;;  %7943 = vrcp.f32 %v4571_v0 }
0x15a3   :  { %v10595_v15 = vpop.eup %7931 }
0x15e4   :  { %v4703_v42 = vpop.permute.xlu1 %4702 }
0x15e5   :  { %v4750_v50 = vmul.f32 %v10558_v49, %v4703_v42  ;;  %v4705_v20 = vpop.permute.xlu0 %4704  ;;  %v10598_v42 = vpop.eup %7933 }
0x15e6   :  { %v4751_v60 = vmul.f32 %v10565_v29, %v4705_v20  ;;  %v7936_v37 = vpop.eup %7935 }
0x15e7   :  { %4782 = vrot.lane.b32.xlu1 %v4750_v50, %s8085_s3  ;;  %v4572_v50 = vadd.f32 1.0, %v7930_v12  ;;  %v10603_v54 = vpop.eup %7937  ;;  %v4573_v1 = vadd.f32 1.0, %v7936_v37 }
0x15e8   :  { %v4707_v7 = vpop.permute.xlu1 %4706  ;;  %4784 = vrot.lane.b32.xlu0 %v4751_v60, %s8085_s3  ;;  %v10606_v55 = vpop.eup %7939 }
0x15e9   :  { %v4752_v2 = vmul.f32 %v10567_v19, %v4707_v7  ;;  %7945 = vrcp.f32 %v4572_v50  ;;  %v10611_v21 = vpop.eup %7941 }
0x15ea   :  { %v4721_v17 = vpop.permute.xlu0 %4720  ;;  %7947 = vrcp.f32 %v4573_v1 }
0x15eb   :  { %4786 = vrot.lane.b32.xlu1 %v4752_v2, %s8085_s3  ;;  %v4759_v61 = vmul.f32 %v10587_v38, %v4721_v17  ;;  %v10616_v2 = vpop.eup %7943  ;;  %v4673_v17 = vmul.f32 %v10574_v24, %v4641_v44 }
0x15ec   :  { %v4709_v62 = vpop.permute.xlu1 %4708 }
0x15ed   :  { %v4753_v28 = vmul.f32 %v10574_v24, %v4709_v62  ;;  %4800 = vrot.lane.b32.xlu0 %v4759_v61, %s8085_s3 }
0x15ee   :  { %v4723_v39 = vpop.permute.xlu0 %4722 }
0x15ef   :  { %4788 = vrot.lane.b32.xlu1 %v4753_v28, %s8085_s3  ;;  %v4760_v45 = vmul.f32 %v10595_v15, %v4723_v39 }
0x15f0   :  { %v4711_v14 = vpop.permute.xlu1 %4710 }
0x15f1   :  { %v4754_v10 = vmul.f32 %v10579_v22, %v4711_v14  ;;  %4802 = vrot.lane.b32.xlu0 %v4760_v45, %s8085_s3  ;;  %v4639_v14 = vrot.slane %v10337_v6, 7  ;;  %v4642_v6 = vrot.slane %v10352_v33, 7  ;;  %v4647_v45 = vrot.slane %v10367_v59, 7 }
0x15f2   :  { %v4725_v52 = vpop.permute.xlu0 %4724 }
0x15f3   :  { %4790 = vrot.lane.b32.xlu1 %v4754_v10, %s8085_s3  ;;  %v4761_v16 = vmul.f32 %v10603_v54, %v4725_v52  ;;  %v10620_v48 = vpop.eup %7945  ;;  %v4640_v10 = vrot.slane %v10340_v43, 7  ;;  %v4671_v53 = vmul.f32 %v10565_v29, %v4639_v14  ;;  %v4679_v37 = vmul.f32 %v10587_v38, %v4647_v45 }
0x15f4   :  { %v4713_v36 = vpop.permute.xlu1 %4712  ;;  %v10624_v62 = vpop.eup %7947 }
0x15f5   :  { %v4755_v58 = vmul.f32 %v10584_v57, %v4713_v36  ;;  %4804 = vrot.lane.b32.xlu0 %v4761_v16, %s8085_s3  ;;  %v4672_v8 = vmul.f32 %v10567_v19, %v4640_v10  ;;  %v4648_v16 = vrot.slane %v10378_v5, 7 }
0x15f6   :  { %v4727_v60 = vpop.permute.xlu0 %4726 }
0x15f7   :  { %4792 = vrot.lane.b32.xlu1 %v4755_v58, %s8085_s3  ;;  %v4762_v7 = vmul.f32 %v10611_v21, %v4727_v60 }
0x15f8   :  { %v4719_v13 = vpop.permute.xlu1 %4718 }
0x15f9   :  { %v4758_v11 = vmul.f32 %v10590_v18, %v4719_v13  ;;  %4806 = vrot.lane.b32.xlu0 %v4762_v7, %s8085_s3  ;;  %v4674_v13 = vmul.f32 %v10579_v22, %v4642_v6 }
0x15fa   :  { %v4729_v26 = vpop.permute.xlu0 %4728 }
0x15fb   :  { %4798 = vrot.lane.b32.xlu1 %v4758_v11, %s8085_s3  ;;  %v4763_v32 = vmul.f32 %v10616_v2, %v4729_v26  ;;  %v4643_v11 = vrot.slane %v10359_v35, 7 }
0x15fc   :  { %v4715_v46 = vpop.permute.xlu1 %4714 }
0x15fd   :  { %v4756_v51 = vmul.f32 %v10598_v42, %v4715_v46  ;;  %4808 = vrot.lane.b32.xlu0 %v4763_v32, %s8085_s3  ;;  %v4675_v25 = vmul.f32 %v10584_v57, %v4643_v11 }
0x15fe   :  { %v4731_v9 = vpop.permute.xlu0 %4730 }
0x15ff   :  { %4794 = vrot.lane.b32.xlu1 %v4756_v51, %s8085_s3  ;;  %v4764_v40 = vmul.f32 %v10620_v48, %v4731_v9  ;;  %v4646_v51 = vrot.slane %v10369_v30, 7  ;;  %v4680_v30 = vmul.f32 %v10595_v15, %v4648_v16  ;;  %v11475_v9 = vld [vmem:[#allocation12_spill] sm:$0xff] }
0x1600   :  { %v4717_v63 = vpop.permute.xlu1 %4716 }
0x1601   :  { %v4757_v20 = vmul.f32 %v10606_v55, %v4717_v63  ;;  %4810 = vrot.lane.b32.xlu0 %v4764_v40, %s8085_s3  ;;  %v4678_v35 = vmul.f32 %v10590_v18, %v4646_v51  ;;  %v4649_v40 = vrot.slane %v11475_v9, 7 }
0x1602   :  { %v4733_v28 = vpop.permute.xlu0 %4732 }
0x1603   :  { %4796 = vrot.lane.b32.xlu1 %v4757_v20, %s8085_s3  ;;  %v4765_v4 = vmul.f32 %v10624_v62, %v4733_v28  ;;  %v11474_v20 = vld [vmem:[#allocation7_spill] sm:$0xff] }
0x1604   :  { %v4644_v60 = vrot.slane %v11474_v20, 7 }
0x1605   :  { %4812 = vrot.lane.b32.xlu0 %v4765_v4, %s8085_s3 }
0x1606   :  { %v4676_v32 = vmul.f32 %v10598_v42, %v4644_v60 }
0x1659   :  { %v4783_v41 = vpop.permute.xlu1 %4782 }
0x165a   :  { %v4830_v23 = vadd.f32 %v4783_v41, %v4670_v56  ;;  %v4785_v27 = vpop.permute.xlu0 %4784  ;;  %v4645_v56 = vrot.slane %v11476_v3, 7 }
0x165b   :  { %v4831_v36 = vadd.f32 %v4785_v27, %v4671_v53  ;;  %v11477_v53 = vld [vmem:[#allocation8_spill] sm:$0xff] }
0x165c   :  { %7949 = vtanh.f32 %v4830_v23  ;;  %v4681_v23 = vmul.f32 %v10603_v54, %v4649_v40  ;;  %v4677_v10 = vmul.f32 %v10606_v55, %v4645_v56  ;;  %v4650_v27 = vrot.slane %v11477_v53, 7 }
0x165d   :  { %v4787_v58 = vpop.permute.xlu1 %4786  ;;  %7951 = vtanh.f32 %v4831_v36 }
0x165e   :  { %v4832_v31 = vadd.f32 %v4787_v58, %v4672_v8 }
0x165f   :  { %v4801_v52 = vpop.permute.xlu0 %4800 }
0x1660   :  { %7953 = vtanh.f32 %v4832_v31  ;;  %v4839_v63 = vadd.f32 %v4801_v52, %v4679_v37  ;;  %v4682_v31 = vmul.f32 %v10611_v21, %v4650_v27  ;;  %v11480_v37 = vld [vmem:[#allocation9_spill] sm:$0xff] }
0x1661   :  { %v4789_v61 = vpop.permute.xlu1 %4788  ;;  %v4653_v52 = vrot.slane %v11480_v37, 7 }
0x1662   :  { %v4833_v43 = vadd.f32 %v4789_v61, %v4673_v17  ;;  %v11478_v61 = vld [vmem:[#allocation11_spill] sm:$0xff] }
0x1663   :  { %v4803_v26 = vpop.permute.xlu0 %4802  ;;  %v4651_v6 = vrot.slane %v11478_v61, 7 }
0x1664   :  { %7955 = vtanh.f32 %v4833_v43  ;;  %v4840_v28 = vadd.f32 %v4803_v26, %v4680_v30 }
0x1665   :  { %v4791_v0 = vpop.permute.xlu1 %4790 }
0x1666   :  { %v7950_v47 = vpop.eup %7949  ;;  %v4834_v12 = vadd.f32 %v4791_v0, %v4674_v13  ;;  %v4683_v0 = vmul.f32 %v10616_v2, %v4651_v6 }
0x1667   :  { %4878 = vrot.lane.b32.xlu1 %v7950_v47, %s8084_s22  ;;  %v7952_v39 = vpop.eup %7951  ;;  %v4805_v14 = vpop.permute.xlu0 %4804 }
0x1668   :  { %7957 = vtanh.f32 %v4834_v12  ;;  %4880 = vrot.lane.b32.xlu0 %v7952_v39, %s8084_s22  ;;  %v4841_v8 = vadd.f32 %v4805_v14, %v4681_v23 }
0x1669   :  { %v4793_v46 = vpop.permute.xlu1 %4792 }
0x166a   :  { %v7954_v50 = vpop.eup %7953  ;;  %v4835_v33 = vadd.f32 %v4793_v46, %v4675_v25  ;;  %v11479_v25 = vld [vmem:[#allocation14_spill] sm:$0xff] }
0x166b   :  { %4882 = vrot.lane.b32.xlu1 %v7954_v50, %s8084_s22  ;;  %v4807_v47 = vpop.permute.xlu0 %4806  ;;  %v4652_v39 = vrot.slane %v11479_v25, 7 }
0x166c   :  { %7959 = vtanh.f32 %v4835_v33  ;;  %v4842_v43 = vadd.f32 %v4807_v47, %v4682_v31 }
0x166d   :  { %v4799_v1 = vpop.permute.xlu1 %4798  ;;  %7961 = vtanh.f32 %v4839_v63  ;;  %v4684_v50 = vmul.f32 %v10620_v48, %v4652_v39  ;;  %v4685_v63 = vmul.f32 %v10624_v62, %v4653_v52 }
0x166e   :  { %v7956_v59 = vpop.eup %7955  ;;  %v4838_v7 = vadd.f32 %v4799_v1, %v4678_v35 }
0x166f   :  { %4884 = vrot.lane.b32.xlu1 %v7956_v59, %s8084_s22  ;;  %v4809_v11 = vpop.permute.xlu0 %4808 }
0x1670   :  { %7963 = vtanh.f32 %v4838_v7  ;;  %v4843_v45 = vadd.f32 %v4809_v11, %v4683_v0 }
0x1671   :  { %v4795_v4 = vpop.permute.xlu1 %4794  ;;  %7965 = vtanh.f32 %v4840_v28 }
0x1672   :  { %v7958_v5 = vpop.eup %7957  ;;  %v4836_v41 = vadd.f32 %v4795_v4, %v4676_v32 }
0x1673   :  { %4886 = vrot.lane.b32.xlu1 %v7958_v5, %s8084_s22  ;;  %v4811_v51 = vpop.permute.xlu0 %4810 }
0x1674   :  { %7967 = vtanh.f32 %v4836_v41  ;;  %v4844_v35 = vadd.f32 %v4811_v51, %v4684_v50 }
0x1675   :  { %v4797_v36 = vpop.permute.xlu1 %4796  ;;  %7969 = vtanh.f32 %v4841_v8 }
0x1676   :  { %v7960_v58 = vpop.eup %7959  ;;  %v4837_v44 = vadd.f32 %v4797_v36, %v4677_v10 }
0x1677   :  { %4888 = vrot.lane.b32.xlu1 %v7960_v58, %s8084_s22  ;;  %v7962_v17 = vpop.eup %7961  ;;  %v4813_v1 = vpop.permute.xlu0 %4812 }
0x1678   :  { %7971 = vtanh.f32 %v4837_v44  ;;  %4896 = vrot.lane.b32.xlu0 %v7962_v17, %s8084_s22  ;;  %v4845_v20 = vadd.f32 %v4813_v1, %v4685_v63 }
0x1679   :  { %7973 = vtanh.f32 %v4842_v43 }
0x167a   :  { %v7964_v13 = vpop.eup %7963  ;;  %7975 = vtanh.f32 %v4843_v45 }
0x167b   :  { %4894 = vrot.lane.b32.xlu1 %v7964_v13, %s8084_s22  ;;  %v7966_v12 = vpop.eup %7965  ;;  %7977 = vtanh.f32 %v4844_v35 }
0x167c   :  { %4898 = vrot.lane.b32.xlu0 %v7966_v12, %s8084_s22  ;;  %7979 = vtanh.f32 %v4845_v20 }
0x167e   :  { %v7968_v46 = vpop.eup %7967 }
0x167f   :  { %4890 = vrot.lane.b32.xlu1 %v7968_v46, %s8084_s22  ;;  %v7970_v33 = vpop.eup %7969 }
0x1680   :  { %4900 = vrot.lane.b32.xlu0 %v7970_v33, %s8084_s22 }
0x1682   :  { %v7972_v16 = vpop.eup %7971 }
0x1683   :  { %4892 = vrot.lane.b32.xlu1 %v7972_v16, %s8084_s22  ;;  %v7974_v59 = vpop.eup %7973 }
0x1684   :  { %4902 = vrot.lane.b32.xlu0 %v7974_v59, %s8084_s22  ;;  %v7976_v60 = vpop.eup %7975 }
0x1685   :  { %v7978_v7 = vpop.eup %7977 }
0x1686   :  { %v7980_v30 = vpop.eup %7979 }
0x1688   :  { %4904 = vrot.lane.b32.xlu0 %v7976_v60, %s8084_s22 }
0x168c   :  { %4906 = vrot.lane.b32.xlu0 %v7978_v7, %s8084_s22 }
0x1690   :  { %4908 = vrot.lane.b32.xlu0 %v7980_v30, %s8084_s22  ;;  %s8094_s22 = smov 16  }
0x16d9   :  { %v4879_v26 = vpop.permute.xlu1 %4878 }
0x16da   :  { %v4881_v28 = vpop.permute.xlu0 %4880  ;;  %v4926_v23 = vmul.f32 %v10558_v49, %v4879_v26 }
0x16db   :  { %v4927_v14 = vmul.f32 %v10565_v29, %v4881_v28 }
0x16dc   :  { %v4942_v44 = vpack.c.bf16 %v4926_v23, %v4926_v23 }
0x16dd   :  { %v4883_v32 = vpop.permute.xlu1 %4882  ;;  %v4943_v17 = vpack.c.bf16 %v4927_v14, %v4927_v14 }
0x16de   :  { %v4928_v36 = vmul.f32 %v10567_v19, %v4883_v32  ;;  %v4974_v19 = vunpack.c.l.b16 %v4942_v44 }
0x16df   :  { %v4975_v25 = vunpack.c.l.b16 %v4943_v17 }
0x16e0   :  { %v4944_v43 = vpack.c.bf16 %v4928_v36, %v4928_v36  ;;  %v4990_v16 = vrot.slane %v4974_v19, 7 }
0x16e1   :  { %v4885_v9 = vpop.permute.xlu1 %4884  ;;  %v4991_v35 = vrot.slane %v4975_v25, 6 }
0x16e2   :  { %v4929_v47 = vmul.f32 %v10574_v24, %v4885_v9 }
0x16e3   :  { %v4992_v28 = vsel %vm763_vm3, %v4991_v35, %v4990_v16  ;;  %v5137_v16 = vld [vmem:[%s11282_s6] sm:$0xff] }
0x16e4   :  { %v4945_v11 = vpack.c.bf16 %v4929_v47, %v4929_v47 }
0x16e5   :  { %v4887_v40 = vpop.permute.xlu1 %4886 }
0x16e6   :  { %v4930_v49 = vmul.f32 %v10579_v22, %v4887_v40  ;;  %v4976_v22 = vunpack.c.l.b16 %v4944_v43  ;;  %v4977_v52 = vunpack.c.l.b16 %v4945_v11 }
0x16e8   :  { %v4946_v39 = vpack.c.bf16 %v4930_v49, %v4930_v49  ;;  %v4993_v30 = vrot.slane %v4976_v22, 5  ;;  %v4995_v9 = vrot.slane %v4977_v52, 4 }
0x16e9   :  { %v4889_v4 = vpop.permute.xlu1 %4888 }
0x16ea   :  { %v4897_v5 = vpop.permute.xlu0 %4896  ;;  %v4931_v29 = vmul.f32 %v10584_v57, %v4889_v4  ;;  %v4978_v63 = vunpack.c.l.b16 %v4946_v39 }
0x16eb   :  { %v4935_v3 = vmul.f32 %v10587_v38, %v4897_v5 }
0x16ec   :  { %v4947_v46 = vpack.c.bf16 %v4931_v29, %v4931_v29  ;;  %v4997_v4 = vrot.slane %v4978_v63, 3  ;;  %v5138_v63 = vld [vmem:[%s11282_s6 + $0x8] sm:$0xff] }
0x16ed   :  { %v4895_v56 = vpop.permute.xlu1 %4894  ;;  %v4951_v10 = vpack.c.bf16 %v4935_v3, %v4935_v3 }
0x16ee   :  { %v4934_v41 = vmul.f32 %v10590_v18, %v4895_v56  ;;  %v4899_v53 = vpop.permute.xlu0 %4898  ;;  %v4979_v1 = vunpack.c.l.b16 %v4947_v46 }
0x16ef   :  { %v4936_v8 = vmul.f32 %v10595_v15, %v4899_v53  ;;  %v4983_v61 = vunpack.c.l.b16 %v4951_v10  ;;  %v4994_v10 = vsel %vm766_vm4, %v4993_v30, %v4992_v28  ;;  %v5247_v28 = vld [vmem:[%s11285_s9] sm:$0xff] }
0x16f0   :  { %v4950_v27 = vpack.c.bf16 %v4934_v41, %v4934_v41  ;;  %v4999_v5 = vrot.slane %v4979_v1, 2  ;;  %v4996_v53 = vsel %vm769_vm5, %v4995_v9, %v4994_v10  ;;  %v5141_v1 = vpack.c.bf16 %v5138_v63, %v5137_v16  ;;  %v5140_v9 = vld [vmem:[%s11282_s6 + $0x18] sm:$0xff] }
0x16f1   :  { %v4952_v31 = vpack.c.bf16 %v4936_v8, %v4936_v8  ;;  %v4891_v38 = vpop.permute.xlu1 %4890  ;;  %v5005_v24 = vrot.slane %v4983_v61, 6  ;;  %v4998_v36 = vsel %vm772_vm6, %v4997_v4, %v4996_v53  ;;  %v5248_v4 = vld [vmem:[%s11285_s9 + $0x8] sm:$0xff]  ;;  %v5250_v10 = vld [vmem:[%s11285_s9 + $0x18] sm:$0xff]  ;;  %v6593_v53 = vld [vmem:[%s11283_s7] ss:$0 sm:$0xff]  ;;  %s8095_s7 = smov 48  }
0x16f2   :  { %v4982_v58 = vunpack.c.l.b16 %v4950_v27  ;;  %v4901_v18 = vpop.permute.xlu0 %4900  ;;  %v4932_v15 = vmul.f32 %v10598_v42, %v4891_v38 }
0x16f3   :  { %v4937_v6 = vmul.f32 %v10603_v54, %v4901_v18  ;;  %v4984_v0 = vunpack.c.l.b16 %v4952_v31  ;;  %v5000_v31 = vsel %vm775_vm7, %v4999_v5, %v4998_v36 }
0x16f4   :  { %v5004_v13 = vrot.slane %v4982_v58, 7  ;;  %v4948_v54 = vpack.c.bf16 %v4932_v15, %v4932_v15 }
0x16f5   :  { %v4953_v12 = vpack.c.bf16 %v4937_v6, %v4937_v6  ;;  %v4893_v33 = vpop.permute.xlu1 %4892  ;;  %v5007_v37 = vrot.slane %v4984_v0, 5 }
0x16f6   :  { %v4903_v45 = vpop.permute.xlu0 %4902  ;;  %v5006_v57 = vsel %vm763_vm3, %v5005_v24, %v5004_v13  ;;  %v4980_v32 = vunpack.c.l.b16 %v4948_v54 }
0x16f7   :  { %v4938_v50 = vmul.f32 %v10611_v21, %v4903_v45  ;;  %v4985_v51 = vunpack.c.l.b16 %v4953_v12  ;;  %v5008_v7 = vsel %vm766_vm4, %v5007_v37, %v5006_v57  ;;  %v4933_v21 = vmul.f32 %v10606_v55, %v4893_v33 }
0x16f8   :  { %v5001_v55 = vrot.slane %v4980_v32, 1  ;;  %v5139_v32 = vld [vmem:[%s11282_s6 + $0x10] sm:$0xff]  ;;  %s8090_s6 = smov 104  }
0x16f9   :  { %v4954_v42 = vpack.c.bf16 %v4938_v50, %v4938_v50  ;;  %v5009_v26 = vrot.slane %v4985_v51, 4  ;;  %v4949_v14 = vpack.c.bf16 %v4933_v21, %v4933_v21 }
0x16fa   :  { %v4905_v59 = vpop.permute.xlu0 %4904  ;;  %v5002_v61 = vsel %vm778_vm8, %v5001_v55, %v5000_v31 }
0x16fb   :  { %v4986_v20 = vunpack.c.l.b16 %v4954_v42  ;;  %v4939_v60 = vmul.f32 %v10616_v2, %v4905_v59  ;;  %v5010_v3 = vsel %vm769_vm5, %v5009_v26, %v5008_v7  ;;  %v4981_v17 = vunpack.c.l.b16 %v4949_v14  ;;  %v5249_v14 = vld [vmem:[%s11285_s9 + $0x10] sm:$0xff] }
0x16fc   :  { %v5252_v55 = vpack.c.bf16 %v5250_v10, %v5249_v14 }
0x16fd   :  { %v4955_v40 = vpack.c.bf16 %v4939_v60, %v4939_v60  ;;  %v5011_v41 = vrot.slane %v4986_v20, 3  ;;  %v5003_v43 = vsel %vm781_vm9, %v4981_v17, %v5002_v61  ;;  %v5199_v17 = vld [vmem:[%s11284_s8] sm:$0xf]  ;;  %s8096_s8 = smov 24  }
0x16fe   :  { %v4907_v56 = vpop.permute.xlu0 %4906 }
0x16ff   :  { %v4987_v23 = vunpack.c.l.b16 %v4955_v40  ;;  %v4940_v2 = vmul.f32 %v10620_v48, %v4907_v56  ;;  %v5012_v8 = vsel %vm772_vm6, %v5011_v41, %v5010_v3  ;;  %v5142_v40 = vpack.c.bf16 %v5140_v9, %v5139_v32 }
0x1700   :  { %v5251_v41 = vpack.c.bf16 %v5248_v4, %v5247_v28 }
0x1701   :  { %v4956_v27 = vpack.c.bf16 %v4940_v2, %v4940_v2  ;;  %v5013_v58 = vrot.slane %v4987_v23, 2 }
0x1702   :  { %v4909_v44 = vpop.permute.xlu0 %4908 }
0x1703   :  { %v4988_v47 = vunpack.c.l.b16 %v4956_v27  ;;  %v4941_v38 = vmul.f32 %v10624_v62, %v4909_v44  ;;  %v5014_v48 = vsel %vm775_vm7, %v5013_v58, %v5012_v8 }
0x1705   :  { %v5015_v18 = vrot.slane %v4988_v47, 1  ;;  %v4957_v49 = vpack.c.bf16 %v4941_v38, %v4941_v38 }
0x1707   :  { %v5016_v29 = vsel %vm778_vm8, %v5015_v18, %v5014_v48  ;;  %v4989_v6 = vunpack.c.l.b16 %v4957_v49  ;;  %v5200_v48 = vpack.c.bf16 %v5199_v17, %v5199_v17 }
0x1709   :  { %v5017_v13 = vsel %vm781_vm9, %v4989_v6, %v5016_v29  ;;  %v8086_v6 = vmov 1  }
0x170a   :  { %v5018_v15 = vpack.c.b16 %v5017_v13, %v5003_v43 }
0x170c   :  { %5019 = vrot.lane.b32.xlu1 %v5018_v15, %s8085_s3 }
0x177e   :  { %v5020_v19 = vpop.permute.xlu1 %5019 }
0x177f   :  { %6781 = vmatpush3.bf16.msra.mxu1 %v5020_v19  ;;  %v5022_v62 = vsel %vm11358_vm10, %v5020_v19, 0 }
0x1780   :  { %6775 = vmatpush3.bf16.xpose.msra.mxu0 %v5022_v62  ;;  %6794 = vmatprep.subr.bf16.mxu1 %v11379_v34  ;;  %v8087_v62 = vmov 2  }
0x1781   :  { %6786 = vmatprep.subr.bf16.mxu0 %v11379_v34 }
0x1787   :  { %6777 = vmatmul.mubr.msk.bf16.vlgmr.msra.gmra.mrb[24].mxu0 %vm11358_vm10, %v5020_v19 }
0x1788   :  { %6790 = vmatprep.mubr.msk.bf16.mxu0 %vm11359_vm2, %v11379_v34  ;;  %6787 = vmatpush3.bf16.msra.mxu0 %v5141_v1  ;;  %v10810_v1 = vld [vmem:[%s11481_s30 + $0x8] sm:$0xff] }
0x1789   :  { %6788 = vmatprep.subr.bf16.mxu0 %v11379_v34 }
0x178c   :  { %6789 = vmatpush3.bf16.msra.mxu0 %v5142_v40 }
0x178d   :  { %6800 = vmatprep.subr.bf16.mxu0 %v11379_v34 }
0x185a   :  { %v5058_v0 = vpop.f32.mrb[24].mxu0 }
0x185b   :  { %v5065_v11 = vmul.f32 0.17677669, %v5058_v0  ;;  %v6778_v12 = vpop.f32.mrb[25].mxu0  ;;  %v8088_v0 = vmov 3  }
0x185c   :  { %v5061_v25 = vpop.f32.mrb[26].mxu0 }
0x185d   :  { %v5066_v24 = vmul.f32 0.17677669, %v5061_v25  ;;  %v6779_v39 = vpop.f32.mrb[27].mxu0  ;;  %v5068_v45 = vsel %vm5067_vm11, %v5065_v11, -inf }
0x185e   :  { %5069 = vmax.xlane.f32.xlu0 %v5068_v45 }
0x185f   :  { %v5071_v46 = vsel %vm5067_vm11, %v5066_v24, -inf }
0x1860   :  { %5072 = vmax.xlane.f32.xlu1 %v5071_v46 }
0x18eb   :  { %v5070_v50 = vpop.xlane.xlu0 %5069 }
0x18ec   :  { %v5074_v22 = vsub.f32 %v5065_v11, %v5070_v50  ;;  %v5294_v11 = vlaneseq }
0x18ed   :  { %v5073_v51 = vpop.xlane.xlu1 %5072 }
0x18ee   :  { %v5076_v57 = vmul.f32 1.442695, %v5074_v22  ;;  %v5075_v54 = vsub.f32 %v5066_v24, %v5073_v51  ;;  %v10778_v12 = vshrl.u32 %v5294_v11, 7  ;;  %v10788_v22 = vld [vmem:[%s11481_s30] sm:$0xff] }
0x18ef   :  { %v10793_v51 = vld [vmem:[%s11482_s0] sm:$0xff] }
0x18f0   :  { %7981 = vpow2.f32 %v5076_v57  ;;  %v5078_v33 = vmul.f32 1.442695, %v5075_v54  ;;  %v5296_v25 = vsub.s32 0, %v10778_v12  ;;  %v5480_v45 = vsub.s32 1, %v10778_v12 }
0x18f2   :  { %7983 = vpow2.f32 %v5078_v33 }
0x18fa   :  { %v7982_v37 = vpop.eup %7981 }
0x18fb   :  { %v5080_v52 = vsel %vm5067_vm11, %v7982_v37, 0.0 }
0x18fc   :  { %v7984_v42 = vpop.eup %7983  ;;  %5081 = vadd.xlane.f32.xlu0 %v5080_v52  ;;  %v10799_v52 = vld [vmem:[%s11482_s0 + $0x8] sm:$0xff] }
0x18fd   :  { %v5083_v35 = vsel %vm5067_vm11, %v7984_v42, 0.0 }
0x1900   :  { %5084 = vadd.xlane.f32.xlu0 %v5083_v35 }
0x1989   :  { %v5082_v59 = vpop.xlane.xlu0 %5081 }
0x198a   :  { %7985 = vrcp.f32 %v5082_v59 }
0x198d   :  { %v5085_v20 = vpop.xlane.xlu0 %5084 }
0x198e   :  { %7987 = vrcp.f32 %v5085_v20 }
0x1994   :  { %v7986_v60 = vpop.eup %7985 }
0x1995   :  { %v5088_v21 = vmul.f32 %v7986_v60, %v7982_v37 }
0x1998   :  { %v7988_v7 = vpop.eup %7987 }
0x1999   :  { %v5089_v30 = vmul.f32 %v7988_v7, %v7984_v42 }
0x199b   :  { %v5090_v26 = vpack.c.bf16 %v5089_v30, %v5088_v21 }
0x199d   :  { %6783 = vmatmul.mubr.msk.bf16.vlgmr.msra.gmra.mrb[24].mxu1 %vm5067_vm11, %v5090_v26  ;;  %v5666_v26 = vsub.s32 2, %v10778_v12 }
0x199e   :  { %6796 = vmatprep.mubr.msk.bf16.mxu1 %vm11359_vm2, %v11379_v34 }
0x1a70   :  { %v5129_v5 = vpop.f32.mrb[24].mxu1 }
0x1a71   :  { %v6784_v3 = vpop.f32.mrb[25].mxu1 }
0x1a72   :  { %v5132_v56 = vpop.f32.mrb[26].mxu1 }
0x1a73   :  { %v10740_v23 = vpack.c.bf16 %v5132_v56, %v5129_v5  ;;  %v6785_v2 = vpop.f32.mrb[27].mxu1 }
0x1a75   :  { %6791 = vmatmul.mubr.msk.bf16.vlgmr.msra.gmra.mrb[28].mxu0 %vm11358_vm10, %v10740_v23 }
0x1a76   :  { %6801 = vmatpush3.bf16.msra.mxu0 %v5251_v41  ;;  %6804 = vmatprep.mubr.msk.bf16.mxu0 %vm11359_vm2, %v11379_v34 }
0x1a77   :  { %6802 = vmatprep.subr.bf16.mxu0 %v11379_v34 }
0x1a7a   :  { %6803 = vmatpush3.bf16.msra.mxu0 %v5252_v55 }
0x1a7b   :  { %6814 = vmatprep.subr.bf16.mxu0 %v11379_v34 }
0x1b48   :  { %v5187_v27 = vpop.f32.mrb[28].mxu0 }
0x1b49   :  { %v6792_v8 = vpop.f32.mrb[29].mxu0  ;;  %v5188_v58 = vadd.f32 %v6593_v53, %v5187_v27 }
0x1b4a   :  { %v5190_v36 = vpop.f32.mrb[30].mxu0 }
0x1b4b   :  { %v5191_v44 = vadd.f32 %v6593_v53, %v5190_v36  ;;  %v6793_v31 = vpop.f32.mrb[31].mxu0 }
0x1b4d   :  { %v10757_v47 = vpack.c.bf16 %v5191_v44, %v5188_v58 }
0x1b4f   :  { %6805 = vmatmul.mubr.msk.bf16.vlgmr.msra.gmra.mrb[32].mxu0 %vm11358_vm10, %v10757_v47  ;;  %v5205_v38 = vsel %vm11358_vm10, %v10757_v47, 0 }
0x1b50   :  { %6815 = vmatpush3.bf16.msra.mxu0 %v10757_v47  ;;  %6795 = vmatpush3.bf16.xpose.msra.mxu1 %v5205_v38 }
0x1b51   :  { %6808 = vmatprep.subr.bf16.mxu1 %v11379_v34  ;;  %6816 = vmatprep.mubr.msk.bf16.mxu0 %vm11359_vm2, %v11379_v34 }
0x1b52   :  { %6826 = vmatprep.subr.bf16.mxu0 %v11379_v34 }
0x1b57   :  { %6797 = vmatmul.mubr.msk.bf16.vlgmr.msra.gmra.mrb[28].mxu1 %vm11358_vm10, %v5200_v48 }
0x1b58   :  { %6809 = vmatpush3.bf16.msra.mxu1 %v10757_v47  ;;  %6810 = vmatprep.mubr.msk.bf16.mxu1 %vm11359_vm2, %v11379_v34 }
0x1b59   :  { %6820 = vmatprep.subr.bf16.mxu1 %v11379_v34 }
0x1c22   :  { %v5287_v61 = vpop.f32.mrb[32].mxu0 }
0x1c23   :  { %5300 = vperm.xlu1 %6917, %v5287_v61   ;;  %v6806_v18 = vpop.f32.mrb[33].mxu0 }
0x1c24   :  { %v5290_v49 = vpop.f32.mrb[34].mxu0 }
0x1c25   :  { %5305 = vperm.xlu0 %6918, %v5290_v49   ;;  %v6807_v29 = vpop.f32.mrb[35].mxu0 }
0x1c27   :  { %6919 = vset.pattern.permute.xlu1 %v8086_v6 }
0x1c28   :  { %5483 = vperm.xlu1 %6919, %v5287_v61  }
0x1c2a   :  { %v10776_v43 = vpop.f32.mrb[28].mxu1 }
0x1c2b   :  { %v6798_v13 = vpop.f32.mrb[29].mxu1  ;;  %v5297_v24 = vrot.slane %v10776_v43, %v5296_v25  ;;  %v5481_v33 = vrot.slane %v10776_v43, %v5480_v45  ;;  %v5667_v14 = vrot.slane %v10776_v43, %v5666_v26 }
0x1c2c   :  { %5487 = vperm.xlu1 %6919, %v5290_v49   ;;  %v5244_v15 = vpop.f32.mrb[30].mxu1 }
0x1c2d   :  { %v6799_v19 = vpop.f32.mrb[31].mxu1 }
0x1c30   :  { %6920 = vset.pattern.permute.xlu1 %v8087_v62 }
0x1c31   :  { %5669 = vperm.xlu1 %6920, %v5287_v61  }
0x1c35   :  { %5673 = vperm.xlu1 %6920, %v5290_v49  }
0x1c39   :  { %6921 = vset.pattern.permute.xlu1 %v8088_v0 }
0x1c3a   :  { %5854 = vperm.xlu1 %6921, %v5287_v61   ;;  %v5851_v61 = vsub.s32 3, %v10778_v12 }
0x1c3c   :  { %v5852_v11 = vrot.slane %v10776_v43, %v5851_v61 }
0x1c3e   :  { %5858 = vperm.xlu1 %6921, %v5290_v49  }
0x1ca2   :  { %v5301_v39 = vpop.permute.xlu1 %5300 }
0x1ca3   :  { %v5308_v46 = vadd.f32 %v5301_v39, %v5297_v24 }
0x1ca4   :  { %v5306_v50 = vpop.permute.xlu0 %5305 }
0x1ca5   :  { %vm5310_vm12 = vcmp.ge.f32.partialorder %v5308_v46, 0.0  ;;  %v5312_v57 = vmul.f32 0.2, %v5308_v46  ;;  %v5309_v54 = vadd.f32 %v5306_v50, %v5297_v24 }
0x1ca7   :  { %v5314_v37 = vsel %vm5310_vm12, %v5308_v46, %v5312_v57  ;;  %vm5311_vm13 = vcmp.ge.f32.partialorder %v5309_v54, 0.0  ;;  %v5313_v42 = vmul.f32 0.2, %v5309_v54  ;;  %v5484_v35 = vpop.permute.xlu1 %5483 }
0x1ca8   :  { %v10802_v16 = vmul.f32 %v5314_v37, %v10788_v22  ;;  %v10805_v63 = vmul.f32 %v5314_v37, %v10793_v51  ;;  %v5490_v59 = vadd.f32 %v5484_v35, %v5481_v33 }
0x1ca9   :  { %v5315_v20 = vsel %vm5311_vm13, %v5309_v54, %v5313_v42 }
0x1caa   :  { %v10813_v60 = vmul.f32 %v5315_v20, %v10799_v52  ;;  %vm5492_vm14 = vcmp.ge.f32.partialorder %v5490_v59, 0.0  ;;  %v5494_v7 = vmul.f32 0.2, %v5490_v59  ;;  %v10816_v21 = vmul.f32 %v5315_v20, %v10810_v1 }
0x1cab   :  { %v5488_v30 = vpop.permute.xlu1 %5487  ;;  %vm5354_vm15 = vcmp.ne.f32.partialorder %v10805_v63, 0.0  ;;  %vm5318_vm0 = vcmp.ne.f32.partialorder %v10802_v16, 0.0 }
0x1cac   :  { %v5496_v32 = vsel %vm5492_vm14, %v5490_v59, %v5494_v7  ;;  %v5491_v9 = vadd.f32 %v5488_v30, %v5481_v33  ;;  %v5356_v40 = vsel %vm5354_vm15, %v10805_v63, -1e+30  ;;  %vm5355_vm1 = vcmp.ne.f32.partialorder %v10813_v60, 0.0 }
0x1cad   :  { %v10826_v28 = vmul.f32 %v5496_v32, %v10788_v22  ;;  %v10829_v4 = vmul.f32 %v5496_v32, %v10793_v51  ;;  %v5358_v5 = vsel %vm5067_vm11, %v5356_v40, -inf  ;;  %v5357_v3 = vsel %vm5355_vm1, %v10813_v60, -1e+30 }
0x1cae   :  { %vm5493_vm3 = vcmp.ge.f32.partialorder %v5491_v9, 0.0  ;;  %v5495_v56 = vmul.f32 0.2, %v5491_v9  ;;  %5359 = vmax.xlane.f32.xlu1 %v5358_v5  ;;  %v5361_v41 = vsel %vm5067_vm11, %v5357_v3, -inf  ;;  %v5320_v2 = vsel %vm5318_vm0, %v10802_v16, -1e+30 }
0x1caf   :  { %5362 = vmax.xlane.f32.xlu0 %v5361_v41  ;;  %vm5319_vm4 = vcmp.ne.f32.partialorder %v10816_v21, 0.0  ;;  %vm5536_vm5 = vcmp.ne.f32.partialorder %v10829_v4, 0.0  ;;  %v5322_v58 = vsel %vm5067_vm11, %v5320_v2, -inf  ;;  %vm5500_vm6 = vcmp.ne.f32.partialorder %v10826_v28, 0.0 }
0x1cb0   :  { %v5497_v10 = vsel %vm5493_vm3, %v5491_v9, %v5495_v56  ;;  %v5670_v55 = vpop.permute.xlu1 %5669  ;;  %v5321_v53 = vsel %vm5319_vm4, %v10816_v21, -1e+30  ;;  %v5538_v31 = vsel %vm5536_vm5, %v10829_v4, -1e+30  ;;  %v5502_v15 = vsel %vm5500_vm6, %v10826_v28, -1e+30 }
0x1cb1   :  { %v10846_v27 = vmul.f32 %v5497_v10, %v10810_v1  ;;  %v10849_v8 = vmul.f32 %v5497_v10, %v10799_v52  ;;  %v5676_v36 = vadd.f32 %v5670_v55, %v5667_v14  ;;  %v5325_v44 = vsel %vm5067_vm11, %v5321_v53, -inf }
0x1cb2   :  { %5323 = vmax.xlane.f32.xlu1 %v5322_v58  ;;  %v5540_v29 = vsel %vm5067_vm11, %v5538_v31, -inf  ;;  %v5504_v45 = vsel %vm5067_vm11, %v5502_v15, -inf }
0x1cb3   :  { %vm5678_vm7 = vcmp.ge.f32.partialorder %v5676_v36, 0.0  ;;  %v5680_v38 = vmul.f32 0.2, %v5676_v36  ;;  %5326 = vmax.xlane.f32.xlu0 %v5325_v44  ;;  %vm5537_vm8 = vcmp.ne.f32.partialorder %v10849_v8, 0.0  ;;  %vm5501_vm9 = vcmp.ne.f32.partialorder %v10846_v27, 0.0 }
0x1cb4   :  { %v5674_v17 = vpop.permute.xlu1 %5673  ;;  %v5539_v48 = vsel %vm5537_vm8, %v10849_v8, -1e+30  ;;  %v5503_v19 = vsel %vm5501_vm9, %v10846_v27, -1e+30 }
0x1cb5   :  { %v5682_v18 = vsel %vm5678_vm7, %v5676_v36, %v5680_v38  ;;  %v5677_v49 = vadd.f32 %v5674_v17, %v5667_v14  ;;  %v5543_v6 = vsel %vm5067_vm11, %v5539_v48, -inf  ;;  %v5507_v46 = vsel %vm5067_vm11, %v5503_v19, -inf }
0x1cb6   :  { %v10866_v13 = vmul.f32 %v5682_v18, %v10793_v51  ;;  %5541 = vmax.xlane.f32.xlu1 %v5540_v29  ;;  %v10875_v62 = vmul.f32 %v5682_v18, %v10788_v22 }
0x1cb7   :  { %vm5679_vm12 = vcmp.ge.f32.partialorder %v5677_v49, 0.0  ;;  %v5681_v0 = vmul.f32 0.2, %v5677_v49  ;;  %5544 = vmax.xlane.f32.xlu0 %v5543_v6 }
0x1cb8   :  { %vm5722_vm13 = vcmp.ne.f32.partialorder %v10866_v13, 0.0  ;;  %vm5686_vm14 = vcmp.ne.f32.partialorder %v10875_v62, 0.0 }
0x1cb9   :  { %v5683_v24 = vsel %vm5679_vm12, %v5677_v49, %v5681_v0  ;;  %v5855_v39 = vpop.permute.xlu1 %5854  ;;  %v5724_v43 = vsel %vm5722_vm13, %v10866_v13, -1e+30  ;;  %v5688_v30 = vsel %vm5686_vm14, %v10875_v62, -1e+30 }
0x1cba   :  { %v10882_v50 = vmul.f32 %v5683_v24, %v10810_v1  ;;  %v10885_v57 = vmul.f32 %v5683_v24, %v10799_v52  ;;  %v5861_v54 = vadd.f32 %v5855_v39, %v5852_v11  ;;  %5505 = vmax.xlane.f32.xlu1 %v5504_v45  ;;  %v5726_v42 = vsel %vm5067_vm11, %v5724_v43, -inf }
0x1cbb   :  { %5508 = vmax.xlane.f32.xlu0 %v5507_v46  ;;  %v5690_v5 = vsel %vm5067_vm11, %v5688_v30, -inf }
0x1cbc   :  { %vm5863_vm3 = vcmp.ge.f32.partialorder %v5861_v54, 0.0  ;;  %v5865_v33 = vmul.f32 0.2, %v5861_v54  ;;  %vm5723_vm7 = vcmp.ne.f32.partialorder %v10885_v57, 0.0  ;;  %vm11361_vm12 = vcmp.ne.f32.partialorder %v10882_v50, 0.0 }
0x1cbd   :  { %v5859_v37 = vpop.permute.xlu1 %5858  ;;  %v5725_v35 = vsel %vm5723_vm7, %v10885_v57, -1e+30  ;;  %v5689_v9 = vsel %vm11361_vm12, %v10882_v50, -1e+30 }
0x1cbe   :  { %v5867_v59 = vsel %vm5863_vm3, %v5861_v54, %v5865_v33  ;;  %v5862_v20 = vadd.f32 %v5859_v37, %v5852_v11  ;;  %5727 = vmax.xlane.f32.xlu1 %v5726_v42  ;;  %v5729_v7 = vsel %vm5067_vm11, %v5725_v35, -inf  ;;  %v5693_v56 = vsel %vm5067_vm11, %v5689_v9, -inf }
0x1cbf   :  { %v10902_v26 = vmul.f32 %v5867_v59, %v10788_v22  ;;  %v10905_v32 = vmul.f32 %v5867_v59, %v10793_v51  ;;  %5730 = vmax.xlane.f32.xlu0 %v5729_v7 }
0x1cc0   :  { %vm5864_vm3 = vcmp.ge.f32.partialorder %v5862_v20, 0.0  ;;  %v5866_v40 = vmul.f32 0.2, %v5862_v20 }
0x1cc1   :  { %vm5907_vm10 = vcmp.ne.f32.partialorder %v10905_v32, 0.0  ;;  %vm5871_vm2 = vcmp.ne.f32.partialorder %v10902_v26, 0.0 }
0x1cc2   :  { %v5868_v3 = vsel %vm5864_vm3, %v5862_v20, %v5866_v40  ;;  %5691 = vmax.xlane.f32.xlu1 %v5690_v5  ;;  %v5909_v22 = vsel %vm5907_vm10, %v10905_v32, -1e+30 }
0x1cc3   :  { %v10917_v51 = vmul.f32 %v5868_v3, %v10810_v1  ;;  %v10920_v41 = vmul.f32 %v5868_v3, %v10799_v52  ;;  %5694 = vmax.xlane.f32.xlu0 %v5693_v56  ;;  %v5911_v2 = vsel %vm5067_vm11, %v5909_v22, -inf  ;;  %v5873_v1 = vsel %vm5871_vm2, %v10902_v26, -1e+30 }
0x1cc4   :  { %v5875_v55 = vsel %vm5067_vm11, %v5873_v1, -inf }
0x1cc5   :  { %vm5908_vm3 = vcmp.ne.f32.partialorder %v10920_v41, 0.0  ;;  %vm5872_vm12 = vcmp.ne.f32.partialorder %v10917_v51, 0.0 }
0x1cc6   :  { %5912 = vmax.xlane.f32.xlu1 %v5911_v2  ;;  %v5910_v14 = vsel %vm5908_vm3, %v10920_v41, -1e+30  ;;  %v5874_v10 = vsel %vm5872_vm12, %v10917_v51, -1e+30 }
0x1cc7   :  { %v5914_v52 = vsel %vm5067_vm11, %v5910_v14, -inf  ;;  %v5878_v53 = vsel %vm5067_vm11, %v5874_v10, -inf }
0x1cc8   :  { %5915 = vmax.xlane.f32.xlu0 %v5914_v52 }
0x1cca   :  { %5876 = vmax.xlane.f32.xlu1 %v5875_v55 }
0x1ccc   :  { %5879 = vmax.xlane.f32.xlu0 %v5878_v53 }
0x1cdb   :  { %5572 = vrot.lane.b32.xlu1 %v10757_v47, %s8089_s25 }
0x1d3b   :  { %v5360_v36 = vpop.xlane.xlu1 %5359 }
0x1d3c   :  { %v5364_v58 = vsub.f32 %v10805_v63, %v5360_v36  ;;  %v5363_v44 = vpop.xlane.xlu0 %5362 }
0x1d3d   :  { %v5365_v31 = vsub.f32 %v10813_v60, %v5363_v44 }
0x1d3e   :  { %v5366_v38 = vsel %vm5354_vm15, %v5364_v58, 0.0 }
0x1d3f   :  { %v5368_v17 = vmul.f32 1.442695, %v5366_v38  ;;  %v5367_v48 = vsel %vm5355_vm1, %v5365_v31, 0.0  ;;  %v5324_v61 = vpop.xlane.xlu1 %5323 }
0x1d40   :  { %v5370_v18 = vmul.f32 1.442695, %v5367_v48  ;;  %v5328_v49 = vsub.f32 %v10802_v16, %v5324_v61  ;;  %v5327_v29 = vpop.xlane.xlu0 %5326 }
0x1d41   :  { %7989 = vpow2.f32 %v5368_v17  ;;  %v5329_v6 = vsub.f32 %v10816_v21, %v5327_v29 }
0x1d42   :  { %7991 = vpow2.f32 %v5370_v18  ;;  %v5330_v15 = vsel %vm5318_vm0, %v5328_v49, 0.0 }
0x1d43   :  { %v5332_v19 = vmul.f32 1.442695, %v5330_v15  ;;  %v5331_v0 = vsel %vm5319_vm4, %v5329_v6, 0.0  ;;  %v5542_v11 = vpop.xlane.xlu1 %5541 }
0x1d44   :  { %v5334_v24 = vmul.f32 1.442695, %v5331_v0  ;;  %v5546_v39 = vsub.f32 %v10829_v4, %v5542_v11  ;;  %v5545_v45 = vpop.xlane.xlu0 %5544 }
0x1d45   :  { %7993 = vpow2.f32 %v5332_v19  ;;  %v5547_v46 = vsub.f32 %v10849_v8, %v5545_v45 }
0x1d46   :  { %7995 = vpow2.f32 %v5334_v24  ;;  %v5548_v54 = vsel %vm5536_vm5, %v5546_v39, 0.0 }
0x1d47   :  { %v5550_v43 = vmul.f32 1.442695, %v5548_v54  ;;  %v5549_v33 = vsel %vm5537_vm8, %v5547_v46, 0.0  ;;  %v5506_v37 = vpop.xlane.xlu1 %5505 }
0x1d48   :  { %v5552_v42 = vmul.f32 1.442695, %v5549_v33  ;;  %v5510_v35 = vsub.f32 %v10826_v28, %v5506_v37  ;;  %v5509_v59 = vpop.xlane.xlu0 %5508 }
0x1d49   :  { %7997 = vpow2.f32 %v5550_v43  ;;  %v5511_v20 = vsub.f32 %v10846_v27, %v5509_v59 }
0x1d4a   :  { %7999 = vpow2.f32 %v5552_v42  ;;  %v5512_v7 = vsel %vm5500_vm6, %v5510_v35, 0.0 }
0x1d4b   :  { %v7990_v30 = vpop.eup %7989  ;;  %v5514_v9 = vmul.f32 1.442695, %v5512_v7  ;;  %v5513_v40 = vsel %vm5501_vm9, %v5511_v20, 0.0  ;;  %v5728_v5 = vpop.xlane.xlu1 %5727 }
0x1d4c   :  { %v7992_v3 = vpop.eup %7991  ;;  %v5516_v56 = vmul.f32 1.442695, %v5513_v40  ;;  %v5732_v22 = vsub.f32 %v10866_v13, %v5728_v5  ;;  %v5731_v2 = vpop.xlane.xlu0 %5730  ;;  %v10966_v14 = vsel %vm5354_vm15, %v7990_v30, 0.0  ;;  %vm11483_vm15 = vcmp.ne.f32.partialorder %v10882_v50, 0.0 }
0x1d4d   :  { %8001 = vpow2.f32 %v5514_v9  ;;  %v5733_v1 = vsub.f32 %v10885_v57, %v5731_v2  ;;  %v5374_v52 = vsel %vm5067_vm11, %v10966_v14, 0.0  ;;  %v10973_v10 = vsel %vm5355_vm1, %v7992_v3, 0.0 }
0x1d4e   :  { %8003 = vpow2.f32 %v5516_v56  ;;  %v5734_v55 = vsel %vm5722_vm13, %v5732_v22, 0.0  ;;  %5375 = vadd.xlane.f32.xlu1 %v5374_v52  ;;  %v5377_v63 = vsel %vm5067_vm11, %v10973_v10, 0.0 }
0x1d4f   :  { %v7994_v53 = vpop.eup %7993  ;;  %v5736_v36 = vmul.f32 1.442695, %v5734_v55  ;;  %v5735_v58 = vsel %vm5723_vm7, %v5733_v1, 0.0  ;;  %v5692_v44 = vpop.xlane.xlu1 %5691  ;;  %5378 = vadd.xlane.f32.xlu0 %v5377_v63 }
0x1d50   :  { %v7996_v31 = vpop.eup %7995  ;;  %v5738_v38 = vmul.f32 1.442695, %v5735_v58  ;;  %v5696_v60 = vsub.f32 %v10875_v62, %v5692_v44  ;;  %v5695_v17 = vpop.xlane.xlu0 %5694  ;;  %v10984_v48 = vsel %vm5318_vm0, %v7994_v53, 0.0  ;;  %vm11484_vm0 = vmmov %vm11483_vm15 }
0x1d51   :  { %8005 = vpow2.f32 %v5736_v36  ;;  %v5697_v61 = vsub.f32 %v10882_v50, %v5695_v17  ;;  %v5338_v18 = vsel %vm5067_vm11, %v10984_v48, 0.0  ;;  %v10991_v49 = vsel %vm5319_vm4, %v7996_v31, 0.0 }
0x1d52   :  { %8007 = vpow2.f32 %v5738_v38  ;;  %v5698_v29 = vsel %vm5686_vm14, %v5696_v60, 0.0  ;;  %5339 = vadd.xlane.f32.xlu1 %v5338_v18  ;;  %v5341_v16 = vsel %vm5067_vm11, %v10991_v49, 0.0 }
0x1d53   :  { %v7998_v6 = vpop.eup %7997  ;;  %v5700_v15 = vmul.f32 1.442695, %v5698_v29  ;;  %v5699_v19 = vsel %vm11483_vm15, %v5697_v61, 0.0  ;;  %v5913_v0 = vpop.xlane.xlu1 %5912  ;;  %5342 = vadd.xlane.f32.xlu0 %v5341_v16 }
0x1d54   :  { %v8000_v11 = vpop.eup %7999  ;;  %v5702_v24 = vmul.f32 1.442695, %v5699_v19  ;;  %v5917_v21 = vsub.f32 %v10905_v32, %v5913_v0  ;;  %v11002_v39 = vsel %vm5536_vm5, %v7998_v6, 0.0 }
0x1d55   :  { %8009 = vpow2.f32 %v5700_v15  ;;  %v5916_v45 = vpop.xlane.xlu0 %5915  ;;  %v5556_v46 = vsel %vm5067_vm11, %v11002_v39, 0.0  ;;  %v11008_v54 = vsel %vm5537_vm8, %v8000_v11, 0.0 }
0x1d56   :  { %8011 = vpow2.f32 %v5702_v24  ;;  %v5919_v43 = vsel %vm5907_vm10, %v5917_v21, 0.0  ;;  %v5918_v33 = vsub.f32 %v10920_v41, %v5916_v45  ;;  %5557 = vadd.xlane.f32.xlu1 %v5556_v46  ;;  %v5559_v4 = vsel %vm5067_vm11, %v11008_v54, 0.0 }
0x1d57   :  { %v8002_v37 = vpop.eup %8001  ;;  %v5921_v42 = vmul.f32 1.442695, %v5919_v43  ;;  %v5877_v35 = vpop.xlane.xlu1 %5876  ;;  %5560 = vadd.xlane.f32.xlu0 %v5559_v4 }
0x1d58   :  { %v8004_v59 = vpop.eup %8003  ;;  %v5920_v8 = vsel %vm5908_vm3, %v5918_v33, 0.0  ;;  %v5881_v20 = vsub.f32 %v10902_v26, %v5877_v35  ;;  %v11020_v7 = vsel %vm5500_vm6, %v8002_v37, 0.0 }
0x1d59   :  { %8013 = vpow2.f32 %v5921_v42  ;;  %v5923_v30 = vmul.f32 1.442695, %v5920_v8  ;;  %v5880_v9 = vpop.xlane.xlu0 %5879  ;;  %v5520_v40 = vsel %vm5067_vm11, %v11020_v7, 0.0  ;;  %v11026_v5 = vsel %vm5501_vm9, %v8004_v59, 0.0 }
0x1d5a   :  { %v5883_v3 = vsel %vm5871_vm2, %v5881_v20, 0.0  ;;  %v5882_v56 = vsub.f32 %v10917_v51, %v5880_v9  ;;  %5521 = vadd.xlane.f32.xlu1 %v5520_v40  ;;  %v5523_v28 = vsel %vm5067_vm11, %v11026_v5, 0.0 }
0x1d5b   :  { %v8006_v22 = vpop.eup %8005  ;;  %8015 = vpow2.f32 %v5923_v30  ;;  %v5885_v2 = vmul.f32 1.442695, %v5883_v3  ;;  %5524 = vadd.xlane.f32.xlu0 %v5523_v28  ;;  %v11085_v26 = vpop.permute.xlu1 %5572 }
0x1d5c   :  { %v8008_v1 = vpop.eup %8007  ;;  %v5884_v52 = vsel %vm5872_vm12, %v5882_v56, 0.0  ;;  %v11037_v27 = vsel %vm5722_vm13, %v8006_v22, 0.0 }
0x1d5d   :  { %8017 = vpow2.f32 %v5885_v2  ;;  %v5887_v55 = vmul.f32 1.442695, %v5884_v52  ;;  %v5742_v63 = vsel %vm5067_vm11, %v11037_v27, 0.0  ;;  %v11043_v53 = vsel %vm5723_vm7, %v8008_v1, 0.0 }
0x1d5e   :  { %5743 = vadd.xlane.f32.xlu1 %v5742_v63  ;;  %v5745_v36 = vsel %vm5067_vm11, %v11043_v53, 0.0  ;;  %vm11485_vm7 = vmmov 0  }
0x1d5f   :  { %v8010_v58 = vpop.eup %8009  ;;  %8019 = vpow2.f32 %v5887_v55  ;;  %5746 = vadd.xlane.f32.xlu0 %v5745_v36 }
0x1d60   :  { %v8012_v44 = vpop.eup %8011  ;;  %v11049_v13 = vsel %vm5686_vm14, %v8010_v58, 0.0 }
0x1d61   :  { %v5706_v31 = vsel %vm5067_vm11, %v11049_v13, 0.0  ;;  %v11055_v57 = vsel %vm11484_vm0, %v8012_v44, 0.0 }
0x1d62   :  { %5707 = vadd.xlane.f32.xlu1 %v5706_v31  ;;  %v5709_v38 = vsel %vm5067_vm11, %v11055_v57, 0.0 }
0x1d63   :  { %v8014_v60 = vpop.eup %8013  ;;  %5710 = vadd.xlane.f32.xlu0 %v5709_v38 }
0x1d64   :  { %v11061_v17 = vsel %vm5907_vm10, %v8014_v60, 0.0 }
0x1d65   :  { %v8016_v62 = vpop.eup %8015  ;;  %v5927_v61 = vsel %vm5067_vm11, %v11061_v17, 0.0 }
0x1d66   :  { %5928 = vadd.xlane.f32.xlu1 %v5927_v61  ;;  %v11067_v50 = vsel %vm5908_vm3, %v8016_v62, 0.0 }
0x1d67   :  { %v8018_v18 = vpop.eup %8017  ;;  %v5930_v29 = vsel %vm5067_vm11, %v11067_v50, 0.0 }
0x1d68   :  { %5931 = vadd.xlane.f32.xlu0 %v5930_v29  ;;  %v11073_v16 = vsel %vm5871_vm2, %v8018_v18, 0.0 }
0x1d69   :  { %v8020_v32 = vpop.eup %8019  ;;  %v5891_v6 = vsel %vm5067_vm11, %v11073_v16, 0.0 }
0x1d6a   :  { %5892 = vadd.xlane.f32.xlu1 %v5891_v6  ;;  %v11079_v15 = vsel %vm5872_vm12, %v8020_v32, 0.0 }
0x1d6b   :  { %v5894_v41 = vsel %vm5067_vm11, %v11079_v15, 0.0 }
0x1d6c   :  { %5895 = vadd.xlane.f32.xlu0 %v5894_v41 }
0x1d7b   :  { %5942 = vrot.lane.b32.xlu1 %v10757_v47, %s8090_s6 }
0x1d82   :  { %5757 = vrot.lane.b32.xlu0 %v10757_v47, %s8091_s26 }
0x1ddb   :  { %v5376_v19 = vpop.xlane.xlu1 %5375 }
0x1ddc   :  { %vm5380_vm2 = vcmp.gt.f32.partialorder %v5376_v19, 0.0  ;;  %v5379_v0 = vpop.xlane.xlu0 %5378 }
0x1ddd   :  { %v5382_v11 = vsel %vm5380_vm2, %v5376_v19, 1.0  ;;  %vm5381_vm10 = vcmp.gt.f32.partialorder %v5379_v0, 0.0 }
0x1dde   :  { %8021 = vrcp.f32 %v5382_v11  ;;  %v5383_v51 = vsel %vm5381_vm10, %v5379_v0, 1.0 }
0x1ddf   :  { %8023 = vrcp.f32 %v5383_v51  ;;  %v5340_v24 = vpop.xlane.xlu1 %5339 }
0x1de0   :  { %vm5344_vm1 = vcmp.gt.f32.partialorder %v5340_v24, 0.0  ;;  %v5343_v21 = vpop.xlane.xlu0 %5342 }
0x1de1   :  { %v5346_v45 = vsel %vm5344_vm1, %v5340_v24, 1.0  ;;  %vm5345_vm4 = vcmp.gt.f32.partialorder %v5343_v21, 0.0  ;;  %vm11486_vm1 = vcmask 261120  }
0x1de2   :  { %8025 = vrcp.f32 %v5346_v45  ;;  %v5347_v46 = vsel %vm5345_vm4, %v5343_v21, 1.0  ;;  %vm6090_vm4 = vcmask 64512  }
0x1de3   :  { %8027 = vrcp.f32 %v5347_v46  ;;  %v5558_v43 = vpop.xlane.xlu1 %5557 }
0x1de4   :  { %vm5562_vm5 = vcmp.gt.f32.partialorder %v5558_v43, 0.0  ;;  %v5561_v47 = vpop.xlane.xlu0 %5560 }
0x1de5   :  { %v5564_v33 = vsel %vm5562_vm5, %v5558_v43, 1.0  ;;  %vm5563_vm6 = vcmp.gt.f32.partialorder %v5561_v47, 0.0  ;;  %vm6095_vm5 = vcmask 195584  }
0x1de6   :  { %8029 = vrcp.f32 %v5564_v33  ;;  %v5565_v4 = vsel %vm5563_vm6, %v5561_v47, 1.0  ;;  %vm6100_vm6 = vcmask 326656  }
0x1de7   :  { %8031 = vrcp.f32 %v5565_v4  ;;  %v5522_v37 = vpop.xlane.xlu1 %5521 }
0x1de8   :  { %v8022_v42 = vpop.eup %8021  ;;  %vm5526_vm8 = vcmp.gt.f32.partialorder %v5522_v37, 0.0  ;;  %v5525_v35 = vpop.xlane.xlu0 %5524 }
0x1de9   :  { %v8024_v59 = vpop.eup %8023  ;;  %v5528_v8 = vsel %vm5526_vm8, %v5522_v37, 1.0  ;;  %vm5527_vm9 = vcmp.gt.f32.partialorder %v5525_v35, 0.0  ;;  %v5386_v20 = vmul.f32 %v8022_v42, %v10966_v14  ;;  %vm6103_vm8 = vcmask 392192  }
0x1dea   :  { %v5387_v30 = vmul.f32 %v8024_v59, %v10973_v10  ;;  %8033 = vrcp.f32 %v5528_v8  ;;  %v5529_v9 = vsel %vm5527_vm9, %v5525_v35, 1.0  ;;  %vm6106_vm9 = vcmask 457728  }
0x1deb   :  { %8035 = vrcp.f32 %v5529_v9  ;;  %v5744_v40 = vpop.xlane.xlu1 %5743  ;;  %v6185_v9 = vld [vmem:[%s11289_s13 + $0x10] sm:$0xff] }
0x1dec   :  { %v8026_v3 = vpop.eup %8025  ;;  %vm5748_vm13 = vcmp.gt.f32.partialorder %v5744_v40, 0.0  ;;  %v5747_v56 = vpop.xlane.xlu0 %5746  ;;  %v5433_v28 = vpack.c.bf16 %v5387_v30, %v5386_v20 }
0x1ded   :  { %v8028_v22 = vpop.eup %8027  ;;  %v5750_v2 = vsel %vm5748_vm13, %v5744_v40, 1.0  ;;  %vm5749_vm14 = vcmp.gt.f32.partialorder %v5747_v56, 0.0  ;;  %v5350_v1 = vmul.f32 %v8026_v3, %v10984_v48  ;;  %v6186_v40 = vld [vmem:[%s11289_s13 + $0x18] sm:$0xff]  ;;  %vm11487_vm13 = vmmov %vm11486_vm1 }
0x1dee   :  { %v5351_v52 = vmul.f32 %v8028_v22, %v10991_v49  ;;  %v5751_v55 = vsel %vm5749_vm14, %v5747_v56, 1.0  ;;  %6817 = vmatmul.mubr.msk.bf16.vlgmr.msra.gmra.mrb[36].mxu0 %vm5067_vm11, %v5433_v28  ;;  %v6188_v3 = vpack.c.bf16 %v6186_v40, %v6185_v9  ;;  %vm11488_vm14 = vmmov %vm11486_vm1 }
0x1def   :  { %8037 = vrcp.f32 %v5751_v55  ;;  %6827 = vmatpush3.bf16.msra.mxu0 %v11085_v26  ;;  %v5708_v14 = vpop.xlane.xlu1 %5707  ;;  %6828 = vmatprep.mubr.msk.bf16.mxu0 %vm11485_vm7, %v11379_v34 }
0x1df0   :  { %v8030_v10 = vpop.eup %8029  ;;  %8039 = vrcp.f32 %v5750_v2  ;;  %vm5712_vm12 = vcmp.gt.f32.partialorder %v5708_v14, 0.0  ;;  %v5711_v63 = vpop.xlane.xlu0 %5710  ;;  %v5388_v36 = vpack.c.bf16 %v5351_v52, %v5350_v1  ;;  %6838 = vmatprep.subr.bf16.mxu0 %v11379_v34 }
0x1df1   :  { %v8032_v48 = vpop.eup %8031  ;;  %v5714_v58 = vsel %vm5712_vm12, %v5708_v14, 1.0  ;;  %vm5713_vm3 = vcmp.gt.f32.partialorder %v5711_v63, 0.0  ;;  %v5568_v49 = vmul.f32 %v8030_v10, %v11002_v39  ;;  %vm11489_vm12 = vmmov %vm11486_vm1 }
0x1df2   :  { %v5569_v44 = vmul.f32 %v8032_v48, %v11008_v54  ;;  %8041 = vrcp.f32 %v5714_v58  ;;  %v5715_v31 = vsel %vm5713_vm3, %v5711_v63, 1.0  ;;  %6811 = vmatmul.mubr.msk.bf16.vlgmr.msra.gmra.mrb[32].mxu1 %vm5067_vm11, %v5388_v36  ;;  %vm11491_vm3 = vmmov %vm11486_vm1 }
0x1df3   :  { %8043 = vrcp.f32 %v5715_v31  ;;  %6821 = vmatpush3.bf16.msra.mxu1 %v11085_v26  ;;  %v5929_v38 = vpop.xlane.xlu1 %5928  ;;  %6822 = vmatprep.mubr.msk.bf16.mxu1 %vm11485_vm7, %v11379_v34 }
0x1df4   :  { %v8034_v60 = vpop.eup %8033  ;;  %vm5933_vm15 = vcmp.gt.f32.partialorder %v5929_v38, 0.0  ;;  %v5619_v62 = vpack.c.bf16 %v5569_v44, %v5568_v49  ;;  %6832 = vmatprep.subr.bf16.mxu1 %v11379_v34  ;;  %v6110_v49 = vld [vmem:[%s11286_s10] sm:$0xff]  ;;  %v6111_v44 = vld [vmem:[%s11286_s10 + $0x8] sm:$0xff] }
0x1df5   :  { %v8036_v61 = vpop.eup %8035  ;;  %v5935_v39 = vsel %vm5933_vm15, %v5929_v38, 1.0  ;;  %v5932_v18 = vpop.xlane.xlu0 %5931  ;;  %v5532_v54 = vmul.f32 %v8034_v60, %v11020_v7  ;;  %v6118_v38 = vpack.c.bf16 %v6111_v44, %v6110_v49  ;;  %vm11492_vm15 = vmmov %vm11486_vm1 }
0x1df6   :  { %v5533_v29 = vmul.f32 %v8036_v61, %v11026_v5  ;;  %vm5934_vm0 = vcmp.gt.f32.partialorder %v5932_v18, 0.0  ;;  %6829 = vmatmul.mubr.msk.bf16.vlgmr.msra.gmra.mrb[40].mxu0 %vm5067_vm11, %v5619_v62  ;;  %8045 = vrcp.f32 %v5935_v39  ;;  %v6112_v61 = vld [vmem:[%s11286_s10 + $0x10] sm:$0xff]  ;;  %v6113_v39 = vld [vmem:[%s11286_s10 + $0x18] sm:$0xff] }
0x1df7   :  { %v5936_v32 = vsel %vm5934_vm0, %v5932_v18, 1.0  ;;  %v5893_v6 = vpop.xlane.xlu1 %5892  ;;  %6840 = vmatprep.mubr.msk.bf16.mxu0 %vm11485_vm7, %v11379_v34  ;;  %v6119_v18 = vpack.c.bf16 %v6113_v39, %v6112_v61  ;;  %vm6420_vm0 = vcmask 122880  }
0x1df8   :  { %8047 = vrcp.f32 %v5936_v32  ;;  %vm5897_vm2 = vcmp.gt.f32.partialorder %v5893_v6, 0.0  ;;  %v5570_v41 = vpack.c.bf16 %v5533_v29, %v5532_v54 }
0x1df9   :  { %v8038_v26 = vpop.eup %8037  ;;  %v5899_v19 = vsel %vm5897_vm2, %v5893_v6, 1.0  ;;  %v5896_v0 = vpop.xlane.xlu0 %5895 }
0x1dfa   :  { %v8040_v11 = vpop.eup %8039  ;;  %8049 = vrcp.f32 %v5899_v19  ;;  %vm5898_vm10 = vcmp.gt.f32.partialorder %v5896_v0, 0.0  ;;  %6823 = vmatmul.mubr.msk.bf16.vlgmr.msra.gmra.mrb[36].mxu1 %vm5067_vm11, %v5570_v41  ;;  %v5755_v7 = vmul.f32 %v8038_v26, %v11043_v53 }
0x1dfb   :  { %v5900_v5 = vsel %vm5898_vm10, %v5896_v0, 1.0  ;;  %6834 = vmatprep.mubr.msk.bf16.mxu1 %vm11485_vm7, %v11379_v34  ;;  %v5754_v21 = vmul.f32 %v8040_v11, %v11037_v27  ;;  %v5943_v4 = vpop.permute.xlu1 %5942  ;;  %v6114_v11 = vld [vmem:[%s11286_s10 + $0x20] sm:$0xff] }
0x1dfc   :  { %v8042_v51 = vpop.eup %8041  ;;  %8051 = vrcp.f32 %v5900_v5 }
0x1dfd   :  { %v8044_v24 = vpop.eup %8043  ;;  %v5758_v45 = vpop.permute.xlu0 %5757  ;;  %v5718_v46 = vmul.f32 %v8042_v51, %v11049_v13  ;;  %v5804_v47 = vpack.c.bf16 %v5755_v7, %v5754_v21  ;;  %v6183_v13 = vld [vmem:[%s11289_s13] sm:$0xff]  ;;  %v6115_v7 = vld [vmem:[%s11286_s10 + $0x28] sm:$0xff]  ;;  %v6116_v21 = vld [vmem:[%s11286_s10 + $0x30] sm:$0xff] }
0x1dfe   :  { %v5719_v43 = vmul.f32 %v8044_v24, %v11055_v57  ;;  %6833 = vmatpush3.bf16.msra.mxu1 %v5758_v45  ;;  %6839 = vmatpush3.bf16.msra.mxu0 %v5758_v45  ;;  %v6184_v57 = vld [vmem:[%s11289_s13 + $0x8] sm:$0xff]  ;;  %s8092_s13 = smov 8   ;;  %v6120_v24 = vpack.c.bf16 %v6115_v7, %v6114_v11  ;;  %v6117_v45 = vld [vmem:[%s11286_s10 + $0x38] sm:$0xff]  ;;  %s8097_s10 = smov 56   ;;  %v6244_v11 = vld [vmem:[%s11291_s15 + $0x10] sm:$0xff] }
0x1dff   :  { %6844 = vmatprep.subr.bf16.mxu1 %v11379_v34  ;;  %6850 = vmatprep.subr.bf16.mxu0 %v11379_v34  ;;  %v6187_v59 = vpack.c.bf16 %v6184_v57, %v6183_v13 }
0x1e00   :  { %v5756_v53 = vpack.c.bf16 %v5719_v43, %v5718_v46  ;;  %v8046_v33 = vpop.eup %8045  ;;  %v6121_v43 = vpack.c.bf16 %v6117_v45, %v6116_v21  ;;  %v6607_v45 = vld [vmem:[%s11288_s12] ss:$0 sm:$0xff] }
0x1e01   :  { %6841 = vmatmul.mubr.msk.bf16.vlgmr.msra.gmra.mrb[44].mxu0 %vm5067_vm11, %v5804_v47 }
0x1e02   :  { %v8048_v37 = vpop.eup %8047  ;;  %6835 = vmatmul.mubr.msk.bf16.vlgmr.msra.gmra.mrb[40].mxu1 %vm5067_vm11, %v5756_v53  ;;  %6851 = vmatpush3.bf16.msra.mxu0 %v5943_v4 }
0x1e03   :  { %v5940_v27 = vmul.f32 %v8048_v37, %v11067_v50  ;;  %6845 = vmatpush3.bf16.msra.mxu1 %v5943_v4  ;;  %6852 = vmatprep.mubr.msk.bf16.mxu0 %vm11485_vm7, %v11379_v34  ;;  %v5939_v50 = vmul.f32 %v8046_v33, %v11061_v17  ;;  %v6364_v4 = vld [vmem:[#allocation2] sm:$0x1] }
0x1e04   :  { %v8050_v42 = vpop.eup %8049  ;;  %6868 = vmatprep.subr.bf16.mxu0 %v11379_v34  ;;  %6846 = vmatprep.mubr.msk.bf16.mxu1 %vm11485_vm7, %v11379_v34 }
0x1e05   :  { %6856 = vmatprep.subr.bf16.mxu1 %v11379_v34  ;;  %v5903_v8 = vmul.f32 %v8050_v42, %v11073_v16  ;;  %v5989_v30 = vpack.c.bf16 %v5940_v27, %v5939_v50 }
0x1e06   :  { %v8052_v35 = vpop.eup %8051 }
0x1e07   :  { %v5904_v20 = vmul.f32 %v8052_v35, %v11079_v15 }
0x1e09   :  { %6853 = vmatmul.mubr.msk.bf16.vlgmr.msra.gmra.mrb[48].mxu0 %vm5067_vm11, %v5989_v30  ;;  %v5941_v17 = vpack.c.bf16 %v5904_v20, %v5903_v8 }
0x1e0a   :  { %6869 = vmatpush3.bf16.msra.mxu0 %v6187_v59  ;;  %6872 = vmatprep.mubr.msk.bf16.mxu0 %vm11485_vm7, %v11379_v34 }
0x1e0b   :  { %6847 = vmatmul.mubr.msk.bf16.vlgmr.msra.gmra.mrb[44].mxu1 %vm5067_vm11, %v5941_v17  ;;  %6870 = vmatprep.subr.bf16.mxu0 %v11379_v34 }
0x1e0c   :  { %6864 = vmatprep.mubr.msk.bf16.mxu1 %vm11485_vm7, %v11379_v34  ;;  %6857 = vmatpush3.bf16.msra.mxu1 %v6118_v38 }
0x1e0d   :  { %6858 = vmatprep.subr.bf16.mxu1 %v11379_v34 }
0x1e0e   :  { %6871 = vmatpush3.bf16.msra.mxu0 %v6188_v3 }
0x1e0f   :  { %6876 = vmatprep.subr.bf16.mxu0 %v11379_v34 }
0x1e10   :  { %6859 = vmatpush3.bf16.msra.mxu1 %v6119_v18 }
0x1e11   :  { %6873 = vmatmul.mubr.msk.bf16.vlgmr.msra.gmra.mrb[52].mxu0 %vm11486_vm1, %v10740_v23  ;;  %6860 = vmatprep.subr.bf16.mxu1 %v11379_v34 }
0x1e12   :  { %6880 = vmatprep.mubr.msk.bf16.mxu0 %vm11485_vm7, %v11379_v34 }
0x1e14   :  { %6861 = vmatpush3.bf16.msra.mxu1 %v6120_v24  ;;  %v6605_v24 = vld [vmem:[%s11287_s11] ss:$0 sm:$0xff] }
0x1e15   :  { %6862 = vmatprep.subr.bf16.mxu1 %v11379_v34 }
0x1e18   :  { %6863 = vmatpush3.bf16.msra.mxu1 %v6121_v43 }
0x1e19   :  { %6884 = vmatprep.subr.bf16.mxu1 %v11379_v34 }
0x1ec1   :  { %v11153_v16 = vpop.f32.mrb[36].mxu0 }
0x1ec2   :  { %v6818_v15 = vpop.f32.mrb[37].mxu0 }
0x1ec3   :  { %v11155_v56 = vpop.f32.mrb[38].mxu0 }
0x1ec4   :  { %v6819_v28 = vpop.f32.mrb[39].mxu0 }
0x1ec5   :  { %v5426_v22 = vpop.f32.mrb[32].mxu1 }
0x1ec6   :  { %v6812_v2 = vpop.f32.mrb[33].mxu1 }
0x1ec7   :  { %v5429_v1 = vpop.f32.mrb[34].mxu1 }
0x1ec8   :  { %v6922_v52 = vpack.i.bf16 %v5429_v1, %v5426_v22  ;;  %v6813_v55 = vpop.f32.mrb[35].mxu1 }
0x1ec9   :  { %v5657_v14 = vpop.f32.mrb[40].mxu0 }
0x1eca   :  { %v6830_v10 = vpop.f32.mrb[41].mxu0  ;;  %6923 = vrot.lane.b32.xlu0 %v6922_v52, %s8085_s3 }
0x1ecb   :  { %v5660_v63 = vpop.f32.mrb[42].mxu0 }
0x1ecc   :  { %v6927_v23 = vpack.i.bf16 %v5660_v63, %v5657_v14  ;;  %v6831_v36 = vpop.f32.mrb[43].mxu0 }
0x1ecd   :  { %v5612_v48 = vpop.f32.mrb[36].mxu1 }
0x1ece   :  { %6928 = vrot.lane.b32.xlu1 %v6927_v23, %s8092_s13  ;;  %v6824_v58 = vpop.f32.mrb[37].mxu1 }
0x1ecf   :  { %v5615_v31 = vpop.f32.mrb[38].mxu1 }
0x1ed0   :  { %v6932_v60 = vpack.i.bf16 %v5615_v31, %v5612_v48  ;;  %v6825_v62 = vpop.f32.mrb[39].mxu1 }
0x1ed2   :  { %6933 = vrot.lane.b32.xlu1 %v6932_v60, %s8093_s2 }
0x1ed4   :  { %v5842_v54 = vpop.f32.mrb[44].mxu0 }
0x1ed5   :  { %v5797_v29 = vpop.f32.mrb[40].mxu1  ;;  %v6842_v32 = vpop.f32.mrb[45].mxu0 }
0x1ed6   :  { %v6836_v6 = vpop.f32.mrb[41].mxu1  ;;  %v5845_v41 = vpop.f32.mrb[46].mxu0 }
0x1ed7   :  { %v6937_v26 = vpack.i.bf16 %v5845_v41, %v5842_v54  ;;  %v5800_v19 = vpop.f32.mrb[42].mxu1  ;;  %v6843_v0 = vpop.f32.mrb[47].mxu0 }
0x1ed8   :  { %v6942_v5 = vpack.i.bf16 %v5800_v19, %v5797_v29  ;;  %v6837_v51 = vpop.f32.mrb[43].mxu1  ;;  %v6242_v19 = vld [vmem:[%s11291_s15] sm:$0xff]  ;;  %v6243_v0 = vld [vmem:[%s11291_s15 + $0x8] sm:$0xff] }
0x1ed9   :  { %6938 = vrot.lane.b32.xlu0 %v6937_v26, %s8094_s22  ;;  %v6246_v7 = vpack.c.bf16 %v6243_v0, %v6242_v19 }
0x1edb   :  { %6877 = vmatpush3.bf16.msra.mxu0 %v6246_v7 }
0x1edc   :  { %v6027_v46 = vpop.f32.mrb[48].mxu0  ;;  %6878 = vmatprep.subr.bf16.mxu0 %v11379_v34 }
0x1edd   :  { %v6854_v47 = vpop.f32.mrb[49].mxu0  ;;  %6943 = vrot.lane.b32.xlu0 %v6942_v5, %s8095_s7  ;;  %v6245_v5 = vld [vmem:[%s11291_s15 + $0x18] sm:$0xff] }
0x1ede   :  { %v5982_v53 = vpop.f32.mrb[44].mxu1  ;;  %v6030_v33 = vpop.f32.mrb[50].mxu0  ;;  %v6247_v51 = vpack.c.bf16 %v6245_v5, %v6244_v11 }
0x1edf   :  { %v6947_v37 = vpack.i.bf16 %v6030_v33, %v6027_v46  ;;  %v6848_v27 = vpop.f32.mrb[45].mxu1  ;;  %v6855_v13 = vpop.f32.mrb[51].mxu0 }
0x1ee0   :  { %v5985_v57 = vpop.f32.mrb[46].mxu1  ;;  %6879 = vmatpush3.bf16.msra.mxu0 %v6247_v51  ;;  %v6609_v13 = vld [vmem:[%s11290_s14] ss:$0 sm:$0xff] }
0x1ee1   :  { %v6952_v42 = vpack.i.bf16 %v5985_v57, %v5982_v53  ;;  %6948 = vrot.lane.b32.xlu1 %v6947_v37, %s8096_s8  ;;  %6367 = vperm.xlu0 %6918, %v6364_v4   ;;  %v6849_v50 = vpop.f32.mrb[47].mxu1 }
0x1ee2   :  { %6892 = vmatprep.subr.bf16.mxu0 %v11379_v34 }
0x1ee4   :  { %v11186_v35 = vpop.f32.mrb[52].mxu0 }
0x1ee5   :  { %v6874_v59 = vpop.f32.mrb[53].mxu0  ;;  %6953 = vrot.lane.b32.xlu1 %v6952_v42, %s8097_s10 }
0x1ee6   :  { %v11188_v8 = vpop.f32.mrb[54].mxu0 }
0x1ee7   :  { %v6875_v20 = vpop.f32.mrb[55].mxu0 }
0x1ee8   :  { %v6302_v20 = vld [vmem:[%s11293_s17] sm:$0xff] }
0x1f3c   :  { %v6924_v9 = vpop.permute.xlu0 %6923 }
0x1f3d   :  { %v6926_v63 = vunpack.i.h.bf16 %v6924_v9  ;;  %v6925_v23 = vunpack.i.l.bf16 %v6924_v9  ;;  %v6305_v9 = vld [vmem:[%s11293_s17 + $0x18] sm:$0xff] }
0x1f40   :  { %v6929_v30 = vpop.permute.xlu1 %6928 }
0x1f41   :  { %v6931_v3 = vunpack.i.h.bf16 %v6929_v30  ;;  %v6930_v15 = vunpack.i.l.bf16 %v6929_v30 }
0x1f43   :  { %v6092_v1 = vsel %vm6090_vm4, %v11155_v56, %v6931_v3  ;;  %v6091_v52 = vsel %vm6090_vm4, %v11153_v16, %v6930_v15 }
0x1f44   :  { %v6934_v17 = vpop.permute.xlu1 %6933 }
0x1f45   :  { %v6936_v58 = vunpack.i.h.bf16 %v6934_v17  ;;  %v6935_v49 = vunpack.i.l.bf16 %v6934_v17  ;;  %v6610_v17 = vld [vmem:[%s11292_s16] ss:$0 sm:$0xff] }
0x1f4b   :  { %v6939_v40 = vpop.permute.xlu0 %6938 }
0x1f4c   :  { %v6941_v28 = vunpack.i.h.bf16 %v6939_v40  ;;  %v6940_v22 = vunpack.i.l.bf16 %v6939_v40 }
0x1f4e   :  { %v6094_v36 = vsel %vm5067_vm11, %v6092_v1, %v6941_v28  ;;  %v6093_v48 = vsel %vm5067_vm11, %v6091_v52, %v6940_v22  ;;  %vm6129_vm11 = vcmask 523264  }
0x1f4f   :  { %v6944_v55 = vpop.permute.xlu0 %6943 }
0x1f50   :  { %v6946_v38 = vunpack.i.h.bf16 %v6944_v55  ;;  %v6945_v60 = vunpack.i.l.bf16 %v6944_v55 }
0x1f53   :  { %v6949_v2 = vpop.permute.xlu1 %6948 }
0x1f54   :  { %v6951_v14 = vunpack.i.h.bf16 %v6949_v2  ;;  %v6950_v10 = vunpack.i.l.bf16 %v6949_v2 }
0x1f56   :  { %v6097_v44 = vsel %vm6095_vm5, %v6094_v36, %v6951_v14  ;;  %v6096_v31 = vsel %vm6095_vm5, %v6093_v48, %v6950_v10 }
0x1f57   :  { %v6099_v56 = vsel %vm11487_vm13, %v6097_v44, %v6926_v63  ;;  %v6098_v16 = vsel %vm11488_vm14, %v6096_v31, %v6925_v23  ;;  %v6954_v62 = vpop.permute.xlu1 %6953 }
0x1f58   :  { %v6101_v61 = vsel %vm6100_vm6, %v6098_v16, %v6935_v49  ;;  %v6102_v39 = vsel %vm6100_vm6, %v6099_v56, %v6936_v58  ;;  %v6956_v18 = vunpack.i.h.bf16 %v6954_v62  ;;  %v6955_v54 = vunpack.i.l.bf16 %v6954_v62 }
0x1f59   :  { %v6104_v29 = vsel %vm6103_vm8, %v6101_v61, %v6945_v60  ;;  %v6105_v32 = vsel %vm6103_vm8, %v6102_v39, %v6946_v38  ;;  %v6361_v60 = vld [vmem:[%s11295_s19] sm:$0x1] }
0x1f5a   :  { %v6108_v6 = vsel %vm6106_vm9, %v6105_v32, %v6956_v18  ;;  %v6107_v41 = vsel %vm6106_vm9, %v6104_v29, %v6955_v54  ;;  %v6362_v56 = vpack.c.bf16 %v6361_v60, %v6361_v60 }
0x1f5b   :  { %v6109_v26 = vpack.c.bf16 %v6108_v6, %v6107_v41 }
0x1f5d   :  { %6865 = vmatmul.mubr.msk.bf16.vlgmr.msra.gmra.mrb[48].mxu1 %vm6129_vm11, %v6109_v26 }
0x1f5e   :  { %6888 = vmatprep.mubr.msk.bf16.mxu1 %vm11485_vm7, %v11379_v34 }
0x1f60   :  { %v6368_v16 = vpop.permute.xlu0 %6367 }
0x1f61   :  { %v6373_v62 = vrot.slane %v6368_v16, %v5296_v25 }
0x2030   :  { %v6167_v21 = vpop.f32.mrb[48].mxu1 }
0x2031   :  { %v6168_v46 = vadd.f32 %v6605_v24, %v6167_v21  ;;  %v6866_v43 = vpop.f32.mrb[49].mxu1 }
0x2032   :  { %v6170_v47 = vpop.f32.mrb[50].mxu1 }
0x2033   :  { %v6181_v53 = vadd.f32 %v6607_v45, %v6168_v46  ;;  %v6171_v33 = vadd.f32 %v6605_v24, %v6170_v47  ;;  %v6867_v4 = vpop.f32.mrb[51].mxu1 }
0x2035   :  { %v6230_v37 = vadd.f32 %v11186_v35, %v6181_v53  ;;  %v6182_v27 = vadd.f32 %v6607_v45, %v6171_v33  ;;  %v6303_v35 = vld [vmem:[%s11293_s17 + $0x8] sm:$0xff] }
0x2036   :  { %v6306_v30 = vpack.c.bf16 %v6303_v35, %v6302_v20 }
0x2037   :  { %v6231_v57 = vadd.f32 %v11188_v8, %v6182_v27  ;;  %v6239_v42 = vadd.f32 %v6609_v13, %v6230_v37  ;;  %v6304_v8 = vld [vmem:[%s11293_s17 + $0x10] sm:$0xff] }
0x2038   :  { %6885 = vmatpush3.bf16.msra.mxu1 %v6306_v30  ;;  %v6307_v40 = vpack.c.bf16 %v6305_v9, %v6304_v8 }
0x2039   :  { %v6240_v50 = vadd.f32 %v6609_v13, %v6231_v57  ;;  %6886 = vmatprep.subr.bf16.mxu1 %v11379_v34 }
0x203b   :  { %v6241_v59 = vpack.c.bf16 %v6240_v50, %v6239_v42 }
0x203c   :  { %6887 = vmatpush3.bf16.msra.mxu1 %v6307_v40 }
0x203d   :  { %6881 = vmatmul.mubr.msk.bf16.vlgmr.msra.gmra.mrb[56].mxu0 %vm11489_vm12, %v6241_v59 }
0x203e   :  { %6894 = vmatprep.mubr.msk.bf16.mxu0 %vm11485_vm7, %v11379_v34  ;;  %vm11490_vm7 = vmmov %vm11486_vm1  ;;  %v6612_v34 = vld [vmem:[%s11294_s18] ss:$0 sm:$0xff]  ;;  %s8098_s18 = smov [#allocation3]  }
0x203f   :  { %s6439_s19 = sshll.u32 %s8098_s18, 4  ;;  %s6440_s19 = int_to_ptr.vmem [resolvable:$true] %s6439_s19 }
0x2040   :  { %s8057_s13 = scalar_lea.vmem %s6440_s19, 16  ;;  %s8061_s30 = scalar_lea.vmem %s6440_s19, 32 }
0x2041   :  { %p8058_p0 = scmp.ne.s32.totalorder %s6440_s19, %s8057_s13  ;;  %p8062_p1 = scmp.lt.s32.totalorder %s6440_s19, %s6440_s19 }
0x2042   :  { %p8063_p2 = scmp.lt.s32.totalorder %s8061_s30, %s8057_s13 }
0x2044   :  { %p8064_p3 = por %p8063_p2, %p8062_p1 }
0x2046   :  { %p8065_p4 = pnand %p8064_p3, %p8058_p0 }
0x2110   :  { %v6292_v3 = vpop.f32.mrb[56].mxu0 }
0x2111   :  { %v6293_v15 = vadd.f32 %v6610_v17, %v6292_v3  ;;  %v6882_v28 = vpop.f32.mrb[57].mxu0 }
0x2112   :  { %v6295_v22 = vpop.f32.mrb[58].mxu0 }
0x2113   :  { %v6296_v2 = vadd.f32 %v6610_v17, %v6295_v22  ;;  %v6883_v1 = vpop.f32.mrb[59].mxu0  ;;  %v6299_v52 = vmax.f32 %v6293_v15, 0.0 }
0x2115   :  { %v6300_v55 = vmax.f32 %v6296_v2, 0.0 }
0x2117   :  { %v6301_v14 = vpack.c.bf16 %v6300_v55, %v6299_v52 }
0x2119   :  { %6889 = vmatmul.mubr.msk.bf16.vlgmr.msra.gmra.mrb[52].mxu1 %vm11490_vm7, %v6301_v14 }
0x21ec   :  { %v6352_v10 = vpop.f32.mrb[52].mxu1 }
0x21ed   :  { %v6353_v63 = vadd.f32 %v6612_v34, %v6352_v10  ;;  %v6890_v23 = vpop.f32.mrb[53].mxu1 }
0x21ee   :  { %v6355_v36 = vpop.f32.mrb[54].mxu1 }
0x21ef   :  { %v6356_v48 = vadd.f32 %v6612_v34, %v6355_v36  ;;  %v6891_v58 = vpop.f32.mrb[55].mxu1  ;;  %v6359_v49 = vmax.f32 %v6353_v63, 0.0 }
0x21f1   :  { %v6360_v44 = vmax.f32 %v6356_v48, 0.0 }
0x21f3   :  { %v6363_v31 = vpack.c.bf16 %v6360_v44, %v6359_v49 }
0x21f5   :  { %v6378_v38 = vsel %vm11491_vm3, %v6363_v31, 0 }
0x21f6   :  { %6893 = vmatpush3.bf16.xpose.msra.mxu0 %v6378_v38 }
0x21fd   :  { %6895 = vmatmul.mubr.msk.bf16.vlgmr.msra.gmra.mrb[60].mxu0 %vm11492_vm15, %v6362_v56 }
0x22d0   :  { %v6414_v61 = vpop.f32.mrb[60].mxu0 }
0x22d1   :  { %v6415_v39 = vadd.f32 %v6414_v61, %v6373_v62  ;;  %v6896_v18 = vpop.f32.mrb[61].mxu0 }
0x22d2   :  { %v6417_v54 = vpop.f32.mrb[62].mxu0 }
0x22d3   :  { %v6421_v29 = vsel %vm6420_vm0, %v6415_v39, -inf  ;;  %v6897_v32 = vpop.f32.mrb[63].mxu0 }
0x22d4   :  { %6422 = vmax.xlane.f32.xlu1 %v6421_v29 }
0x2361   :  { %v6423_v6 = vpop.xlane.xlu1 %6422 }
0x2362   :  { %v6424_v41 = vsub.f32 %v6415_v39, %v6423_v6 }
0x2364   :  { %v6425_v26 = vmul.f32 1.442695, %v6424_v41 }
0x2366   :  { %8053 = vpow2.f32 %v6425_v26 }
0x2370   :  { %v8054_v19 = vpop.eup %8053 }
0x2371   :  { %v6427_v0 = vsel %vm6420_vm0, %v8054_v19, 0.0 }
0x2372   :  { %6428 = vadd.xlane.f32.xlu0 %v6427_v0 }
0x23ff   :  { %v6429_v11 = vpop.xlane.xlu0 %6428 }
0x2400   :  { %8055 = vrcp.f32 %v6429_v11 }
0x240a   :  { %v8056_v12 = vpop.eup %8055 }
0x240b   :  { %v6431_v25 = vmul.f32 %v8056_v12, %v8054_v19 }
0x240d   :  { %6432 = vst.msk [vmem:[#allocation3] sm:$0x1] %vm6420_vm0, %v6431_v25 }
0x240e   :  { %8068 = shalt.err (!%p8065_p4)
}
0x240f   :  { %s8069_s0 = scalar_lea.hbm %s11297_s21, 16 }
0x2410   :  { %p8070_p5 = scmp.ne.s32.totalorder %s11297_s21, %s8069_s0  ;;  %p8073_p6 = scmp.lt.u32.totalorder %s8069_s0, %s11297_s21 }
0x2412   :  { %p8075_p7 = pnand %p8073_p6, %p8070_p5 }
0x2414   :  { %8078 = shalt.err (!%p8075_p7)
}
0x2415   :  { %6442 = dma.vmem_to_hbm [thread:$0]  %s6440_s19, 16, %s11297_s21, [#allocation4]  }
0x2416   :  { %8079 = dma.done.wait [#allocation4], 16  }
0x2417   :  { %8080 = vsyncadd [#allocation4], 4294967280 }
0x2418   :  { %6446 = vsyncpa [#allocation4], 1 }

</bundles_post_ra>
